<compile_context>
chip_gen: v7x
topology: tpu7x:2x2x1
jax: 0.10.0
libtpu: 0.0.40
codegen_flags: <defaults>
</compile_context>

<pallas_src>
import functools

import jax
import jax.numpy as jnp
from jax.experimental import pallas as pl
from jax.experimental.pallas import tpu as pltpu

_VMEM_SPEC = pl.BlockSpec(memory_space=pltpu.MemorySpace.VMEM)
_BN_EPS = 1e-5


# ---------------------------------------------------------------------------
# Pallas kernels
# ---------------------------------------------------------------------------

def _bn_relu(y, g, b):
    """Single-pass folded training-mode BatchNorm + ReLU on an (M, C) f32 slab."""
    m = jnp.mean(y, axis=0, keepdims=True)
    var = jnp.maximum(jnp.mean(y * y, axis=0, keepdims=True) - m * m, 0.0)
    scale = g * jax.lax.rsqrt(var + _BN_EPS)
    shift = b - m * scale
    return jnp.maximum(y * scale + shift, 0.0)


def _conv_bn_relu_kernel(p_ref, w_ref, g_ref, b_ref, o_ref):
    """One conv as an MXU matmul (bf16 operands, f32 acc) + folded BN + ReLU."""
    y = jnp.dot(p_ref[...], w_ref[...], preferred_element_type=jnp.float32)
    o_ref[...] = _bn_relu(y, g_ref[...], b_ref[...]).astype(o_ref.dtype)


def _tail_kernel(*refs):
    """layer1/block1 .. layer4 fully fused.  All weights + (2,C) activations
    live in VMEM for the whole kernel; 13 small matmuls chained in sequence."""
    o_ref = refs[-1]
    it = iter(refs[:-1])

    def nxt():
        return next(it)[...]

    def mm(a, w):
        return jnp.dot(a.astype(jnp.bfloat16), w,
                       preferred_element_type=jnp.float32)

    p1 = nxt()                      # (2, 256) im2col patches for layer1/block1 conv1
    r1 = nxt()                      # (2, 64)  residual input to the 1x1 downsample

    # ---- layer1, block1 (downsample) ----
    w1 = nxt(); w2 = nxt(); wd = nxt(); bd = nxt(); g = nxt(); b = nxt()
    a = _bn_relu(mm(p1, w1), g, b)
    y = _bn_relu(mm(a, w2), g, b)
    x = jnp.maximum(y + mm(r1, wd) + bd, 0.0)

    # ---- layers 2..4: [block0 (no add), block1 (downsample add)] ----
    for _ in range(3):
        w1 = nxt(); w2 = nxt(); g = nxt(); b = nxt()
        x = _bn_relu(mm(x, w1), g, b)
        x = _bn_relu(mm(x, w2), g, b)          # trailing relu(x) is a no-op (x >= 0)

        w1 = nxt(); w2 = nxt(); wd = nxt(); bd = nxt(); g = nxt(); b = nxt()
        res = x
        a = _bn_relu(mm(x, w1), g, b)
        y = _bn_relu(mm(a, w2), g, b)
        x = jnp.maximum(y + mm(res, wd) + bd, 0.0)

    o_ref[...] = x.astype(o_ref.dtype)


# ---------------------------------------------------------------------------
# JAX glue: im2col (layout plumbing; weight-side ops constant-fold under jit)
# ---------------------------------------------------------------------------

def _conv_patches(x, w_hwio, stride, pad, k_align=128):
    """Lower a conv to matmul operands.

    Returns (lhs [M, Kpad] bf16, wmat [Kpad, Cout] bf16, Ho, Wo).  Patches are
    built as one contiguous (M, T, Cin) stack and flattened once; dead taps
    (receptive field entirely inside the zero padding) are pruned; K is
    zero-padded to a multiple of 128 so MXU passes are lane-aligned.
    """
    Nb, H, W, Cin = x.shape
    kh, kw, _, Cout = w_hwio.shape
    Ho = (H + 2 * pad - kh) // stride + 1
    Wo = (W + 2 * pad - kw) // stride + 1

    def _live(d, size, n_out):
        return any(0 <= o * stride + d - pad < size for o in range(n_out))

    taps = [(dh, dw) for dh in range(kh) if _live(dh, H, Ho)
            for dw in range(kw) if _live(dw, W, Wo)]

    xp = jnp.pad(x, ((0, 0), (pad, pad), (pad, pad), (0, 0)))
    slabs = [xp[:, dh:dh + stride * (Ho - 1) + 1:stride,
                dw:dw + stride * (Wo - 1) + 1:stride, :]
             for (dh, dw) in taps]                       # each (Nb, Ho, Wo, Cin)
    patches = jnp.stack(slabs, axis=3)                   # (Nb, Ho, Wo, T, Cin)
    lhs = patches.reshape(Nb * Ho * Wo, len(taps) * Cin)

    wrows = jnp.stack([w_hwio[dh, dw] for (dh, dw) in taps], axis=0)  # (T,Cin,Cout)
    wmat = wrows.reshape(len(taps) * Cin, Cout)

    K = lhs.shape[1]
    Kpad = ((K + k_align - 1) // k_align) * k_align
    if Kpad != K:
        lhs = jnp.pad(lhs, ((0, 0), (0, Kpad - K)))
        wmat = jnp.pad(wmat, ((0, Kpad - K), (0, 0)))
    return lhs.astype(jnp.bfloat16), wmat.astype(jnp.bfloat16), Ho, Wo


def conv_bn_relu(x, w_hwio, gamma, beta, *, stride, pad):
    """One fused conv+BN+ReLU pallas_call (grid-less, whole arrays in VMEM)."""
    Nb = x.shape[0]
    lhs, wmat, Ho, Wo = _conv_patches(x, w_hwio, stride, pad)
    Cout = wmat.shape[1]
    g = gamma.reshape(1, Cout).astype(jnp.float32)
    b = beta.reshape(1, Cout).astype(jnp.float32)
    out = pl.pallas_call(
        _conv_bn_relu_kernel,
        out_shape=jax.ShapeDtypeStruct((lhs.shape[0], Cout), jnp.bfloat16),
        in_specs=[_VMEM_SPEC] * 4,
        out_specs=_VMEM_SPEC,
    )(lhs, wmat, g, b)
    return out.reshape(Nb, Ho, Wo, Cout)


def maxpool_3x3_s2_p1(x):
    # Input is post-ReLU (>= 0), so zero padding is equivalent to -inf padding.
    # TODO(synk): fusing this 9-way max into the stem kernel epilogue (review
    # item 2) needs stride-2 slicing along the sublane axis inside the kernel;
    # kept as XLA glue (a few maximum ops over a 64 KB slab) to stay robust.
    Nb, H, W, C = x.shape
    xp = jnp.pad(x, ((0, 0), (1, 1), (1, 1), (0, 0)))
    Ho = (H + 2 - 3) // 2 + 1
    Wo = (W + 2 - 3) // 2 + 1
    out = None
    for dh in range(3):
        for dw in range(3):
            sl = xp[:, dh:dh + 2 * (Ho - 1) + 1:2,
                       dw:dw + 2 * (Wo - 1) + 1:2, :]
            out = sl if out is None else jnp.maximum(out, sl)
    return out


# ---------------------------------------------------------------------------
# Fused tail: layer1/block1 .. layer4 in ONE pallas_call
# ---------------------------------------------------------------------------

def fused_tail(x, l1b1, later_layers):
    """x: (N, 2, 2, 64) activation after layer1/block0.  Returns (N, 512) f32."""
    Nb, H, W, Cin = x.shape
    assert (H, W) == (2, 2) and Cin == 64, (H, W, Cin)

    def _bf16(a):
        return a.astype(jnp.bfloat16)

    def _vec(a):
        return a.reshape(1, -1).astype(jnp.float32)

    # layer1/block1 conv1 on a 2x2 input (pad 1, stride 2): only taps
    # (1,1),(1,2),(2,1),(2,2) are live -> the patch matrix is just x flattened.
    p1 = _bf16(x.reshape(Nb, H * W * Cin))                      # (2, 256)
    r1 = _bf16(x[:, 0, 0, :])                                   # 1x1/s2 downsample input
    operands = [
        p1, r1,
        _bf16(l1b1["w1"][1:3, 1:3].reshape(4 * Cin, -1)),       # (256, 64)
        _bf16(l1b1["w2"][1, 1]),                                # (64, 64) centre tap
        _bf16(l1b1["wd"][0, 0]),                                # (64, 64)
        _vec(l1b1["bd"]), _vec(l1b1["gamma"]), _vec(l1b1["beta"]),
    ]
    for blk0, blk1 in later_layers:
        operands += [
            _bf16(blk0["w1"][1, 1]), _bf16(blk0["w2"][1, 1]),
            _vec(blk0["gamma"]), _vec(blk0["beta"]),
            _bf16(blk1["w1"][1, 1]), _bf16(blk1["w2"][1, 1]),
            _bf16(blk1["wd"][0, 0]), _vec(blk1["bd"]),
            _vec(blk1["gamma"]), _vec(blk1["beta"]),
        ]
    cout = later_layers[-1][1]["w2"].shape[3]                   # 512

    return pl.pallas_call(
        _tail_kernel,
        out_shape=jax.ShapeDtypeStruct((Nb, cout), jnp.float32),
        in_specs=[_VMEM_SPEC] * len(operands),
        out_specs=_VMEM_SPEC,
        compiler_params=pltpu.CompilerParams(vmem_limit_bytes=32 * 1024 * 1024),
    )(*operands)


# ---------------------------------------------------------------------------
# Forward pass
# ---------------------------------------------------------------------------

def my_resnet_forward(x_nchw, params):
    # NCHW (PyTorch) -> NHWC; kernels operate on (M, C) slabs, channels on lanes.
    x = jnp.transpose(x_nchw, (0, 2, 3, 1))
    x = conv_bn_relu(x, params["stem_w"], params["stem_gamma"],
                     params["stem_beta"], stride=2, pad=3)          # (2,16,16,64)
    x = maxpool_3x3_s2_p1(x)                                        # (2, 8, 8,64)

    l1b0 = params["layers"][0][0]   # Residual(64, 64, stride=2, downsample=False)
    x = conv_bn_relu(x, l1b0["w1"], l1b0["gamma"], l1b0["beta"], stride=2, pad=1)
    x = conv_bn_relu(x, l1b0["w2"], l1b0["gamma"], l1b0["beta"], stride=2, pad=1)
    # block's trailing relu(x) is a no-op (x >= 0 already, no residual add here).

    feat = fused_tail(x, params["layers"][0][1], params["layers"][1:])  # (2, 512)
    # Global average pool is the identity here (spatial is already 1x1); the
    # 512x10 FC head stays in plain JAX (too small to amortize a launch, and a
    # 10-wide kernel output would force lane-masked partial stores).
    return feat @ params["fc_w"] + params["fc_b"]                       # (2, 10)


# ---------------------------------------------------------------------------
# Deterministic synthetic parameters
# ---------------------------------------------------------------------------

def init_params(key):
    keys = iter(jax.random.split(key, 64))

    def conv_w(kh, kw, cin, cout):
        fan_in = kh * kw * cin
        return jax.random.normal(next(keys), (kh, kw, cin, cout),
                                 jnp.float32) / jnp.sqrt(fan_in)

    def conv_b(cout):
        return 0.01 * jax.random.normal(next(keys), (cout,), jnp.float32)

    def bn_p(c):
        gamma = 1.0 + 0.1 * jax.random.normal(next(keys), (c,), jnp.float32)
        beta = 0.1 * jax.random.normal(next(keys), (c,), jnp.float32)
        return gamma, beta

    # Conv biases that are immediately followed by BatchNorm are omitted on
    # purpose: a per-channel constant is exactly cancelled by BN's batch-mean
    # subtraction, so the forward output is identical.
    params = {"stem_w": conv_w(7, 7, 3, 64)}
    params["stem_gamma"], params["stem_beta"] = bn_p(64)

    def res_block_params(cin, cout, downsample):
        p = {"w1": conv_w(3, 3, cin, cout), "w2": conv_w(3, 3, cout, cout)}
        p["gamma"], p["beta"] = bn_p(cout)        # shared self.bn of the block
        if downsample:
            p["wd"] = conv_w(1, 1, cout, cout)
            p["bd"] = conv_b(cout)                # NOT followed by BN -> keep bias
        return p

    layers = []
    for cin, cout in [(64, 64), (64, 128), (128, 256), (256, 512)]:
        layers.append([res_block_params(cin, cout, False),
                       res_block_params(cout, cout, True)])
    params["layers"] = layers

    params["fc_w"] = jax.random.normal(next(keys), (512, 10),
                                       jnp.float32) / jnp.sqrt(512.0)
    params["fc_b"] = 0.01 * jax.random.normal(next(keys), (10,), jnp.float32)
    return params


# ---------------------------------------------------------------------------

if __name__ == "__main__":
    key = jax.random.PRNGKey(0)
    kx, kp = jax.random.split(key)
    # 32x32 input: spatial collapses to 2x2 -> 1x1 before the first downsample
    # block, the regime in which the reference module's `x += residual` is
    # shape-consistent (both 3x3 convs in a Residual block apply the stride).
    x = jax.random.normal(kx, (2, 3, 32, 32), jnp.float32)
    params = init_params(kp)

    fwd = jax.jit(functools.partial(my_resnet_forward, params=params))
    out = jax.block_until_ready(fwd(x))
    assert out.shape == (2, 10), out.shape
    assert bool(jnp.all(jnp.isfinite(out)))
    # TODO(synk): BatchNorm running-stat updates (a training-mode side effect
    # that does not influence the forward output) are not reproduced.
    print("KERNEL_OK")
</pallas_src>

<mosaic_0001>
module attributes {stable_mosaic.version = 11 : i64} {
  func.func @_conv_bn_relu_kernel(%arg0: memref<512x256xbf16, #tpu.memory_space<vmem>>, %arg1: memref<256x64xbf16, #tpu.memory_space<vmem>>, %arg2: memref<1x64xf32, #tpu.memory_space<vmem>>, %arg3: memref<1x64xf32, #tpu.memory_space<vmem>>, %arg4: memref<512x64xbf16, #tpu.memory_space<vmem>>) attributes {dimension_semantics = [], scalar_prefetch = 0 : i64, scratch_operands = 0 : i64, tpu.core_type = #tpu.core_type<tc>} {
    %c0 = arith.constant 0 : index
    %c0_0 = arith.constant 0 : index
    %0 = vector.load %arg0[%c0, %c0_0] : memref<512x256xbf16, #tpu.memory_space<vmem>>, vector<512x256xbf16>
    %c0_1 = arith.constant 0 : index
    %c0_2 = arith.constant 0 : index
    %1 = vector.load %arg1[%c0_1, %c0_2] : memref<256x64xbf16, #tpu.memory_space<vmem>>, vector<256x64xbf16>
    %cst = arith.constant dense<0.000000e+00> : vector<512x64xf32>
    %2 = tpu.matmul %0, %1, %cst {dimension_numbers = #tpu.dot_dimension_numbers<[1], [0], [0], [1], [0, 0, 1, 1], [], []>} : vector<512x256xbf16>, vector<256x64xbf16>, vector<512x64xf32> -> vector<512x64xf32>
    %c0_3 = arith.constant 0 : index
    %c0_4 = arith.constant 0 : index
    %3 = vector.load %arg2[%c0_3, %c0_4] : memref<1x64xf32, #tpu.memory_space<vmem>>, vector<1x64xf32>
    %c0_5 = arith.constant 0 : index
    %c0_6 = arith.constant 0 : index
    %4 = vector.load %arg3[%c0_5, %c0_6] : memref<1x64xf32, #tpu.memory_space<vmem>>, vector<1x64xf32>
    %cst_7 = arith.constant dense<0.000000e+00> : vector<64xf32>
    %5 = vector.multi_reduction <add>, %2, %cst_7 [0] : vector<512x64xf32> to vector<64xf32>
    %6 = vector.shape_cast %5 : vector<64xf32> to vector<1x64xf32>
    %cst_8 = arith.constant 5.120000e+02 : f32
    %7 = vector.broadcast %cst_8 : f32 to vector<1x64xf32>
    %8 = arith.divf %6, %7 : vector<1x64xf32>
    %9 = arith.mulf %2, %2 : vector<512x64xf32>
    %cst_9 = arith.constant dense<0.000000e+00> : vector<64xf32>
    %10 = vector.multi_reduction <add>, %9, %cst_9 [0] : vector<512x64xf32> to vector<64xf32>
    %11 = vector.shape_cast %10 : vector<64xf32> to vector<1x64xf32>
    %cst_10 = arith.constant 5.120000e+02 : f32
    %12 = vector.broadcast %cst_10 : f32 to vector<1x64xf32>
    %13 = arith.divf %11, %12 : vector<1x64xf32>
    %14 = arith.mulf %8, %8 : vector<1x64xf32>
    %15 = arith.subf %13, %14 : vector<1x64xf32>
    %cst_11 = arith.constant 0.000000e+00 : f32
    %16 = vector.broadcast %cst_11 : f32 to vector<1x64xf32>
    %17 = arith.maximumf %15, %16 : vector<1x64xf32>
    %cst_12 = arith.constant 9.99999974E-6 : f32
    %18 = vector.broadcast %cst_12 : f32 to vector<1x64xf32>
    %19 = arith.addf %17, %18 : vector<1x64xf32>
    %20 = math.rsqrt %19 : vector<1x64xf32>
    %21 = arith.mulf %3, %20 : vector<1x64xf32>
    %22 = arith.mulf %8, %21 : vector<1x64xf32>
    %23 = arith.subf %4, %22 : vector<1x64xf32>
    %24 = vector.broadcast %21 : vector<1x64xf32> to vector<512x64xf32>
    %25 = arith.mulf %2, %24 : vector<512x64xf32>
    %26 = vector.broadcast %23 : vector<1x64xf32> to vector<512x64xf32>
    %27 = arith.addf %25, %26 : vector<512x64xf32>
    %cst_13 = arith.constant 0.000000e+00 : f32
    %28 = vector.broadcast %cst_13 : f32 to vector<512x64xf32>
    %29 = arith.maximumf %27, %28 : vector<512x64xf32>
    %30 = arith.truncf %29 : vector<512x64xf32> to vector<512x64xbf16>
    %c0_14 = arith.constant 0 : index
    %c0_15 = arith.constant 0 : index
    %31 = vector.load %arg4[%c0_14, %c0_15] : memref<512x64xbf16, #tpu.memory_space<vmem>>, vector<512x64xbf16>
    tpu.vector_store %arg4[%c0_14, %c0_15], %30 {strides = array<i32>} : memref<512x64xbf16, #tpu.memory_space<vmem>>, vector<512x64xbf16>,
    return
  }
}

module attributes {stable_mosaic.version = 11 : i64} {
  func.func @_conv_bn_relu_kernel(%arg0: memref<32x640xbf16, #tpu.memory_space<vmem>>, %arg1: memref<640x64xbf16, #tpu.memory_space<vmem>>, %arg2: memref<1x64xf32, #tpu.memory_space<vmem>>, %arg3: memref<1x64xf32, #tpu.memory_space<vmem>>, %arg4: memref<32x64xbf16, #tpu.memory_space<vmem>>) attributes {dimension_semantics = [], scalar_prefetch = 0 : i64, scratch_operands = 0 : i64, tpu.core_type = #tpu.core_type<tc>} {
    %c0 = arith.constant 0 : index
    %c0_0 = arith.constant 0 : index
    %0 = vector.load %arg0[%c0, %c0_0] : memref<32x640xbf16, #tpu.memory_space<vmem>>, vector<32x640xbf16>
    %c0_1 = arith.constant 0 : index
    %c0_2 = arith.constant 0 : index
    %1 = vector.load %arg1[%c0_1, %c0_2] : memref<640x64xbf16, #tpu.memory_space<vmem>>, vector<640x64xbf16>
    %cst = arith.constant dense<0.000000e+00> : vector<32x64xf32>
    %2 = tpu.matmul %0, %1, %cst {dimension_numbers = #tpu.dot_dimension_numbers<[1], [0], [0], [1], [0, 0, 1, 1], [], []>} : vector<32x640xbf16>, vector<640x64xbf16>, vector<32x64xf32> -> vector<32x64xf32>
    %c0_3 = arith.constant 0 : index
    %c0_4 = arith.constant 0 : index
    %3 = vector.load %arg2[%c0_3, %c0_4] : memref<1x64xf32, #tpu.memory_space<vmem>>, vector<1x64xf32>
    %c0_5 = arith.constant 0 : index
    %c0_6 = arith.constant 0 : index
    %4 = vector.load %arg3[%c0_5, %c0_6] : memref<1x64xf32, #tpu.memory_space<vmem>>, vector<1x64xf32>
    %cst_7 = arith.constant dense<0.000000e+00> : vector<64xf32>
    %5 = vector.multi_reduction <add>, %2, %cst_7 [0] : vector<32x64xf32> to vector<64xf32>
    %6 = vector.shape_cast %5 : vector<64xf32> to vector<1x64xf32>
    %cst_8 = arith.constant 3.200000e+01 : f32
    %7 = vector.broadcast %cst_8 : f32 to vector<1x64xf32>
    %8 = arith.divf %6, %7 : vector<1x64xf32>
    %9 = arith.mulf %2, %2 : vector<32x64xf32>
    %cst_9 = arith.constant dense<0.000000e+00> : vector<64xf32>
    %10 = vector.multi_reduction <add>, %9, %cst_9 [0] : vector<32x64xf32> to vector<64xf32>
    %11 = vector.shape_cast %10 : vector<64xf32> to vector<1x64xf32>
    %cst_10 = arith.constant 3.200000e+01 : f32
    %12 = vector.broadcast %cst_10 : f32 to vector<1x64xf32>
    %13 = arith.divf %11, %12 : vector<1x64xf32>
    %14 = arith.mulf %8, %8 : vector<1x64xf32>
    %15 = arith.subf %13, %14 : vector<1x64xf32>
    %cst_11 = arith.constant 0.000000e+00 : f32
    %16 = vector.broadcast %cst_11 : f32 to vector<1x64xf32>
    %17 = arith.maximumf %15, %16 : vector<1x64xf32>
    %cst_12 = arith.constant 9.99999974E-6 : f32
    %18 = vector.broadcast %cst_12 : f32 to vector<1x64xf32>
    %19 = arith.addf %17, %18 : vector<1x64xf32>
    %20 = math.rsqrt %19 : vector<1x64xf32>
    %21 = arith.mulf %3, %20 : vector<1x64xf32>
    %22 = arith.mulf %8, %21 : vector<1x64xf32>
    %23 = arith.subf %4, %22 : vector<1x64xf32>
    %24 = vector.broadcast %21 : vector<1x64xf32> to vector<32x64xf32>
    %25 = arith.mulf %2, %24 : vector<32x64xf32>
    %26 = vector.broadcast %23 : vector<1x64xf32> to vector<32x64xf32>
    %27 = arith.addf %25, %26 : vector<32x64xf32>
    %cst_13 = arith.constant 0.000000e+00 : f32
    %28 = vector.broadcast %cst_13 : f32 to vector<32x64xf32>
    %29 = arith.maximumf %27, %28 : vector<32x64xf32>
    %30 = arith.truncf %29 : vector<32x64xf32> to vector<32x64xbf16>
    %c0_14 = arith.constant 0 : index
    %c0_15 = arith.constant 0 : index
    %31 = vector.load %arg4[%c0_14, %c0_15] : memref<32x64xbf16, #tpu.memory_space<vmem>>, vector<32x64xbf16>
    tpu.vector_store %arg4[%c0_14, %c0_15], %30 {strides = array<i32>} : memref<32x64xbf16, #tpu.memory_space<vmem>>, vector<32x64xbf16>,
    return
  }
}

module attributes {stable_mosaic.version = 11 : i64} {
  func.func @_conv_bn_relu_kernel(%arg0: memref<8x640xbf16, #tpu.memory_space<vmem>>, %arg1: memref<640x64xbf16, #tpu.memory_space<vmem>>, %arg2: memref<1x64xf32, #tpu.memory_space<vmem>>, %arg3: memref<1x64xf32, #tpu.memory_space<vmem>>, %arg4: memref<8x64xbf16, #tpu.memory_space<vmem>>) attributes {dimension_semantics = [], scalar_prefetch = 0 : i64, scratch_operands = 0 : i64, tpu.core_type = #tpu.core_type<tc>} {
    %c0 = arith.constant 0 : index
    %c0_0 = arith.constant 0 : index
    %0 = vector.load %arg0[%c0, %c0_0] : memref<8x640xbf16, #tpu.memory_space<vmem>>, vector<8x640xbf16>
    %c0_1 = arith.constant 0 : index
    %c0_2 = arith.constant 0 : index
    %1 = vector.load %arg1[%c0_1, %c0_2] : memref<640x64xbf16, #tpu.memory_space<vmem>>, vector<640x64xbf16>
    %cst = arith.constant dense<0.000000e+00> : vector<8x64xf32>
    %2 = tpu.matmul %0, %1, %cst {dimension_numbers = #tpu.dot_dimension_numbers<[1], [0], [0], [1], [0, 0, 1, 1], [], []>} : vector<8x640xbf16>, vector<640x64xbf16>, vector<8x64xf32> -> vector<8x64xf32>
    %c0_3 = arith.constant 0 : index
    %c0_4 = arith.constant 0 : index
    %3 = vector.load %arg2[%c0_3, %c0_4] : memref<1x64xf32, #tpu.memory_space<vmem>>, vector<1x64xf32>
    %c0_5 = arith.constant 0 : index
    %c0_6 = arith.constant 0 : index
    %4 = vector.load %arg3[%c0_5, %c0_6] : memref<1x64xf32, #tpu.memory_space<vmem>>, vector<1x64xf32>
    %cst_7 = arith.constant dense<0.000000e+00> : vector<64xf32>
    %5 = vector.multi_reduction <add>, %2, %cst_7 [0] : vector<8x64xf32> to vector<64xf32>
    %6 = vector.shape_cast %5 : vector<64xf32> to vector<1x64xf32>
    %cst_8 = arith.constant 8.000000e+00 : f32
    %7 = vector.broadcast %cst_8 : f32 to vector<1x64xf32>
    %8 = arith.divf %6, %7 : vector<1x64xf32>
    %9 = arith.mulf %2, %2 : vector<8x64xf32>
    %cst_9 = arith.constant dense<0.000000e+00> : vector<64xf32>
    %10 = vector.multi_reduction <add>, %9, %cst_9 [0] : vector<8x64xf32> to vector<64xf32>
    %11 = vector.shape_cast %10 : vector<64xf32> to vector<1x64xf32>
    %cst_10 = arith.constant 8.000000e+00 : f32
    %12 = vector.broadcast %cst_10 : f32 to vector<1x64xf32>
    %13 = arith.divf %11, %12 : vector<1x64xf32>
    %14 = arith.mulf %8, %8 : vector<1x64xf32>
    %15 = arith.subf %13, %14 : vector<1x64xf32>
    %cst_11 = arith.constant 0.000000e+00 : f32
    %16 = vector.broadcast %cst_11 : f32 to vector<1x64xf32>
    %17 = arith.maximumf %15, %16 : vector<1x64xf32>
    %cst_12 = arith.constant 9.99999974E-6 : f32
    %18 = vector.broadcast %cst_12 : f32 to vector<1x64xf32>
    %19 = arith.addf %17, %18 : vector<1x64xf32>
    %20 = math.rsqrt %19 : vector<1x64xf32>
    %21 = arith.mulf %3, %20 : vector<1x64xf32>
    %22 = arith.mulf %8, %21 : vector<1x64xf32>
    %23 = arith.subf %4, %22 : vector<1x64xf32>
    %24 = vector.broadcast %21 : vector<1x64xf32> to vector<8x64xf32>
    %25 = arith.mulf %2, %24 : vector<8x64xf32>
    %26 = vector.broadcast %23 : vector<1x64xf32> to vector<8x64xf32>
    %27 = arith.addf %25, %26 : vector<8x64xf32>
    %cst_13 = arith.constant 0.000000e+00 : f32
    %28 = vector.broadcast %cst_13 : f32 to vector<8x64xf32>
    %29 = arith.maximumf %27, %28 : vector<8x64xf32>
    %30 = arith.truncf %29 : vector<8x64xf32> to vector<8x64xbf16>
    %c0_14 = arith.constant 0 : index
    %c0_15 = arith.constant 0 : index
    %31 = vector.load %arg4[%c0_14, %c0_15] : memref<8x64xbf16, #tpu.memory_space<vmem>>, vector<8x64xbf16>
    tpu.vector_store %arg4[%c0_14, %c0_15], %30 {strides = array<i32>} : memref<8x64xbf16, #tpu.memory_space<vmem>>, vector<8x64xbf16>,
    return
  }
}

module attributes {stable_mosaic.version = 11 : i64} {
  func.func @_tail_kernel(%arg0: memref<2x256xbf16, #tpu.memory_space<vmem>>, %arg1: memref<2x64xbf16, #tpu.memory_space<vmem>>, %arg2: memref<256x64xbf16, #tpu.memory_space<vmem>>, %arg3: memref<64x64xbf16, #tpu.memory_space<vmem>>, %arg4: memref<64x64xbf16, #tpu.memory_space<vmem>>, %arg5: memref<1x64xf32, #tpu.memory_space<vmem>>, %arg6: memref<1x64xf32, #tpu.memory_space<vmem>>, %arg7: memref<1x64xf32, #tpu.memory_space<vmem>>, %arg8: memref<64x128xbf16, #tpu.memory_space<vmem>>, %arg9: memref<128x128xbf16, #tpu.memory_space<vmem>>, %arg10: memref<1x128xf32, #tpu.memory_space<vmem>>, %arg11: memref<1x128xf32, #tpu.memory_space<vmem>>, %arg12: memref<128x128xbf16, #tpu.memory_space<vmem>>, %arg13: memref<128x128xbf16, #tpu.memory_space<vmem>>, %arg14: memref<128x128xbf16, #tpu.memory_space<vmem>>, %arg15: memref<1x128xf32, #tpu.memory_space<vmem>>, %arg16: memref<1x128xf32, #tpu.memory_space<vmem>>, %arg17: memref<1x128xf32, #tpu.memory_space<vmem>>, %arg18: memref<128x256xbf16, #tpu.memory_space<vmem>>, %arg19: memref<256x256xbf16, #tpu.memory_space<vmem>>, %arg20: memref<1x256xf32, #tpu.memory_space<vmem>>, %arg21: memref<1x256xf32, #tpu.memory_space<vmem>>, %arg22: memref<256x256xbf16, #tpu.memory_space<vmem>>, %arg23: memref<256x256xbf16, #tpu.memory_space<vmem>>, %arg24: memref<256x256xbf16, #tpu.memory_space<vmem>>, %arg25: memref<1x256xf32, #tpu.memory_space<vmem>>, %arg26: memref<1x256xf32, #tpu.memory_space<vmem>>, %arg27: memref<1x256xf32, #tpu.memory_space<vmem>>, %arg28: memref<256x512xbf16, #tpu.memory_space<vmem>>, %arg29: memref<512x512xbf16, #tpu.memory_space<vmem>>, %arg30: memref<1x512xf32, #tpu.memory_space<vmem>>, %arg31: memref<1x512xf32, #tpu.memory_space<vmem>>, %arg32: memref<512x512xbf16, #tpu.memory_space<vmem>>, %arg33: memref<512x512xbf16, #tpu.memory_space<vmem>>, %arg34: memref<512x512xbf16, #tpu.memory_space<vmem>>, %arg35: memref<1x512xf32, #tpu.memory_space<vmem>>, %arg36: memref<1x512xf32, #tpu.memory_space<vmem>>, %arg37: memref<1x512xf32, #tpu.memory_space<vmem>>, %arg38: memref<2x512xf32, #tpu.memory_space<vmem>>) attributes {dimension_semantics = [], scalar_prefetch = 0 : i64, scratch_operands = 0 : i64, tpu.core_type = #tpu.core_type<tc>} {
    %c0 = arith.constant 0 : index
    %c0_0 = arith.constant 0 : index
    %0 = vector.load %arg0[%c0, %c0_0] : memref<2x256xbf16, #tpu.memory_space<vmem>>, vector<2x256xbf16>
    %c0_1 = arith.constant 0 : index
    %c0_2 = arith.constant 0 : index
    %1 = vector.load %arg1[%c0_1, %c0_2] : memref<2x64xbf16, #tpu.memory_space<vmem>>, vector<2x64xbf16>
    %c0_3 = arith.constant 0 : index
    %c0_4 = arith.constant 0 : index
    %2 = vector.load %arg2[%c0_3, %c0_4] : memref<256x64xbf16, #tpu.memory_space<vmem>>, vector<256x64xbf16>
    %c0_5 = arith.constant 0 : index
    %c0_6 = arith.constant 0 : index
    %3 = vector.load %arg3[%c0_5, %c0_6] : memref<64x64xbf16, #tpu.memory_space<vmem>>, vector<64x64xbf16>
    %c0_7 = arith.constant 0 : index
    %c0_8 = arith.constant 0 : index
    %4 = vector.load %arg4[%c0_7, %c0_8] : memref<64x64xbf16, #tpu.memory_space<vmem>>, vector<64x64xbf16>
    %c0_9 = arith.constant 0 : index
    %c0_10 = arith.constant 0 : index
    %5 = vector.load %arg5[%c0_9, %c0_10] : memref<1x64xf32, #tpu.memory_space<vmem>>, vector<1x64xf32>
    %c0_11 = arith.constant 0 : index
    %c0_12 = arith.constant 0 : index
    %6 = vector.load %arg6[%c0_11, %c0_12] : memref<1x64xf32, #tpu.memory_space<vmem>>, vector<1x64xf32>
    %c0_13 = arith.constant 0 : index
    %c0_14 = arith.constant 0 : index
    %7 = vector.load %arg7[%c0_13, %c0_14] : memref<1x64xf32, #tpu.memory_space<vmem>>, vector<1x64xf32>
    %cst = arith.constant dense<0.000000e+00> : vector<2x64xf32>
    %8 = tpu.matmul %0, %2, %cst {dimension_numbers = #tpu.dot_dimension_numbers<[1], [0], [0], [1], [0, 0, 1, 1], [], []>} : vector<2x256xbf16>, vector<256x64xbf16>, vector<2x64xf32> -> vector<2x64xf32>
    %cst_15 = arith.constant dense<0.000000e+00> : vector<64xf32>
    %9 = vector.multi_reduction <add>, %8, %cst_15 [0] : vector<2x64xf32> to vector<64xf32>
    %10 = vector.shape_cast %9 : vector<64xf32> to vector<1x64xf32>
    %cst_16 = arith.constant 2.000000e+00 : f32
    %11 = vector.broadcast %cst_16 : f32 to vector<1x64xf32>
    %12 = arith.divf %10, %11 : vector<1x64xf32>
    %13 = arith.mulf %8, %8 : vector<2x64xf32>
    %cst_17 = arith.constant dense<0.000000e+00> : vector<64xf32>
    %14 = vector.multi_reduction <add>, %13, %cst_17 [0] : vector<2x64xf32> to vector<64xf32>
    %15 = vector.shape_cast %14 : vector<64xf32> to vector<1x64xf32>
    %cst_18 = arith.constant 2.000000e+00 : f32
    %16 = vector.broadcast %cst_18 : f32 to vector<1x64xf32>
    %17 = arith.divf %15, %16 : vector<1x64xf32>
    %18 = arith.mulf %12, %12 : vector<1x64xf32>
    %19 = arith.subf %17, %18 : vector<1x64xf32>
    %cst_19 = arith.constant 0.000000e+00 : f32
    %20 = vector.broadcast %cst_19 : f32 to vector<1x64xf32>
    %21 = arith.maximumf %19, %20 : vector<1x64xf32>
    %cst_20 = arith.constant 9.99999974E-6 : f32
    %22 = vector.broadcast %cst_20 : f32 to vector<1x64xf32>
    %23 = arith.addf %21, %22 : vector<1x64xf32>
    %24 = math.rsqrt %23 : vector<1x64xf32>
    %25 = arith.mulf %6, %24 : vector<1x64xf32>
    %26 = arith.mulf %12, %25 : vector<1x64xf32>
    %27 = arith.subf %7, %26 : vector<1x64xf32>
    %28 = vector.broadcast %25 : vector<1x64xf32> to vector<2x64xf32>
    %29 = arith.mulf %8, %28 : vector<2x64xf32>
    %30 = vector.broadcast %27 : vector<1x64xf32> to vector<2x64xf32>
    %31 = arith.addf %29, %30 : vector<2x64xf32>
    %cst_21 = arith.constant 0.000000e+00 : f32
    %32 = vector.broadcast %cst_21 : f32 to vector<2x64xf32>
    %33 = arith.maximumf %31, %32 : vector<2x64xf32>
    %34 = arith.truncf %33 : vector<2x64xf32> to vector<2x64xbf16>
    %cst_22 = arith.constant dense<0.000000e+00> : vector<2x64xf32>
    %35 = tpu.matmul %34, %3, %cst_22 {dimension_numbers = #tpu.dot_dimension_numbers<[1], [0], [0], [1], [0, 0, 1, 1], [], []>} : vector<2x64xbf16>, vector<64x64xbf16>, vector<2x64xf32> -> vector<2x64xf32>
    %cst_23 = arith.constant dense<0.000000e+00> : vector<64xf32>
    %36 = vector.multi_reduction <add>, %35, %cst_23 [0] : vector<2x64xf32> to vector<64xf32>
    %37 = vector.shape_cast %36 : vector<64xf32> to vector<1x64xf32>
    %cst_24 = arith.constant 2.000000e+00 : f32
    %38 = vector.broadcast %cst_24 : f32 to vector<1x64xf32>
    %39 = arith.divf %37, %38 : vector<1x64xf32>
    %40 = arith.mulf %35, %35 : vector<2x64xf32>
    %cst_25 = arith.constant dense<0.000000e+00> : vector<64xf32>
    %41 = vector.multi_reduction <add>, %40, %cst_25 [0] : vector<2x64xf32> to vector<64xf32>
    %42 = vector.shape_cast %41 : vector<64xf32> to vector<1x64xf32>
    %cst_26 = arith.constant 2.000000e+00 : f32
    %43 = vector.broadcast %cst_26 : f32 to vector<1x64xf32>
    %44 = arith.divf %42, %43 : vector<1x64xf32>
    %45 = arith.mulf %39, %39 : vector<1x64xf32>
    %46 = arith.subf %44, %45 : vector<1x64xf32>
    %cst_27 = arith.constant 0.000000e+00 : f32
    %47 = vector.broadcast %cst_27 : f32 to vector<1x64xf32>
    %48 = arith.maximumf %46, %47 : vector<1x64xf32>
    %cst_28 = arith.constant 9.99999974E-6 : f32
    %49 = vector.broadcast %cst_28 : f32 to vector<1x64xf32>
    %50 = arith.addf %48, %49 : vector<1x64xf32>
    %51 = math.rsqrt %50 : vector<1x64xf32>
    %52 = arith.mulf %6, %51 : vector<1x64xf32>
    %53 = arith.mulf %39, %52 : vector<1x64xf32>
    %54 = arith.subf %7, %53 : vector<1x64xf32>
    %55 = vector.broadcast %52 : vector<1x64xf32> to vector<2x64xf32>
    %56 = arith.mulf %35, %55 : vector<2x64xf32>
    %57 = vector.broadcast %54 : vector<1x64xf32> to vector<2x64xf32>
    %58 = arith.addf %56, %57 : vector<2x64xf32>
    %cst_29 = arith.constant 0.000000e+00 : f32
    %59 = vector.broadcast %cst_29 : f32 to vector<2x64xf32>
    %60 = arith.maximumf %58, %59 : vector<2x64xf32>
    %cst_30 = arith.constant dense<0.000000e+00> : vector<2x64xf32>
    %61 = tpu.matmul %1, %4, %cst_30 {dimension_numbers = #tpu.dot_dimension_numbers<[1], [0], [0], [1], [0, 0, 1, 1], [], []>} : vector<2x64xbf16>, vector<64x64xbf16>, vector<2x64xf32> -> vector<2x64xf32>
    %62 = arith.addf %60, %61 : vector<2x64xf32>
    %63 = vector.broadcast %5 : vector<1x64xf32> to vector<2x64xf32>
    %64 = arith.addf %62, %63 : vector<2x64xf32>
    %cst_31 = arith.constant 0.000000e+00 : f32
    %65 = vector.broadcast %cst_31 : f32 to vector<2x64xf32>
    %66 = arith.maximumf %64, %65 : vector<2x64xf32>
    %c0_32 = arith.constant 0 : index
    %c0_33 = arith.constant 0 : index
    %67 = vector.load %arg8[%c0_32, %c0_33] : memref<64x128xbf16, #tpu.memory_space<vmem>>, vector<64x128xbf16>
    %c0_34 = arith.constant 0 : index
    %c0_35 = arith.constant 0 : index
    %68 = vector.load %arg9[%c0_34, %c0_35] : memref<128x128xbf16, #tpu.memory_space<vmem>>, vector<128x128xbf16>
    %c0_36 = arith.constant 0 : index
    %c0_37 = arith.constant 0 : index
    %69 = vector.load %arg10[%c0_36, %c0_37] : memref<1x128xf32, #tpu.memory_space<vmem>>, vector<1x128xf32>
    %c0_38 = arith.constant 0 : index
    %c0_39 = arith.constant 0 : index
    %70 = vector.load %arg11[%c0_38, %c0_39] : memref<1x128xf32, #tpu.memory_space<vmem>>, vector<1x128xf32>
    %71 = arith.truncf %66 : vector<2x64xf32> to vector<2x64xbf16>
    %cst_40 = arith.constant dense<0.000000e+00> : vector<2x128xf32>
    %72 = tpu.matmul %71, %67, %cst_40 {dimension_numbers = #tpu.dot_dimension_numbers<[1], [0], [0], [1], [0, 0, 1, 1], [], []>} : vector<2x64xbf16>, vector<64x128xbf16>, vector<2x128xf32> -> vector<2x128xf32>
    %cst_41 = arith.constant dense<0.000000e+00> : vector<128xf32>
    %73 = vector.multi_reduction <add>, %72, %cst_41 [0] : vector<2x128xf32> to vector<128xf32>
    %74 = vector.shape_cast %73 : vector<128xf32> to vector<1x128xf32>
    %cst_42 = arith.constant 2.000000e+00 : f32
    %75 = vector.broadcast %cst_42 : f32 to vector<1x128xf32>
    %76 = arith.divf %74, %75 : vector<1x128xf32>
    %77 = arith.mulf %72, %72 : vector<2x128xf32>
    %cst_43 = arith.constant dense<0.000000e+00> : vector<128xf32>
    %78 = vector.multi_reduction <add>, %77, %cst_43 [0] : vector<2x128xf32> to vector<128xf32>
    %79 = vector.shape_cast %78 : vector<128xf32> to vector<1x128xf32>
    %cst_44 = arith.constant 2.000000e+00 : f32
    %80 = vector.broadcast %cst_44 : f32 to vector<1x128xf32>
    %81 = arith.divf %79, %80 : vector<1x128xf32>
    %82 = arith.mulf %76, %76 : vector<1x128xf32>
    %83 = arith.subf %81, %82 : vector<1x128xf32>
    %cst_45 = arith.constant 0.000000e+00 : f32
    %84 = vector.broadcast %cst_45 : f32 to vector<1x128xf32>
    %85 = arith.maximumf %83, %84 : vector<1x128xf32>
    %cst_46 = arith.constant 9.99999974E-6 : f32
    %86 = vector.broadcast %cst_46 : f32 to vector<1x128xf32>
    %87 = arith.addf %85, %86 : vector<1x128xf32>
    %88 = math.rsqrt %87 : vector<1x128xf32>
    %89 = arith.mulf %69, %88 : vector<1x128xf32>
    %90 = arith.mulf %76, %89 : vector<1x128xf32>
    %91 = arith.subf %70, %90 : vector<1x128xf32>
    %92 = vector.broadcast %89 : vector<1x128xf32> to vector<2x128xf32>
    %93 = arith.mulf %72, %92 : vector<2x128xf32>
    %94 = vector.broadcast %91 : vector<1x128xf32> to vector<2x128xf32>
    %95 = arith.addf %93, %94 : vector<2x128xf32>
    %cst_47 = arith.constant 0.000000e+00 : f32
    %96 = vector.broadcast %cst_47 : f32 to vector<2x128xf32>
    %97 = arith.maximumf %95, %96 : vector<2x128xf32>
    %98 = arith.truncf %97 : vector<2x128xf32> to vector<2x128xbf16>
    %cst_48 = arith.constant dense<0.000000e+00> : vector<2x128xf32>
    %99 = tpu.matmul %98, %68, %cst_48 {dimension_numbers = #tpu.dot_dimension_numbers<[1], [0], [0], [1], [0, 0, 1, 1], [], []>} : vector<2x128xbf16>, vector<128x128xbf16>, vector<2x128xf32> -> vector<2x128xf32>
    %cst_49 = arith.constant dense<0.000000e+00> : vector<128xf32>
    %100 = vector.multi_reduction <add>, %99, %cst_49 [0] : vector<2x128xf32> to vector<128xf32>
    %101 = vector.shape_cast %100 : vector<128xf32> to vector<1x128xf32>
    %cst_50 = arith.constant 2.000000e+00 : f32
    %102 = vector.broadcast %cst_50 : f32 to vector<1x128xf32>
    %103 = arith.divf %101, %102 : vector<1x128xf32>
    %104 = arith.mulf %99, %99 : vector<2x128xf32>
    %cst_51 = arith.constant dense<0.000000e+00> : vector<128xf32>
    %105 = vector.multi_reduction <add>, %104, %cst_51 [0] : vector<2x128xf32> to vector<128xf32>
    %106 = vector.shape_cast %105 : vector<128xf32> to vector<1x128xf32>
    %cst_52 = arith.constant 2.000000e+00 : f32
    %107 = vector.broadcast %cst_52 : f32 to vector<1x128xf32>
    %108 = arith.divf %106, %107 : vector<1x128xf32>
    %109 = arith.mulf %103, %103 : vector<1x128xf32>
    %110 = arith.subf %108, %109 : vector<1x128xf32>
    %cst_53 = arith.constant 0.000000e+00 : f32
    %111 = vector.broadcast %cst_53 : f32 to vector<1x128xf32>
    %112 = arith.maximumf %110, %111 : vector<1x128xf32>
    %cst_54 = arith.constant 9.99999974E-6 : f32
    %113 = vector.broadcast %cst_54 : f32 to vector<1x128xf32>
    %114 = arith.addf %112, %113 : vector<1x128xf32>
    %115 = math.rsqrt %114 : vector<1x128xf32>
    %116 = arith.mulf %69, %115 : vector<1x128xf32>
    %117 = arith.mulf %103, %116 : vector<1x128xf32>
    %118 = arith.subf %70, %117 : vector<1x128xf32>
    %119 = vector.broadcast %116 : vector<1x128xf32> to vector<2x128xf32>
    %120 = arith.mulf %99, %119 : vector<2x128xf32>
    %121 = vector.broadcast %118 : vector<1x128xf32> to vector<2x128xf32>
    %122 = arith.addf %120, %121 : vector<2x128xf32>
    %cst_55 = arith.constant 0.000000e+00 : f32
    %123 = vector.broadcast %cst_55 : f32 to vector<2x128xf32>
    %124 = arith.maximumf %122, %123 : vector<2x128xf32>
    %c0_56 = arith.constant 0 : index
    %c0_57 = arith.constant 0 : index
    %125 = vector.load %arg12[%c0_56, %c0_57] : memref<128x128xbf16, #tpu.memory_space<vmem>>, vector<128x128xbf16>
    %c0_58 = arith.constant 0 : index
    %c0_59 = arith.constant 0 : index
    %126 = vector.load %arg13[%c0_58, %c0_59] : memref<128x128xbf16, #tpu.memory_space<vmem>>, vector<128x128xbf16>
    %c0_60 = arith.constant 0 : index
    %c0_61 = arith.constant 0 : index
    %127 = vector.load %arg14[%c0_60, %c0_61] : memref<128x128xbf16, #tpu.memory_space<vmem>>, vector<128x128xbf16>
    %c0_62 = arith.constant 0 : index
    %c0_63 = arith.constant 0 : index
    %128 = vector.load %arg15[%c0_62, %c0_63] : memref<1x128xf32, #tpu.memory_space<vmem>>, vector<1x128xf32>
    %c0_64 = arith.constant 0 : index
    %c0_65 = arith.constant 0 : index
    %129 = vector.load %arg16[%c0_64, %c0_65] : memref<1x128xf32, #tpu.memory_space<vmem>>, vector<1x128xf32>
    %c0_66 = arith.constant 0 : index
    %c0_67 = arith.constant 0 : index
    %130 = vector.load %arg17[%c0_66, %c0_67] : memref<1x128xf32, #tpu.memory_space<vmem>>, vector<1x128xf32>
    %131 = arith.truncf %124 : vector<2x128xf32> to vector<2x128xbf16>
    %cst_68 = arith.constant dense<0.000000e+00> : vector<2x128xf32>
    %132 = tpu.matmul %131, %125, %cst_68 {dimension_numbers = #tpu.dot_dimension_numbers<[1], [0], [0], [1], [0, 0, 1, 1], [], []>} : vector<2x128xbf16>, vector<128x128xbf16>, vector<2x128xf32> -> vector<2x128xf32>
    %cst_69 = arith.constant dense<0.000000e+00> : vector<128xf32>
    %133 = vector.multi_reduction <add>, %132, %cst_69 [0] : vector<2x128xf32> to vector<128xf32>
    %134 = vector.shape_cast %133 : vector<128xf32> to vector<1x128xf32>
    %cst_70 = arith.constant 2.000000e+00 : f32
    %135 = vector.broadcast %cst_70 : f32 to vector<1x128xf32>
    %136 = arith.divf %134, %135 : vector<1x128xf32>
    %137 = arith.mulf %132, %132 : vector<2x128xf32>
    %cst_71 = arith.constant dense<0.000000e+00> : vector<128xf32>
    %138 = vector.multi_reduction <add>, %137, %cst_71 [0] : vector<2x128xf32> to vector<128xf32>
    %139 = vector.shape_cast %138 : vector<128xf32> to vector<1x128xf32>
    %cst_72 = arith.constant 2.000000e+00 : f32
    %140 = vector.broadcast %cst_72 : f32 to vector<1x128xf32>
    %141 = arith.divf %139, %140 : vector<1x128xf32>
    %142 = arith.mulf %136, %136 : vector<1x128xf32>
    %143 = arith.subf %141, %142 : vector<1x128xf32>
    %cst_73 = arith.constant 0.000000e+00 : f32
    %144 = vector.broadcast %cst_73 : f32 to vector<1x128xf32>
    %145 = arith.maximumf %143, %144 : vector<1x128xf32>
    %cst_74 = arith.constant 9.99999974E-6 : f32
    %146 = vector.broadcast %cst_74 : f32 to vector<1x128xf32>
    %147 = arith.addf %145, %146 : vector<1x128xf32>
    %148 = math.rsqrt %147 : vector<1x128xf32>
    %149 = arith.mulf %129, %148 : vector<1x128xf32>
    %150 = arith.mulf %136, %149 : vector<1x128xf32>
    %151 = arith.subf %130, %150 : vector<1x128xf32>
    %152 = vector.broadcast %149 : vector<1x128xf32> to vector<2x128xf32>
    %153 = arith.mulf %132, %152 : vector<2x128xf32>
    %154 = vector.broadcast %151 : vector<1x128xf32> to vector<2x128xf32>
    %155 = arith.addf %153, %154 : vector<2x128xf32>
    %cst_75 = arith.constant 0.000000e+00 : f32
    %156 = vector.broadcast %cst_75 : f32 to vector<2x128xf32>
    %157 = arith.maximumf %155, %156 : vector<2x128xf32>
    %158 = arith.truncf %157 : vector<2x128xf32> to vector<2x128xbf16>
    %cst_76 = arith.constant dense<0.000000e+00> : vector<2x128xf32>
    %159 = tpu.matmul %158, %126, %cst_76 {dimension_numbers = #tpu.dot_dimension_numbers<[1], [0], [0], [1], [0, 0, 1, 1], [], []>} : vector<2x128xbf16>, vector<128x128xbf16>, vector<2x128xf32> -> vector<2x128xf32>
    %cst_77 = arith.constant dense<0.000000e+00> : vector<128xf32>
    %160 = vector.multi_reduction <add>, %159, %cst_77 [0] : vector<2x128xf32> to vector<128xf32>
    %161 = vector.shape_cast %160 : vector<128xf32> to vector<1x128xf32>
    %cst_78 = arith.constant 2.000000e+00 : f32
    %162 = vector.broadcast %cst_78 : f32 to vector<1x128xf32>
    %163 = arith.divf %161, %162 : vector<1x128xf32>
    %164 = arith.mulf %159, %159 : vector<2x128xf32>
    %cst_79 = arith.constant dense<0.000000e+00> : vector<128xf32>
    %165 = vector.multi_reduction <add>, %164, %cst_79 [0] : vector<2x128xf32> to vector<128xf32>
    %166 = vector.shape_cast %165 : vector<128xf32> to vector<1x128xf32>
    %cst_80 = arith.constant 2.000000e+00 : f32
    %167 = vector.broadcast %cst_80 : f32 to vector<1x128xf32>
    %168 = arith.divf %166, %167 : vector<1x128xf32>
    %169 = arith.mulf %163, %163 : vector<1x128xf32>
    %170 = arith.subf %168, %169 : vector<1x128xf32>
    %cst_81 = arith.constant 0.000000e+00 : f32
    %171 = vector.broadcast %cst_81 : f32 to vector<1x128xf32>
    %172 = arith.maximumf %170, %171 : vector<1x128xf32>
    %cst_82 = arith.constant 9.99999974E-6 : f32
    %173 = vector.broadcast %cst_82 : f32 to vector<1x128xf32>
    %174 = arith.addf %172, %173 : vector<1x128xf32>
    %175 = math.rsqrt %174 : vector<1x128xf32>
    %176 = arith.mulf %129, %175 : vector<1x128xf32>
    %177 = arith.mulf %163, %176 : vector<1x128xf32>
    %178 = arith.subf %130, %177 : vector<1x128xf32>
    %179 = vector.broadcast %176 : vector<1x128xf32> to vector<2x128xf32>
    %180 = arith.mulf %159, %179 : vector<2x128xf32>
    %181 = vector.broadcast %178 : vector<1x128xf32> to vector<2x128xf32>
    %182 = arith.addf %180, %181 : vector<2x128xf32>
    %cst_83 = arith.constant 0.000000e+00 : f32
    %183 = vector.broadcast %cst_83 : f32 to vector<2x128xf32>
    %184 = arith.maximumf %182, %183 : vector<2x128xf32>
    %185 = arith.truncf %124 : vector<2x128xf32> to vector<2x128xbf16>
    %cst_84 = arith.constant dense<0.000000e+00> : vector<2x128xf32>
    %186 = tpu.matmul %185, %127, %cst_84 {dimension_numbers = #tpu.dot_dimension_numbers<[1], [0], [0], [1], [0, 0, 1, 1], [], []>} : vector<2x128xbf16>, vector<128x128xbf16>, vector<2x128xf32> -> vector<2x128xf32>
    %187 = arith.addf %184, %186 : vector<2x128xf32>
    %188 = vector.broadcast %128 : vector<1x128xf32> to vector<2x128xf32>
    %189 = arith.addf %187, %188 : vector<2x128xf32>
    %cst_85 = arith.constant 0.000000e+00 : f32
    %190 = vector.broadcast %cst_85 : f32 to vector<2x128xf32>
    %191 = arith.maximumf %189, %190 : vector<2x128xf32>
    %c0_86 = arith.constant 0 : index
    %c0_87 = arith.constant 0 : index
    %192 = vector.load %arg18[%c0_86, %c0_87] : memref<128x256xbf16, #tpu.memory_space<vmem>>, vector<128x256xbf16>
    %c0_88 = arith.constant 0 : index
    %c0_89 = arith.constant 0 : index
    %193 = vector.load %arg19[%c0_88, %c0_89] : memref<256x256xbf16, #tpu.memory_space<vmem>>, vector<256x256xbf16>
    %c0_90 = arith.constant 0 : index
    %c0_91 = arith.constant 0 : index
    %194 = vector.load %arg20[%c0_90, %c0_91] : memref<1x256xf32, #tpu.memory_space<vmem>>, vector<1x256xf32>
    %c0_92 = arith.constant 0 : index
    %c0_93 = arith.constant 0 : index
    %195 = vector.load %arg21[%c0_92, %c0_93] : memref<1x256xf32, #tpu.memory_space<vmem>>, vector<1x256xf32>
    %196 = arith.truncf %191 : vector<2x128xf32> to vector<2x128xbf16>
    %cst_94 = arith.constant dense<0.000000e+00> : vector<2x256xf32>
    %197 = tpu.matmul %196, %192, %cst_94 {dimension_numbers = #tpu.dot_dimension_numbers<[1], [0], [0], [1], [0, 0, 1, 1], [], []>} : vector<2x128xbf16>, vector<128x256xbf16>, vector<2x256xf32> -> vector<2x256xf32>
    %cst_95 = arith.constant dense<0.000000e+00> : vector<256xf32>
    %198 = vector.multi_reduction <add>, %197, %cst_95 [0] : vector<2x256xf32> to vector<256xf32>
    %199 = vector.shape_cast %198 : vector<256xf32> to vector<1x256xf32>
    %cst_96 = arith.constant 2.000000e+00 : f32
    %200 = vector.broadcast %cst_96 : f32 to vector<1x256xf32>
    %201 = arith.divf %199, %200 : vector<1x256xf32>
    %202 = arith.mulf %197, %197 : vector<2x256xf32>
    %cst_97 = arith.constant dense<0.000000e+00> : vector<256xf32>
    %203 = vector.multi_reduction <add>, %202, %cst_97 [0] : vector<2x256xf32> to vector<256xf32>
    %204 = vector.shape_cast %203 : vector<256xf32> to vector<1x256xf32>
    %cst_98 = arith.constant 2.000000e+00 : f32
    %205 = vector.broadcast %cst_98 : f32 to vector<1x256xf32>
    %206 = arith.divf %204, %205 : vector<1x256xf32>
    %207 = arith.mulf %201, %201 : vector<1x256xf32>
    %208 = arith.subf %206, %207 : vector<1x256xf32>
    %cst_99 = arith.constant 0.000000e+00 : f32
    %209 = vector.broadcast %cst_99 : f32 to vector<1x256xf32>
    %210 = arith.maximumf %208, %209 : vector<1x256xf32>
    %cst_100 = arith.constant 9.99999974E-6 : f32
    %211 = vector.broadcast %cst_100 : f32 to vector<1x256xf32>
    %212 = arith.addf %210, %211 : vector<1x256xf32>
    %213 = math.rsqrt %212 : vector<1x256xf32>
    %214 = arith.mulf %194, %213 : vector<1x256xf32>
    %215 = arith.mulf %201, %214 : vector<1x256xf32>
    %216 = arith.subf %195, %215 : vector<1x256xf32>
    %217 = vector.broadcast %214 : vector<1x256xf32> to vector<2x256xf32>
    %218 = arith.mulf %197, %217 : vector<2x256xf32>
    %219 = vector.broadcast %216 : vector<1x256xf32> to vector<2x256xf32>
    %220 = arith.addf %218, %219 : vector<2x256xf32>
    %cst_101 = arith.constant 0.000000e+00 : f32
    %221 = vector.broadcast %cst_101 : f32 to vector<2x256xf32>
    %222 = arith.maximumf %220, %221 : vector<2x256xf32>
    %223 = arith.truncf %222 : vector<2x256xf32> to vector<2x256xbf16>
    %cst_102 = arith.constant dense<0.000000e+00> : vector<2x256xf32>
    %224 = tpu.matmul %223, %193, %cst_102 {dimension_numbers = #tpu.dot_dimension_numbers<[1], [0], [0], [1], [0, 0, 1, 1], [], []>} : vector<2x256xbf16>, vector<256x256xbf16>, vector<2x256xf32> -> vector<2x256xf32>
    %cst_103 = arith.constant dense<0.000000e+00> : vector<256xf32>
    %225 = vector.multi_reduction <add>, %224, %cst_103 [0] : vector<2x256xf32> to vector<256xf32>
    %226 = vector.shape_cast %225 : vector<256xf32> to vector<1x256xf32>
    %cst_104 = arith.constant 2.000000e+00 : f32
    %227 = vector.broadcast %cst_104 : f32 to vector<1x256xf32>
    %228 = arith.divf %226, %227 : vector<1x256xf32>
    %229 = arith.mulf %224, %224 : vector<2x256xf32>
    %cst_105 = arith.constant dense<0.000000e+00> : vector<256xf32>
    %230 = vector.multi_reduction <add>, %229, %cst_105 [0] : vector<2x256xf32> to vector<256xf32>
    %231 = vector.shape_cast %230 : vector<256xf32> to vector<1x256xf32>
    %cst_106 = arith.constant 2.000000e+00 : f32
    %232 = vector.broadcast %cst_106 : f32 to vector<1x256xf32>
    %233 = arith.divf %231, %232 : vector<1x256xf32>
    %234 = arith.mulf %228, %228 : vector<1x256xf32>
    %235 = arith.subf %233, %234 : vector<1x256xf32>
    %cst_107 = arith.constant 0.000000e+00 : f32
    %236 = vector.broadcast %cst_107 : f32 to vector<1x256xf32>
    %237 = arith.maximumf %235, %236 : vector<1x256xf32>
    %cst_108 = arith.constant 9.99999974E-6 : f32
    %238 = vector.broadcast %cst_108 : f32 to vector<1x256xf32>
    %239 = arith.addf %237, %238 : vector<1x256xf32>
    %240 = math.rsqrt %239 : vector<1x256xf32>
    %241 = arith.mulf %194, %240 : vector<1x256xf32>
    %242 = arith.mulf %228, %241 : vector<1x256xf32>
    %243 = arith.subf %195, %242 : vector<1x256xf32>
    %244 = vector.broadcast %241 : vector<1x256xf32> to vector<2x256xf32>
    %245 = arith.mulf %224, %244 : vector<2x256xf32>
    %246 = vector.broadcast %243 : vector<1x256xf32> to vector<2x256xf32>
    %247 = arith.addf %245, %246 : vector<2x256xf32>
    %cst_109 = arith.constant 0.000000e+00 : f32
    %248 = vector.broadcast %cst_109 : f32 to vector<2x256xf32>
    %249 = arith.maximumf %247, %248 : vector<2x256xf32>
    %c0_110 = arith.constant 0 : index
    %c0_111 = arith.constant 0 : index
    %250 = vector.load %arg22[%c0_110, %c0_111] : memref<256x256xbf16, #tpu.memory_space<vmem>>, vector<256x256xbf16>
    %c0_112 = arith.constant 0 : index
    %c0_113 = arith.constant 0 : index
    %251 = vector.load %arg23[%c0_112, %c0_113] : memref<256x256xbf16, #tpu.memory_space<vmem>>, vector<256x256xbf16>
    %c0_114 = arith.constant 0 : index
    %c0_115 = arith.constant 0 : index
    %252 = vector.load %arg24[%c0_114, %c0_115] : memref<256x256xbf16, #tpu.memory_space<vmem>>, vector<256x256xbf16>
    %c0_116 = arith.constant 0 : index
    %c0_117 = arith.constant 0 : index
    %253 = vector.load %arg25[%c0_116, %c0_117] : memref<1x256xf32, #tpu.memory_space<vmem>>, vector<1x256xf32>
    %c0_118 = arith.constant 0 : index
    %c0_119 = arith.constant 0 : index
    %254 = vector.load %arg26[%c0_118, %c0_119] : memref<1x256xf32, #tpu.memory_space<vmem>>, vector<1x256xf32>
    %c0_120 = arith.constant 0 : index
    %c0_121 = arith.constant 0 : index
    %255 = vector.load %arg27[%c0_120, %c0_121] : memref<1x256xf32, #tpu.memory_space<vmem>>, vector<1x256xf32>
    %256 = arith.truncf %249 : vector<2x256xf32> to vector<2x256xbf16>
    %cst_122 = arith.constant dense<0.000000e+00> : vector<2x256xf32>
    %257 = tpu.matmul %256, %250, %cst_122 {dimension_numbers = #tpu.dot_dimension_numbers<[1], [0], [0], [1], [0, 0, 1, 1], [], []>} : vector<2x256xbf16>, vector<256x256xbf16>, vector<2x256xf32> -> vector<2x256xf32>
    %cst_123 = arith.constant dense<0.000000e+00> : vector<256xf32>
    %258 = vector.multi_reduction <add>, %257, %cst_123 [0] : vector<2x256xf32> to vector<256xf32>
    %259 = vector.shape_cast %258 : vector<256xf32> to vector<1x256xf32>
    %cst_124 = arith.constant 2.000000e+00 : f32
    %260 = vector.broadcast %cst_124 : f32 to vector<1x256xf32>
    %261 = arith.divf %259, %260 : vector<1x256xf32>
    %262 = arith.mulf %257, %257 : vector<2x256xf32>
    %cst_125 = arith.constant dense<0.000000e+00> : vector<256xf32>
    %263 = vector.multi_reduction <add>, %262, %cst_125 [0] : vector<2x256xf32> to vector<256xf32>
    %264 = vector.shape_cast %263 : vector<256xf32> to vector<1x256xf32>
    %cst_126 = arith.constant 2.000000e+00 : f32
    %265 = vector.broadcast %cst_126 : f32 to vector<1x256xf32>
    %266 = arith.divf %264, %265 : vector<1x256xf32>
    %267 = arith.mulf %261, %261 : vector<1x256xf32>
    %268 = arith.subf %266, %267 : vector<1x256xf32>
    %cst_127 = arith.constant 0.000000e+00 : f32
    %269 = vector.broadcast %cst_127 : f32 to vector<1x256xf32>
    %270 = arith.maximumf %268, %269 : vector<1x256xf32>
    %cst_128 = arith.constant 9.99999974E-6 : f32
    %271 = vector.broadcast %cst_128 : f32 to vector<1x256xf32>
    %272 = arith.addf %270, %271 : vector<1x256xf32>
    %273 = math.rsqrt %272 : vector<1x256xf32>
    %274 = arith.mulf %254, %273 : vector<1x256xf32>
    %275 = arith.mulf %261, %274 : vector<1x256xf32>
    %276 = arith.subf %255, %275 : vector<1x256xf32>
    %277 = vector.broadcast %274 : vector<1x256xf32> to vector<2x256xf32>
    %278 = arith.mulf %257, %277 : vector<2x256xf32>
    %279 = vector.broadcast %276 : vector<1x256xf32> to vector<2x256xf32>
    %280 = arith.addf %278, %279 : vector<2x256xf32>
    %cst_129 = arith.constant 0.000000e+00 : f32
    %281 = vector.broadcast %cst_129 : f32 to vector<2x256xf32>
    %282 = arith.maximumf %280, %281 : vector<2x256xf32>
    %283 = arith.truncf %282 : vector<2x256xf32> to vector<2x256xbf16>
    %cst_130 = arith.constant dense<0.000000e+00> : vector<2x256xf32>
    %284 = tpu.matmul %283, %251, %cst_130 {dimension_numbers = #tpu.dot_dimension_numbers<[1], [0], [0], [1], [0, 0, 1, 1], [], []>} : vector<2x256xbf16>, vector<256x256xbf16>, vector<2x256xf32> -> vector<2x256xf32>
    %cst_131 = arith.constant dense<0.000000e+00> : vector<256xf32>
    %285 = vector.multi_reduction <add>, %284, %cst_131 [0] : vector<2x256xf32> to vector<256xf32>
    %286 = vector.shape_cast %285 : vector<256xf32> to vector<1x256xf32>
    %cst_132 = arith.constant 2.000000e+00 : f32
    %287 = vector.broadcast %cst_132 : f32 to vector<1x256xf32>
    %288 = arith.divf %286, %287 : vector<1x256xf32>
    %289 = arith.mulf %284, %284 : vector<2x256xf32>
    %cst_133 = arith.constant dense<0.000000e+00> : vector<256xf32>
    %290 = vector.multi_reduction <add>, %289, %cst_133 [0] : vector<2x256xf32> to vector<256xf32>
    %291 = vector.shape_cast %290 : vector<256xf32> to vector<1x256xf32>
    %cst_134 = arith.constant 2.000000e+00 : f32
    %292 = vector.broadcast %cst_134 : f32 to vector<1x256xf32>
    %293 = arith.divf %291, %292 : vector<1x256xf32>
    %294 = arith.mulf %288, %288 : vector<1x256xf32>
    %295 = arith.subf %293, %294 : vector<1x256xf32>
    %cst_135 = arith.constant 0.000000e+00 : f32
    %296 = vector.broadcast %cst_135 : f32 to vector<1x256xf32>
    %297 = arith.maximumf %295, %296 : vector<1x256xf32>
    %cst_136 = arith.constant 9.99999974E-6 : f32
    %298 = vector.broadcast %cst_136 : f32 to vector<1x256xf32>
    %299 = arith.addf %297, %298 : vector<1x256xf32>
    %300 = math.rsqrt %299 : vector<1x256xf32>
    %301 = arith.mulf %254, %300 : vector<1x256xf32>
    %302 = arith.mulf %288, %301 : vector<1x256xf32>
    %303 = arith.subf %255, %302 : vector<1x256xf32>
    %304 = vector.broadcast %301 : vector<1x256xf32> to vector<2x256xf32>
    %305 = arith.mulf %284, %304 : vector<2x256xf32>
    %306 = vector.broadcast %303 : vector<1x256xf32> to vector<2x256xf32>
    %307 = arith.addf %305, %306 : vector<2x256xf32>
    %cst_137 = arith.constant 0.000000e+00 : f32
    %308 = vector.broadcast %cst_137 : f32 to vector<2x256xf32>
    %309 = arith.maximumf %307, %308 : vector<2x256xf32>
    %310 = arith.truncf %249 : vector<2x256xf32> to vector<2x256xbf16>
    %cst_138 = arith.constant dense<0.000000e+00> : vector<2x256xf32>
    %311 = tpu.matmul %310, %252, %cst_138 {dimension_numbers = #tpu.dot_dimension_numbers<[1], [0], [0], [1], [0, 0, 1, 1], [], []>} : vector<2x256xbf16>, vector<256x256xbf16>, vector<2x256xf32> -> vector<2x256xf32>
    %312 = arith.addf %309, %311 : vector<2x256xf32>
    %313 = vector.broadcast %253 : vector<1x256xf32> to vector<2x256xf32>
    %314 = arith.addf %312, %313 : vector<2x256xf32>
    %cst_139 = arith.constant 0.000000e+00 : f32
    %315 = vector.broadcast %cst_139 : f32 to vector<2x256xf32>
    %316 = arith.maximumf %314, %315 : vector<2x256xf32>
    %c0_140 = arith.constant 0 : index
    %c0_141 = arith.constant 0 : index
    %317 = vector.load %arg28[%c0_140, %c0_141] : memref<256x512xbf16, #tpu.memory_space<vmem>>, vector<256x512xbf16>
    %c0_142 = arith.constant 0 : index
    %c0_143 = arith.constant 0 : index
    %318 = vector.load %arg29[%c0_142, %c0_143] : memref<512x512xbf16, #tpu.memory_space<vmem>>, vector<512x512xbf16>
    %c0_144 = arith.constant 0 : index
    %c0_145 = arith.constant 0 : index
    %319 = vector.load %arg30[%c0_144, %c0_145] : memref<1x512xf32, #tpu.memory_space<vmem>>, vector<1x512xf32>
    %c0_146 = arith.constant 0 : index
    %c0_147 = arith.constant 0 : index
    %320 = vector.load %arg31[%c0_146, %c0_147] : memref<1x512xf32, #tpu.memory_space<vmem>>, vector<1x512xf32>
    %321 = arith.truncf %316 : vector<2x256xf32> to vector<2x256xbf16>
    %cst_148 = arith.constant dense<0.000000e+00> : vector<2x512xf32>
    %322 = tpu.matmul %321, %317, %cst_148 {dimension_numbers = #tpu.dot_dimension_numbers<[1], [0], [0], [1], [0, 0, 1, 1], [], []>} : vector<2x256xbf16>, vector<256x512xbf16>, vector<2x512xf32> -> vector<2x512xf32>
    %cst_149 = arith.constant dense<0.000000e+00> : vector<512xf32>
    %323 = vector.multi_reduction <add>, %322, %cst_149 [0] : vector<2x512xf32> to vector<512xf32>
    %324 = vector.shape_cast %323 : vector<512xf32> to vector<1x512xf32>
    %cst_150 = arith.constant 2.000000e+00 : f32
    %325 = vector.broadcast %cst_150 : f32 to vector<1x512xf32>
    %326 = arith.divf %324, %325 : vector<1x512xf32>
    %327 = arith.mulf %322, %322 : vector<2x512xf32>
    %cst_151 = arith.constant dense<0.000000e+00> : vector<512xf32>
    %328 = vector.multi_reduction <add>, %327, %cst_151 [0] : vector<2x512xf32> to vector<512xf32>
    %329 = vector.shape_cast %328 : vector<512xf32> to vector<1x512xf32>
    %cst_152 = arith.constant 2.000000e+00 : f32
    %330 = vector.broadcast %cst_152 : f32 to vector<1x512xf32>
    %331 = arith.divf %329, %330 : vector<1x512xf32>
    %332 = arith.mulf %326, %326 : vector<1x512xf32>
    %333 = arith.subf %331, %332 : vector<1x512xf32>
    %cst_153 = arith.constant 0.000000e+00 : f32
    %334 = vector.broadcast %cst_153 : f32 to vector<1x512xf32>
    %335 = arith.maximumf %333, %334 : vector<1x512xf32>
    %cst_154 = arith.constant 9.99999974E-6 : f32
    %336 = vector.broadcast %cst_154 : f32 to vector<1x512xf32>
    %337 = arith.addf %335, %336 : vector<1x512xf32>
    %338 = math.rsqrt %337 : vector<1x512xf32>
    %339 = arith.mulf %319, %338 : vector<1x512xf32>
    %340 = arith.mulf %326, %339 : vector<1x512xf32>
    %341 = arith.subf %320, %340 : vector<1x512xf32>
    %342 = vector.broadcast %339 : vector<1x512xf32> to vector<2x512xf32>
    %343 = arith.mulf %322, %342 : vector<2x512xf32>
    %344 = vector.broadcast %341 : vector<1x512xf32> to vector<2x512xf32>
    %345 = arith.addf %343, %344 : vector<2x512xf32>
    %cst_155 = arith.constant 0.000000e+00 : f32
    %346 = vector.broadcast %cst_155 : f32 to vector<2x512xf32>
    %347 = arith.maximumf %345, %346 : vector<2x512xf32>
    %348 = arith.truncf %347 : vector<2x512xf32> to vector<2x512xbf16>
    %cst_156 = arith.constant dense<0.000000e+00> : vector<2x512xf32>
    %349 = tpu.matmul %348, %318, %cst_156 {dimension_numbers = #tpu.dot_dimension_numbers<[1], [0], [0], [1], [0, 0, 1, 1], [], []>} : vector<2x512xbf16>, vector<512x512xbf16>, vector<2x512xf32> -> vector<2x512xf32>
    %cst_157 = arith.constant dense<0.000000e+00> : vector<512xf32>
    %350 = vector.multi_reduction <add>, %349, %cst_157 [0] : vector<2x512xf32> to vector<512xf32>
    %351 = vector.shape_cast %350 : vector<512xf32> to vector<1x512xf32>
    %cst_158 = arith.constant 2.000000e+00 : f32
    %352 = vector.broadcast %cst_158 : f32 to vector<1x512xf32>
    %353 = arith.divf %351, %352 : vector<1x512xf32>
    %354 = arith.mulf %349, %349 : vector<2x512xf32>
    %cst_159 = arith.constant dense<0.000000e+00> : vector<512xf32>
    %355 = vector.multi_reduction <add>, %354, %cst_159 [0] : vector<2x512xf32> to vector<512xf32>
    %356 = vector.shape_cast %355 : vector<512xf32> to vector<1x512xf32>
    %cst_160 = arith.constant 2.000000e+00 : f32
    %357 = vector.broadcast %cst_160 : f32 to vector<1x512xf32>
    %358 = arith.divf %356, %357 : vector<1x512xf32>
    %359 = arith.mulf %353, %353 : vector<1x512xf32>
    %360 = arith.subf %358, %359 : vector<1x512xf32>
    %cst_161 = arith.constant 0.000000e+00 : f32
    %361 = vector.broadcast %cst_161 : f32 to vector<1x512xf32>
    %362 = arith.maximumf %360, %361 : vector<1x512xf32>
    %cst_162 = arith.constant 9.99999974E-6 : f32
    %363 = vector.broadcast %cst_162 : f32 to vector<1x512xf32>
    %364 = arith.addf %362, %363 : vector<1x512xf32>
    %365 = math.rsqrt %364 : vector<1x512xf32>
    %366 = arith.mulf %319, %365 : vector<1x512xf32>
    %367 = arith.mulf %353, %366 : vector<1x512xf32>
    %368 = arith.subf %320, %367 : vector<1x512xf32>
    %369 = vector.broadcast %366 : vector<1x512xf32> to vector<2x512xf32>
    %370 = arith.mulf %349, %369 : vector<2x512xf32>
    %371 = vector.broadcast %368 : vector<1x512xf32> to vector<2x512xf32>
    %372 = arith.addf %370, %371 : vector<2x512xf32>
    %cst_163 = arith.constant 0.000000e+00 : f32
    %373 = vector.broadcast %cst_163 : f32 to vector<2x512xf32>
    %374 = arith.maximumf %372, %373 : vector<2x512xf32>
    %c0_164 = arith.constant 0 : index
    %c0_165 = arith.constant 0 : index
    %375 = vector.load %arg32[%c0_164, %c0_165] : memref<512x512xbf16, #tpu.memory_space<vmem>>, vector<512x512xbf16>
    %c0_166 = arith.constant 0 : index
    %c0_167 = arith.constant 0 : index
    %376 = vector.load %arg33[%c0_166, %c0_167] : memref<512x512xbf16, #tpu.memory_space<vmem>>, vector<512x512xbf16>
    %c0_168 = arith.constant 0 : index
    %c0_169 = arith.constant 0 : index
    %377 = vector.load %arg34[%c0_168, %c0_169] : memref<512x512xbf16, #tpu.memory_space<vmem>>, vector<512x512xbf16>
    %c0_170 = arith.constant 0 : index
    %c0_171 = arith.constant 0 : index
    %378 = vector.load %arg35[%c0_170, %c0_171] : memref<1x512xf32, #tpu.memory_space<vmem>>, vector<1x512xf32>
    %c0_172 = arith.constant 0 : index
    %c0_173 = arith.constant 0 : index
    %379 = vector.load %arg36[%c0_172, %c0_173] : memref<1x512xf32, #tpu.memory_space<vmem>>, vector<1x512xf32>
    %c0_174 = arith.constant 0 : index
    %c0_175 = arith.constant 0 : index
    %380 = vector.load %arg37[%c0_174, %c0_175] : memref<1x512xf32, #tpu.memory_space<vmem>>, vector<1x512xf32>
    %381 = arith.truncf %374 : vector<2x512xf32> to vector<2x512xbf16>
    %cst_176 = arith.constant dense<0.000000e+00> : vector<2x512xf32>
    %382 = tpu.matmul %381, %375, %cst_176 {dimension_numbers = #tpu.dot_dimension_numbers<[1], [0], [0], [1], [0, 0, 1, 1], [], []>} : vector<2x512xbf16>, vector<512x512xbf16>, vector<2x512xf32> -> vector<2x512xf32>
    %cst_177 = arith.constant dense<0.000000e+00> : vector<512xf32>
    %383 = vector.multi_reduction <add>, %382, %cst_177 [0] : vector<2x512xf32> to vector<512xf32>
    %384 = vector.shape_cast %383 : vector<512xf32> to vector<1x512xf32>
    %cst_178 = arith.constant 2.000000e+00 : f32
    %385 = vector.broadcast %cst_178 : f32 to vector<1x512xf32>
    %386 = arith.divf %384, %385 : vector<1x512xf32>
    %387 = arith.mulf %382, %382 : vector<2x512xf32>
    %cst_179 = arith.constant dense<0.000000e+00> : vector<512xf32>
    %388 = vector.multi_reduction <add>, %387, %cst_179 [0] : vector<2x512xf32> to vector<512xf32>
    %389 = vector.shape_cast %388 : vector<512xf32> to vector<1x512xf32>
    %cst_180 = arith.constant 2.000000e+00 : f32
    %390 = vector.broadcast %cst_180 : f32 to vector<1x512xf32>
    %391 = arith.divf %389, %390 : vector<1x512xf32>
    %392 = arith.mulf %386, %386 : vector<1x512xf32>
    %393 = arith.subf %391, %392 : vector<1x512xf32>
    %cst_181 = arith.constant 0.000000e+00 : f32
    %394 = vector.broadcast %cst_181 : f32 to vector<1x512xf32>
    %395 = arith.maximumf %393, %394 : vector<1x512xf32>
    %cst_182 = arith.constant 9.99999974E-6 : f32
    %396 = vector.broadcast %cst_182 : f32 to vector<1x512xf32>
    %397 = arith.addf %395, %396 : vector<1x512xf32>
    %398 = math.rsqrt %397 : vector<1x512xf32>
    %399 = arith.mulf %379, %398 : vector<1x512xf32>
    %400 = arith.mulf %386, %399 : vector<1x512xf32>
    %401 = arith.subf %380, %400 : vector<1x512xf32>
    %402 = vector.broadcast %399 : vector<1x512xf32> to vector<2x512xf32>
    %403 = arith.mulf %382, %402 : vector<2x512xf32>
    %404 = vector.broadcast %401 : vector<1x512xf32> to vector<2x512xf32>
    %405 = arith.addf %403, %404 : vector<2x512xf32>
    %cst_183 = arith.constant 0.000000e+00 : f32
    %406 = vector.broadcast %cst_183 : f32 to vector<2x512xf32>
    %407 = arith.maximumf %405, %406 : vector<2x512xf32>
    %408 = arith.truncf %407 : vector<2x512xf32> to vector<2x512xbf16>
    %cst_184 = arith.constant dense<0.000000e+00> : vector<2x512xf32>
    %409 = tpu.matmul %408, %376, %cst_184 {dimension_numbers = #tpu.dot_dimension_numbers<[1], [0], [0], [1], [0, 0, 1, 1], [], []>} : vector<2x512xbf16>, vector<512x512xbf16>, vector<2x512xf32> -> vector<2x512xf32>
    %cst_185 = arith.constant dense<0.000000e+00> : vector<512xf32>
    %410 = vector.multi_reduction <add>, %409, %cst_185 [0] : vector<2x512xf32> to vector<512xf32>
    %411 = vector.shape_cast %410 : vector<512xf32> to vector<1x512xf32>
    %cst_186 = arith.constant 2.000000e+00 : f32
    %412 = vector.broadcast %cst_186 : f32 to vector<1x512xf32>
    %413 = arith.divf %411, %412 : vector<1x512xf32>
    %414 = arith.mulf %409, %409 : vector<2x512xf32>
    %cst_187 = arith.constant dense<0.000000e+00> : vector<512xf32>
    %415 = vector.multi_reduction <add>, %414, %cst_187 [0] : vector<2x512xf32> to vector<512xf32>
    %416 = vector.shape_cast %415 : vector<512xf32> to vector<1x512xf32>
    %cst_188 = arith.constant 2.000000e+00 : f32
    %417 = vector.broadcast %cst_188 : f32 to vector<1x512xf32>
    %418 = arith.divf %416, %417 : vector<1x512xf32>
    %419 = arith.mulf %413, %413 : vector<1x512xf32>
    %420 = arith.subf %418, %419 : vector<1x512xf32>
    %cst_189 = arith.constant 0.000000e+00 : f32
    %421 = vector.broadcast %cst_189 : f32 to vector<1x512xf32>
    %422 = arith.maximumf %420, %421 : vector<1x512xf32>
    %cst_190 = arith.constant 9.99999974E-6 : f32
    %423 = vector.broadcast %cst_190 : f32 to vector<1x512xf32>
    %424 = arith.addf %422, %423 : vector<1x512xf32>
    %425 = math.rsqrt %424 : vector<1x512xf32>
    %426 = arith.mulf %379, %425 : vector<1x512xf32>
    %427 = arith.mulf %413, %426 : vector<1x512xf32>
    %428 = arith.subf %380, %427 : vector<1x512xf32>
    %429 = vector.broadcast %426 : vector<1x512xf32> to vector<2x512xf32>
    %430 = arith.mulf %409, %429 : vector<2x512xf32>
    %431 = vector.broadcast %428 : vector<1x512xf32> to vector<2x512xf32>
    %432 = arith.addf %430, %431 : vector<2x512xf32>
    %cst_191 = arith.constant 0.000000e+00 : f32
    %433 = vector.broadcast %cst_191 : f32 to vector<2x512xf32>
    %434 = arith.maximumf %432, %433 : vector<2x512xf32>
    %435 = arith.truncf %374 : vector<2x512xf32> to vector<2x512xbf16>
    %cst_192 = arith.constant dense<0.000000e+00> : vector<2x512xf32>
    %436 = tpu.matmul %435, %377, %cst_192 {dimension_numbers = #tpu.dot_dimension_numbers<[1], [0], [0], [1], [0, 0, 1, 1], [], []>} : vector<2x512xbf16>, vector<512x512xbf16>, vector<2x512xf32> -> vector<2x512xf32>
    %437 = arith.addf %434, %436 : vector<2x512xf32>
    %438 = vector.broadcast %378 : vector<1x512xf32> to vector<2x512xf32>
    %439 = arith.addf %437, %438 : vector<2x512xf32>
    %cst_193 = arith.constant 0.000000e+00 : f32
    %440 = vector.broadcast %cst_193 : f32 to vector<2x512xf32>
    %441 = arith.maximumf %439, %440 : vector<2x512xf32>
    %c0_194 = arith.constant 0 : index
    %c0_195 = arith.constant 0 : index
    %442 = vector.load %arg38[%c0_194, %c0_195] : memref<2x512xf32, #tpu.memory_space<vmem>>, vector<2x512xf32>
    tpu.vector_store %arg38[%c0_194, %c0_195], %441 {strides = array<i32>} : memref<2x512xf32, #tpu.memory_space<vmem>>, vector<2x512xf32>,
    return
  }
}

</mosaic_0001>

<bundles_post_ra>
// kernel: my_resnet_forward.4
= control target key start
LH: loop header
LB: loop body
LE: loop exit
PB: predicated region body
PF: predicated region fallthrough
CT: control target
= control target key end

     0   :  { %v2047_v0 = vmov 0   ;;  %vm821_vm0 = vcmask 523264   ;;  %vm1623_vm1 = vcmask 519168   ;;  %s3843_s1 = inlined_call_operand.vmem [shape: bf16[256,64], index: 1, kind: input, shape index: {}]   ;;  %s3844_s0 = inlined_call_operand.vmem [shape: bf16[512,256], index: 0, kind: input, shape index: {}]   ;;  %s3845_s2 = inlined_call_operand.vmem [shape: f32[1,64], index: 2, kind: input, shape index: {}]   ;;  %s3846_s3 = inlined_call_operand.vmem [shape: f32[1,64], index: 3, kind: input, shape index: {}]   ;;  %s3847_s4 = inlined_call_operand.vmem [shape: bf16[512,64], index: 4, kind: output, shape index: {}]  }
   0x1   :  { %530 = vmatprep.subr.bf16.mxu0 %v2047_v0  ;;  %v1933_v1 = vld [vmem:[%s3843_s1] sm:$0xff]   ;;  %1900 = vmatprep.subr.bf16.mxu1 %v2047_v0  ;;  %v1934_v2 = vld [vmem:[%s3843_s1 + $0x8] sm:$0xff]   ;;  %v1935_v3 = vld [vmem:[%s3843_s1 + $0x10] sm:$0xff]  }
   0x2   :  { %531 = vmatpush1.bf16.msra.mxu0 %v1933_v1  ;;  %1916 = vmatpush1.bf16.msra.mxu1 %v1933_v1  ;;  %v1936_v4 = vld [vmem:[%s3843_s1 + $0x18] sm:$0xff]   ;;  %v1937_v5 = vld [vmem:[%s3843_s1 + $0x20] sm:$0xff]   ;;  %v1938_v7 = vld [vmem:[%s3843_s1 + $0x28] sm:$0xff]  }
   0x3   :  { %532 = vmatprep.subr.bf16.mxu0 %v2047_v0  ;;  %1901 = vmatprep.subr.bf16.mxu1 %v2047_v0  ;;  %v1951_v6 = vld [vmem:[%s3844_s0 + $0x4] ss:$8 sps:$4 sm:$0xff]   ;;  %v1939_v8 = vld [vmem:[%s3843_s1 + $0x30] sm:$0xff]   ;;  %v1940_v9 = vld [vmem:[%s3843_s1 + $0x38] sm:$0xff]  }
   0x4   :  { %562 = vmatprep.mubr.bf16.mxu0 %v1951_v6  ;;  %v1975_v10 = vld [vmem:[%s3844_s0 + $0x104] ss:$8 sps:$4 sm:$0xff]   ;;  %v1943_v13 = vld [vmem:[%s3843_s1 + $0x50] sm:$0xff]   ;;  %v1944_v14 = vld [vmem:[%s3843_s1 + $0x58] sm:$0xff]  }
   0x5   :  { %690 = vmatprep.mubr.bf16.mxu1 %v1975_v10  ;;  %v1941_v11 = vld [vmem:[%s3843_s1 + $0x40] sm:$0xff]   ;;  %v1942_v12 = vld [vmem:[%s3843_s1 + $0x48] sm:$0xff]   ;;  %v1947_v17 = vld [vmem:[%s3843_s1 + $0x70] sm:$0xff]  }
   0x6   :  { %533 = vmatpush1.bf16.msra.mxu0 %v1934_v2  ;;  %1917 = vmatpush1.bf16.msra.mxu1 %v1934_v2  ;;  %v1945_v15 = vld [vmem:[%s3843_s1 + $0x60] sm:$0xff]   ;;  %v1946_v16 = vld [vmem:[%s3843_s1 + $0x68] sm:$0xff]   ;;  %v1948_v18 = vld [vmem:[%s3843_s1 + $0x78] sm:$0xff]  }
   0x7   :  { %534 = vmatprep.subr.bf16.mxu0 %v2047_v0  ;;  %1902 = vmatprep.subr.bf16.mxu1 %v2047_v0  ;;  %v1949_v19 = vld [vmem:[%s3844_s0] ss:$8 sps:$4 sm:$0xff]   ;;  %v1952_v21 = vld [vmem:[%s3844_s0 + $0x14] ss:$8 sps:$4 sm:$0xff]   ;;  %v1954_v23 = vld [vmem:[%s3844_s0 + $0x10] ss:$8 sps:$4 sm:$0xff]  }
   0x8   :  { %v1973_v20 = vld [vmem:[%s3844_s0 + $0x100] ss:$8 sps:$4 sm:$0xff]   ;;  %v1979_v22 = vld [vmem:[%s3844_s0 + $0x114] ss:$8 sps:$4 sm:$0xff]   ;;  %v1981_v24 = vld [vmem:[%s3844_s0 + $0x110] ss:$8 sps:$4 sm:$0xff]  }
   0x9   :  { %v1955_v25 = vld [vmem:[%s3844_s0 + $0x24] ss:$8 sps:$4 sm:$0xff]   ;;  %v1957_v27 = vld [vmem:[%s3844_s0 + $0x20] ss:$8 sps:$4 sm:$0xff]   ;;  %v1958_v29 = vld [vmem:[%s3844_s0 + $0x34] ss:$8 sps:$4 sm:$0xff]  }
   0xa   :  { %535 = vmatpush1.bf16.msra.mxu0 %v1935_v3  ;;  %1918 = vmatpush1.bf16.msra.mxu1 %v1935_v3  ;;  %v1985_v26 = vld [vmem:[%s3844_s0 + $0x124] ss:$8 sps:$4 sm:$0xff]   ;;  %v1987_v28 = vld [vmem:[%s3844_s0 + $0x120] ss:$8 sps:$4 sm:$0xff]   ;;  %v1991_v30 = vld [vmem:[%s3844_s0 + $0x134] ss:$8 sps:$4 sm:$0xff]  }
   0xb   :  { %536 = vmatprep.subr.bf16.mxu0 %v2047_v0  ;;  %1903 = vmatprep.subr.bf16.mxu1 %v2047_v0  ;;  %v1960_v31 = vld [vmem:[%s3844_s0 + $0x30] ss:$8 sps:$4 sm:$0xff]   ;;  %v1961_v33 = vld [vmem:[%s3844_s0 + $0x44] ss:$8 sps:$4 sm:$0xff]   ;;  %v1963_v35 = vld [vmem:[%s3844_s0 + $0x40] ss:$8 sps:$4 sm:$0xff]  }
   0xc   :  { %v1993_v32 = vld [vmem:[%s3844_s0 + $0x130] ss:$8 sps:$4 sm:$0xff]   ;;  %v1997_v34 = vld [vmem:[%s3844_s0 + $0x144] ss:$8 sps:$4 sm:$0xff]   ;;  %v1999_v36 = vld [vmem:[%s3844_s0 + $0x140] ss:$8 sps:$4 sm:$0xff]  }
   0xd   :  { %v1964_v37 = vld [vmem:[%s3844_s0 + $0x54] ss:$8 sps:$4 sm:$0xff]   ;;  %v1966_v39 = vld [vmem:[%s3844_s0 + $0x50] ss:$8 sps:$4 sm:$0xff]   ;;  %v1967_v41 = vld [vmem:[%s3844_s0 + $0x64] ss:$8 sps:$4 sm:$0xff]  }
   0xe   :  { %537 = vmatpush1.bf16.msra.mxu0 %v1936_v4  ;;  %1919 = vmatpush1.bf16.msra.mxu1 %v1936_v4  ;;  %v2003_v38 = vld [vmem:[%s3844_s0 + $0x154] ss:$8 sps:$4 sm:$0xff]   ;;  %v2005_v40 = vld [vmem:[%s3844_s0 + $0x150] ss:$8 sps:$4 sm:$0xff]   ;;  %v2009_v42 = vld [vmem:[%s3844_s0 + $0x164] ss:$8 sps:$4 sm:$0xff]  }
   0xf   :  { %538 = vmatprep.subr.bf16.mxu0 %v2047_v0  ;;  %1904 = vmatprep.subr.bf16.mxu1 %v2047_v0  ;;  %v1969_v43 = vld [vmem:[%s3844_s0 + $0x60] ss:$8 sps:$4 sm:$0xff]   ;;  %v1970_v45 = vld [vmem:[%s3844_s0 + $0x74] ss:$8 sps:$4 sm:$0xff]   ;;  %v1972_v47 = vld [vmem:[%s3844_s0 + $0x70] ss:$8 sps:$4 sm:$0xff]  }
  0x10   :  { %v2011_v44 = vld [vmem:[%s3844_s0 + $0x160] ss:$8 sps:$4 sm:$0xff]   ;;  %v2015_v46 = vld [vmem:[%s3844_s0 + $0x174] ss:$8 sps:$4 sm:$0xff]   ;;  %v2017_v48 = vld [vmem:[%s3844_s0 + $0x170] ss:$8 sps:$4 sm:$0xff]  }
  0x11   :  { %v1976_v49 = vld [vmem:[%s3844_s0 + $0x84] ss:$8 sps:$4 sm:$0xff]   ;;  %v1978_v51 = vld [vmem:[%s3844_s0 + $0x80] ss:$8 sps:$4 sm:$0xff]   ;;  %v1982_v53 = vld [vmem:[%s3844_s0 + $0x94] ss:$8 sps:$4 sm:$0xff]  }
  0x12   :  { %539 = vmatpush1.bf16.msra.mxu0 %v1937_v5  ;;  %1920 = vmatpush1.bf16.msra.mxu1 %v1937_v5  ;;  %v2021_v50 = vld [vmem:[%s3844_s0 + $0x184] ss:$8 sps:$4 sm:$0xff]   ;;  %v2023_v52 = vld [vmem:[%s3844_s0 + $0x180] ss:$8 sps:$4 sm:$0xff]   ;;  %v2024_v54 = vld [vmem:[%s3844_s0 + $0x194] ss:$8 sps:$4 sm:$0xff]  }
  0x13   :  { %540 = vmatprep.subr.bf16.mxu0 %v2047_v0  ;;  %1905 = vmatprep.subr.bf16.mxu1 %v2047_v0  ;;  %v1984_v55 = vld [vmem:[%s3844_s0 + $0x90] ss:$8 sps:$4 sm:$0xff]   ;;  %v1988_v57 = vld [vmem:[%s3844_s0 + $0xa4] ss:$8 sps:$4 sm:$0xff]   ;;  %v1990_v59 = vld [vmem:[%s3844_s0 + $0xa0] ss:$8 sps:$4 sm:$0xff]  }
  0x14   :  { %v2026_v56 = vld [vmem:[%s3844_s0 + $0x190] ss:$8 sps:$4 sm:$0xff]   ;;  %v2027_v58 = vld [vmem:[%s3844_s0 + $0x1a4] ss:$8 sps:$4 sm:$0xff]   ;;  %v2029_v60 = vld [vmem:[%s3844_s0 + $0x1a0] ss:$8 sps:$4 sm:$0xff]  }
  0x15   :  { %v1994_v61 = vld [vmem:[%s3844_s0 + $0xb4] ss:$8 sps:$4 sm:$0xff]   ;;  %v1996_v63 = vld [vmem:[%s3844_s0 + $0xb0] ss:$8 sps:$4 sm:$0xff]   ;;  %v2000_v1 = vld [vmem:[%s3844_s0 + $0xc4] ss:$8 sps:$4 sm:$0xff]  }
  0x16   :  { %541 = vmatpush1.bf16.msra.mxu0 %v1938_v7  ;;  %1921 = vmatpush1.bf16.msra.mxu1 %v1938_v7  ;;  %v2030_v62 = vld [vmem:[%s3844_s0 + $0x1b4] ss:$8 sps:$4 sm:$0xff]   ;;  %v2033_v2 = vld [vmem:[%s3844_s0 + $0x1c4] ss:$8 sps:$4 sm:$0xff]   ;;  %v2002_v3 = vld [vmem:[%s3844_s0 + $0xc0] ss:$8 sps:$4 sm:$0xff]  }
  0x17   :  { %542 = vmatprep.subr.bf16.mxu0 %v2047_v0  ;;  %1906 = vmatprep.subr.bf16.mxu1 %v2047_v0  ;;  %v2035_v4 = vld [vmem:[%s3844_s0 + $0x1c0] ss:$8 sps:$4 sm:$0xff]   ;;  %v2006_v5 = vld [vmem:[%s3844_s0 + $0xd4] ss:$8 sps:$4 sm:$0xff]   ;;  %v2008_v7 = vld [vmem:[%s3844_s0 + $0xd0] ss:$8 sps:$4 sm:$0xff]  }
  0x18   :  { %v2036_v6 = vld [vmem:[%s3844_s0 + $0x1d4] ss:$8 sps:$4 sm:$0xff]   ;;  %v2039_v10 = vld [vmem:[%s3844_s0 + $0x1e4] ss:$8 sps:$4 sm:$0xff]  }
  0x1a   :  { %543 = vmatpush1.bf16.msra.mxu0 %v1939_v8  ;;  %1922 = vmatpush1.bf16.msra.mxu1 %v1939_v8  ;;  %v2038_v8 = vld [vmem:[%s3844_s0 + $0x1d0] ss:$8 sps:$4 sm:$0xff]  }
  0x1b   :  { %544 = vmatprep.subr.bf16.mxu0 %v2047_v0  ;;  %1907 = vmatprep.subr.bf16.mxu1 %v2047_v0 }
  0x1e   :  { %545 = vmatpush1.bf16.msra.mxu0 %v1940_v9  ;;  %1923 = vmatpush1.bf16.msra.mxu1 %v1940_v9  ;;  %v2012_v9 = vld [vmem:[%s3844_s0 + $0xe4] ss:$8 sps:$4 sm:$0xff]  }
  0x1f   :  { %546 = vmatprep.subr.bf16.mxu0 %v2047_v0  ;;  %1908 = vmatprep.subr.bf16.mxu1 %v2047_v0 }
  0x22   :  { %547 = vmatpush1.bf16.msra.mxu0 %v1941_v11  ;;  %1924 = vmatpush1.bf16.msra.mxu1 %v1941_v11  ;;  %v2014_v11 = vld [vmem:[%s3844_s0 + $0xe0] ss:$8 sps:$4 sm:$0xff]  }
  0x23   :  { %548 = vmatprep.subr.bf16.mxu0 %v2047_v0  ;;  %1909 = vmatprep.subr.bf16.mxu1 %v2047_v0 }
  0x26   :  { %549 = vmatpush1.bf16.msra.mxu0 %v1942_v12  ;;  %1925 = vmatpush1.bf16.msra.mxu1 %v1942_v12  ;;  %v2041_v12 = vld [vmem:[%s3844_s0 + $0x1e0] ss:$8 sps:$4 sm:$0xff]  }
  0x27   :  { %550 = vmatprep.subr.bf16.mxu0 %v2047_v0  ;;  %1910 = vmatprep.subr.bf16.mxu1 %v2047_v0 }
  0x2a   :  { %551 = vmatpush1.bf16.msra.mxu0 %v1943_v13  ;;  %1926 = vmatpush1.bf16.msra.mxu1 %v1943_v13  ;;  %v2018_v13 = vld [vmem:[%s3844_s0 + $0xf4] ss:$8 sps:$4 sm:$0xff]  }
  0x2b   :  { %552 = vmatprep.subr.bf16.mxu0 %v2047_v0  ;;  %1911 = vmatprep.subr.bf16.mxu1 %v2047_v0 }
  0x2e   :  { %553 = vmatpush1.bf16.msra.mxu0 %v1944_v14  ;;  %1927 = vmatpush1.bf16.msra.mxu1 %v1944_v14  ;;  %v2042_v14 = vld [vmem:[%s3844_s0 + $0x1f4] ss:$8 sps:$4 sm:$0xff]  }
  0x2f   :  { %554 = vmatprep.subr.bf16.mxu0 %v2047_v0  ;;  %1912 = vmatprep.subr.bf16.mxu1 %v2047_v0 }
  0x32   :  { %555 = vmatpush1.bf16.msra.mxu0 %v1945_v15  ;;  %1928 = vmatpush1.bf16.msra.mxu1 %v1945_v15  ;;  %v2020_v15 = vld [vmem:[%s3844_s0 + $0xf0] ss:$8 sps:$4 sm:$0xff]  }
  0x33   :  { %556 = vmatprep.subr.bf16.mxu0 %v2047_v0  ;;  %1913 = vmatprep.subr.bf16.mxu1 %v2047_v0 }
  0x36   :  { %557 = vmatpush1.bf16.msra.mxu0 %v1946_v16  ;;  %1929 = vmatpush1.bf16.msra.mxu1 %v1946_v16  ;;  %v2044_v16 = vld [vmem:[%s3844_s0 + $0x1f0] ss:$8 sps:$4 sm:$0xff]  }
  0x37   :  { %558 = vmatprep.subr.bf16.mxu0 %v2047_v0  ;;  %1914 = vmatprep.subr.bf16.mxu1 %v2047_v0 }
  0x3a   :  { %559 = vmatpush1.bf16.msra.mxu0 %v1947_v17  ;;  %1930 = vmatpush1.bf16.msra.mxu1 %v1947_v17 }
  0x3b   :  { %560 = vmatprep.subr.bf16.mxu0 %v2047_v0  ;;  %1915 = vmatprep.subr.bf16.mxu1 %v2047_v0  ;;  %v2032_v0 = vld [vmem:[%s3844_s0 + $0x1b0] ss:$8 sps:$4 sm:$0xff]  }
  0x3e   :  { %561 = vmatpush1.bf16.msra.mxu0 %v1948_v18  ;;  %1931 = vmatpush1.bf16.msra.mxu1 %v1948_v18 }
  0x41   :  { %563 = vmatmul.mubr.bf16.vlgmr.msra.gmra.mrb[0].mxu0 %v1949_v19  ;;  %691 = vmatmul.mubr.bf16.vlgmr.msra.gmra.mrb[0].mxu1 %v1973_v20 }
  0x42   :  { %570 = vmatprep.mubr.bf16.mxu0 %v1952_v21  ;;  %698 = vmatprep.mubr.bf16.mxu1 %v1979_v22 }
  0x49   :  { %571 = vmatmul.mubr.bf16.gmra.mrb[4].mxu0 %v1954_v23  ;;  %699 = vmatmul.mubr.bf16.gmra.mrb[4].mxu1 %v1981_v24 }
  0x4a   :  { %578 = vmatprep.mubr.bf16.mxu0 %v1955_v25  ;;  %706 = vmatprep.mubr.bf16.mxu1 %v1985_v26 }
  0x51   :  { %579 = vmatmul.mubr.bf16.gmra.mrb[8].mxu0 %v1957_v27  ;;  %707 = vmatmul.mubr.bf16.gmra.mrb[8].mxu1 %v1987_v28 }
  0x52   :  { %586 = vmatprep.mubr.bf16.mxu0 %v1958_v29  ;;  %714 = vmatprep.mubr.bf16.mxu1 %v1991_v30 }
  0x59   :  { %587 = vmatmul.mubr.bf16.gmra.mrb[12].mxu0 %v1960_v31  ;;  %715 = vmatmul.mubr.bf16.gmra.mrb[12].mxu1 %v1993_v32 }
  0x5a   :  { %594 = vmatprep.mubr.bf16.mxu0 %v1961_v33  ;;  %722 = vmatprep.mubr.bf16.mxu1 %v1997_v34 }
  0x61   :  { %595 = vmatmul.mubr.bf16.gmra.mrb[16].mxu0 %v1963_v35  ;;  %723 = vmatmul.mubr.bf16.gmra.mrb[16].mxu1 %v1999_v36 }
  0x62   :  { %602 = vmatprep.mubr.bf16.mxu0 %v1964_v37  ;;  %730 = vmatprep.mubr.bf16.mxu1 %v2003_v38 }
  0x69   :  { %603 = vmatmul.mubr.bf16.gmra.mrb[20].mxu0 %v1966_v39  ;;  %731 = vmatmul.mubr.bf16.gmra.mrb[20].mxu1 %v2005_v40 }
  0x6a   :  { %610 = vmatprep.mubr.bf16.mxu0 %v1967_v41  ;;  %738 = vmatprep.mubr.bf16.mxu1 %v2009_v42 }
  0x71   :  { %611 = vmatmul.mubr.bf16.gmra.mrb[24].mxu0 %v1969_v43  ;;  %739 = vmatmul.mubr.bf16.gmra.mrb[24].mxu1 %v2011_v44 }
  0x72   :  { %618 = vmatprep.mubr.bf16.mxu0 %v1970_v45  ;;  %746 = vmatprep.mubr.bf16.mxu1 %v2015_v46 }
  0x79   :  { %619 = vmatmul.mubr.bf16.gmra.mrb[28].mxu0 %v1972_v47  ;;  %747 = vmatmul.mubr.bf16.gmra.mrb[28].mxu1 %v2017_v48 }
  0x7a   :  { %626 = vmatprep.mubr.bf16.mxu0 %v1976_v49  ;;  %754 = vmatprep.mubr.bf16.mxu1 %v2021_v50 }
  0x81   :  { %627 = vmatmul.mubr.bf16.gmra.mrb[32].mxu0 %v1978_v51  ;;  %755 = vmatmul.mubr.bf16.gmra.mrb[32].mxu1 %v2023_v52 }
  0x82   :  { %634 = vmatprep.mubr.bf16.mxu0 %v1982_v53  ;;  %762 = vmatprep.mubr.bf16.mxu1 %v2024_v54 }
  0x89   :  { %635 = vmatmul.mubr.bf16.gmra.mrb[36].mxu0 %v1984_v55  ;;  %763 = vmatmul.mubr.bf16.gmra.mrb[36].mxu1 %v2026_v56 }
  0x8a   :  { %642 = vmatprep.mubr.bf16.mxu0 %v1988_v57  ;;  %770 = vmatprep.mubr.bf16.mxu1 %v2027_v58 }
  0x91   :  { %643 = vmatmul.mubr.bf16.gmra.mrb[40].mxu0 %v1990_v59  ;;  %771 = vmatmul.mubr.bf16.gmra.mrb[40].mxu1 %v2029_v60 }
  0x92   :  { %650 = vmatprep.mubr.bf16.mxu0 %v1994_v61  ;;  %778 = vmatprep.mubr.bf16.mxu1 %v2030_v62 }
  0x99   :  { %651 = vmatmul.mubr.bf16.gmra.mrb[44].mxu0 %v1996_v63  ;;  %779 = vmatmul.mubr.bf16.gmra.mrb[44].mxu1 %v2032_v0 }
  0x9a   :  { %658 = vmatprep.mubr.bf16.mxu0 %v2000_v1  ;;  %786 = vmatprep.mubr.bf16.mxu1 %v2033_v2 }
  0xa1   :  { %659 = vmatmul.mubr.bf16.gmra.mrb[48].mxu0 %v2002_v3  ;;  %787 = vmatmul.mubr.bf16.gmra.mrb[48].mxu1 %v2035_v4 }
  0xa2   :  { %666 = vmatprep.mubr.bf16.mxu0 %v2006_v5  ;;  %794 = vmatprep.mubr.bf16.mxu1 %v2036_v6 }
  0xa9   :  { %667 = vmatmul.mubr.bf16.gmra.mrb[52].mxu0 %v2008_v7  ;;  %795 = vmatmul.mubr.bf16.gmra.mrb[52].mxu1 %v2038_v8 }
  0xaa   :  { %674 = vmatprep.mubr.bf16.mxu0 %v2012_v9  ;;  %802 = vmatprep.mubr.bf16.mxu1 %v2039_v10 }
  0xb1   :  { %675 = vmatmul.mubr.bf16.gmra.mrb[56].mxu0 %v2014_v11  ;;  %803 = vmatmul.mubr.bf16.gmra.mrb[56].mxu1 %v2041_v12 }
  0xb2   :  { %682 = vmatprep.mubr.bf16.mxu0 %v2018_v13  ;;  %810 = vmatprep.mubr.bf16.mxu1 %v2042_v14 }
  0xb9   :  { %683 = vmatmul.mubr.bf16.gmra.mrb[60].mxu0 %v2020_v15  ;;  %811 = vmatmul.mubr.bf16.gmra.mrb[60].mxu1 %v2044_v16 }
 0x114   :  { %v2345_v17 = vpop.f32.mrb[0].mxu0  ;;  %v2347_v18 = vpop.f32.mrb[0].mxu1 }
 0x115   :  { %v957_v19 = vmul.f32 %v2345_v17, %v2345_v17  ;;  %v566_v20 = vpop.f32.mrb[1].mxu0  ;;  %v694_v21 = vpop.f32.mrb[1].mxu1  ;;  %v822_v24 = vsel %vm821_vm0, %v2345_v17, 0.0 }
 0x116   :  { %v2351_v22 = vpop.f32.mrb[2].mxu0  ;;  %v2353_v23 = vpop.f32.mrb[2].mxu1 }
 0x117   :  { %v823_v25 = vsel %vm821_vm0, %v2351_v22, 0.0  ;;  %v958_v26 = vmul.f32 %v2351_v22, %v2351_v22  ;;  %v569_v27 = vpop.f32.mrb[3].mxu0  ;;  %v697_v28 = vpop.f32.mrb[3].mxu1  ;;  %v1021_v30 = vsel %vm821_vm0, %v957_v19, 0.0 }
 0x118   :  { %v824_v29 = vadd.f32 %v823_v25, %v822_v24 }
 0x119   :  { %v1022_v31 = vsel %vm821_vm0, %v958_v26, 0.0 }
 0x11a   :  { %v1023_v32 = vadd.f32 %v1022_v31, %v1021_v30 }
 0x11c   :  { %v2363_v33 = vpop.f32.mrb[4].mxu0  ;;  %v2365_v34 = vpop.f32.mrb[4].mxu1 }
 0x11d   :  { %v825_v35 = vsel %vm821_vm0, %v2363_v33, 0.0  ;;  %v959_v36 = vmul.f32 %v2363_v33, %v2363_v33  ;;  %v574_v37 = vpop.f32.mrb[5].mxu0  ;;  %v702_v38 = vpop.f32.mrb[5].mxu1 }
 0x11e   :  { %v826_v39 = vadd.f32 %v825_v35, %v824_v29  ;;  %v2371_v40 = vpop.f32.mrb[6].mxu0  ;;  %v2373_v41 = vpop.f32.mrb[6].mxu1 }
 0x11f   :  { %v1024_v42 = vsel %vm821_vm0, %v959_v36, 0.0  ;;  %v827_v43 = vsel %vm821_vm0, %v2371_v40, 0.0  ;;  %v960_v44 = vmul.f32 %v2371_v40, %v2371_v40  ;;  %v577_v45 = vpop.f32.mrb[7].mxu0  ;;  %v705_v46 = vpop.f32.mrb[7].mxu1 }
 0x120   :  { %v1025_v47 = vadd.f32 %v1024_v42, %v1023_v32  ;;  %v828_v48 = vadd.f32 %v827_v43, %v826_v39 }
 0x121   :  { %v1026_v49 = vsel %vm821_vm0, %v960_v44, 0.0 }
 0x122   :  { %v1027_v50 = vadd.f32 %v1026_v49, %v1025_v47 }
 0x124   :  { %v2381_v51 = vpop.f32.mrb[8].mxu0  ;;  %v2383_v52 = vpop.f32.mrb[8].mxu1 }
 0x125   :  { %v829_v53 = vsel %vm821_vm0, %v2381_v51, 0.0  ;;  %v961_v54 = vmul.f32 %v2381_v51, %v2381_v51  ;;  %v582_v55 = vpop.f32.mrb[9].mxu0  ;;  %v710_v56 = vpop.f32.mrb[9].mxu1 }
 0x126   :  { %v830_v57 = vadd.f32 %v829_v53, %v828_v48  ;;  %v2389_v58 = vpop.f32.mrb[10].mxu0  ;;  %v2391_v59 = vpop.f32.mrb[10].mxu1 }
 0x127   :  { %v1028_v60 = vsel %vm821_vm0, %v961_v54, 0.0  ;;  %v831_v61 = vsel %vm821_vm0, %v2389_v58, 0.0  ;;  %v962_v62 = vmul.f32 %v2389_v58, %v2389_v58  ;;  %v585_v63 = vpop.f32.mrb[11].mxu0  ;;  %v713_v0 = vpop.f32.mrb[11].mxu1 }
 0x128   :  { %v1029_v1 = vadd.f32 %v1028_v60, %v1027_v50  ;;  %v832_v2 = vadd.f32 %v831_v61, %v830_v57 }
 0x129   :  { %v1030_v3 = vsel %vm821_vm0, %v962_v62, 0.0 }
 0x12a   :  { %v1031_v4 = vadd.f32 %v1030_v3, %v1029_v1 }
 0x12c   :  { %v2399_v5 = vpop.f32.mrb[12].mxu0  ;;  %v2401_v6 = vpop.f32.mrb[12].mxu1 }
 0x12d   :  { %v833_v7 = vsel %vm821_vm0, %v2399_v5, 0.0  ;;  %v963_v8 = vmul.f32 %v2399_v5, %v2399_v5  ;;  %v590_v9 = vpop.f32.mrb[13].mxu0  ;;  %v718_v10 = vpop.f32.mrb[13].mxu1 }
 0x12e   :  { %v834_v11 = vadd.f32 %v833_v7, %v832_v2  ;;  %v2407_v12 = vpop.f32.mrb[14].mxu0  ;;  %v2409_v13 = vpop.f32.mrb[14].mxu1 }
 0x12f   :  { %v1032_v14 = vsel %vm821_vm0, %v963_v8, 0.0  ;;  %v835_v15 = vsel %vm821_vm0, %v2407_v12, 0.0  ;;  %v964_v16 = vmul.f32 %v2407_v12, %v2407_v12  ;;  %v593_v19 = vpop.f32.mrb[15].mxu0  ;;  %v721_v20 = vpop.f32.mrb[15].mxu1 }
 0x130   :  { %v1033_v21 = vadd.f32 %v1032_v14, %v1031_v4  ;;  %v836_v24 = vadd.f32 %v835_v15, %v834_v11 }
 0x131   :  { %v1034_v25 = vsel %vm821_vm0, %v964_v16, 0.0 }
 0x132   :  { %v1035_v26 = vadd.f32 %v1034_v25, %v1033_v21 }
 0x134   :  { %v2417_v27 = vpop.f32.mrb[16].mxu0  ;;  %v2419_v28 = vpop.f32.mrb[16].mxu1 }
 0x135   :  { %v837_v29 = vsel %vm821_vm0, %v2417_v27, 0.0  ;;  %v965_v30 = vmul.f32 %v2417_v27, %v2417_v27  ;;  %v598_v31 = vpop.f32.mrb[17].mxu0  ;;  %v726_v32 = vpop.f32.mrb[17].mxu1 }
 0x136   :  { %v838_v35 = vadd.f32 %v837_v29, %v836_v24  ;;  %v2425_v36 = vpop.f32.mrb[18].mxu0  ;;  %v2427_v37 = vpop.f32.mrb[18].mxu1 }
 0x137   :  { %v1036_v38 = vsel %vm821_vm0, %v965_v30, 0.0  ;;  %v839_v39 = vsel %vm821_vm0, %v2425_v36, 0.0  ;;  %v966_v42 = vmul.f32 %v2425_v36, %v2425_v36  ;;  %v601_v43 = vpop.f32.mrb[19].mxu0  ;;  %v729_v44 = vpop.f32.mrb[19].mxu1 }
 0x138   :  { %v1037_v45 = vadd.f32 %v1036_v38, %v1035_v26  ;;  %v840_v46 = vadd.f32 %v839_v39, %v838_v35 }
 0x139   :  { %v1038_v47 = vsel %vm821_vm0, %v966_v42, 0.0 }
 0x13a   :  { %v1039_v48 = vadd.f32 %v1038_v47, %v1037_v45 }
 0x13c   :  { %v2435_v49 = vpop.f32.mrb[20].mxu0  ;;  %v2437_v50 = vpop.f32.mrb[20].mxu1 }
 0x13d   :  { %v841_v53 = vsel %vm821_vm0, %v2435_v49, 0.0  ;;  %v967_v54 = vmul.f32 %v2435_v49, %v2435_v49  ;;  %v606_v55 = vpop.f32.mrb[21].mxu0  ;;  %v734_v56 = vpop.f32.mrb[21].mxu1 }
 0x13e   :  { %v842_v57 = vadd.f32 %v841_v53, %v840_v46  ;;  %v2443_v60 = vpop.f32.mrb[22].mxu0  ;;  %v2445_v61 = vpop.f32.mrb[22].mxu1 }
 0x13f   :  { %v1040_v62 = vsel %vm821_vm0, %v967_v54, 0.0  ;;  %v843_v63 = vsel %vm821_vm0, %v2443_v60, 0.0  ;;  %v968_v0 = vmul.f32 %v2443_v60, %v2443_v60  ;;  %v609_v1 = vpop.f32.mrb[23].mxu0  ;;  %v737_v2 = vpop.f32.mrb[23].mxu1 }
 0x140   :  { %v1041_v3 = vadd.f32 %v1040_v62, %v1039_v48  ;;  %v844_v4 = vadd.f32 %v843_v63, %v842_v57 }
 0x141   :  { %v1042_v7 = vsel %vm821_vm0, %v968_v0, 0.0 }
 0x142   :  { %v1043_v8 = vadd.f32 %v1042_v7, %v1041_v3 }
 0x144   :  { %v2453_v9 = vpop.f32.mrb[24].mxu0  ;;  %v2455_v10 = vpop.f32.mrb[24].mxu1 }
 0x145   :  { %v845_v11 = vsel %vm821_vm0, %v2453_v9, 0.0  ;;  %v969_v14 = vmul.f32 %v2453_v9, %v2453_v9  ;;  %v614_v15 = vpop.f32.mrb[25].mxu0  ;;  %v742_v16 = vpop.f32.mrb[25].mxu1 }
 0x146   :  { %v846_v19 = vadd.f32 %v845_v11, %v844_v4  ;;  %v2461_v20 = vpop.f32.mrb[26].mxu0  ;;  %v2463_v21 = vpop.f32.mrb[26].mxu1 }
 0x147   :  { %v1044_v24 = vsel %vm821_vm0, %v969_v14, 0.0  ;;  %v847_v25 = vsel %vm821_vm0, %v2461_v20, 0.0  ;;  %v970_v26 = vmul.f32 %v2461_v20, %v2461_v20  ;;  %v617_v29 = vpop.f32.mrb[27].mxu0  ;;  %v745_v30 = vpop.f32.mrb[27].mxu1 }
 0x148   :  { %v1045_v31 = vadd.f32 %v1044_v24, %v1043_v8  ;;  %v848_v32 = vadd.f32 %v847_v25, %v846_v19 }
 0x149   :  { %v1046_v35 = vsel %vm821_vm0, %v970_v26, 0.0 }
 0x14a   :  { %v1047_v38 = vadd.f32 %v1046_v35, %v1045_v31 }
 0x14c   :  { %v2471_v39 = vpop.f32.mrb[28].mxu0  ;;  %v2473_v42 = vpop.f32.mrb[28].mxu1 }
 0x14d   :  { %3890 = vst [vmem:[#allocation2_spill] sm:$0xff] %v2471_v39  ;;  %v849_v43 = vsel %vm821_vm0, %v2471_v39, 0.0  ;;  %v971_v44 = vmul.f32 %v2471_v39, %v2471_v39  ;;  %v622_v45 = vpop.f32.mrb[29].mxu0  ;;  %v750_v46 = vpop.f32.mrb[29].mxu1  ;;  %v887_v39 = vsel %vm821_vm0, %v2353_v23, 0.0 }
 0x14e   :  { %v850_v47 = vadd.f32 %v849_v43, %v848_v32  ;;  %v2479_v48 = vpop.f32.mrb[30].mxu0  ;;  %v2481_v53 = vpop.f32.mrb[30].mxu1 }
 0x14f   :  { %3891 = vst [vmem:[#allocation3_spill] sm:$0xff] %v2479_v48  ;;  %v1048_v54 = vsel %vm821_vm0, %v971_v44, 0.0  ;;  %v851_v55 = vsel %vm821_vm0, %v2479_v48, 0.0  ;;  %v972_v56 = vmul.f32 %v2479_v48, %v2479_v48  ;;  %v625_v57 = vpop.f32.mrb[31].mxu0  ;;  %v753_v62 = vpop.f32.mrb[31].mxu1 }
 0x150   :  { %v1049_v63 = vadd.f32 %v1048_v54, %v1047_v38  ;;  %v852_v0 = vadd.f32 %v851_v55, %v850_v47 }
 0x151   :  { %v1050_v1 = vsel %vm821_vm0, %v972_v56, 0.0 }
 0x152   :  { %v1051_v2 = vadd.f32 %v1050_v1, %v1049_v63 }
 0x154   :  { %v2489_v3 = vpop.f32.mrb[32].mxu0  ;;  %v2491_v4 = vpop.f32.mrb[32].mxu1 }
 0x155   :  { %3892 = vst [vmem:[#allocation4_spill] sm:$0xff] %v2489_v3  ;;  %v853_v7 = vsel %vm821_vm0, %v2489_v3, 0.0  ;;  %v973_v8 = vmul.f32 %v2489_v3, %v2489_v3  ;;  %v630_v11 = vpop.f32.mrb[33].mxu0  ;;  %v758_v14 = vpop.f32.mrb[33].mxu1 }
 0x156   :  { %v854_v15 = vadd.f32 %v853_v7, %v852_v0  ;;  %v2497_v16 = vpop.f32.mrb[34].mxu0  ;;  %v2499_v19 = vpop.f32.mrb[34].mxu1 }
 0x157   :  { %3893 = vst [vmem:[#allocation5_spill] sm:$0xff] %v2497_v16  ;;  %v1052_v24 = vsel %vm821_vm0, %v973_v8, 0.0  ;;  %v855_v25 = vsel %vm821_vm0, %v2497_v16, 0.0  ;;  %v974_v26 = vmul.f32 %v2497_v16, %v2497_v16  ;;  %v633_v29 = vpop.f32.mrb[35].mxu0  ;;  %v761_v30 = vpop.f32.mrb[35].mxu1 }
 0x158   :  { %v1053_v31 = vadd.f32 %v1052_v24, %v1051_v2  ;;  %v856_v32 = vadd.f32 %v855_v25, %v854_v15 }
 0x159   :  { %v1054_v35 = vsel %vm821_vm0, %v974_v26, 0.0 }
 0x15a   :  { %v1055_v38 = vadd.f32 %v1054_v35, %v1053_v31 }
 0x15c   :  { %v2507_v43 = vpop.f32.mrb[36].mxu0  ;;  %v2509_v44 = vpop.f32.mrb[36].mxu1 }
 0x15d   :  { %3894 = vst [vmem:[#allocation6_spill] sm:$0xff] %v2507_v43  ;;  %v857_v45 = vsel %vm821_vm0, %v2507_v43, 0.0  ;;  %v975_v46 = vmul.f32 %v2507_v43, %v2507_v43  ;;  %v638_v47 = vpop.f32.mrb[37].mxu0  ;;  %v766_v54 = vpop.f32.mrb[37].mxu1 }
 0x15e   :  { %v858_v55 = vadd.f32 %v857_v45, %v856_v32  ;;  %v2515_v56 = vpop.f32.mrb[38].mxu0  ;;  %v2517_v57 = vpop.f32.mrb[38].mxu1 }
 0x15f   :  { %3895 = vst [vmem:[#allocation7_spill] sm:$0xff] %v2515_v56  ;;  %v1056_v62 = vsel %vm821_vm0, %v975_v46, 0.0  ;;  %v859_v63 = vsel %vm821_vm0, %v2515_v56, 0.0  ;;  %v976_v0 = vmul.f32 %v2515_v56, %v2515_v56  ;;  %v641_v1 = vpop.f32.mrb[39].mxu0  ;;  %v769_v2 = vpop.f32.mrb[39].mxu1 }
 0x160   :  { %v1057_v7 = vadd.f32 %v1056_v62, %v1055_v38  ;;  %v860_v8 = vadd.f32 %v859_v63, %v858_v55 }
 0x161   :  { %v1058_v11 = vsel %vm821_vm0, %v976_v0, 0.0 }
 0x162   :  { %v1059_v14 = vadd.f32 %v1058_v11, %v1057_v7 }
 0x164   :  { %v2525_v15 = vpop.f32.mrb[40].mxu0  ;;  %v2527_v24 = vpop.f32.mrb[40].mxu1 }
 0x165   :  { %3896 = vst [vmem:[#allocation8_spill] sm:$0xff] %v2525_v15  ;;  %v861_v25 = vsel %vm821_vm0, %v2525_v15, 0.0  ;;  %v977_v26 = vmul.f32 %v2525_v15, %v2525_v15  ;;  %v646_v29 = vpop.f32.mrb[41].mxu0  ;;  %v774_v30 = vpop.f32.mrb[41].mxu1 }
 0x166   :  { %v862_v31 = vadd.f32 %v861_v25, %v860_v8  ;;  %v2533_v32 = vpop.f32.mrb[42].mxu0  ;;  %v2535_v35 = vpop.f32.mrb[42].mxu1 }
 0x167   :  { %3897 = vst [vmem:[#allocation9_spill] sm:$0xff] %v2533_v32  ;;  %v1060_v38 = vsel %vm821_vm0, %v977_v26, 0.0  ;;  %v863_v45 = vsel %vm821_vm0, %v2533_v32, 0.0  ;;  %v978_v46 = vmul.f32 %v2533_v32, %v2533_v32  ;;  %v649_v47 = vpop.f32.mrb[43].mxu0  ;;  %v777_v54 = vpop.f32.mrb[43].mxu1 }
 0x168   :  { %v1061_v55 = vadd.f32 %v1060_v38, %v1059_v14  ;;  %v864_v62 = vadd.f32 %v863_v45, %v862_v31 }
 0x169   :  { %v1062_v63 = vsel %vm821_vm0, %v978_v46, 0.0 }
 0x16a   :  { %v1063_v0 = vadd.f32 %v1062_v63, %v1061_v55 }
 0x16c   :  { %v2543_v1 = vpop.f32.mrb[44].mxu0  ;;  %v2545_v2 = vpop.f32.mrb[44].mxu1 }
 0x16d   :  { %3898 = vst [vmem:[#allocation10_spill] sm:$0xff] %v2543_v1  ;;  %v865_v7 = vsel %vm821_vm0, %v2543_v1, 0.0  ;;  %v979_v8 = vmul.f32 %v2543_v1, %v2543_v1  ;;  %v654_v11 = vpop.f32.mrb[45].mxu0  ;;  %v782_v25 = vpop.f32.mrb[45].mxu1 }
 0x16e   :  { %v866_v26 = vadd.f32 %v865_v7, %v864_v62  ;;  %v2551_v29 = vpop.f32.mrb[46].mxu0  ;;  %v2553_v14 = vpop.f32.mrb[46].mxu1 }
 0x16f   :  { %3899 = vst [vmem:[#allocation11_spill] sm:$0xff] %v2551_v29  ;;  %v1064_v30 = vsel %vm821_vm0, %v979_v8, 0.0  ;;  %v867_v31 = vsel %vm821_vm0, %v2551_v29, 0.0  ;;  %v980_v38 = vmul.f32 %v2551_v29, %v2551_v29  ;;  %v657_v45 = vpop.f32.mrb[47].mxu0  ;;  %v785_v46 = vpop.f32.mrb[47].mxu1 }
 0x170   :  { %v1065_v47 = vadd.f32 %v1064_v30, %v1063_v0  ;;  %v868_v54 = vadd.f32 %v867_v31, %v866_v26 }
 0x171   :  { %v1066_v55 = vsel %vm821_vm0, %v980_v38, 0.0 }
 0x172   :  { %v1067_v63 = vadd.f32 %v1066_v55, %v1065_v47 }
 0x174   :  { %v2561_v62 = vpop.f32.mrb[48].mxu0  ;;  %v2563_v7 = vpop.f32.mrb[48].mxu1 }
 0x175   :  { %3900 = vst [vmem:[#allocation12_spill] sm:$0xff] %v2561_v62  ;;  %v869_v8 = vsel %vm821_vm0, %v2561_v62, 0.0  ;;  %v981_v11 = vmul.f32 %v2561_v62, %v2561_v62  ;;  %v662_v25 = vpop.f32.mrb[49].mxu0  ;;  %v790_v1 = vpop.f32.mrb[49].mxu1 }
 0x176   :  { %v870_v29 = vadd.f32 %v869_v8, %v868_v54  ;;  %v2569_v45 = vpop.f32.mrb[50].mxu0  ;;  %v2571_v0 = vpop.f32.mrb[50].mxu1 }
 0x177   :  { %3901 = vst [vmem:[#allocation13_spill] sm:$0xff] %v2569_v45  ;;  %3902 = vst [vmem:[#allocation14_spill] sm:$0xff] %v2571_v0  ;;  %v1068_v26 = vsel %vm821_vm0, %v981_v11, 0.0  ;;  %v871_v30 = vsel %vm821_vm0, %v2569_v45, 0.0  ;;  %v982_v31 = vmul.f32 %v2569_v45, %v2569_v45  ;;  %v665_v38 = vpop.f32.mrb[51].mxu0  ;;  %v793_v46 = vpop.f32.mrb[51].mxu1 }
 0x178   :  { %v1069_v47 = vadd.f32 %v1068_v26, %v1067_v63  ;;  %v872_v55 = vadd.f32 %v871_v30, %v870_v29 }
 0x179   :  { %v1070_v25 = vsel %vm821_vm0, %v982_v31, 0.0 }
 0x17a   :  { %v1071_v1 = vadd.f32 %v1070_v25, %v1069_v47 }
 0x17c   :  { %v2579_v54 = vpop.f32.mrb[52].mxu0  ;;  %v2581_v8 = vpop.f32.mrb[52].mxu1 }
 0x17d   :  { %3903 = vst [vmem:[#allocation15_spill] sm:$0xff] %v2579_v54  ;;  %3904 = vst [vmem:[#allocation16_spill] sm:$0xff] %v2581_v8  ;;  %v873_v11 = vsel %vm821_vm0, %v2579_v54, 0.0  ;;  %v983_v62 = vmul.f32 %v2579_v54, %v2579_v54  ;;  %v670_v32 = vpop.f32.mrb[53].mxu0  ;;  %v798_v15 = vpop.f32.mrb[53].mxu1 }
 0x17e   :  { %v874_v45 = vadd.f32 %v873_v11, %v872_v55  ;;  %v2587_v38 = vpop.f32.mrb[54].mxu0  ;;  %v2589_v63 = vpop.f32.mrb[54].mxu1 }
 0x17f   :  { %3905 = vst [vmem:[#allocation17_spill] sm:$0xff] %v2587_v38  ;;  %3906 = vst [vmem:[#allocation18_spill] sm:$0xff] %v2589_v63  ;;  %v1072_v29 = vsel %vm821_vm0, %v983_v62, 0.0  ;;  %v875_v26 = vsel %vm821_vm0, %v2587_v38, 0.0  ;;  %v984_v30 = vmul.f32 %v2587_v38, %v2587_v38  ;;  %v673_v31 = vpop.f32.mrb[55].mxu0  ;;  %v801_v46 = vpop.f32.mrb[55].mxu1 }
 0x180   :  { %v1073_v47 = vadd.f32 %v1072_v29, %v1071_v1  ;;  %v876_v25 = vadd.f32 %v875_v26, %v874_v45 }
 0x181   :  { %v1074_v32 = vsel %vm821_vm0, %v984_v30, 0.0 }
 0x182   :  { %v1075_v15 = vadd.f32 %v1074_v32, %v1073_v47 }
 0x184   :  { %v2597_v55 = vpop.f32.mrb[56].mxu0  ;;  %v2599_v11 = vpop.f32.mrb[56].mxu1 }
 0x185   :  { %3907 = vst [vmem:[#allocation19_spill] sm:$0xff] %v2597_v55  ;;  %3908 = vst [vmem:[#allocation20_spill] sm:$0xff] %v2599_v11  ;;  %v877_v62 = vsel %vm821_vm0, %v2597_v55, 0.0  ;;  %v985_v54 = vmul.f32 %v2597_v55, %v2597_v55  ;;  %v678_v56 = vpop.f32.mrb[57].mxu0  ;;  %v806_v43 = vpop.f32.mrb[57].mxu1 }
 0x186   :  { %v878_v38 = vadd.f32 %v877_v62, %v876_v25  ;;  %v2605_v31 = vpop.f32.mrb[58].mxu0  ;;  %v2607_v1 = vpop.f32.mrb[58].mxu1 }
 0x187   :  { %3909 = vst [vmem:[#allocation21_spill] sm:$0xff] %v2605_v31  ;;  %3910 = vst [vmem:[#allocation22_spill] sm:$0xff] %v2607_v1  ;;  %v1076_v45 = vsel %vm821_vm0, %v985_v54, 0.0  ;;  %v879_v29 = vsel %vm821_vm0, %v2605_v31, 0.0  ;;  %v986_v26 = vmul.f32 %v2605_v31, %v2605_v31  ;;  %v681_v30 = vpop.f32.mrb[59].mxu0  ;;  %v809_v46 = vpop.f32.mrb[59].mxu1 }
 0x188   :  { %v1077_v47 = vadd.f32 %v1076_v45, %v1075_v15  ;;  %v880_v32 = vadd.f32 %v879_v29, %v878_v38  ;;  %v989_v38 = vmul.f32 %v2347_v18, %v2347_v18 }
 0x189   :  { %v1078_v56 = vsel %vm821_vm0, %v986_v26, 0.0 }
 0x18a   :  { %v1079_v43 = vadd.f32 %v1078_v56, %v1077_v47  ;;  %v990_v56 = vmul.f32 %v2353_v23, %v2353_v23  ;;  %v1084_v48 = vsel %vm821_vm0, %v989_v38, 0.0 }
 0x18c   :  { %v2615_v25 = vpop.f32.mrb[60].mxu0  ;;  %v2617_v62 = vpop.f32.mrb[60].mxu1 }
 0x18d   :  { %3911 = vst [vmem:[#allocation23_spill] sm:$0xff] %v2615_v25  ;;  %3912 = vst [vmem:[#allocation24_spill] sm:$0xff] %v2617_v62  ;;  %v881_v54 = vsel %vm821_vm0, %v2615_v25, 0.0  ;;  %v987_v55 = vmul.f32 %v2615_v25, %v2615_v25  ;;  %v686_v16 = vpop.f32.mrb[61].mxu0  ;;  %v814_v3 = vpop.f32.mrb[61].mxu1 }
 0x18e   :  { %v882_v31 = vadd.f32 %v881_v54, %v880_v32  ;;  %v2623_v30 = vpop.f32.mrb[62].mxu0  ;;  %v2625_v15 = vpop.f32.mrb[62].mxu1  ;;  %v885_v32 = vsel %vm821_vm0, %v2347_v18, 0.0 }
 0x18f   :  { %3913 = vst [vmem:[#allocation25_spill] sm:$0xff] %v2625_v15  ;;  %v1080_v45 = vsel %vm821_vm0, %v987_v55, 0.0  ;;  %v883_v29 = vsel %vm821_vm0, %v2623_v30, 0.0  ;;  %v988_v26 = vmul.f32 %v2623_v30, %v2623_v30  ;;  %v689_v46 = vpop.f32.mrb[63].mxu0  ;;  %v817_v47 = vpop.f32.mrb[63].mxu1 }
 0x190   :  { %v1081_v16 = vadd.f32 %v1080_v45, %v1079_v43  ;;  %v884_v3 = vadd.f32 %v883_v29, %v882_v31  ;;  %v991_v46 = vmul.f32 %v2365_v34, %v2365_v34  ;;  %v1086_v45 = vsel %vm821_vm0, %v990_v56, 0.0 }
 0x191   :  { %v1082_v54 = vsel %vm821_vm0, %v988_v26, 0.0  ;;  %v889_v29 = vsel %vm821_vm0, %v2365_v34, 0.0  ;;  %v992_v26 = vmul.f32 %v2373_v41, %v2373_v41  ;;  %v893_v56 = vsel %vm821_vm0, %v2383_v52, 0.0 }
 0x192   :  { %v886_v25 = vadd.f32 %v885_v32, %v884_v3  ;;  %v1083_v55 = vadd.f32 %v1082_v54, %v1081_v16  ;;  %v1088_v38 = vsel %vm821_vm0, %v991_v46, 0.0  ;;  %v891_v3 = vsel %vm821_vm0, %v2373_v41, 0.0 }
 0x193   :  { %v993_v32 = vmul.f32 %v2383_v52, %v2383_v52  ;;  %v994_v54 = vmul.f32 %v2391_v59, %v2391_v59 }
 0x194   :  { %v888_v43 = vadd.f32 %v887_v39, %v886_v25  ;;  %v1085_v31 = vadd.f32 %v1084_v48, %v1083_v55  ;;  %v1090_v25 = vsel %vm821_vm0, %v992_v26, 0.0 }
 0x195   :  { %v1092_v46 = vsel %vm821_vm0, %v993_v32, 0.0  ;;  %v1094_v26 = vsel %vm821_vm0, %v994_v54, 0.0 }
 0x196   :  { %v890_v47 = vadd.f32 %v889_v29, %v888_v43  ;;  %v1087_v16 = vadd.f32 %v1086_v45, %v1085_v31  ;;  %v895_v31 = vsel %vm821_vm0, %v2391_v59, 0.0  ;;  %v995_v45 = vmul.f32 %v2401_v6, %v2401_v6 }
 0x198   :  { %v892_v39 = vadd.f32 %v891_v3, %v890_v47  ;;  %v1089_v48 = vadd.f32 %v1088_v38, %v1087_v16  ;;  %v897_v16 = vsel %vm821_vm0, %v2401_v6, 0.0  ;;  %v996_v38 = vmul.f32 %v2409_v13, %v2409_v13 }
 0x199   :  { %v1096_v32 = vsel %vm821_vm0, %v995_v45, 0.0 }
 0x19a   :  { %v894_v55 = vadd.f32 %v893_v56, %v892_v39  ;;  %v1091_v43 = vadd.f32 %v1090_v25, %v1089_v48  ;;  %v899_v48 = vsel %vm821_vm0, %v2409_v13, 0.0  ;;  %v997_v25 = vmul.f32 %v2419_v28, %v2419_v28 }
 0x19b   :  { %v1098_v54 = vsel %vm821_vm0, %v996_v38, 0.0 }
 0x19c   :  { %v896_v29 = vadd.f32 %v895_v31, %v894_v55  ;;  %v1093_v47 = vadd.f32 %v1092_v46, %v1091_v43  ;;  %v901_v43 = vsel %vm821_vm0, %v2419_v28, 0.0  ;;  %v998_v46 = vmul.f32 %v2427_v37, %v2427_v37 }
 0x19d   :  { %v1100_v45 = vsel %vm821_vm0, %v997_v25, 0.0 }
 0x19e   :  { %v898_v3 = vadd.f32 %v897_v16, %v896_v29  ;;  %v1095_v39 = vadd.f32 %v1094_v26, %v1093_v47  ;;  %v903_v47 = vsel %vm821_vm0, %v2427_v37, 0.0  ;;  %v999_v26 = vmul.f32 %v2437_v50, %v2437_v50 }
 0x19f   :  { %v1102_v38 = vsel %vm821_vm0, %v998_v46, 0.0 }
 0x1a0   :  { %v900_v56 = vadd.f32 %v899_v48, %v898_v3  ;;  %v1097_v55 = vadd.f32 %v1096_v32, %v1095_v39  ;;  %v905_v39 = vsel %vm821_vm0, %v2437_v50, 0.0  ;;  %v1000_v32 = vmul.f32 %v2445_v61, %v2445_v61 }
 0x1a1   :  { %v1104_v25 = vsel %vm821_vm0, %v999_v26, 0.0 }
 0x1a2   :  { %v1099_v31 = vadd.f32 %v1098_v54, %v1097_v55  ;;  %v902_v29 = vadd.f32 %v901_v43, %v900_v56  ;;  %v907_v55 = vsel %vm821_vm0, %v2445_v61, 0.0  ;;  %v1001_v54 = vmul.f32 %v2455_v10, %v2455_v10 }
 0x1a3   :  { %v1106_v46 = vsel %vm821_vm0, %v1000_v32, 0.0 }
 0x1a4   :  { %v904_v16 = vadd.f32 %v903_v47, %v902_v29  ;;  %v1101_v3 = vadd.f32 %v1100_v45, %v1099_v31  ;;  %v909_v29 = vsel %vm821_vm0, %v2455_v10, 0.0  ;;  %v1002_v45 = vmul.f32 %v2463_v21, %v2463_v21 }
 0x1a5   :  { %v1108_v26 = vsel %vm821_vm0, %v1001_v54, 0.0 }
 0x1a6   :  { %v906_v48 = vadd.f32 %v905_v39, %v904_v16  ;;  %v1103_v56 = vadd.f32 %v1102_v38, %v1101_v3  ;;  %v911_v3 = vsel %vm821_vm0, %v2463_v21, 0.0  ;;  %v1003_v38 = vmul.f32 %v2473_v42, %v2473_v42 }
 0x1a7   :  { %v1110_v32 = vsel %vm821_vm0, %v1002_v45, 0.0 }
 0x1a8   :  { %v908_v43 = vadd.f32 %v907_v55, %v906_v48  ;;  %v1105_v31 = vadd.f32 %v1104_v25, %v1103_v56  ;;  %v913_v56 = vsel %vm821_vm0, %v2473_v42, 0.0  ;;  %v1004_v25 = vmul.f32 %v2481_v53, %v2481_v53 }
 0x1a9   :  { %v1112_v54 = vsel %vm821_vm0, %v1003_v38, 0.0 }
 0x1aa   :  { %v910_v47 = vadd.f32 %v909_v29, %v908_v43  ;;  %v1107_v16 = vadd.f32 %v1106_v46, %v1105_v31  ;;  %v915_v31 = vsel %vm821_vm0, %v2481_v53, 0.0  ;;  %v1005_v46 = vmul.f32 %v2491_v4, %v2491_v4 }
 0x1ab   :  { %v1114_v45 = vsel %vm821_vm0, %v1004_v25, 0.0 }
 0x1ac   :  { %v912_v39 = vadd.f32 %v911_v3, %v910_v47  ;;  %v1109_v48 = vadd.f32 %v1108_v26, %v1107_v16  ;;  %v917_v16 = vsel %vm821_vm0, %v2491_v4, 0.0  ;;  %v1006_v26 = vmul.f32 %v2499_v19, %v2499_v19 }
 0x1ad   :  { %v1116_v38 = vsel %vm821_vm0, %v1005_v46, 0.0 }
 0x1ae   :  { %v914_v55 = vadd.f32 %v913_v56, %v912_v39  ;;  %v1111_v43 = vadd.f32 %v1110_v32, %v1109_v48  ;;  %v919_v48 = vsel %vm821_vm0, %v2499_v19, 0.0  ;;  %v1007_v32 = vmul.f32 %v2509_v44, %v2509_v44 }
 0x1af   :  { %v1118_v25 = vsel %vm821_vm0, %v1006_v26, 0.0 }
 0x1b0   :  { %v916_v29 = vadd.f32 %v915_v31, %v914_v55  ;;  %v1113_v47 = vadd.f32 %v1112_v54, %v1111_v43  ;;  %v921_v43 = vsel %vm821_vm0, %v2509_v44, 0.0  ;;  %v1008_v54 = vmul.f32 %v2517_v57, %v2517_v57 }
 0x1b1   :  { %v1120_v46 = vsel %vm821_vm0, %v1007_v32, 0.0 }
 0x1b2   :  { %v918_v3 = vadd.f32 %v917_v16, %v916_v29  ;;  %v1115_v39 = vadd.f32 %v1114_v45, %v1113_v47  ;;  %v923_v47 = vsel %vm821_vm0, %v2517_v57, 0.0  ;;  %v1009_v45 = vmul.f32 %v2527_v24, %v2527_v24 }
 0x1b3   :  { %v1122_v26 = vsel %vm821_vm0, %v1008_v54, 0.0 }
 0x1b4   :  { %v1117_v56 = vadd.f32 %v1116_v38, %v1115_v39  ;;  %v920_v55 = vadd.f32 %v919_v48, %v918_v3  ;;  %v925_v39 = vsel %vm821_vm0, %v2527_v24, 0.0  ;;  %v1010_v38 = vmul.f32 %v2535_v35, %v2535_v35 }
 0x1b5   :  { %v1124_v32 = vsel %vm821_vm0, %v1009_v45, 0.0 }
 0x1b6   :  { %v1119_v31 = vadd.f32 %v1118_v25, %v1117_v56  ;;  %v922_v29 = vadd.f32 %v921_v43, %v920_v55  ;;  %v927_v55 = vsel %vm821_vm0, %v2535_v35, 0.0  ;;  %v1011_v25 = vmul.f32 %v2545_v2, %v2545_v2 }
 0x1b7   :  { %v1126_v54 = vsel %vm821_vm0, %v1010_v38, 0.0 }
 0x1b8   :  { %v1121_v16 = vadd.f32 %v1120_v46, %v1119_v31  ;;  %v924_v3 = vadd.f32 %v923_v47, %v922_v29  ;;  %v929_v29 = vsel %vm821_vm0, %v2545_v2, 0.0  ;;  %v1012_v46 = vmul.f32 %v2553_v14, %v2553_v14 }
 0x1b9   :  { %v1128_v45 = vsel %vm821_vm0, %v1011_v25, 0.0 }
 0x1ba   :  { %v1123_v48 = vadd.f32 %v1122_v26, %v1121_v16  ;;  %v926_v56 = vadd.f32 %v925_v39, %v924_v3  ;;  %v931_v3 = vsel %vm821_vm0, %v2553_v14, 0.0  ;;  %v1013_v26 = vmul.f32 %v2563_v7, %v2563_v7 }
 0x1bb   :  { %v1130_v38 = vsel %vm821_vm0, %v1012_v46, 0.0 }
 0x1bc   :  { %v1125_v43 = vadd.f32 %v1124_v32, %v1123_v48  ;;  %v928_v31 = vadd.f32 %v927_v55, %v926_v56  ;;  %v933_v56 = vsel %vm821_vm0, %v2563_v7, 0.0  ;;  %v1014_v32 = vmul.f32 %v2571_v0, %v2571_v0 }
 0x1bd   :  { %v1132_v25 = vsel %vm821_vm0, %v1013_v26, 0.0 }
 0x1be   :  { %v1127_v47 = vadd.f32 %v1126_v54, %v1125_v43  ;;  %v930_v16 = vadd.f32 %v929_v29, %v928_v31  ;;  %v935_v31 = vsel %vm821_vm0, %v2571_v0, 0.0  ;;  %v1015_v54 = vmul.f32 %v2581_v8, %v2581_v8 }
 0x1bf   :  { %v1134_v46 = vsel %vm821_vm0, %v1014_v32, 0.0 }
 0x1c0   :  { %v1129_v39 = vadd.f32 %v1128_v45, %v1127_v47  ;;  %v932_v48 = vadd.f32 %v931_v3, %v930_v16  ;;  %v937_v16 = vsel %vm821_vm0, %v2581_v8, 0.0  ;;  %v1016_v45 = vmul.f32 %v2589_v63, %v2589_v63 }
 0x1c1   :  { %v1136_v26 = vsel %vm821_vm0, %v1015_v54, 0.0 }
 0x1c2   :  { %v1131_v55 = vadd.f32 %v1130_v38, %v1129_v39  ;;  %v934_v43 = vadd.f32 %v933_v56, %v932_v48  ;;  %v939_v48 = vsel %vm821_vm0, %v2589_v63, 0.0  ;;  %v1017_v38 = vmul.f32 %v2599_v11, %v2599_v11 }
 0x1c3   :  { %v1138_v32 = vsel %vm821_vm0, %v1016_v45, 0.0 }
 0x1c4   :  { %v1133_v29 = vadd.f32 %v1132_v25, %v1131_v55  ;;  %v936_v47 = vadd.f32 %v935_v31, %v934_v43  ;;  %v941_v43 = vsel %vm821_vm0, %v2599_v11, 0.0  ;;  %v1018_v25 = vmul.f32 %v2607_v1, %v2607_v1 }
 0x1c5   :  { %v1019_v31 = vmul.f32 %v2617_v62, %v2617_v62 }
 0x1c6   :  { %v1135_v3 = vadd.f32 %v1134_v46, %v1133_v29  ;;  %v938_v39 = vadd.f32 %v937_v16, %v936_v47  ;;  %v1140_v47 = vsel %vm821_vm0, %v1017_v38, 0.0  ;;  %v943_v46 = vsel %vm821_vm0, %v2607_v1, 0.0 }
 0x1c7   :  { %v945_v16 = vsel %vm821_vm0, %v2617_v62, 0.0  ;;  %v947_v38 = vsel %vm821_vm0, %v2625_v15, 0.0 }
 0x1c8   :  { %v1137_v56 = vadd.f32 %v1136_v26, %v1135_v3  ;;  %v940_v55 = vadd.f32 %v939_v48, %v938_v39  ;;  %v1142_v39 = vsel %vm821_vm0, %v1018_v25, 0.0  ;;  %v1144_v26 = vsel %vm821_vm0, %v1019_v31, 0.0 }
 0x1c9   :  { %v1020_v48 = vmul.f32 %v2625_v15, %v2625_v15 }
 0x1ca   :  { %v1139_v54 = vadd.f32 %v1138_v32, %v1137_v56  ;;  %v942_v29 = vadd.f32 %v941_v43, %v940_v55 }
 0x1cb   :  { %v1146_v43 = vsel %vm821_vm0, %v1020_v48, 0.0  ;;  %v1164_v48 = vlaneseq }
 0x1cc   :  { %v1141_v45 = vadd.f32 %v1140_v47, %v1139_v54  ;;  %v944_v3 = vadd.f32 %v943_v46, %v942_v29 }
 0x1ce   :  { %v1143_v11 = vadd.f32 %v1142_v39, %v1141_v45  ;;  %v946_v56 = vadd.f32 %v945_v16, %v944_v3 }
 0x1d0   :  { %v1145_v55 = vadd.f32 %v1144_v26, %v1143_v11  ;;  %v948_v32 = vadd.f32 %v947_v38, %v946_v56  ;;  %v2793_v38 = vshrl.u32 %v1164_v48, 7  ;;  %v3921_v48 = vld [vmem:[#allocation9_spill] sm:$0xff] }
 0x1d2   :  { %v949_v1 = vrot.slane %v948_v32, 4  ;;  %v1147_v62 = vadd.f32 %v1146_v43, %v1145_v55 }
 0x1d4   :  { %v950_v54 = vadd.f32 %v949_v1, %v948_v32  ;;  %v1148_v29 = vrot.slane %v1147_v62, 4  ;;  %v819_v1 = vld [vmem:[%s3845_s2] sm:$0x1]  ;;  %v3929_v32 = vld [vmem:[#allocation17_spill] sm:$0xff] }
 0x1d6   :  { %v951_v47 = vrot.slane %v950_v54, 2  ;;  %v1149_v25 = vadd.f32 %v1148_v29, %v1147_v62  ;;  %v3872_v62 = vsub.s32 0, %v2793_v38 }
 0x1d8   :  { %v952_v46 = vadd.f32 %v951_v47, %v950_v54  ;;  %v1150_v31 = vrot.slane %v1149_v25, 2 }
 0x1da   :  { %v953_v63 = vrot.slane %v952_v46, 1  ;;  %v1151_v8 = vadd.f32 %v1150_v31, %v1149_v25  ;;  %v3915_v31 = vld [vmem:[#allocation3_spill] sm:$0xff] }
 0x1dc   :  { %v954_v0 = vadd.f32 %v953_v63, %v952_v46  ;;  %v1152_v45 = vrot.slane %v1151_v8, 1  ;;  %v3914_v46 = vld [vmem:[#allocation2_spill] sm:$0xff] }
 0x1de   :  { %v956_v16 = vmul.f32 0.001953125, %v954_v0  ;;  %v1153_v3 = vadd.f32 %v1152_v45, %v1151_v8  ;;  %v2802_v0 = vld [vmem:[%s3846_s3] sm:$0x1]  ;;  %v3916_v45 = vld [vmem:[#allocation4_spill] sm:$0xff] }
 0x1e0   :  { %v1154_v39 = vmul.f32 0.001953125, %v1153_v3  ;;  %v1155_v15 = vmul.f32 %v956_v16, %v956_v16  ;;  %v3918_v3 = vld [vmem:[#allocation6_spill] sm:$0xff] }
 0x1e2   :  { %v1156_v11 = vsub.f32 %v1154_v39, %v1155_v15  ;;  %v3919_v39 = vld [vmem:[#allocation7_spill] sm:$0xff] }
 0x1e4   :  { %v1157_v26 = vmax.f32 %v1156_v11, 0.0 }
 0x1e6   :  { %v1158_v56 = vadd.f32 1e-05, %v1157_v26  ;;  %v3920_v26 = vld [vmem:[#allocation8_spill] sm:$0xff] }
 0x1e8   :  { %2045 = vrsqrt.f32 %v1158_v56 }
 0x1f2   :  { %v2046_v55 = vpop.eup %2045 }
 0x1f3   :  { %v1160_v63 = vmul.f32 %v2046_v55, %v819_v1  ;;  %v3922_v55 = vld [vmem:[#allocation10_spill] sm:$0xff] }
 0x1f5   :  { %v2804_v8 = vmul.f32 %v1160_v63, %v956_v16  ;;  %v2808_v15 = vrot.slane %v1160_v63, %v3872_v62  ;;  %v3917_v16 = vld [vmem:[#allocation5_spill] sm:$0xff]  ;;  %v3930_v62 = vld [vmem:[#allocation19_spill] sm:$0xff] }
 0x1f7   :  { %v2814_v43 = vmul.f32 %v2808_v15, %v2345_v17  ;;  %v2818_v54 = vmul.f32 %v2808_v15, %v2351_v22  ;;  %v2822_v29 = vmul.f32 %v2808_v15, %v2363_v33  ;;  %v2826_v47 = vmul.f32 %v2808_v15, %v2371_v40 }
 0x1f8   :  { %v2830_v25 = vmul.f32 %v2808_v15, %v2381_v51  ;;  %v2834_v17 = vmul.f32 %v2808_v15, %v2389_v58  ;;  %v2838_v22 = vmul.f32 %v2808_v15, %v2399_v5  ;;  %v2842_v33 = vmul.f32 %v2808_v15, %v2407_v12 }
 0x1f9   :  { %v2846_v40 = vmul.f32 %v2808_v15, %v2417_v27  ;;  %v2850_v51 = vmul.f32 %v2808_v15, %v2425_v36  ;;  %v2854_v58 = vmul.f32 %v2808_v15, %v2435_v49  ;;  %v2858_v5 = vmul.f32 %v2808_v15, %v2443_v60 }
 0x1fa   :  { %v2862_v12 = vmul.f32 %v2808_v15, %v2453_v9  ;;  %v2866_v27 = vmul.f32 %v2808_v15, %v2461_v20  ;;  %v2870_v36 = vmul.f32 %v2808_v15, %v3914_v46  ;;  %v2874_v49 = vmul.f32 %v2808_v15, %v3915_v31  ;;  %v3923_v46 = vld [vmem:[#allocation11_spill] sm:$0xff] }
 0x1fb   :  { %v2878_v60 = vmul.f32 %v2808_v15, %v3916_v45  ;;  %v2882_v9 = vmul.f32 %v2808_v15, %v3917_v16  ;;  %v2886_v20 = vmul.f32 %v2808_v15, %v3918_v3  ;;  %v2890_v11 = vmul.f32 %v2808_v15, %v3919_v39  ;;  %v3925_v45 = vld [vmem:[#allocation12_spill] sm:$0xff]  ;;  %v3927_v3 = vld [vmem:[#allocation13_spill] sm:$0xff] }
 0x1fc   :  { %v2894_v56 = vmul.f32 %v2808_v15, %v3920_v26  ;;  %v2898_v1 = vmul.f32 %v2808_v15, %v3921_v48  ;;  %v2902_v63 = vmul.f32 %v2808_v15, %v3922_v55  ;;  %v2906_v31 = vmul.f32 %v2808_v15, %v3923_v46  ;;  %v3928_v26 = vld [vmem:[#allocation15_spill] sm:$0xff] }
 0x1fd   :  { %v2910_v16 = vmul.f32 %v2808_v15, %v3925_v45  ;;  %v2914_v39 = vmul.f32 %v2808_v15, %v3927_v3  ;;  %v2918_v48 = vmul.f32 %v2808_v15, %v3928_v26  ;;  %v2922_v55 = vmul.f32 %v2808_v15, %v3929_v32 }
 0x1fe   :  { %3924 = vst [vmem:[#allocation2_spill] sm:$0xff] %v2906_v31  ;;  %v2926_v46 = vmul.f32 %v2808_v15, %v3930_v62  ;;  %v3931_v31 = vld [vmem:[#allocation21_spill] sm:$0xff]  ;;  %v2938_v26 = vmul.f32 %v2808_v15, %v2623_v30  ;;  %v2942_v32 = vmul.f32 %v2808_v15, %v2347_v18  ;;  %v2946_v62 = vmul.f32 %v2808_v15, %v2353_v23 }
 0x1ff   :  { %3926 = vst [vmem:[#allocation3_spill] sm:$0xff] %v2910_v16  ;;  %v2930_v45 = vmul.f32 %v2808_v15, %v3931_v31  ;;  %v3932_v16 = vld [vmem:[#allocation23_spill] sm:$0xff]  ;;  %v2950_v31 = vmul.f32 %v2808_v15, %v2365_v34  ;;  %v2958_v30 = vmul.f32 %v2808_v15, %v2383_v52  ;;  %v2962_v18 = vmul.f32 %v2808_v15, %v2391_v59 }
 0x200   :  { %v2934_v3 = vmul.f32 %v2808_v15, %v3932_v16  ;;  %v2954_v16 = vmul.f32 %v2808_v15, %v2373_v41  ;;  %v2966_v23 = vmul.f32 %v2808_v15, %v2401_v6  ;;  %v2970_v34 = vmul.f32 %v2808_v15, %v2409_v13 }
 0x201   :  { %v2974_v41 = vmul.f32 %v2808_v15, %v2419_v28  ;;  %v2978_v52 = vmul.f32 %v2808_v15, %v2427_v37  ;;  %v2982_v59 = vmul.f32 %v2808_v15, %v2437_v50  ;;  %v2986_v6 = vmul.f32 %v2808_v15, %v2445_v61 }
 0x202   :  { %v2990_v13 = vmul.f32 %v2808_v15, %v2455_v10  ;;  %v2994_v28 = vmul.f32 %v2808_v15, %v2463_v21  ;;  %v2998_v37 = vmul.f32 %v2808_v15, %v2473_v42  ;;  %v3002_v50 = vmul.f32 %v2808_v15, %v2481_v53 }
 0x203   :  { %v3006_v61 = vmul.f32 %v2808_v15, %v2491_v4  ;;  %v3010_v10 = vmul.f32 %v2808_v15, %v2499_v19  ;;  %v3014_v21 = vmul.f32 %v2808_v15, %v2509_v44  ;;  %v3018_v42 = vmul.f32 %v2808_v15, %v2517_v57 }
 0x204   :  { %v3022_v53 = vmul.f32 %v2808_v15, %v2527_v24  ;;  %v3026_v4 = vmul.f32 %v2808_v15, %v2535_v35  ;;  %v3030_v19 = vmul.f32 %v2808_v15, %v2545_v2  ;;  %v3034_v44 = vmul.f32 %v2808_v15, %v2553_v14 }
 0x205   :  { %3933 = vst [vmem:[#allocation4_spill] sm:$0xff] %v3018_v42  ;;  %v3038_v57 = vmul.f32 %v2808_v15, %v2563_v7  ;;  %v3939_v42 = vld [vmem:[#allocation14_spill] sm:$0xff] }
 0x206   :  { %3934 = vst [vmem:[#allocation5_spill] sm:$0xff] %v3022_v53  ;;  %3935 = vst [vmem:[#allocation6_spill] sm:$0xff] %v3026_v4  ;;  %v3042_v24 = vmul.f32 %v2808_v15, %v3939_v42  ;;  %v3941_v53 = vld [vmem:[#allocation16_spill] sm:$0xff]  ;;  %v3943_v4 = vld [vmem:[#allocation18_spill] sm:$0xff] }
 0x207   :  { %3936 = vst [vmem:[#allocation7_spill] sm:$0xff] %v3030_v19  ;;  %3937 = vst [vmem:[#allocation8_spill] sm:$0xff] %v3034_v44  ;;  %v3046_v35 = vmul.f32 %v2808_v15, %v3941_v53  ;;  %v3050_v2 = vmul.f32 %v2808_v15, %v3943_v4  ;;  %v3945_v19 = vld [vmem:[#allocation20_spill] sm:$0xff]  ;;  %v3946_v44 = vld [vmem:[#allocation22_spill] sm:$0xff]  ;;  %v3950_v4 = vsub.f32 %v2802_v0, %v2804_v8 }
 0x208   :  { %3938 = vst [vmem:[#allocation9_spill] sm:$0xff] %v3038_v57  ;;  %3940 = vst [vmem:[#allocation10_spill] sm:$0xff] %v3042_v24  ;;  %v3054_v14 = vmul.f32 %v2808_v15, %v3945_v19  ;;  %v3058_v7 = vmul.f32 %v2808_v15, %v3946_v44  ;;  %v3947_v57 = vld [vmem:[#allocation24_spill] sm:$0xff]  ;;  %v3948_v24 = vld [vmem:[#allocation25_spill] sm:$0xff] }
 0x209   :  { %3942 = vst [vmem:[#allocation11_spill] sm:$0xff] %v3046_v35  ;;  %3944 = vst [vmem:[#allocation12_spill] sm:$0xff] %v3050_v2  ;;  %v3062_v42 = vmul.f32 %v2808_v15, %v3947_v57  ;;  %v3066_v53 = vmul.f32 %v2808_v15, %v3948_v24  ;;  %v3949_v35 = vsub.s32 0, %v2793_v38 }
 0x20b   :  { %v3073_v2 = vrot.slane %v3950_v4, %v3949_v35 }
 0x20c   :  { %v3962_v4 = vld [vmem:[#allocation4_spill] sm:$0xff] }
 0x20d   :  { %v3077_v19 = vadd.f32 %v3073_v2, %v2814_v43  ;;  %v3081_v44 = vadd.f32 %v3073_v2, %v2818_v54  ;;  %v3085_v57 = vadd.f32 %v3073_v2, %v2822_v29  ;;  %v3089_v38 = vadd.f32 %v3073_v2, %v2826_v47 }
 0x20e   :  { %v3093_v0 = vadd.f32 %v3073_v2, %v2830_v25  ;;  %v3097_v8 = vadd.f32 %v3073_v2, %v2834_v17  ;;  %v3101_v15 = vadd.f32 %v3073_v2, %v2838_v22  ;;  %v3105_v43 = vadd.f32 %v3073_v2, %v2842_v33 }
 0x20f   :  { %v3109_v54 = vadd.f32 %v3073_v2, %v2846_v40  ;;  %v3113_v29 = vadd.f32 %v3073_v2, %v2850_v51  ;;  %v3117_v47 = vadd.f32 %v3073_v2, %v2854_v58  ;;  %v3121_v25 = vadd.f32 %v3073_v2, %v2858_v5 }
 0x210   :  { %v3125_v17 = vadd.f32 %v3073_v2, %v2862_v12  ;;  %v3129_v22 = vadd.f32 %v3073_v2, %v2866_v27  ;;  %v3133_v33 = vadd.f32 %v3073_v2, %v2870_v36  ;;  %v3137_v40 = vadd.f32 %v3073_v2, %v2874_v49 }
 0x211   :  { %v3141_v51 = vadd.f32 %v3073_v2, %v2878_v60  ;;  %v3145_v58 = vadd.f32 %v3073_v2, %v2882_v9  ;;  %v3149_v5 = vadd.f32 %v3073_v2, %v2886_v20  ;;  %v3153_v12 = vadd.f32 %v3073_v2, %v2890_v11  ;;  %v3951_v60 = vld [vmem:[#allocation2_spill] sm:$0xff]  ;;  %v3952_v20 = vld [vmem:[#allocation3_spill] sm:$0xff] }
 0x212   :  { %v3157_v27 = vadd.f32 %v3073_v2, %v2894_v56  ;;  %v3161_v36 = vadd.f32 %v3073_v2, %v2898_v1  ;;  %v3165_v49 = vadd.f32 %v3073_v2, %v2902_v63  ;;  %v3169_v9 = vadd.f32 %v3073_v2, %v3951_v60  ;;  %v3964_v60 = vld [vmem:[#allocation5_spill] sm:$0xff] }
 0x213   :  { %v3173_v11 = vadd.f32 %v3073_v2, %v3952_v20  ;;  %v3177_v56 = vadd.f32 %v3073_v2, %v2914_v39  ;;  %v3181_v1 = vadd.f32 %v3073_v2, %v2918_v48  ;;  %v3185_v63 = vadd.f32 %v3073_v2, %v2922_v55  ;;  %v3966_v20 = vld [vmem:[#allocation6_spill] sm:$0xff] }
 0x214   :  { %v3189_v24 = vadd.f32 %v3073_v2, %v2926_v46  ;;  %v3193_v35 = vadd.f32 %v3073_v2, %v2930_v45  ;;  %v3197_v39 = vadd.f32 %v3073_v2, %v2934_v3  ;;  %v3201_v48 = vadd.f32 %v3073_v2, %v2938_v26 }
 0x215   :  { %v3205_v55 = vadd.f32 %v3073_v2, %v2942_v32  ;;  %v3209_v46 = vadd.f32 %v3073_v2, %v2946_v62  ;;  %v3213_v45 = vadd.f32 %v3073_v2, %v2950_v31  ;;  %v3217_v3 = vadd.f32 %v3073_v2, %v2954_v16 }
 0x216   :  { %v3221_v26 = vadd.f32 %v3073_v2, %v2958_v30  ;;  %v3225_v32 = vadd.f32 %v3073_v2, %v2962_v18  ;;  %v3229_v62 = vadd.f32 %v3073_v2, %v2966_v23  ;;  %v3233_v31 = vadd.f32 %v3073_v2, %v2970_v34 }
 0x217   :  { %v3237_v16 = vadd.f32 %v3073_v2, %v2974_v41  ;;  %v3241_v30 = vadd.f32 %v3073_v2, %v2978_v52  ;;  %v3245_v18 = vadd.f32 %v3073_v2, %v2982_v59  ;;  %v3249_v23 = vadd.f32 %v3073_v2, %v2986_v6 }
 0x218   :  { %3953 = vst [vmem:[#allocation13_spill] sm:$0xff] %v3229_v62  ;;  %3954 = vst [vmem:[#allocation15_spill] sm:$0xff] %v3233_v31  ;;  %v3253_v34 = vadd.f32 %v3073_v2, %v2990_v13  ;;  %v3257_v41 = vadd.f32 %v3073_v2, %v2994_v28  ;;  %v3261_v52 = vadd.f32 %v3073_v2, %v2998_v37 }
 0x219   :  { %3955 = vst [vmem:[#allocation17_spill] sm:$0xff] %v3237_v16  ;;  %3956 = vst [vmem:[#allocation19_spill] sm:$0xff] %v3241_v30  ;;  %v3265_v59 = vadd.f32 %v3073_v2, %v3002_v50  ;;  %v3269_v6 = vadd.f32 %v3073_v2, %v3006_v61  ;;  %v3273_v13 = vadd.f32 %v3073_v2, %v3010_v10 }
 0x21a   :  { %3957 = vst [vmem:[#allocation21_spill] sm:$0xff] %v3245_v18  ;;  %v3277_v28 = vadd.f32 %v3073_v2, %v3014_v21  ;;  %v3281_v37 = vadd.f32 %v3073_v2, %v3962_v4  ;;  %v3285_v50 = vadd.f32 %v3073_v2, %v3964_v60  ;;  %v3289_v61 = vadd.f32 %v3073_v2, %v3966_v20 }
 0x21b   :  { %3958 = vst [vmem:[#allocation23_spill] sm:$0xff] %v3265_v59  ;;  %3959 = vst [vmem:[#allocation14_spill] sm:$0xff] %v3269_v6  ;;  %v3968_v6 = vld [vmem:[#allocation7_spill] sm:$0xff] }
 0x21c   :  { %3960 = vst [vmem:[#allocation16_spill] sm:$0xff] %v3273_v13  ;;  %3961 = vst [vmem:[#allocation18_spill] sm:$0xff] %v3277_v28  ;;  %v3293_v10 = vadd.f32 %v3073_v2, %v3968_v6  ;;  %v3969_v13 = vld [vmem:[#allocation8_spill] sm:$0xff]  ;;  %v3970_v28 = vld [vmem:[#allocation9_spill] sm:$0xff] }
 0x21d   :  { %3963 = vst [vmem:[#allocation20_spill] sm:$0xff] %v3281_v37  ;;  %3965 = vst [vmem:[#allocation22_spill] sm:$0xff] %v3285_v50  ;;  %v3297_v21 = vadd.f32 %v3073_v2, %v3969_v13  ;;  %v3301_v4 = vadd.f32 %v3073_v2, %v3970_v28  ;;  %v3971_v37 = vld [vmem:[#allocation10_spill] sm:$0xff]  ;;  %v3972_v50 = vld [vmem:[#allocation11_spill] sm:$0xff]  ;;  %v3317_v13 = vadd.f32 %v3073_v2, %v3054_v14 }
 0x21e   :  { %3967 = vst [vmem:[#allocation24_spill] sm:$0xff] %v3289_v61  ;;  %v3305_v60 = vadd.f32 %v3073_v2, %v3971_v37  ;;  %v3309_v20 = vadd.f32 %v3073_v2, %v3972_v50  ;;  %v3974_v61 = vld [vmem:[#allocation12_spill] sm:$0xff]  ;;  %v3321_v28 = vadd.f32 %v3073_v2, %v3058_v7  ;;  %v3325_v37 = vadd.f32 %v3073_v2, %v3062_v42 }
 0x21f   :  { %v3313_v6 = vadd.f32 %v3073_v2, %v3974_v61  ;;  %3976 = vst [vmem:[#allocation3_spill] sm:$0xff] %v3317_v13  ;;  %v3329_v50 = vadd.f32 %v3073_v2, %v3066_v53  ;;  %v3987_v62 = vmov %v3317_v13  ;;  %v3990_v13 = vmax.f32 %v3077_v19, 0.0 }
 0x220   :  { %3973 = vst [vmem:[#allocation25_spill] sm:$0xff] %v3309_v20  ;;  %3977 = vst [vmem:[#allocation4_spill] sm:$0xff] %v3321_v28  ;;  %v3988_v31 = vmov %v3321_v28  ;;  %v3989_v16 = vmov %v3325_v37  ;;  %v3991_v28 = vmax.f32 %v3081_v44, 0.0  ;;  %v3993_v53 = vmax.f32 %v3089_v38, 0.0 }
 0x221   :  { %3975 = vst [vmem:[#allocation2_spill] sm:$0xff] %v3313_v6  ;;  %3978 = vst [vmem:[#allocation5_spill] sm:$0xff] %v3325_v37  ;;  %v3986_v20 = vmov %v3313_v6  ;;  %v1836_v7 = vpack.c.bf16 %v3990_v13, %v3990_v13  ;;  %v3992_v37 = vmax.f32 %v3085_v57, 0.0  ;;  %v3994_v6 = vmax.f32 %v3093_v0, 0.0 }
 0x222   :  { %v1837_v42 = vpack.c.bf16 %v3991_v28, %v3991_v28  ;;  %v1839_v61 = vpack.c.bf16 %v3993_v53, %v3993_v53  ;;  %v3995_v19 = vmax.f32 %v3097_v8, 0.0  ;;  %v3996_v44 = vmax.f32 %v3101_v15, 0.0 }
 0x223   :  { %v1838_v2 = vpack.c.bf16 %v3992_v37, %v3992_v37  ;;  %v1840_v14 = vpack.c.bf16 %v3994_v6, %v3994_v6  ;;  %v3997_v57 = vmax.f32 %v3105_v43, 0.0  ;;  %v3998_v38 = vmax.f32 %v3109_v54, 0.0  ;;  %1624 = vst.msk [vmem:[%s3847_s4] sm:$0xf] %vm1623_vm1, %v1836_v7 }
 0x224   :  { %v3983_v30 = vld [vmem:[#allocation22_spill] sm:$0xff]  ;;  %v1841_v13 = vpack.c.bf16 %v3995_v19, %v3995_v19  ;;  %v1842_v28 = vpack.c.bf16 %v3996_v44, %v3996_v44  ;;  %v3999_v0 = vmax.f32 %v3113_v29, 0.0  ;;  %v4000_v8 = vmax.f32 %v3117_v47, 0.0  ;;  %1625 = vst.msk [vmem:[%s3847_s4 + $0x4] sm:$0xf] %vm1623_vm1, %v1837_v42 }
 0x225   :  { %v3984_v18 = vld [vmem:[#allocation24_spill] sm:$0xff]  ;;  %v1843_v37 = vpack.c.bf16 %v3997_v57, %v3997_v57  ;;  %v1844_v53 = vpack.c.bf16 %v3998_v38, %v3998_v38  ;;  %v4001_v15 = vmax.f32 %v3121_v25, 0.0  ;;  %1626 = vst.msk [vmem:[%s3847_s4 + $0x8] sm:$0xf] %vm1623_vm1, %v1838_v2  ;;  %1627 = vst.msk [vmem:[%s3847_s4 + $0xc] sm:$0xf] %vm1623_vm1, %v1839_v61 }
 0x226   :  { %v1845_v6 = vpack.c.bf16 %v3999_v0, %v3999_v0  ;;  %v1846_v19 = vpack.c.bf16 %v4000_v8, %v4000_v8  ;;  %v4002_v43 = vmax.f32 %v3125_v17, 0.0  ;;  %v4003_v29 = vmax.f32 %v3129_v22, 0.0  ;;  %1628 = vst.msk [vmem:[%s3847_s4 + $0x10] sm:$0xf] %vm1623_vm1, %v1840_v14  ;;  %1629 = vst.msk [vmem:[%s3847_s4 + $0x14] sm:$0xf] %vm1623_vm1, %v1841_v13 }
 0x227   :  { %v3985_v59 = vld [vmem:[#allocation25_spill] sm:$0xff]  ;;  %v1847_v44 = vpack.c.bf16 %v4001_v15, %v4001_v15  ;;  %v4004_v25 = vmax.f32 %v3133_v33, 0.0  ;;  %v4005_v42 = vmax.f32 %v3137_v40, 0.0  ;;  %1630 = vst.msk [vmem:[%s3847_s4 + $0x18] sm:$0xf] %vm1623_vm1, %v1842_v28  ;;  %v4006_v17 = vmax.f32 %v3141_v51, 0.0 }
 0x228   :  { %v1848_v54 = vpack.c.bf16 %v4002_v43, %v4002_v43  ;;  %v1849_v47 = vpack.c.bf16 %v4003_v29, %v4003_v29  ;;  %1631 = vst.msk [vmem:[%s3847_s4 + $0x1c] sm:$0xf] %vm1623_vm1, %v1843_v37  ;;  %v4007_v33 = vmax.f32 %v3145_v58, 0.0  ;;  %v4008_v61 = vmax.f32 %v3149_v5, 0.0  ;;  %1632 = vst.msk [vmem:[%s3847_s4 + $0x20] sm:$0xf] %vm1623_vm1, %v1844_v53 }
 0x229   :  { %v1850_v7 = vpack.c.bf16 %v4004_v25, %v4004_v25  ;;  %v1851_v2 = vpack.c.bf16 %v4005_v42, %v4005_v42  ;;  %v1852_v22 = vpack.c.bf16 %v4006_v17, %v4006_v17  ;;  %v4009_v13 = vmax.f32 %v3153_v12, 0.0  ;;  %1633 = vst.msk [vmem:[%s3847_s4 + $0x24] sm:$0xf] %vm1623_vm1, %v1845_v6  ;;  %1634 = vst.msk [vmem:[%s3847_s4 + $0x28] sm:$0xf] %vm1623_vm1, %v1846_v19  ;;  %v4028_v42 = vld [vmem:[#allocation13_spill] sm:$0xff] }
 0x22a   :  { %v1853_v40 = vpack.c.bf16 %v4007_v33, %v4007_v33  ;;  %v1854_v14 = vpack.c.bf16 %v4008_v61, %v4008_v61  ;;  %1635 = vst.msk [vmem:[%s3847_s4 + $0x2c] sm:$0xf] %vm1623_vm1, %v1847_v44  ;;  %v4010_v51 = vmax.f32 %v3157_v27, 0.0  ;;  %v4011_v5 = vmax.f32 %v3161_v36, 0.0  ;;  %1636 = vst.msk [vmem:[%s3847_s4 + $0x30] sm:$0xf] %vm1623_vm1, %v1848_v54 }
 0x22b   :  { %v1855_v28 = vpack.c.bf16 %v4009_v13, %v4009_v13  ;;  %v4012_v57 = vmax.f32 %v3165_v49, 0.0  ;;  %v4013_v38 = vmax.f32 %v3169_v9, 0.0  ;;  %1637 = vst.msk [vmem:[%s3847_s4 + $0x34] sm:$0xf] %vm1623_vm1, %v1849_v47  ;;  %1638 = vst.msk [vmem:[%s3847_s4 + $0x38] sm:$0xf] %vm1623_vm1, %v1850_v7 }
 0x22c   :  { %v1856_v58 = vpack.c.bf16 %v4010_v51, %v4010_v51  ;;  %v1857_v12 = vpack.c.bf16 %v4011_v5, %v4011_v5  ;;  %1639 = vst.msk [vmem:[%s3847_s4 + $0x3c] sm:$0xf] %vm1623_vm1, %v1851_v2  ;;  %v4014_v27 = vmax.f32 %v3173_v11, 0.0  ;;  %v4015_v49 = vmax.f32 %v3177_v56, 0.0  ;;  %1640 = vst.msk [vmem:[%s3847_s4 + $0x40] sm:$0xf] %vm1623_vm1, %v1852_v22 }
 0x22d   :  { %v1858_v37 = vpack.c.bf16 %v4012_v57, %v4012_v57  ;;  %v1859_v53 = vpack.c.bf16 %v4013_v38, %v4013_v38  ;;  %v4016_v0 = vmax.f32 %v3181_v1, 0.0  ;;  %v4017_v8 = vmax.f32 %v3185_v63, 0.0  ;;  %1641 = vst.msk [vmem:[%s3847_s4 + $0x44] sm:$0xf] %vm1623_vm1, %v1853_v40  ;;  %1642 = vst.msk [vmem:[%s3847_s4 + $0x48] sm:$0xf] %vm1623_vm1, %v1854_v14 }
 0x22e   :  { %v1860_v36 = vpack.c.bf16 %v4014_v27, %v4014_v27  ;;  %v1861_v9 = vpack.c.bf16 %v4015_v49, %v4015_v49  ;;  %1643 = vst.msk [vmem:[%s3847_s4 + $0x4c] sm:$0xf] %vm1623_vm1, %v1855_v28  ;;  %v4018_v11 = vmax.f32 %v3189_v24, 0.0  ;;  %v4019_v1 = vmax.f32 %v3193_v35, 0.0  ;;  %1644 = vst.msk [vmem:[%s3847_s4 + $0x50] sm:$0xf] %vm1623_vm1, %v1856_v58 }
 0x22f   :  { %v1862_v6 = vpack.c.bf16 %v4016_v0, %v4016_v0  ;;  %v1863_v19 = vpack.c.bf16 %v4017_v8, %v4017_v8  ;;  %v4020_v15 = vmax.f32 %v3197_v39, 0.0  ;;  %v4021_v43 = vmax.f32 %v3201_v48, 0.0  ;;  %1645 = vst.msk [vmem:[%s3847_s4 + $0x54] sm:$0xf] %vm1623_vm1, %v1857_v12  ;;  %1646 = vst.msk [vmem:[%s3847_s4 + $0x58] sm:$0xf] %vm1623_vm1, %v1858_v37 }
 0x230   :  { %v1864_v56 = vpack.c.bf16 %v4018_v11, %v4018_v11  ;;  %v1865_v63 = vpack.c.bf16 %v4019_v1, %v4019_v1  ;;  %1647 = vst.msk [vmem:[%s3847_s4 + $0x5c] sm:$0xf] %vm1623_vm1, %v1859_v53  ;;  %v4022_v24 = vmax.f32 %v3205_v55, 0.0  ;;  %v4023_v39 = vmax.f32 %v3209_v46, 0.0  ;;  %1648 = vst.msk [vmem:[%s3847_s4 + $0x60] sm:$0xf] %vm1623_vm1, %v1860_v36 }
 0x231   :  { %v1866_v44 = vpack.c.bf16 %v4020_v15, %v4020_v15  ;;  %v1867_v54 = vpack.c.bf16 %v4021_v43, %v4021_v43  ;;  %v4024_v29 = vmax.f32 %v3213_v45, 0.0  ;;  %v4025_v25 = vmax.f32 %v3217_v3, 0.0  ;;  %1649 = vst.msk [vmem:[%s3847_s4 + $0x64] sm:$0xf] %vm1623_vm1, %v1861_v9  ;;  %1650 = vst.msk [vmem:[%s3847_s4 + $0x68] sm:$0xf] %vm1623_vm1, %v1862_v6 }
 0x232   :  { %v1868_v35 = vpack.c.bf16 %v4022_v24, %v4022_v24  ;;  %v1869_v48 = vpack.c.bf16 %v4023_v39, %v4023_v39  ;;  %1651 = vst.msk [vmem:[%s3847_s4 + $0x6c] sm:$0xf] %vm1623_vm1, %v1863_v19  ;;  %v4026_v55 = vmax.f32 %v3221_v26, 0.0  ;;  %v4027_v45 = vmax.f32 %v3225_v32, 0.0  ;;  %v4030_v22 = vld [vmem:[#allocation15_spill] sm:$0xff]  ;;  %v4032_v26 = vld [vmem:[#allocation17_spill] sm:$0xff] }
 0x233   :  { %v1870_v47 = vpack.c.bf16 %v4024_v29, %v4024_v29  ;;  %v1871_v7 = vpack.c.bf16 %v4025_v25, %v4025_v25  ;;  %v4029_v2 = vmax.f32 %v4028_v42, 0.0  ;;  %v4031_v33 = vmax.f32 %v4030_v22, 0.0  ;;  %1652 = vst.msk [vmem:[%s3847_s4 + $0x70] sm:$0xf] %vm1623_vm1, %v1864_v56  ;;  %1653 = vst.msk [vmem:[%s3847_s4 + $0x74] sm:$0xf] %vm1623_vm1, %v1865_v63 }
 0x234   :  { %v1872_v46 = vpack.c.bf16 %v4026_v55, %v4026_v55  ;;  %v1873_v3 = vpack.c.bf16 %v4027_v45, %v4027_v45  ;;  %1654 = vst.msk [vmem:[%s3847_s4 + $0x78] sm:$0xf] %vm1623_vm1, %v1866_v44  ;;  %1655 = vst.msk [vmem:[%s3847_s4 + $0x7c] sm:$0xf] %vm1623_vm1, %v1867_v54  ;;  %v4033_v32 = vmax.f32 %v4032_v26, 0.0  ;;  %v4034_v14 = vld [vmem:[#allocation19_spill] sm:$0xff] }
 0x235   :  { %v1874_v17 = vpack.c.bf16 %v4029_v2, %v4029_v2  ;;  %v1875_v40 = vpack.c.bf16 %v4031_v33, %v4031_v33  ;;  %v4035_v13 = vmax.f32 %v4034_v14, 0.0  ;;  %v4036_v51 = vld [vmem:[#allocation21_spill] sm:$0xff]  ;;  %v4038_v12 = vmax.f32 %v3249_v23, 0.0  ;;  %1656 = vst.msk [vmem:[%s3847_s4 + $0x80] sm:$0xf] %vm1623_vm1, %v1868_v35  ;;  %v4042_v49 = vld [vmem:[#allocation23_spill] sm:$0xff] }
 0x236   :  { %v1876_v61 = vpack.c.bf16 %v4033_v32, %v4033_v32  ;;  %v4037_v58 = vmax.f32 %v4036_v51, 0.0  ;;  %1657 = vst.msk [vmem:[%s3847_s4 + $0x84] sm:$0xf] %vm1623_vm1, %v1869_v48  ;;  %1658 = vst.msk [vmem:[%s3847_s4 + $0x88] sm:$0xf] %vm1623_vm1, %v1870_v47  ;;  %v4039_v23 = vmax.f32 %v3253_v34, 0.0 }
 0x237   :  { %v1877_v28 = vpack.c.bf16 %v4035_v13, %v4035_v13  ;;  %v1879_v57 = vpack.c.bf16 %v4038_v12, %v4038_v12  ;;  %1659 = vst.msk [vmem:[%s3847_s4 + $0x8c] sm:$0xf] %vm1623_vm1, %v1871_v7  ;;  %v4040_v38 = vmax.f32 %v3257_v41, 0.0  ;;  %v4041_v27 = vmax.f32 %v3261_v52, 0.0  ;;  %1660 = vst.msk [vmem:[%s3847_s4 + $0x90] sm:$0xf] %vm1623_vm1, %v1872_v46 }
 0x238   :  { %v1878_v5 = vpack.c.bf16 %v4037_v58, %v4037_v58  ;;  %v1880_v37 = vpack.c.bf16 %v4039_v23, %v4039_v23  ;;  %v4043_v9 = vmax.f32 %v4042_v49, 0.0  ;;  %1661 = vst.msk [vmem:[%s3847_s4 + $0x94] sm:$0xf] %vm1623_vm1, %v1873_v3  ;;  %1662 = vst.msk [vmem:[%s3847_s4 + $0x98] sm:$0xf] %vm1623_vm1, %v1874_v17  ;;  %v4044_v34 = vld [vmem:[#allocation14_spill] sm:$0xff] }
 0x239   :  { %v1881_v53 = vpack.c.bf16 %v4040_v38, %v4040_v38  ;;  %v1882_v36 = vpack.c.bf16 %v4041_v27, %v4041_v27  ;;  %1663 = vst.msk [vmem:[%s3847_s4 + $0x9c] sm:$0xf] %vm1623_vm1, %v1875_v40  ;;  %v4045_v41 = vmax.f32 %v4044_v34, 0.0  ;;  %v4046_v6 = vld [vmem:[#allocation16_spill] sm:$0xff]  ;;  %v4048_v11 = vld [vmem:[#allocation18_spill] sm:$0xff]  ;;  %v4052_v43 = vmax.f32 %v3983_v30, 0.0 }
 0x23a   :  { %v1883_v0 = vpack.c.bf16 %v4043_v9, %v4043_v9  ;;  %v4047_v8 = vmax.f32 %v4046_v6, 0.0  ;;  %v4049_v56 = vmax.f32 %v4048_v11, 0.0  ;;  %v4050_v63 = vld [vmem:[#allocation20_spill] sm:$0xff]  ;;  %1664 = vst.msk [vmem:[%s3847_s4 + $0xa0] sm:$0xf] %vm1623_vm1, %v1876_v61  ;;  %v4053_v24 = vmax.f32 %v3984_v18, 0.0 }
 0x23b   :  { %v1884_v52 = vpack.c.bf16 %v4045_v41, %v4045_v41  ;;  %v4051_v15 = vmax.f32 %v4050_v63, 0.0  ;;  %1665 = vst.msk [vmem:[%s3847_s4 + $0xa4] sm:$0xf] %vm1623_vm1, %v1877_v28  ;;  %1666 = vst.msk [vmem:[%s3847_s4 + $0xa8] sm:$0xf] %vm1623_vm1, %v1878_v5  ;;  %v1888_v54 = vpack.c.bf16 %v4052_v43, %v4052_v43  ;;  %v4054_v39 = vmax.f32 %v3293_v10, 0.0 }
 0x23c   :  { %v1885_v19 = vpack.c.bf16 %v4047_v8, %v4047_v8  ;;  %v1886_v1 = vpack.c.bf16 %v4049_v56, %v4049_v56  ;;  %1667 = vst.msk [vmem:[%s3847_s4 + $0xac] sm:$0xf] %vm1623_vm1, %v1879_v57  ;;  %v1889_v35 = vpack.c.bf16 %v4053_v24, %v4053_v24  ;;  %v4055_v29 = vmax.f32 %v3297_v21, 0.0  ;;  %1668 = vst.msk [vmem:[%s3847_s4 + $0xb0] sm:$0xf] %vm1623_vm1, %v1880_v37 }
 0x23d   :  { %v1887_v44 = vpack.c.bf16 %v4051_v15, %v4051_v15  ;;  %v1890_v48 = vpack.c.bf16 %v4054_v39, %v4054_v39  ;;  %1669 = vst.msk [vmem:[%s3847_s4 + $0xb4] sm:$0xf] %vm1623_vm1, %v1881_v53  ;;  %1670 = vst.msk [vmem:[%s3847_s4 + $0xb8] sm:$0xf] %vm1623_vm1, %v1882_v36  ;;  %v4056_v30 = vmax.f32 %v3301_v4, 0.0  ;;  %v4057_v10 = vmax.f32 %v3305_v60, 0.0 }
 0x23e   :  { %v1891_v47 = vpack.c.bf16 %v4055_v29, %v4055_v29  ;;  %1671 = vst.msk [vmem:[%s3847_s4 + $0xbc] sm:$0xf] %vm1623_vm1, %v1883_v0  ;;  %v4058_v25 = vmax.f32 %v3985_v59, 0.0  ;;  %v4059_v55 = vmax.f32 %v3986_v20, 0.0  ;;  %1672 = vst.msk [vmem:[%s3847_s4 + $0xc0] sm:$0xf] %vm1623_vm1, %v1884_v52 }
 0x23f   :  { %v1892_v18 = vpack.c.bf16 %v4056_v30, %v4056_v30  ;;  %v1893_v21 = vpack.c.bf16 %v4057_v10, %v4057_v10  ;;  %1673 = vst.msk [vmem:[%s3847_s4 + $0xc4] sm:$0xf] %vm1623_vm1, %v1885_v19  ;;  %1674 = vst.msk [vmem:[%s3847_s4 + $0xc8] sm:$0xf] %vm1623_vm1, %v1886_v1  ;;  %v4060_v59 = vmax.f32 %v3987_v62, 0.0  ;;  %v4061_v60 = vmax.f32 %v3988_v31, 0.0 }
 0x240   :  { %v1894_v7 = vpack.c.bf16 %v4058_v25, %v4058_v25  ;;  %v1895_v46 = vpack.c.bf16 %v4059_v55, %v4059_v55  ;;  %1675 = vst.msk [vmem:[%s3847_s4 + $0xcc] sm:$0xf] %vm1623_vm1, %v1887_v44  ;;  %v4062_v45 = vmax.f32 %v3989_v16, 0.0  ;;  %v4063_v42 = vmax.f32 %v3329_v50, 0.0  ;;  %1676 = vst.msk [vmem:[%s3847_s4 + $0xd0] sm:$0xf] %vm1623_vm1, %v1888_v54 }
 0x241   :  { %v1896_v4 = vpack.c.bf16 %v4060_v59, %v4060_v59  ;;  %v1897_v20 = vpack.c.bf16 %v4061_v60, %v4061_v60  ;;  %1677 = vst.msk [vmem:[%s3847_s4 + $0xd4] sm:$0xf] %vm1623_vm1, %v1889_v35  ;;  %1678 = vst.msk [vmem:[%s3847_s4 + $0xd8] sm:$0xf] %vm1623_vm1, %v1890_v48 }
 0x242   :  { %v1898_v3 = vpack.c.bf16 %v4062_v45, %v4062_v45  ;;  %v1899_v2 = vpack.c.bf16 %v4063_v42, %v4063_v42  ;;  %1679 = vst.msk [vmem:[%s3847_s4 + $0xdc] sm:$0xf] %vm1623_vm1, %v1891_v47  ;;  %1680 = vst.msk [vmem:[%s3847_s4 + $0xe0] sm:$0xf] %vm1623_vm1, %v1892_v18 }
 0x243   :  { %1681 = vst.msk [vmem:[%s3847_s4 + $0xe4] sm:$0xf] %vm1623_vm1, %v1893_v21  ;;  %1682 = vst.msk [vmem:[%s3847_s4 + $0xe8] sm:$0xf] %vm1623_vm1, %v1894_v7 }
 0x244   :  { %1683 = vst.msk [vmem:[%s3847_s4 + $0xec] sm:$0xf] %vm1623_vm1, %v1895_v46  ;;  %1684 = vst.msk [vmem:[%s3847_s4 + $0xf0] sm:$0xf] %vm1623_vm1, %v1896_v4 }
 0x245   :  { %1685 = vst.msk [vmem:[%s3847_s4 + $0xf4] sm:$0xf] %vm1623_vm1, %v1897_v20  ;;  %1686 = vst.msk [vmem:[%s3847_s4 + $0xf8] sm:$0xf] %vm1623_vm1, %v1898_v3 }
 0x246   :  { %1687 = vst.msk [vmem:[%s3847_s4 + $0xfc] sm:$0xf] %vm1623_vm1, %v1899_v2 }

// kernel: my_resnet_forward.5
= control target key start
LH: loop header
LB: loop body
LE: loop exit
PB: predicated region body
PF: predicated region fallthrough
CT: control target
= control target key end

     0   :  { %vm551_vm0 = vcmask 523264   ;;  %vm633_vm1 = vcmask 519168   ;;  %s1043_s1 = inlined_call_operand.vmem [shape: bf16[640,64], index: 1, kind: input, shape index: {}]   ;;  %s1044_s0 = inlined_call_operand.vmem [shape: bf16[32,640], index: 0, kind: input, shape index: {}]   ;;  %s1045_s2 = inlined_call_operand.vmem [shape: f32[1,64], index: 2, kind: input, shape index: {}]   ;;  %s1046_s3 = inlined_call_operand.vmem [shape: f32[1,64], index: 3, kind: input, shape index: {}]   ;;  %s1047_s4 = inlined_call_operand.vmem [shape: bf16[32,64], index: 4, kind: output, shape index: {}]  }
   0x1   :  { %v786_v0 = vld [vmem:[%s1043_s1 + $0x40] sm:$0xff]   ;;  %v790_v4 = vld [vmem:[%s1043_s1 + $0x48] sm:$0xff]   ;;  %v794_v8 = vld [vmem:[%s1043_s1 + $0x50] sm:$0xff]  }
   0x2   :  { %v787_v1 = vld [vmem:[%s1043_s1 + $0xc0] sm:$0xff]   ;;  %700 = vmatprep.subr.bf16.mxu0 %v786_v0  ;;  %v791_v5 = vld [vmem:[%s1043_s1 + $0xc8] sm:$0xff]   ;;  %v795_v9 = vld [vmem:[%s1043_s1 + $0xd0] sm:$0xff]  }
   0x3   :  { %v788_v2 = vld [vmem:[%s1043_s1] sm:$0xff]   ;;  %728 = vmatprep.subr.bf16.mxu1 %v787_v1  ;;  %v792_v6 = vld [vmem:[%s1043_s1 + $0x8] sm:$0xff]   ;;  %v796_v10 = vld [vmem:[%s1043_s1 + $0x10] sm:$0xff]  }
   0x4   :  { %v789_v3 = vld [vmem:[%s1043_s1 + $0x80] sm:$0xff]   ;;  %701 = vmatpush3.bf16.msra.mxu0 %v788_v2  ;;  %v793_v7 = vld [vmem:[%s1043_s1 + $0x88] sm:$0xff]   ;;  %v797_v11 = vld [vmem:[%s1043_s1 + $0x90] sm:$0xff]  }
   0x5   :  { %729 = vmatpush3.bf16.msra.mxu1 %v789_v3  ;;  %702 = vmatprep.subr.bf16.mxu0 %v790_v4  ;;  %v798_v12 = vld [vmem:[%s1043_s1 + $0x58] sm:$0xff]   ;;  %v802_v16 = vld [vmem:[%s1043_s1 + $0x60] sm:$0xff]   ;;  %v806_v20 = vld [vmem:[%s1043_s1 + $0x68] sm:$0xff]  }
   0x6   :  { %730 = vmatprep.subr.bf16.mxu1 %v791_v5  ;;  %v799_v13 = vld [vmem:[%s1043_s1 + $0xd8] sm:$0xff]   ;;  %v803_v17 = vld [vmem:[%s1043_s1 + $0xe0] sm:$0xff]   ;;  %v807_v21 = vld [vmem:[%s1043_s1 + $0xe8] sm:$0xff]  }
   0x7   :  { %v800_v14 = vld [vmem:[%s1043_s1 + $0x18] sm:$0xff]   ;;  %v804_v18 = vld [vmem:[%s1043_s1 + $0x20] sm:$0xff]   ;;  %v808_v22 = vld [vmem:[%s1043_s1 + $0x28] sm:$0xff]  }
   0x8   :  { %703 = vmatpush3.bf16.msra.mxu0 %v792_v6  ;;  %v801_v15 = vld [vmem:[%s1043_s1 + $0x98] sm:$0xff]   ;;  %v805_v19 = vld [vmem:[%s1043_s1 + $0xa0] sm:$0xff]   ;;  %v809_v23 = vld [vmem:[%s1043_s1 + $0xa8] sm:$0xff]  }
   0x9   :  { %731 = vmatpush3.bf16.msra.mxu1 %v793_v7  ;;  %704 = vmatprep.subr.bf16.mxu0 %v794_v8  ;;  %v810_v24 = vld [vmem:[%s1043_s1 + $0x70] sm:$0xff]   ;;  %v814_v28 = vld [vmem:[%s1043_s1 + $0x78] sm:$0xff]   ;;  %v823_v35 = vld [vmem:[%s1044_s0 + $0xc] ss:$20 sps:$4 sm:$0xff]  }
   0xa   :  { %732 = vmatprep.subr.bf16.mxu1 %v795_v9  ;;  %v811_v25 = vld [vmem:[%s1043_s1 + $0xf0] sm:$0xff]   ;;  %v815_v29 = vld [vmem:[%s1043_s1 + $0xf8] sm:$0xff]   ;;  %v824_v36 = vld [vmem:[%s1043_s1 + $0x100] sm:$0xff]   ;;  %483 = vmatprep.mubr.bf16.mxu1 %v823_v35 }
   0xb   :  { %v812_v26 = vld [vmem:[%s1043_s1 + $0x30] sm:$0xff]   ;;  %v816_v30 = vld [vmem:[%s1043_s1 + $0x38] sm:$0xff]   ;;  %v825_v37 = vld [vmem:[%s1043_s1 + $0x108] sm:$0xff]  }
   0xc   :  { %705 = vmatpush3.bf16.msra.mxu0 %v796_v10  ;;  %v813_v27 = vld [vmem:[%s1043_s1 + $0xb0] sm:$0xff]   ;;  %v817_v31 = vld [vmem:[%s1043_s1 + $0xb8] sm:$0xff]   ;;  %v829_v39 = vld [vmem:[%s1044_s0 + $0x2c] ss:$20 sps:$4 sm:$0xff]  }
   0xd   :  { %733 = vmatpush3.bf16.msra.mxu1 %v797_v11  ;;  %706 = vmatprep.subr.bf16.mxu0 %v798_v12  ;;  %v818_v32 = vld [vmem:[%s1044_s0] ss:$20 sps:$4 sm:$0xff]   ;;  %v820_v33 = vld [vmem:[%s1044_s0 + $0x4] ss:$20 sps:$4 sm:$0xff]   ;;  %v821_v34 = vld [vmem:[%s1044_s0 + $0x8] ss:$20 sps:$4 sm:$0xff]  }
   0xe   :  { %734 = vmatprep.subr.bf16.mxu1 %v799_v13  ;;  %434 = vmatprep.mubr.bf16.mxu0 %v820_v33  ;;  %v826_v38 = vld [vmem:[%s1043_s1 + $0x110] sm:$0xff]   ;;  %v827_v41 = vld [vmem:[%s1043_s1 + $0x118] sm:$0xff]   ;;  %v828_v45 = vld [vmem:[%s1043_s1 + $0x120] sm:$0xff]  }
   0xf   :  { %v831_v40 = vld [vmem:[%s1044_s0 + $0x34] ss:$20 sps:$4 sm:$0xff]   ;;  %v835_v43 = vld [vmem:[%s1044_s0 + $0x30] ss:$20 sps:$4 sm:$0xff]   ;;  %v837_v48 = vld [vmem:[%s1043_s1 + $0x138] sm:$0xff]  }
  0x10   :  { %707 = vmatpush3.bf16.msra.mxu0 %v800_v14  ;;  %v834_v42 = vld [vmem:[%s1044_s0 + $0x28] ss:$20 sps:$4 sm:$0xff]   ;;  %v838_v44 = vld [vmem:[%s1044_s0 + $0x10] ss:$20 sps:$4 sm:$0xff]   ;;  %v839_v49 = vld [vmem:[%s1044_s0 + $0x38] ss:$20 sps:$4 sm:$0xff]  }
  0x11   :  { %735 = vmatpush3.bf16.msra.mxu1 %v801_v15  ;;  %708 = vmatprep.subr.bf16.mxu0 %v802_v16  ;;  %v833_v46 = vld [vmem:[%s1043_s1 + $0x128] sm:$0xff]   ;;  %v836_v47 = vld [vmem:[%s1043_s1 + $0x130] sm:$0xff]  }
  0x12   :  { %736 = vmatprep.subr.bf16.mxu1 %v803_v17 }
  0x14   :  { %709 = vmatpush3.bf16.msra.mxu0 %v804_v18 }
  0x15   :  { %737 = vmatpush3.bf16.msra.mxu1 %v805_v19  ;;  %710 = vmatprep.subr.bf16.mxu0 %v806_v20 }
  0x16   :  { %738 = vmatprep.subr.bf16.mxu1 %v807_v21 }
  0x18   :  { %711 = vmatpush3.bf16.msra.mxu0 %v808_v22 }
  0x19   :  { %739 = vmatpush3.bf16.msra.mxu1 %v809_v23  ;;  %712 = vmatprep.subr.bf16.mxu0 %v810_v24 }
  0x1a   :  { %740 = vmatprep.subr.bf16.mxu1 %v811_v25 }
  0x1c   :  { %713 = vmatpush3.bf16.msra.mxu0 %v812_v26 }
  0x1d   :  { %741 = vmatpush3.bf16.msra.mxu1 %v813_v27  ;;  %714 = vmatprep.subr.bf16.mxu0 %v814_v28 }
  0x1e   :  { %742 = vmatprep.subr.bf16.mxu1 %v815_v29 }
  0x20   :  { %715 = vmatpush3.bf16.msra.mxu0 %v816_v30 }
  0x21   :  { %743 = vmatpush3.bf16.msra.mxu1 %v817_v31  ;;  %766 = vmatprep.subr.bf16.mxu0 %v824_v36 }
  0x23   :  { %435 = vmatmul.mubr.bf16.vlgmr.msra.gmra.mrb[0].mxu0 %v818_v32 }
  0x24   :  { %484 = vmatmul.mubr.bf16.vlgmr.msra.gmra.mrb[0].mxu1 %v821_v34  ;;  %767 = vmatpush3.bf16.msra.mxu0 %v824_v36 }
  0x25   :  { %768 = vmatprep.subr.bf16.mxu0 %v825_v37  ;;  %442 = vmatprep.mubr.bf16.mxu0 %v829_v39 }
  0x26   :  { %491 = vmatprep.mubr.bf16.mxu1 %v831_v40 }
  0x28   :  { %769 = vmatpush3.bf16.msra.mxu0 %v825_v37 }
  0x29   :  { %770 = vmatprep.subr.bf16.mxu0 %v826_v38 }
  0x2b   :  { %443 = vmatmul.mubr.bf16.gmra.mrb[4].mxu0 %v834_v42 }
  0x2c   :  { %492 = vmatmul.mubr.bf16.gmra.mrb[4].mxu1 %v835_v43  ;;  %771 = vmatpush3.bf16.msra.mxu0 %v826_v38 }
  0x2d   :  { %772 = vmatprep.subr.bf16.mxu0 %v827_v41  ;;  %782 = vmatprep.mubr.bf16.mxu0 %v838_v44 }
  0x30   :  { %773 = vmatpush3.bf16.msra.mxu0 %v827_v41 }
  0x31   :  { %774 = vmatprep.subr.bf16.mxu0 %v828_v45 }
  0x34   :  { %775 = vmatpush3.bf16.msra.mxu0 %v828_v45 }
  0x35   :  { %776 = vmatprep.subr.bf16.mxu0 %v833_v46 }
  0x38   :  { %777 = vmatpush3.bf16.msra.mxu0 %v833_v46 }
  0x39   :  { %778 = vmatprep.subr.bf16.mxu0 %v836_v47 }
  0x3c   :  { %779 = vmatpush3.bf16.msra.mxu0 %v836_v47 }
  0x3d   :  { %780 = vmatprep.subr.bf16.mxu0 %v837_v48 }
  0x40   :  { %781 = vmatpush3.bf16.msra.mxu0 %v837_v48 }
  0x43   :  { %783 = vmatmul.mubr.bf16.vlgmr.msra.gmra.mrb[8].mxu0 %v839_v49 }
  0xf6   :  { %v716_v50 = vpop.f32.mrb[0].mxu0 }
  0xf7   :  { %v744_v51 = vpop.f32.mrb[0].mxu1  ;;  %v717_v52 = vpop.f32.mrb[1].mxu0 }
  0xf8   :  { %v718_v53 = vadd.f32 %v717_v52, %v716_v50  ;;  %v745_v54 = vpop.f32.mrb[1].mxu1  ;;  %v719_v55 = vpop.f32.mrb[2].mxu0 }
  0xf9   :  { %v746_v56 = vadd.f32 %v745_v54, %v744_v51  ;;  %v747_v57 = vpop.f32.mrb[2].mxu1  ;;  %v720_v58 = vpop.f32.mrb[3].mxu0 }
  0xfa   :  { %v721_v59 = vadd.f32 %v720_v58, %v719_v55  ;;  %v748_v60 = vpop.f32.mrb[3].mxu1  ;;  %v594_v58 = vlaneseq }
  0xfb   :  { %v749_v61 = vadd.f32 %v748_v60, %v747_v57  ;;  %v486_v62 = vadd.f32 %v746_v56, %v718_v53  ;;  %v549_v60 = vld [vmem:[%s1045_s2] sm:$0x1] }
  0xfd   :  { %v489_v63 = vadd.f32 %v749_v61, %v721_v59  ;;  %v595_v59 = vshrl.u32 %v594_v58, 7 }
  0xfe   :  { %v722_v0 = vpop.f32.mrb[4].mxu0 }
  0xff   :  { %v750_v1 = vpop.f32.mrb[4].mxu1  ;;  %v723_v2 = vpop.f32.mrb[5].mxu0  ;;  %v596_v61 = vsub.s32 0, %v595_v59 }
 0x100   :  { %v724_v3 = vadd.f32 %v723_v2, %v722_v0  ;;  %v751_v4 = vpop.f32.mrb[5].mxu1  ;;  %v725_v5 = vpop.f32.mrb[6].mxu0  ;;  %v550_v0 = vld [vmem:[%s1046_s3] sm:$0x1] }
 0x101   :  { %v752_v6 = vadd.f32 %v751_v4, %v750_v1  ;;  %v753_v7 = vpop.f32.mrb[6].mxu1  ;;  %v726_v8 = vpop.f32.mrb[7].mxu0 }
 0x102   :  { %v727_v9 = vadd.f32 %v726_v8, %v725_v5  ;;  %v754_v10 = vpop.f32.mrb[7].mxu1 }
 0x103   :  { %v755_v11 = vadd.f32 %v754_v10, %v753_v7  ;;  %v494_v12 = vadd.f32 %v752_v6, %v724_v3 }
 0x105   :  { %v497_v13 = vadd.f32 %v755_v11, %v727_v9 }
 0x116   :  { %v784_v14 = vpop.f32.mrb[8].mxu0 }
 0x117   :  { %v543_v15 = vadd.f32 %v784_v14, %v494_v12  ;;  %v534_v16 = vpop.f32.mrb[9].mxu0 }
 0x118   :  { %v535_v17 = vadd.f32 %v534_v16, %v486_v62  ;;  %v785_v18 = vpop.f32.mrb[10].mxu0 }
 0x119   :  { %v546_v19 = vadd.f32 %v785_v18, %v497_v13  ;;  %v537_v20 = vpop.f32.mrb[11].mxu0  ;;  %v569_v23 = vmul.f32 %v543_v15, %v543_v15  ;;  %v555_v28 = vsel %vm551_vm0, %v543_v15, 0.0 }
 0x11a   :  { %v567_v21 = vmul.f32 %v535_v17, %v535_v17  ;;  %v538_v22 = vadd.f32 %v537_v20, %v489_v63  ;;  %v552_v24 = vsel %vm551_vm0, %v535_v17, 0.0 }
 0x11b   :  { %v570_v30 = vmul.f32 %v546_v19, %v546_v19  ;;  %v574_v34 = vsel %vm551_vm0, %v569_v23, 0.0  ;;  %v557_v35 = vsel %vm551_vm0, %v546_v19, 0.0 }
 0x11c   :  { %v553_v25 = vsel %vm551_vm0, %v538_v22, 0.0  ;;  %v568_v26 = vmul.f32 %v538_v22, %v538_v22  ;;  %v571_v29 = vsel %vm551_vm0, %v567_v21, 0.0 }
 0x11d   :  { %v554_v27 = vadd.f32 %v553_v25, %v552_v24  ;;  %v576_v38 = vsel %vm551_vm0, %v570_v30, 0.0 }
 0x11e   :  { %v572_v31 = vsel %vm551_vm0, %v568_v26, 0.0 }
 0x11f   :  { %v556_v32 = vadd.f32 %v555_v28, %v554_v27  ;;  %v573_v33 = vadd.f32 %v572_v31, %v571_v29 }
 0x121   :  { %v558_v36 = vadd.f32 %v557_v35, %v556_v32  ;;  %v575_v37 = vadd.f32 %v574_v34, %v573_v33 }
 0x123   :  { %v559_v39 = vrot.slane %v558_v36, 4  ;;  %v577_v40 = vadd.f32 %v576_v38, %v575_v37 }
 0x125   :  { %v560_v41 = vadd.f32 %v559_v39, %v558_v36  ;;  %v578_v42 = vrot.slane %v577_v40, 4 }
 0x127   :  { %v561_v43 = vrot.slane %v560_v41, 2  ;;  %v579_v44 = vadd.f32 %v578_v42, %v577_v40 }
 0x129   :  { %v562_v45 = vadd.f32 %v561_v43, %v560_v41  ;;  %v580_v46 = vrot.slane %v579_v44, 2 }
 0x12b   :  { %v563_v47 = vrot.slane %v562_v45, 1  ;;  %v581_v48 = vadd.f32 %v580_v46, %v579_v44 }
 0x12d   :  { %v564_v49 = vadd.f32 %v563_v47, %v562_v45  ;;  %v582_v50 = vrot.slane %v581_v48, 1 }
 0x12f   :  { %v566_v51 = vmul.f32 0.03125, %v564_v49  ;;  %v583_v52 = vadd.f32 %v582_v50, %v581_v48 }
 0x131   :  { %v584_v53 = vmul.f32 0.03125, %v583_v52  ;;  %v585_v54 = vmul.f32 %v566_v51, %v566_v51 }
 0x133   :  { %v586_v55 = vsub.f32 %v584_v53, %v585_v54 }
 0x135   :  { %v587_v56 = vmax.f32 %v586_v55, 0.0 }
 0x137   :  { %v588_v57 = vadd.f32 1e-05, %v587_v56 }
 0x139   :  { %840 = vrsqrt.f32 %v588_v57 }
 0x143   :  { %v841_v62 = vpop.eup %840 }
 0x144   :  { %v590_v63 = vmul.f32 %v841_v62, %v549_v60 }
 0x146   :  { %v591_v1 = vmul.f32 %v590_v63, %v566_v51  ;;  %v597_v2 = vrot.slane %v590_v63, %v596_v61 }
 0x148   :  { %v592_v3 = vsub.f32 %v550_v0, %v591_v1  ;;  %v599_v4 = vmul.f32 %v597_v2, %v535_v17  ;;  %v600_v5 = vmul.f32 %v597_v2, %v538_v22  ;;  %v601_v6 = vmul.f32 %v597_v2, %v543_v15 }
 0x149   :  { %v602_v7 = vmul.f32 %v597_v2, %v546_v19 }
 0x14a   :  { %v607_v8 = vrot.slane %v592_v3, %v596_v61 }
 0x14c   :  { %v609_v9 = vadd.f32 %v607_v8, %v599_v4  ;;  %v610_v10 = vadd.f32 %v607_v8, %v600_v5  ;;  %v611_v11 = vadd.f32 %v607_v8, %v601_v6  ;;  %v612_v12 = vadd.f32 %v607_v8, %v602_v7 }
 0x14e   :  { %v613_v13 = vmax.f32 %v609_v9, 0.0  ;;  %v614_v14 = vmax.f32 %v610_v10, 0.0  ;;  %v615_v16 = vmax.f32 %v611_v11, 0.0  ;;  %v616_v18 = vmax.f32 %v612_v12, 0.0 }
 0x150   :  { %v696_v20 = vpack.c.bf16 %v613_v13, %v613_v13  ;;  %v697_v21 = vpack.c.bf16 %v614_v14, %v614_v14  ;;  %v698_v23 = vpack.c.bf16 %v615_v16, %v615_v16  ;;  %v699_v24 = vpack.c.bf16 %v616_v18, %v616_v18 }
 0x152   :  { %634 = vst.msk [vmem:[%s1047_s4] sm:$0xf] %vm633_vm1, %v696_v20  ;;  %635 = vst.msk [vmem:[%s1047_s4 + $0x4] sm:$0xf] %vm633_vm1, %v697_v21 }
 0x153   :  { %636 = vst.msk [vmem:[%s1047_s4 + $0x8] sm:$0xf] %vm633_vm1, %v698_v23  ;;  %637 = vst.msk [vmem:[%s1047_s4 + $0xc] sm:$0xf] %vm633_vm1, %v699_v24 }

// kernel: my_resnet_forward.6
= control target key start
LH: loop header
LB: loop body
LE: loop exit
PB: predicated region body
PF: predicated region fallthrough
CT: control target
= control target key end

     0   :  { %v697_v36 = vmov 0.0   ;;  %vm698_vm0 = vmmov 0   ;;  %vm481_vm1 = vcmask 523264   ;;  %vm524_vm2 = vcmask 519168   ;;  %s862_s1 = inlined_call_operand.vmem [shape: bf16[640,64], index: 1, kind: input, shape index: {}]   ;;  %s863_s0 = inlined_call_operand.vmem [shape: bf16[8,640], index: 0, kind: input, shape index: {}]   ;;  %s864_s2 = inlined_call_operand.vmem [shape: f32[1,64], index: 2, kind: input, shape index: {}]   ;;  %s865_s3 = inlined_call_operand.vmem [shape: f32[1,64], index: 3, kind: input, shape index: {}]   ;;  %s866_s4 = inlined_call_operand.vmem [shape: bf16[8,64], index: 4, kind: output, shape index: {}]  }
   0x1   :  { %v650_v0 = vld [vmem:[%s862_s1 + $0x40] sm:$0xff]   ;;  %v654_v4 = vld [vmem:[%s862_s1 + $0x48] sm:$0xff]   ;;  %v658_v8 = vld [vmem:[%s862_s1 + $0x50] sm:$0xff]  }
   0x2   :  { %v651_v1 = vld [vmem:[%s862_s1 + $0xc0] sm:$0xff]   ;;  %575 = vmatprep.subr.bf16.mxu0 %v650_v0  ;;  %v655_v5 = vld [vmem:[%s862_s1 + $0xc8] sm:$0xff]   ;;  %v659_v9 = vld [vmem:[%s862_s1 + $0xd0] sm:$0xff]  }
   0x3   :  { %v652_v2 = vld [vmem:[%s862_s1] sm:$0xff]   ;;  %597 = vmatprep.subr.bf16.mxu1 %v651_v1  ;;  %v656_v6 = vld [vmem:[%s862_s1 + $0x8] sm:$0xff]   ;;  %v660_v10 = vld [vmem:[%s862_s1 + $0x10] sm:$0xff]  }
   0x4   :  { %v653_v3 = vld [vmem:[%s862_s1 + $0x80] sm:$0xff]   ;;  %576 = vmatpush3.bf16.msra.mxu0 %v652_v2  ;;  %v657_v7 = vld [vmem:[%s862_s1 + $0x88] sm:$0xff]   ;;  %v661_v11 = vld [vmem:[%s862_s1 + $0x90] sm:$0xff]  }
   0x5   :  { %598 = vmatpush3.bf16.msra.mxu1 %v653_v3  ;;  %577 = vmatprep.subr.bf16.mxu0 %v654_v4  ;;  %v662_v12 = vld [vmem:[%s862_s1 + $0x58] sm:$0xff]   ;;  %v666_v16 = vld [vmem:[%s862_s1 + $0x60] sm:$0xff]   ;;  %v670_v20 = vld [vmem:[%s862_s1 + $0x68] sm:$0xff]  }
   0x6   :  { %599 = vmatprep.subr.bf16.mxu1 %v655_v5  ;;  %v663_v13 = vld [vmem:[%s862_s1 + $0xd8] sm:$0xff]   ;;  %v667_v17 = vld [vmem:[%s862_s1 + $0xe0] sm:$0xff]   ;;  %v671_v21 = vld [vmem:[%s862_s1 + $0xe8] sm:$0xff]  }
   0x7   :  { %v664_v14 = vld [vmem:[%s862_s1 + $0x18] sm:$0xff]   ;;  %v668_v18 = vld [vmem:[%s862_s1 + $0x20] sm:$0xff]   ;;  %v672_v22 = vld [vmem:[%s862_s1 + $0x28] sm:$0xff]  }
   0x8   :  { %578 = vmatpush3.bf16.msra.mxu0 %v656_v6  ;;  %v665_v15 = vld [vmem:[%s862_s1 + $0x98] sm:$0xff]   ;;  %v669_v19 = vld [vmem:[%s862_s1 + $0xa0] sm:$0xff]   ;;  %v673_v23 = vld [vmem:[%s862_s1 + $0xa8] sm:$0xff]  }
   0x9   :  { %600 = vmatpush3.bf16.msra.mxu1 %v657_v7  ;;  %579 = vmatprep.subr.bf16.mxu0 %v658_v8  ;;  %v674_v24 = vld [vmem:[%s862_s1 + $0x70] sm:$0xff]   ;;  %v678_v28 = vld [vmem:[%s862_s1 + $0x78] sm:$0xff]   ;;  %v18_v32 = vld [vmem:[%s863_s0] sm:$0xff] }
   0xa   :  { %601 = vmatprep.subr.bf16.mxu1 %v659_v9  ;;  %v675_v25 = vld [vmem:[%s862_s1 + $0xf0] sm:$0xff]   ;;  %v679_v29 = vld [vmem:[%s862_s1 + $0xf8] sm:$0xff]   ;;  %v530_v33 = vcombine.low %v18_v32, %v18_v32  ;;  %v531_v34 = vcombine.high %v18_v32, %v18_v32  ;;  %v19_v35 = vld [vmem:[%s863_s0 + $0x8] sm:$0xff] }
   0xb   :  { %v676_v26 = vld [vmem:[%s862_s1 + $0x30] sm:$0xff]   ;;  %v680_v30 = vld [vmem:[%s862_s1 + $0x38] sm:$0xff]   ;;  %v532_v37 = vcombine.low %v19_v35, %v19_v35  ;;  %v533_v38 = vcombine.high %v19_v35, %v19_v35  ;;  %v687_v39 = vld [vmem:[%s862_s1 + $0x100] sm:$0xff]  }
   0xc   :  { %580 = vmatpush3.bf16.msra.mxu0 %v660_v10  ;;  %v677_v27 = vld [vmem:[%s862_s1 + $0xb0] sm:$0xff]   ;;  %v681_v31 = vld [vmem:[%s862_s1 + $0xb8] sm:$0xff]   ;;  %391 = vmatprep.mubr.bf16.mxu0 %v531_v34  ;;  %v688_v40 = vld [vmem:[%s862_s1 + $0x108] sm:$0xff]  }
   0xd   :  { %602 = vmatpush3.bf16.msra.mxu1 %v661_v11  ;;  %581 = vmatprep.subr.bf16.mxu0 %v662_v12  ;;  %v689_v41 = vld [vmem:[%s862_s1 + $0x110] sm:$0xff]   ;;  %v690_v42 = vld [vmem:[%s862_s1 + $0x118] sm:$0xff]   ;;  %v691_v43 = vld [vmem:[%s862_s1 + $0x120] sm:$0xff]  }
   0xe   :  { %603 = vmatprep.subr.bf16.mxu1 %v663_v13  ;;  %431 = vmatprep.mubr.bf16.mxu1 %v533_v38  ;;  %v692_v44 = vld [vmem:[%s862_s1 + $0x128] sm:$0xff]   ;;  %v693_v45 = vld [vmem:[%s862_s1 + $0x130] sm:$0xff]   ;;  %v694_v46 = vld [vmem:[%s862_s1 + $0x138] sm:$0xff]  }
   0xf   :  { %v684_v47 = vld [vmem:[%s863_s0 + $0x10] ss:$0 sps:$4 sm:$0xff]  }
  0x10   :  { %582 = vmatpush3.bf16.msra.mxu0 %v664_v14 }
  0x11   :  { %604 = vmatpush3.bf16.msra.mxu1 %v665_v15  ;;  %583 = vmatprep.subr.bf16.mxu0 %v666_v16 }
  0x12   :  { %605 = vmatprep.subr.bf16.mxu1 %v667_v17 }
  0x14   :  { %584 = vmatpush3.bf16.msra.mxu0 %v668_v18 }
  0x15   :  { %606 = vmatpush3.bf16.msra.mxu1 %v669_v19  ;;  %585 = vmatprep.subr.bf16.mxu0 %v670_v20 }
  0x16   :  { %607 = vmatprep.subr.bf16.mxu1 %v671_v21  ;;  %v509_v21 = vlaneseq }
  0x18   :  { %586 = vmatpush3.bf16.msra.mxu0 %v672_v22  ;;  %v510_v22 = vshrl.u32 %v509_v21, 7 }
  0x19   :  { %608 = vmatpush3.bf16.msra.mxu1 %v673_v23  ;;  %587 = vmatprep.subr.bf16.mxu0 %v674_v24  ;;  %v479_v23 = vld [vmem:[%s864_s2] sm:$0x1] }
  0x1a   :  { %609 = vmatprep.subr.bf16.mxu1 %v675_v25  ;;  %v511_v24 = vsub.s32 0, %v510_v22 }
  0x1c   :  { %588 = vmatpush3.bf16.msra.mxu0 %v676_v26 }
  0x1d   :  { %610 = vmatpush3.bf16.msra.mxu1 %v677_v27  ;;  %589 = vmatprep.subr.bf16.mxu0 %v678_v28  ;;  %v480_v27 = vld [vmem:[%s865_s3] sm:$0x1] }
  0x1e   :  { %611 = vmatprep.subr.bf16.mxu1 %v679_v29 }
  0x20   :  { %590 = vmatpush3.bf16.msra.mxu0 %v680_v30 }
  0x21   :  { %612 = vmatpush3.bf16.msra.mxu1 %v681_v31  ;;  %628 = vmatprep.subr.bf16.mxu0 %v697_v36 }
  0x23   :  { %392 = vmatmul.mubr.bf16.vlgmr.msra.gmra.mrb[0].mxu0 %v530_v33 }
  0x24   :  { %432 = vmatmul.mubr.bf16.vlgmr.msra.gmra.mrb[0].mxu1 %v532_v37  ;;  %629 = vmatpush3.bf16.msra.mxu0 %v687_v39 }
  0x25   :  { %630 = vmatprep.subr.bf16.mxu0 %v697_v36  ;;  %644 = vmatprep.mubr.msk.bf16.mxu0 %vm698_vm0, %v697_v36 }
  0x28   :  { %631 = vmatpush3.bf16.msra.mxu0 %v688_v40 }
  0x29   :  { %632 = vmatprep.subr.bf16.mxu0 %v697_v36 }
  0x2c   :  { %633 = vmatpush3.bf16.msra.mxu0 %v689_v41 }
  0x2d   :  { %634 = vmatprep.subr.bf16.mxu0 %v697_v36 }
  0x30   :  { %635 = vmatpush3.bf16.msra.mxu0 %v690_v42 }
  0x31   :  { %636 = vmatprep.subr.bf16.mxu0 %v697_v36 }
  0x34   :  { %637 = vmatpush3.bf16.msra.mxu0 %v691_v43 }
  0x35   :  { %638 = vmatprep.subr.bf16.mxu0 %v697_v36 }
  0x38   :  { %639 = vmatpush3.bf16.msra.mxu0 %v692_v44 }
  0x39   :  { %640 = vmatprep.subr.bf16.mxu0 %v697_v36 }
  0x3c   :  { %641 = vmatpush3.bf16.msra.mxu0 %v693_v45 }
  0x3d   :  { %642 = vmatprep.subr.bf16.mxu0 %v697_v36 }
  0x40   :  { %643 = vmatpush3.bf16.msra.mxu0 %v694_v46 }
  0x43   :  { %645 = vmatmul.mubr.bf16.vlgmr.msra.gmra.mrb[4].mxu0 %v684_v47 }
  0xf6   :  { %v591_v48 = vpop.f32.mrb[0].mxu0 }
  0xf7   :  { %v613_v49 = vpop.f32.mrb[0].mxu1  ;;  %v592_v50 = vpop.f32.mrb[1].mxu0 }
  0xf8   :  { %v593_v51 = vadd.f32 %v592_v50, %v591_v48  ;;  %v614_v52 = vpop.f32.mrb[1].mxu1  ;;  %v594_v53 = vpop.f32.mrb[2].mxu0 }
  0xf9   :  { %v615_v54 = vadd.f32 %v614_v52, %v613_v49  ;;  %v595_v55 = vpop.f32.mrb[3].mxu0  ;;  %v616_v56 = vpop.f32.mrb[2].mxu1 }
  0xfa   :  { %v617_v57 = vpop.f32.mrb[3].mxu1 }
  0xfb   :  { %v434_v58 = vadd.f32 %v615_v54, %v593_v51 }
 0x116   :  { %v473_v59 = vpop.f32.mrb[4].mxu0 }
 0x117   :  { %v474_v60 = vadd.f32 %v473_v59, %v434_v58  ;;  %v646_v61 = vpop.f32.mrb[5].mxu0 }
 0x118   :  { %v476_v62 = vpop.f32.mrb[6].mxu0 }
 0x119   :  { %v482_v63 = vsel %vm481_vm1, %v474_v60, 0.0  ;;  %v491_v0 = vmul.f32 %v474_v60, %v474_v60  ;;  %v647_v1 = vpop.f32.mrb[7].mxu0 }
 0x11a   :  { %v483_v2 = vrot.slane %v482_v63, 4 }
 0x11b   :  { %v492_v3 = vsel %vm481_vm1, %v491_v0, 0.0 }
 0x11c   :  { %v484_v4 = vadd.f32 %v483_v2, %v482_v63  ;;  %v493_v5 = vrot.slane %v492_v3, 4 }
 0x11e   :  { %v485_v6 = vrot.slane %v484_v4, 2  ;;  %v494_v7 = vadd.f32 %v493_v5, %v492_v3 }
 0x120   :  { %v486_v8 = vadd.f32 %v485_v6, %v484_v4  ;;  %v495_v9 = vrot.slane %v494_v7, 2 }
 0x122   :  { %v487_v10 = vrot.slane %v486_v8, 1  ;;  %v496_v11 = vadd.f32 %v495_v9, %v494_v7 }
 0x124   :  { %v488_v12 = vadd.f32 %v487_v10, %v486_v8  ;;  %v497_v13 = vrot.slane %v496_v11, 1 }
 0x126   :  { %v490_v14 = vmul.f32 0.125, %v488_v12  ;;  %v498_v15 = vadd.f32 %v497_v13, %v496_v11 }
 0x128   :  { %v499_v16 = vmul.f32 0.125, %v498_v15  ;;  %v500_v17 = vmul.f32 %v490_v14, %v490_v14 }
 0x12a   :  { %v501_v18 = vsub.f32 %v499_v16, %v500_v17 }
 0x12c   :  { %v502_v19 = vmax.f32 %v501_v18, 0.0 }
 0x12e   :  { %v503_v20 = vadd.f32 1e-05, %v502_v19 }
 0x130   :  { %695 = vrsqrt.f32 %v503_v20 }
 0x13a   :  { %v696_v25 = vpop.eup %695 }
 0x13b   :  { %v505_v26 = vmul.f32 %v696_v25, %v479_v23 }
 0x13d   :  { %v506_v28 = vmul.f32 %v505_v26, %v490_v14  ;;  %v512_v29 = vrot.slane %v505_v26, %v511_v24 }
 0x13f   :  { %v507_v30 = vsub.f32 %v480_v27, %v506_v28  ;;  %v514_v31 = vmul.f32 %v512_v29, %v474_v60 }
 0x141   :  { %v519_v32 = vrot.slane %v507_v30, %v511_v24 }
 0x143   :  { %v521_v33 = vadd.f32 %v519_v32, %v514_v31 }
 0x145   :  { %v522_v34 = vmax.f32 %v521_v33, 0.0 }
 0x147   :  { %v523_v35 = vpack.c.bf16 %v522_v34, %v522_v34 }
 0x149   :  { %525 = vst.msk [vmem:[%s866_s4] sm:$0xf] %vm524_vm2, %v523_v35 }

// kernel: my_resnet_forward.7
= control target key start
LH: loop header
LB: loop body
LE: loop exit
PB: predicated region body
PF: predicated region fallthrough
CT: control target
= control target key end

     0   :  { %s10197_s3 = smov 2   ;;  %v10198_v6 = vmov 1966171168   ;;  %v224_v8 = vlaneseq  ;;  %s10199_s10 = smov 3   ;;  %v10200_v27 = vmov 0.0   ;;  %vm10201_vm0 = vmmov 0   ;;  %s11575_s0 = inlined_call_operand.smem [shape: u32[39], index: -1, kind: input, shape index: {}] }
   0x1   :  { %s10248_s6 = sld [smem:[%s11575_s0 + %s10197_s3]]   ;;  %v222_v7 = vunpack.c.l.s4 %v10198_v6  ;;  %8810 = vmatprep.subr.bf16.mxu1 %v10200_v27  ;;  %8818 = vmatprep.mubr.msk.bf16.mxu1 %vm10201_vm0, %v10200_v27  ;;  %s10202_s14 = smov 4   ;;  %vm373_vm1 = vcmask 517120   ;;  %vm440_vm2 = vcmask 523264   ;;  %vm694_vm3 = vcmask 1041408  }
   0x2   :  { %s1_s9 = sld [smem:[%s11575_s0]]   ;;  %v10261_v12 = vshrl.u32 %v224_v8, 7  ;;  %s10203_s18 = smov 6  }
   0x3   :  { %v223_v11 = vunpack.c.0.s8 %v222_v7  ;;  %s7915_s13 = sld [smem:[%s11575_s0 + %s10199_s10]]   ;;  %s10204_s22 = smov 7  }
   0x4   :  { %s10292_s17 = sld [smem:[%s11575_s0 + %s10202_s14]]   ;;  %v10305_v58 = vsub.s32 0, %v10261_v12  ;;  %s10205_s26 = smov 1  }
   0x5   :  { %v10266_v15 = vsub.s32 %v223_v11, %v10261_v12  ;;  %s7918_s21 = sld [smem:[%s11575_s0 + %s10203_s18]]   ;;  %s10206_s30 = smov 8  }
   0x6   :  { %s7919_s25 = sld [smem:[%s11575_s0 + %s10204_s22]]   ;;  %s10207_s4 = smov 5  }
   0x7   :  { %v8993_v0 = vld [vmem:[%s10248_s6 + $0x40] sm:$0xff]   ;;  %v8995_v2 = vld [vmem:[%s10248_s6 + $0x48] sm:$0xff]   ;;  %v8997_v4 = vld [vmem:[%s10248_s6 + $0x50] sm:$0xff]   ;;  %s7913_s29 = sld [smem:[%s11575_s0 + %s10205_s26]]   ;;  %s10208_s8 = smov 9  }
   0x8   :  { %v8994_v1 = vld [vmem:[%s10248_s6] sm:$0xff]   ;;  %8737 = vmatprep.subr.bf16.mxu0 %v8993_v0  ;;  %v8996_v3 = vld [vmem:[%s10248_s6 + $0x8] sm:$0xff]   ;;  %v8998_v5 = vld [vmem:[%s10248_s6 + $0x10] sm:$0xff]   ;;  %s7920_s3 = sld [smem:[%s11575_s0 + %s10206_s30]]   ;;  %s10209_s12 = smov 10  }
   0x9   :  { %8738 = vmatpush3.bf16.msra.mxu0 %v8994_v1  ;;  %v8999_v9 = vld [vmem:[%s10248_s6 + $0x58] sm:$0xff]   ;;  %v9001_v13 = vld [vmem:[%s10248_s6 + $0x60] sm:$0xff]   ;;  %v9003_v16 = vld [vmem:[%s10248_s6 + $0x68] sm:$0xff]   ;;  %s7917_s7 = sld [smem:[%s11575_s0 + %s10207_s4]]   ;;  %s10210_s16 = smov 11  }
   0xa   :  { %8739 = vmatprep.subr.bf16.mxu0 %v8995_v2  ;;  %v9000_v10 = vld [vmem:[%s10248_s6 + $0x18] sm:$0xff]   ;;  %v9002_v14 = vld [vmem:[%s10248_s6 + $0x20] sm:$0xff]   ;;  %v9004_v19 = vld [vmem:[%s10248_s6 + $0x28] sm:$0xff]   ;;  %s7921_s11 = sld [smem:[%s11575_s0 + %s10208_s8]]   ;;  %s10211_s20 = smov 12  }
   0xb   :  { %v7951_v17 = vld.sshfl [vmem:[%s1_s9] sm:$0x11 pattern:$0x75316420]  ;;  %v9005_v21 = vld [vmem:[%s10248_s6 + $0x70] sm:$0xff]   ;;  %v9007_v23 = vld [vmem:[%s10248_s6 + $0x78] sm:$0xff]   ;;  %s7922_s15 = sld [smem:[%s11575_s0 + %s10209_s12]]  }
   0xc   :  { %v220_v18 = vcombine.high %v7951_v17, %v7951_v17  ;;  %v9006_v22 = vld [vmem:[%s10248_s6 + $0x30] sm:$0xff]   ;;  %v9008_v24 = vld [vmem:[%s10248_s6 + $0x38] sm:$0xff]   ;;  %v227_v25 = vrot.slane %v7951_v17, %v10266_v15  ;;  %v9009_v26 = vld [vmem:[%s7915_s13] sm:$0xff]   ;;  %s7923_s19 = sld [smem:[%s11575_s0 + %s10210_s16]]   ;;  %s10212_s24 = smov 14  }
   0xd   :  { %8740 = vmatpush3.bf16.msra.mxu0 %v8996_v3  ;;  %8811 = vmatpush3.bf16.msra.mxu1 %v9009_v26  ;;  %v9010_v28 = vld [vmem:[%s7915_s13 + $0x8] sm:$0xff]   ;;  %v9011_v29 = vld [vmem:[%s7915_s13 + $0x10] sm:$0xff]   ;;  %v9012_v30 = vld [vmem:[%s7915_s13 + $0x18] sm:$0xff]   ;;  %s7924_s23 = sld [smem:[%s11575_s0 + %s10211_s20]]   ;;  %s10213_s28 = smov 13  }
   0xe   :  { %8741 = vmatprep.subr.bf16.mxu0 %v8997_v4  ;;  %v234_v20 = vrot.slane %v220_v18, %v10266_v15  ;;  %8812 = vmatprep.subr.bf16.mxu1 %v10200_v27  ;;  %v10302_v57 = vld [vmem:[%s7918_s21] sm:$0x1]  ;;  %v9014_v7 = vld [vmem:[%s10292_s17 + $0x8] sm:$0xff]   ;;  %v9015_v8 = vld [vmem:[%s10292_s17 + $0x10] sm:$0xff]   ;;  %s10390_s27 = sld [smem:[%s11575_s0 + %s10212_s24]]   ;;  %s10214_s2 = smov 16  }
   0xf   :  { %v10308_v61 = vld [vmem:[%s7919_s25] sm:$0x1]  ;;  %s7925_s1 = sld [smem:[%s11575_s0 + %s10213_s28]]   ;;  %s10215_s6 = smov 17  }
  0x10   :  { %365 = vmatprep.mubr.bf16.mxu0 %v234_v20  ;;  %v9017_v11 = vld [vmem:[%s7920_s3] sm:$0xff]   ;;  %s7928_s5 = sld [smem:[%s11575_s0 + %s10214_s2]]   ;;  %s10216_s10 = smov 18  }
  0x11   :  { %8742 = vmatpush3.bf16.msra.mxu0 %v8998_v5  ;;  %8813 = vmatpush3.bf16.msra.mxu1 %v9010_v28  ;;  %v9013_v5 = vld [vmem:[%s10292_s17] sm:$0xff]   ;;  %s7929_s9 = sld [smem:[%s11575_s0 + %s10215_s6]]   ;;  %s10218_s14 = smov 15  }
  0x12   :  { %8743 = vmatprep.subr.bf16.mxu0 %v8999_v9  ;;  %8814 = vmatprep.subr.bf16.mxu1 %v10200_v27  ;;  %v9016_v9 = vld [vmem:[%s10292_s17 + $0x18] sm:$0xff]   ;;  %s7930_s13 = sld [smem:[%s11575_s0 + %s10216_s10]]   ;;  %s10219_s18 = smov 19  }
  0x13   :  { %s7927_s17 = sld [smem:[%s11575_s0 + %s10218_s14]]   ;;  %s10220_s22 = smov 20  }
  0x14   :  { %s10461_s21 = sld [smem:[%s11575_s0 + %s10219_s18]]   ;;  %s10221_s26 = smov 21  }
  0x15   :  { %8744 = vmatpush3.bf16.msra.mxu0 %v9000_v10  ;;  %8815 = vmatpush3.bf16.msra.mxu1 %v9011_v29  ;;  %v160_v10 = vld [vmem:[%s7913_s29] sm:$0x1]  ;;  %s7932_s25 = sld [smem:[%s11575_s0 + %s10220_s22]]   ;;  %s10222_s30 = smov 22  }
  0x16   :  { %8745 = vmatprep.subr.bf16.mxu0 %v9001_v13  ;;  %8816 = vmatprep.subr.bf16.mxu1 %v10200_v27  ;;  %v9018_v13 = vld [vmem:[%s7920_s3 + $0x8] sm:$0xff]   ;;  %s7933_s29 = sld [smem:[%s11575_s0 + %s10221_s26]]   ;;  %s10223_s4 = smov 24  }
  0x17   :  { %s10224_s8 = smov 23   ;;  %s10225_s12 = smov 26  }
  0x18   :  { %s10226_s16 = smov 27   ;;  %s10227_s20 = smov 28  }
  0x19   :  { %8746 = vmatpush3.bf16.msra.mxu0 %v9002_v14  ;;  %8817 = vmatpush3.bf16.msra.mxu1 %v9012_v30  ;;  %v9019_v14 = vld [vmem:[%s7920_s3 + $0x10] sm:$0xff]   ;;  %s10228_s24 = smov 25   ;;  %s10229_s28 = smov 29  }
  0x1a   :  { %8747 = vmatprep.subr.bf16.mxu0 %v9003_v16  ;;  %8822 = vmatprep.subr.bf16.mxu1 %v10200_v27  ;;  %v9020_v16 = vld [vmem:[%s7920_s3 + $0x18] sm:$0xff]   ;;  %s10531_s3 = sld [smem:[%s11575_s0 + %s10222_s30]]   ;;  %s10230_s2 = smov 30  }
  0x1b   :  { %s10231_s6 = smov 31   ;;  %s10232_s10 = smov 32  }
  0x1c   :  { %s10233_s14 = smov 33   ;;  %s10234_s18 = smov 34  }
  0x1d   :  { %8748 = vmatpush3.bf16.msra.mxu0 %v9004_v19  ;;  %s10235_s22 = smov 36   ;;  %s10236_s26 = smov 37  }
  0x1e   :  { %8749 = vmatprep.subr.bf16.mxu0 %v9005_v21  ;;  %s10237_s30 = smov 35  }
  0x21   :  { %8750 = vmatpush3.bf16.msra.mxu0 %v9006_v22 }
  0x22   :  { %8751 = vmatprep.subr.bf16.mxu0 %v9007_v23 }
  0x25   :  { %8752 = vmatpush3.bf16.msra.mxu0 %v9008_v24 }
  0x26   :  { %8834 = vmatprep.subr.bf16.mxu0 %v10200_v27 }
  0x28   :  { %366 = vmatmul.mubr.bf16.vlgmr.msra.gmra.mrb[0].mxu0 %v227_v25 }
  0x29   :  { %8842 = vmatprep.mubr.msk.bf16.mxu0 %vm10201_vm0, %v10200_v27  ;;  %8835 = vmatpush3.bf16.msra.mxu0 %v9017_v11 }
  0x2a   :  { %8836 = vmatprep.subr.bf16.mxu0 %v10200_v27 }
  0x2d   :  { %8837 = vmatpush3.bf16.msra.mxu0 %v9018_v13 }
  0x2e   :  { %8838 = vmatprep.subr.bf16.mxu0 %v10200_v27 }
  0x31   :  { %8839 = vmatpush3.bf16.msra.mxu0 %v9019_v14 }
  0x32   :  { %8840 = vmatprep.subr.bf16.mxu0 %v10200_v27 }
  0x35   :  { %8841 = vmatpush3.bf16.msra.mxu0 %v9020_v16 }
  0x36   :  { %8866 = vmatprep.subr.bf16.mxu0 %v10200_v27 }
  0xfb   :  { %v8753_v31 = vpop.f32.mrb[0].mxu0 }
  0xfc   :  { %v8754_v32 = vpop.f32.mrb[1].mxu0 }
  0xfd   :  { %v8755_v33 = vadd.f32 %v8754_v32, %v8753_v31  ;;  %v8756_v34 = vpop.f32.mrb[2].mxu0 }
  0xfe   :  { %v8757_v35 = vpop.f32.mrb[3].mxu0 }
  0xff   :  { %v374_v36 = vsel %vm373_vm1, %v8755_v33, 0.0  ;;  %v383_v37 = vmul.f32 %v8755_v33, %v8755_v33 }
 0x100   :  { %v375_v38 = vrot.slane %v374_v36, 4 }
 0x101   :  { %v384_v39 = vsel %vm373_vm1, %v383_v37, 0.0 }
 0x102   :  { %v376_v40 = vadd.f32 %v375_v38, %v374_v36  ;;  %v385_v41 = vrot.slane %v384_v39, 4 }
 0x104   :  { %v377_v42 = vrot.slane %v376_v40, 2  ;;  %v386_v43 = vadd.f32 %v385_v41, %v384_v39 }
 0x106   :  { %v378_v44 = vadd.f32 %v377_v42, %v376_v40  ;;  %v387_v45 = vrot.slane %v386_v43, 2 }
 0x108   :  { %v379_v46 = vrot.slane %v378_v44, 1  ;;  %v388_v47 = vadd.f32 %v387_v45, %v386_v43 }
 0x10a   :  { %v380_v48 = vadd.f32 %v379_v46, %v378_v44  ;;  %v389_v49 = vrot.slane %v388_v47, 1 }
 0x10c   :  { %v382_v50 = vmul.f32 0.5, %v380_v48  ;;  %v390_v51 = vadd.f32 %v389_v49, %v388_v47 }
 0x10e   :  { %v391_v52 = vmul.f32 0.5, %v390_v51  ;;  %v392_v53 = vmul.f32 %v382_v50, %v382_v50 }
 0x110   :  { %v393_v54 = vsub.f32 %v391_v52, %v392_v53 }
 0x112   :  { %v394_v55 = vmax.f32 %v393_v54, 0.0 }
 0x114   :  { %v395_v56 = vadd.f32 1e-05, %v394_v55 }
 0x116   :  { %10133 = vrsqrt.f32 %v395_v56  ;;  %v7978_v56 = vld [vmem:[%s7917_s7] ss:$0 sm:$0xff]  ;;  %s10567_s7 = sld [smem:[%s11575_s0 + %s10223_s4]]   ;;  %s10239_s4 = smov 38  }
 0x120   :  { %v10134_v59 = vpop.eup %10133 }
 0x121   :  { %v397_v60 = vmul.f32 %v10134_v59, %v10302_v57 }
 0x123   :  { %v398_v62 = vmul.f32 %v397_v60, %v382_v50  ;;  %v404_v63 = vrot.slane %v397_v60, %v10305_v58 }
 0x125   :  { %v399_v0 = vsub.f32 %v10308_v61, %v398_v62  ;;  %v406_v1 = vmul.f32 %v8755_v33, %v404_v63  ;;  %v9022_v63 = vld [vmem:[%s7921_s11 + $0x8] sm:$0xff]  }
 0x127   :  { %v411_v2 = vrot.slane %v399_v0, %v10305_v58  ;;  %v9023_v0 = vld [vmem:[%s7921_s11 + $0x10] sm:$0xff]  }
 0x129   :  { %v413_v3 = vadd.f32 %v411_v2, %v406_v1  ;;  %v9024_v1 = vld [vmem:[%s7921_s11 + $0x18] sm:$0xff]   ;;  %v9025_v2 = vld [vmem:[%s7921_s11 + $0x20] sm:$0xff]  }
 0x12b   :  { %v414_v4 = vmax.f32 %v413_v3, 0.0  ;;  %v9026_v3 = vld [vmem:[%s7921_s11 + $0x28] sm:$0xff]  }
 0x12d   :  { %v415_v6 = vpack.c.bf16 %v414_v4, %v414_v4  ;;  %v9027_v4 = vld [vmem:[%s7921_s11 + $0x30] sm:$0xff]  }
 0x12f   :  { %8819 = vmatmul.mubr.msk.bf16.vlgmr.msra.gmra.mrb[0].mxu1 %vm440_vm2, %v415_v6 }
 0x130   :  { %8823 = vmatpush3.bf16.msra.mxu1 %v9013_v5  ;;  %8830 = vmatprep.mubr.msk.bf16.mxu1 %vm10201_vm0, %v10200_v27  ;;  %v9028_v5 = vld [vmem:[%s7921_s11 + $0x38] sm:$0xff]  }
 0x131   :  { %8824 = vmatprep.subr.bf16.mxu1 %v10200_v27 }
 0x134   :  { %8825 = vmatpush3.bf16.msra.mxu1 %v9014_v7 }
 0x135   :  { %8826 = vmatprep.subr.bf16.mxu1 %v10200_v27 }
 0x138   :  { %8827 = vmatpush3.bf16.msra.mxu1 %v9015_v8 }
 0x139   :  { %8828 = vmatprep.subr.bf16.mxu1 %v10200_v27 }
 0x13c   :  { %8829 = vmatpush3.bf16.msra.mxu1 %v9016_v9 }
 0x13d   :  { %8846 = vmatprep.subr.bf16.mxu1 %v10200_v27 }
 0x13f   :  { %8831 = vmatmul.mubr.msk.bf16.vlgmr.msra.gmra.mrb[4].mxu1 %vm440_vm2, %v160_v10 }
 0x140   :  { %8862 = vmatprep.mubr.msk.bf16.mxu1 %vm10201_vm0, %v10200_v27 }
 0x202   :  { %v478_v17 = vpop.f32.mrb[0].mxu1 }
 0x203   :  { %v484_v18 = vsel %vm373_vm1, %v478_v17, 0.0  ;;  %v492_v19 = vmul.f32 %v478_v17, %v478_v17  ;;  %v8820_v20 = vpop.f32.mrb[1].mxu1 }
 0x204   :  { %v485_v21 = vrot.slane %v484_v18, 4  ;;  %v481_v22 = vpop.f32.mrb[2].mxu1 }
 0x205   :  { %v493_v23 = vsel %vm373_vm1, %v492_v19, 0.0  ;;  %v8821_v24 = vpop.f32.mrb[3].mxu1 }
 0x206   :  { %v486_v25 = vadd.f32 %v485_v21, %v484_v18  ;;  %v494_v26 = vrot.slane %v493_v23, 4 }
 0x208   :  { %v487_v28 = vrot.slane %v486_v25, 2  ;;  %v495_v29 = vadd.f32 %v494_v26, %v493_v23 }
 0x20a   :  { %v488_v30 = vadd.f32 %v487_v28, %v486_v25  ;;  %v496_v31 = vrot.slane %v495_v29, 2 }
 0x20c   :  { %v489_v32 = vrot.slane %v488_v30, 1  ;;  %v497_v33 = vadd.f32 %v496_v31, %v495_v29 }
 0x20e   :  { %v490_v34 = vadd.f32 %v489_v32, %v488_v30  ;;  %v498_v35 = vrot.slane %v497_v33, 1 }
 0x210   :  { %v491_v36 = vmul.f32 0.5, %v490_v34  ;;  %v499_v37 = vadd.f32 %v498_v35, %v497_v33  ;;  %v10368_v34 = vld [vmem:[%s7922_s15] sm:$0x1]  ;;  %s7938_s15 = sld [smem:[%s11575_s0 + %s10225_s12]]  }
 0x212   :  { %v500_v38 = vmul.f32 0.5, %v499_v37  ;;  %v501_v39 = vmul.f32 %v491_v36, %v491_v36  ;;  %v585_v40 = vpop.f32.mrb[4].mxu1  ;;  %v10371_v37 = vld [vmem:[%s7923_s19] sm:$0x1]  ;;  %s7939_s19 = sld [smem:[%s11575_s0 + %s10226_s16]]  }
 0x213   :  { %v8832_v41 = vpop.f32.mrb[5].mxu1 }
 0x214   :  { %v502_v42 = vsub.f32 %v500_v38, %v501_v39  ;;  %v588_v43 = vpop.f32.mrb[6].mxu1 }
 0x215   :  { %v8833_v44 = vpop.f32.mrb[7].mxu1 }
 0x216   :  { %v503_v45 = vmax.f32 %v502_v42, 0.0 }
 0x218   :  { %v504_v46 = vadd.f32 1e-05, %v503_v45 }
 0x21a   :  { %10135 = vrsqrt.f32 %v504_v46  ;;  %v9029_v46 = vld [vmem:[%s7924_s23] sm:$0xff]  }
 0x224   :  { %v10136_v47 = vpop.eup %10135 }
 0x225   :  { %v506_v48 = vmul.f32 %v10136_v47, %v10302_v57  ;;  %v9030_v47 = vld [vmem:[%s7924_s23 + $0x8] sm:$0xff]  }
 0x227   :  { %v513_v49 = vrot.slane %v506_v48, %v10305_v58  ;;  %v507_v50 = vmul.f32 %v506_v48, %v491_v36  ;;  %v9031_v48 = vld [vmem:[%s7924_s23 + $0x10] sm:$0xff]  }
 0x229   :  { %v508_v51 = vsub.f32 %v10308_v61, %v507_v50  ;;  %v515_v52 = vmul.f32 %v513_v49, %v478_v17  ;;  %v9021_v61 = vld [vmem:[%s7921_s11] sm:$0xff]   ;;  %v9032_v49 = vld [vmem:[%s7924_s23 + $0x18] sm:$0xff]   ;;  %s10623_s11 = sld [smem:[%s11575_s0 + %s10224_s8]]  }
 0x22a   :  { %8847 = vmatpush3.bf16.msra.mxu1 %v9021_v61  ;;  %v9033_v50 = vld [vmem:[%s7924_s23 + $0x20] sm:$0xff]  }
 0x22b   :  { %v520_v53 = vrot.slane %v508_v51, %v10305_v58  ;;  %8848 = vmatprep.subr.bf16.mxu1 %v10200_v27  ;;  %v9034_v51 = vld [vmem:[%s7924_s23 + $0x28] sm:$0xff]  }
 0x22d   :  { %v522_v54 = vadd.f32 %v520_v53, %v515_v52  ;;  %v9035_v52 = vld [vmem:[%s7924_s23 + $0x30] sm:$0xff]   ;;  %v9036_v53 = vld [vmem:[%s7924_s23 + $0x38] sm:$0xff]   ;;  %s10694_s23 = sld [smem:[%s11575_s0 + %s10227_s20]]  }
 0x22e   :  { %8849 = vmatpush3.bf16.msra.mxu1 %v9022_v63 }
 0x22f   :  { %v523_v55 = vmax.f32 %v522_v54, 0.0  ;;  %8850 = vmatprep.subr.bf16.mxu1 %v10200_v27 }
 0x231   :  { %v591_v59 = vadd.f32 %v585_v40, %v523_v55 }
 0x232   :  { %8851 = vmatpush3.bf16.msra.mxu1 %v9023_v0 }
 0x233   :  { %v598_v60 = vadd.f32 %v7978_v56, %v591_v59  ;;  %8852 = vmatprep.subr.bf16.mxu1 %v10200_v27 }
 0x235   :  { %v599_v62 = vmax.f32 %v598_v60, 0.0 }
 0x236   :  { %8853 = vmatpush3.bf16.msra.mxu1 %v9024_v1 }
 0x237   :  { %v626_v57 = vpack.c.bf16 %v599_v62, %v599_v62  ;;  %8854 = vmatprep.subr.bf16.mxu1 %v10200_v27 }
 0x239   :  { %8843 = vmatmul.mubr.msk.bf16.vlgmr.msra.gmra.mrb[4].mxu0 %vm440_vm2, %v626_v57 }
 0x23a   :  { %8882 = vmatprep.mubr.msk.bf16.mxu0 %vm10201_vm0, %v10200_v27  ;;  %8855 = vmatpush3.bf16.msra.mxu1 %v9025_v2 }
 0x23b   :  { %8856 = vmatprep.subr.bf16.mxu1 %v10200_v27  ;;  %8867 = vmatpush3.bf16.msra.mxu0 %v9029_v46 }
 0x23c   :  { %8868 = vmatprep.subr.bf16.mxu0 %v10200_v27 }
 0x23e   :  { %8857 = vmatpush3.bf16.msra.mxu1 %v9026_v3 }
 0x23f   :  { %8858 = vmatprep.subr.bf16.mxu1 %v10200_v27  ;;  %8869 = vmatpush3.bf16.msra.mxu0 %v9030_v47 }
 0x240   :  { %8870 = vmatprep.subr.bf16.mxu0 %v10200_v27 }
 0x242   :  { %8859 = vmatpush3.bf16.msra.mxu1 %v9027_v4 }
 0x243   :  { %8860 = vmatprep.subr.bf16.mxu1 %v10200_v27  ;;  %8871 = vmatpush3.bf16.msra.mxu0 %v9031_v48 }
 0x244   :  { %8872 = vmatprep.subr.bf16.mxu0 %v10200_v27 }
 0x246   :  { %8861 = vmatpush3.bf16.msra.mxu1 %v9028_v5 }
 0x247   :  { %8886 = vmatprep.subr.bf16.mxu1 %v10200_v27  ;;  %8873 = vmatpush3.bf16.msra.mxu0 %v9032_v49 }
 0x248   :  { %8874 = vmatprep.subr.bf16.mxu0 %v10200_v27 }
 0x24b   :  { %8875 = vmatpush3.bf16.msra.mxu0 %v9033_v50 }
 0x24c   :  { %8876 = vmatprep.subr.bf16.mxu0 %v10200_v27 }
 0x24f   :  { %8877 = vmatpush3.bf16.msra.mxu0 %v9034_v51 }
 0x250   :  { %8878 = vmatprep.subr.bf16.mxu0 %v10200_v27 }
 0x253   :  { %8879 = vmatpush3.bf16.msra.mxu0 %v9035_v52 }
 0x254   :  { %8880 = vmatprep.subr.bf16.mxu0 %v10200_v27 }
 0x257   :  { %8881 = vmatpush3.bf16.msra.mxu0 %v9036_v53 }
 0x258   :  { %8906 = vmatprep.subr.bf16.mxu0 %v10200_v27 }
 0x30c   :  { %v688_v6 = vpop.f32.mrb[4].mxu0 }
 0x30d   :  { %v695_v7 = vsel %vm694_vm3, %v688_v6, 0.0  ;;  %v703_v8 = vmul.f32 %v688_v6, %v688_v6  ;;  %v8844_v9 = vpop.f32.mrb[5].mxu0 }
 0x30e   :  { %v696_v10 = vrot.slane %v695_v7, 4  ;;  %v691_v11 = vpop.f32.mrb[6].mxu0 }
 0x30f   :  { %v704_v13 = vsel %vm694_vm3, %v703_v8, 0.0  ;;  %v8845_v14 = vpop.f32.mrb[7].mxu0 }
 0x310   :  { %v697_v16 = vadd.f32 %v696_v10, %v695_v7  ;;  %v705_v17 = vrot.slane %v704_v13, 4 }
 0x312   :  { %v698_v18 = vrot.slane %v697_v16, 2  ;;  %v706_v19 = vadd.f32 %v705_v17, %v704_v13 }
 0x314   :  { %v699_v20 = vadd.f32 %v698_v18, %v697_v16  ;;  %v707_v21 = vrot.slane %v706_v19, 2 }
 0x316   :  { %v700_v22 = vrot.slane %v699_v20, 1  ;;  %v708_v23 = vadd.f32 %v707_v21, %v706_v19 }
 0x318   :  { %v701_v24 = vadd.f32 %v700_v22, %v699_v20  ;;  %v709_v25 = vrot.slane %v708_v23, 1 }
 0x31a   :  { %v702_v26 = vmul.f32 0.5, %v701_v24  ;;  %v710_v28 = vadd.f32 %v709_v25, %v708_v23 }
 0x31c   :  { %v711_v29 = vmul.f32 0.5, %v710_v28  ;;  %v712_v30 = vmul.f32 %v702_v26, %v702_v26  ;;  %v9037_v28 = vld [vmem:[%s10390_s27] sm:$0xff]  }
 0x31e   :  { %v713_v31 = vsub.f32 %v711_v29, %v712_v30  ;;  %v9038_v30 = vld [vmem:[%s10390_s27 + $0x8] sm:$0xff]  }
 0x320   :  { %v714_v32 = vmax.f32 %v713_v31, 0.0  ;;  %v9039_v31 = vld [vmem:[%s10390_s27 + $0x10] sm:$0xff]  }
 0x322   :  { %v715_v33 = vadd.f32 1e-05, %v714_v32  ;;  %v9040_v32 = vld [vmem:[%s10390_s27 + $0x18] sm:$0xff]  }
 0x324   :  { %10137 = vrsqrt.f32 %v715_v33  ;;  %v9041_v33 = vld [vmem:[%s10390_s27 + $0x20] sm:$0xff]  }
 0x32e   :  { %v10138_v35 = vpop.eup %10137 }
 0x32f   :  { %v717_v36 = vmul.f32 %v10138_v35, %v10368_v34  ;;  %v9043_v35 = vld [vmem:[%s10390_s27 + $0x30] sm:$0xff]  }
 0x331   :  { %v718_v38 = vmul.f32 %v717_v36, %v702_v26  ;;  %v724_v39 = vrot.slane %v717_v36, %v10305_v58  ;;  %v9044_v36 = vld [vmem:[%s10390_s27 + $0x38] sm:$0xff]  }
 0x333   :  { %v719_v40 = vsub.f32 %v10371_v37, %v718_v38  ;;  %v726_v41 = vmul.f32 %v724_v39, %v688_v6  ;;  %v9046_v38 = vld [vmem:[%s7925_s1 + $0x8] sm:$0xff]   ;;  %v9047_v39 = vld [vmem:[%s7925_s1 + $0x10] sm:$0xff]  }
 0x335   :  { %v731_v42 = vrot.slane %v719_v40, %v10305_v58  ;;  %v9048_v40 = vld [vmem:[%s7925_s1 + $0x18] sm:$0xff]  }
 0x337   :  { %v733_v43 = vadd.f32 %v731_v42, %v726_v41  ;;  %v9049_v41 = vld [vmem:[%s7925_s1 + $0x20] sm:$0xff]   ;;  %v9050_v42 = vld [vmem:[%s7925_s1 + $0x28] sm:$0xff]  }
 0x339   :  { %v734_v44 = vmax.f32 %v733_v43, 0.0  ;;  %v9051_v43 = vld [vmem:[%s7925_s1 + $0x30] sm:$0xff]  }
 0x33b   :  { %v735_v45 = vpack.c.bf16 %v734_v44, %v734_v44  ;;  %v9052_v44 = vld [vmem:[%s7925_s1 + $0x38] sm:$0xff]  }
 0x33d   :  { %8863 = vmatmul.mubr.bf16.vlgmr.msra.gmra.mrb[8].mxu1 %v735_v45 }
 0x33e   :  { %8902 = vmatprep.mubr.msk.bf16.mxu1 %vm10201_vm0, %v10200_v27 }
 0x410   :  { %v818_v54 = vpop.f32.mrb[8].mxu1 }
 0x411   :  { %v824_v55 = vsel %vm694_vm3, %v818_v54, 0.0  ;;  %v832_v56 = vmul.f32 %v818_v54, %v818_v54  ;;  %v8864_v59 = vpop.f32.mrb[9].mxu1 }
 0x412   :  { %v825_v60 = vrot.slane %v824_v55, 4  ;;  %v821_v62 = vpop.f32.mrb[10].mxu1 }
 0x413   :  { %v833_v57 = vsel %vm694_vm3, %v832_v56, 0.0  ;;  %v8865_v61 = vpop.f32.mrb[11].mxu1 }
 0x414   :  { %v826_v63 = vadd.f32 %v825_v60, %v824_v55  ;;  %v834_v0 = vrot.slane %v833_v57, 4 }
 0x416   :  { %v827_v1 = vrot.slane %v826_v63, 2  ;;  %v835_v2 = vadd.f32 %v834_v0, %v833_v57 }
 0x418   :  { %v828_v3 = vadd.f32 %v827_v1, %v826_v63  ;;  %v836_v4 = vrot.slane %v835_v2, 2 }
 0x41a   :  { %v829_v5 = vrot.slane %v828_v3, 1  ;;  %v837_v6 = vadd.f32 %v836_v4, %v835_v2 }
 0x41c   :  { %v830_v7 = vadd.f32 %v829_v5, %v828_v3  ;;  %v838_v8 = vrot.slane %v837_v6, 1 }
 0x41e   :  { %v831_v9 = vmul.f32 0.5, %v830_v7  ;;  %v839_v10 = vadd.f32 %v838_v8, %v837_v6  ;;  %v10435_v6 = vld [vmem:[%s7928_s5] sm:$0x1]  ;;  %s10883_s5 = sld [smem:[%s11575_s0 + %s10230_s2]]  }
 0x420   :  { %v840_v11 = vmul.f32 0.5, %v839_v10  ;;  %v841_v13 = vmul.f32 %v831_v9, %v831_v9 }
 0x422   :  { %v842_v14 = vsub.f32 %v840_v11, %v841_v13 }
 0x424   :  { %v843_v16 = vmax.f32 %v842_v14, 0.0  ;;  %v10440_v14 = vld [vmem:[%s7929_s9] sm:$0x1]  ;;  %s10903_s9 = sld [smem:[%s11575_s0 + %s10231_s6]]  }
 0x426   :  { %v844_v17 = vadd.f32 1e-05, %v843_v16 }
 0x428   :  { %10139 = vrsqrt.f32 %v844_v17 }
 0x432   :  { %v10140_v18 = vpop.eup %10139 }
 0x433   :  { %v846_v19 = vmul.f32 %v10140_v18, %v10368_v34  ;;  %v9042_v34 = vld [vmem:[%s10390_s27 + $0x28] sm:$0xff]   ;;  %s7937_s27 = sld [smem:[%s11575_s0 + %s10228_s24]]  }
 0x435   :  { %v847_v20 = vmul.f32 %v846_v19, %v831_v9  ;;  %v853_v21 = vrot.slane %v846_v19, %v10305_v58 }
 0x437   :  { %v848_v22 = vsub.f32 %v10371_v37, %v847_v20  ;;  %v855_v23 = vmul.f32 %v853_v21, %v818_v54  ;;  %v9045_v37 = vld [vmem:[%s7925_s1] sm:$0xff]   ;;  %s10784_s1 = sld [smem:[%s11575_s0 + %s10229_s28]]  }
 0x438   :  { %8887 = vmatpush3.bf16.msra.mxu1 %v9045_v37  ;;  %v9073_v37 = vld [vmem:[%s7930_s13 + $0x64] ss:$8 sps:$4 sm:$0xff]  }
 0x439   :  { %v860_v24 = vrot.slane %v848_v22, %v10305_v58  ;;  %8888 = vmatprep.subr.bf16.mxu1 %v10200_v27 }
 0x43b   :  { %v862_v25 = vadd.f32 %v860_v24, %v855_v23  ;;  %v9055_v24 = vld [vmem:[%s7930_s13 + $0x4] ss:$8 sps:$4 sm:$0xff]  }
 0x43c   :  { %8889 = vmatpush3.bf16.msra.mxu1 %v9046_v38  ;;  %v9071_v38 = vld [vmem:[%s7930_s13 + $0x60] ss:$8 sps:$4 sm:$0xff]  }
 0x43d   :  { %v863_v26 = vmax.f32 %v862_v25, 0.0  ;;  %8890 = vmatprep.subr.bf16.mxu1 %v10200_v27  ;;  %v9053_v25 = vld [vmem:[%s7930_s13] ss:$8 sps:$4 sm:$0xff]  }
 0x43f   :  { %v915_v29 = vpack.c.bf16 %v863_v26, %v863_v26  ;;  %v9058_v26 = vld [vmem:[%s7930_s13 + $0x14] ss:$8 sps:$4 sm:$0xff]  }
 0x440   :  { %8891 = vmatpush3.bf16.msra.mxu1 %v9047_v39  ;;  %v9076_v39 = vld [vmem:[%s7930_s13 + $0x74] ss:$8 sps:$4 sm:$0xff]  }
 0x441   :  { %8883 = vmatmul.mubr.bf16.vlgmr.msra.gmra.mrb[8].mxu0 %v915_v29  ;;  %8892 = vmatprep.subr.bf16.mxu1 %v10200_v27 }
 0x442   :  { %8907 = vmatpush3.bf16.msra.mxu0 %v9037_v28  ;;  %8922 = vmatprep.mubr.msk.bf16.mxu0 %vm10201_vm0, %v10200_v27  ;;  %v9056_v28 = vld [vmem:[%s7930_s13 + $0x10] ss:$8 sps:$4 sm:$0xff]  }
 0x443   :  { %8908 = vmatprep.subr.bf16.mxu0 %v10200_v27 }
 0x444   :  { %8893 = vmatpush3.bf16.msra.mxu1 %v9048_v40  ;;  %v9074_v40 = vld [vmem:[%s7930_s13 + $0x70] ss:$8 sps:$4 sm:$0xff]  }
 0x445   :  { %8894 = vmatprep.subr.bf16.mxu1 %v10200_v27 }
 0x446   :  { %8909 = vmatpush3.bf16.msra.mxu0 %v9038_v30  ;;  %v9059_v30 = vld [vmem:[%s7930_s13 + $0x20] ss:$8 sps:$4 sm:$0xff]  }
 0x447   :  { %8910 = vmatprep.subr.bf16.mxu0 %v10200_v27 }
 0x448   :  { %8895 = vmatpush3.bf16.msra.mxu1 %v9049_v41  ;;  %v10217_v41 = vmov 0  }
 0x449   :  { %8896 = vmatprep.subr.bf16.mxu1 %v10200_v27 }
 0x44a   :  { %8911 = vmatpush3.bf16.msra.mxu0 %v9039_v31  ;;  %v9064_v31 = vld [vmem:[%s7930_s13 + $0x34] ss:$8 sps:$4 sm:$0xff]  }
 0x44b   :  { %8912 = vmatprep.subr.bf16.mxu0 %v10200_v27 }
 0x44c   :  { %8897 = vmatpush3.bf16.msra.mxu1 %v9050_v42 }
 0x44d   :  { %8898 = vmatprep.subr.bf16.mxu1 %v10200_v27 }
 0x44e   :  { %8913 = vmatpush3.bf16.msra.mxu0 %v9040_v32  ;;  %v9062_v32 = vld [vmem:[%s7930_s13 + $0x30] ss:$8 sps:$4 sm:$0xff]  }
 0x44f   :  { %8914 = vmatprep.subr.bf16.mxu0 %v10200_v27 }
 0x450   :  { %8899 = vmatpush3.bf16.msra.mxu1 %v9051_v43 }
 0x451   :  { %8900 = vmatprep.subr.bf16.mxu1 %v10200_v27 }
 0x452   :  { %8915 = vmatpush3.bf16.msra.mxu0 %v9041_v33  ;;  %v9067_v33 = vld [vmem:[%s7930_s13 + $0x44] ss:$8 sps:$4 sm:$0xff]  }
 0x453   :  { %8916 = vmatprep.subr.bf16.mxu0 %v10200_v27 }
 0x454   :  { %8901 = vmatpush3.bf16.msra.mxu1 %v9052_v44 }
 0x455   :  { %1401 = vmatprep.subr.bf16.mxu1 %v9055_v24  ;;  %v9083_v24 = vld [vmem:[%s10461_s21 + $0x20] ss:$8 sps:$4 sm:$0xff]  }
 0x456   :  { %8917 = vmatpush3.bf16.msra.mxu0 %v9042_v34  ;;  %v9065_v34 = vld [vmem:[%s7930_s13 + $0x40] ss:$8 sps:$4 sm:$0xff]  }
 0x457   :  { %8918 = vmatprep.subr.bf16.mxu0 %v10200_v27 }
 0x45a   :  { %8919 = vmatpush3.bf16.msra.mxu0 %v9043_v35  ;;  %v9070_v35 = vld [vmem:[%s7930_s13 + $0x54] ss:$8 sps:$4 sm:$0xff]  }
 0x45b   :  { %8920 = vmatprep.subr.bf16.mxu0 %v10200_v27 }
 0x45e   :  { %8921 = vmatpush3.bf16.msra.mxu0 %v9044_v36  ;;  %v9068_v36 = vld [vmem:[%s7930_s13 + $0x50] ss:$8 sps:$4 sm:$0xff]  }
 0x461   :  { %8923 = vmatmul.mubr.bf16.vlgmr.msra.gmra.mrb[12].mxu0 %v915_v29  ;;  %v9061_v29 = vld [vmem:[%s7930_s13 + $0x24] ss:$8 sps:$4 sm:$0xff]   ;;  %s10984_s13 = sld [smem:[%s11575_s0 + %s10232_s10]]  }
 0x514   :  { %v998_v45 = vpop.f32.mrb[8].mxu0 }
 0x515   :  { %v1004_v46 = vsel %vm694_vm3, %v998_v45, 0.0  ;;  %v1012_v47 = vmul.f32 %v998_v45, %v998_v45  ;;  %v8884_v48 = vpop.f32.mrb[9].mxu0 }
 0x516   :  { %v1005_v49 = vrot.slane %v1004_v46, 4  ;;  %v1001_v50 = vpop.f32.mrb[10].mxu0 }
 0x517   :  { %v1013_v51 = vsel %vm694_vm3, %v1012_v47, 0.0  ;;  %v8885_v52 = vpop.f32.mrb[11].mxu0 }
 0x518   :  { %v1006_v53 = vadd.f32 %v1005_v49, %v1004_v46  ;;  %v1014_v54 = vrot.slane %v1013_v51, 4 }
 0x51a   :  { %v1007_v55 = vrot.slane %v1006_v53, 2  ;;  %v1015_v56 = vadd.f32 %v1014_v54, %v1013_v51 }
 0x51c   :  { %v1008_v59 = vadd.f32 %v1007_v55, %v1006_v53  ;;  %v1016_v60 = vrot.slane %v1015_v56, 2 }
 0x51e   :  { %v1009_v62 = vrot.slane %v1008_v59, 1  ;;  %v1017_v27 = vadd.f32 %v1016_v60, %v1015_v56 }
 0x520   :  { %v1010_v57 = vadd.f32 %v1009_v62, %v1008_v59  ;;  %v1018_v61 = vrot.slane %v1017_v27, 1 }
 0x522   :  { %v1011_v63 = vmul.f32 0.5, %v1010_v57  ;;  %v1019_v0 = vadd.f32 %v1018_v61, %v1017_v27 }
 0x524   :  { %v1020_v1 = vmul.f32 0.5, %v1019_v0  ;;  %v1021_v2 = vmul.f32 %v1011_v63, %v1011_v63 }
 0x526   :  { %v1022_v3 = vsub.f32 %v1020_v1, %v1021_v2 }
 0x528   :  { %v1023_v4 = vmax.f32 %v1022_v3, 0.0 }
 0x52a   :  { %v1024_v5 = vadd.f32 1e-05, %v1023_v4 }
 0x52c   :  { %10141 = vrsqrt.f32 %v1024_v5 }
 0x534   :  { %v10437_v7 = vpop.f32.mrb[12].mxu0 }
 0x535   :  { %v8924_v8 = vpop.f32.mrb[13].mxu0 }
 0x536   :  { %v10142_v9 = vpop.eup %10141  ;;  %v1258_v10 = vpop.f32.mrb[14].mxu0 }
 0x537   :  { %v1026_v11 = vmul.f32 %v10142_v9, %v10435_v6  ;;  %v8925_v13 = vpop.f32.mrb[15].mxu0 }
 0x539   :  { %v1027_v16 = vmul.f32 %v1026_v11, %v1011_v63  ;;  %v1033_v17 = vrot.slane %v1026_v11, %v10305_v58 }
 0x53b   :  { %v1028_v18 = vsub.f32 %v10440_v14, %v1027_v16  ;;  %v1035_v19 = vmul.f32 %v1033_v17, %v998_v45  ;;  %v8016_v17 = vld [vmem:[%s7927_s17] ss:$0 sm:$0xff]  ;;  %s11184_s17 = sld [smem:[%s11575_s0 + %s10233_s14]]  }
 0x53d   :  { %v1040_v20 = vrot.slane %v1028_v18, %v10305_v58 }
 0x53f   :  { %v1042_v21 = vadd.f32 %v1040_v20, %v1035_v19 }
 0x541   :  { %v1043_v22 = vmax.f32 %v1042_v21, 0.0  ;;  %v9082_v21 = vld [vmem:[%s10461_s21 + $0x14] ss:$8 sps:$4 sm:$0xff]  }
 0x543   :  { %v1044_v23 = vpack.c.bf16 %v1043_v22, %v1043_v22  ;;  %v9080_v22 = vld [vmem:[%s10461_s21 + $0x10] ss:$8 sps:$4 sm:$0xff]  }
 0x545   :  { %8903 = vmatmul.mubr.bf16.vlgmr.msra.gmra.mrb[12].mxu1 %v1044_v23  ;;  %v9085_v23 = vld [vmem:[%s10461_s21 + $0x24] ss:$8 sps:$4 sm:$0xff]  }
 0x546   :  { %1402 = vmatpush1.bf16.msra.mxu1 %v9053_v25  ;;  %1433 = vmatprep.mubr.bf16.mxu1 %v10217_v41  ;;  %v9088_v25 = vld [vmem:[%s10461_s21 + $0x34] ss:$8 sps:$4 sm:$0xff]   ;;  %v9107_v41 = vld [vmem:[%s10461_s21 + $0xa0] ss:$8 sps:$4 sm:$0xff]  }
 0x547   :  { %1403 = vmatprep.subr.bf16.mxu1 %v9058_v26  ;;  %v9086_v26 = vld [vmem:[%s10461_s21 + $0x30] ss:$8 sps:$4 sm:$0xff]  }
 0x54a   :  { %1404 = vmatpush1.bf16.msra.mxu1 %v9056_v28  ;;  %v9091_v28 = vld [vmem:[%s10461_s21 + $0x44] ss:$8 sps:$4 sm:$0xff]  }
 0x54b   :  { %1405 = vmatprep.subr.bf16.mxu1 %v9061_v29  ;;  %v9089_v29 = vld [vmem:[%s10461_s21 + $0x40] ss:$8 sps:$4 sm:$0xff]  }
 0x54e   :  { %1406 = vmatpush1.bf16.msra.mxu1 %v9059_v30  ;;  %v9094_v30 = vld [vmem:[%s10461_s21 + $0x54] ss:$8 sps:$4 sm:$0xff]  }
 0x54f   :  { %1407 = vmatprep.subr.bf16.mxu1 %v9064_v31  ;;  %v9092_v31 = vld [vmem:[%s10461_s21 + $0x50] ss:$8 sps:$4 sm:$0xff]  }
 0x552   :  { %1408 = vmatpush1.bf16.msra.mxu1 %v9062_v32  ;;  %v9097_v32 = vld [vmem:[%s10461_s21 + $0x64] ss:$8 sps:$4 sm:$0xff]  }
 0x553   :  { %1409 = vmatprep.subr.bf16.mxu1 %v9067_v33  ;;  %v9095_v33 = vld [vmem:[%s10461_s21 + $0x60] ss:$8 sps:$4 sm:$0xff]  }
 0x556   :  { %1410 = vmatpush1.bf16.msra.mxu1 %v9065_v34  ;;  %v9100_v34 = vld [vmem:[%s10461_s21 + $0x74] ss:$8 sps:$4 sm:$0xff]  }
 0x557   :  { %1411 = vmatprep.subr.bf16.mxu1 %v9070_v35  ;;  %v9098_v35 = vld [vmem:[%s10461_s21 + $0x70] ss:$8 sps:$4 sm:$0xff]  }
 0x55a   :  { %1412 = vmatpush1.bf16.msra.mxu1 %v9068_v36  ;;  %v9103_v36 = vld [vmem:[%s10461_s21 + $0x84] ss:$8 sps:$4 sm:$0xff]  }
 0x55b   :  { %1413 = vmatprep.subr.bf16.mxu1 %v9073_v37  ;;  %v9101_v37 = vld [vmem:[%s10461_s21 + $0x80] ss:$8 sps:$4 sm:$0xff]  }
 0x55e   :  { %1414 = vmatpush1.bf16.msra.mxu1 %v9071_v38  ;;  %v9106_v38 = vld [vmem:[%s10461_s21 + $0x94] ss:$8 sps:$4 sm:$0xff]  }
 0x55f   :  { %1415 = vmatprep.subr.bf16.mxu1 %v9076_v39  ;;  %v9104_v39 = vld [vmem:[%s10461_s21 + $0x90] ss:$8 sps:$4 sm:$0xff]  }
 0x562   :  { %1416 = vmatpush1.bf16.msra.mxu1 %v9074_v40  ;;  %v9109_v40 = vld [vmem:[%s10461_s21 + $0xa4] ss:$8 sps:$4 sm:$0xff]  }
 0x618   :  { %v1127_v42 = vpop.f32.mrb[12].mxu1 }
 0x619   :  { %v1133_v43 = vsel %vm694_vm3, %v1127_v42, 0.0  ;;  %v1141_v44 = vmul.f32 %v1127_v42, %v1127_v42  ;;  %v8904_v45 = vpop.f32.mrb[13].mxu1 }
 0x61a   :  { %v1134_v46 = vrot.slane %v1133_v43, 4  ;;  %v1130_v47 = vpop.f32.mrb[14].mxu1  ;;  %v9113_v45 = vld [vmem:[%s10461_s21 + $0xc0] ss:$8 sps:$4 sm:$0xff]  }
 0x61b   :  { %v1142_v48 = vsel %vm694_vm3, %v1141_v44, 0.0  ;;  %v8905_v49 = vpop.f32.mrb[15].mxu1  ;;  %v9115_v44 = vld [vmem:[%s10461_s21 + $0xc4] ss:$8 sps:$4 sm:$0xff]   ;;  %v9116_v47 = vld [vmem:[%s10461_s21 + $0xd0] ss:$8 sps:$4 sm:$0xff]  }
 0x61c   :  { %v1135_v50 = vadd.f32 %v1134_v46, %v1133_v43  ;;  %v1143_v51 = vrot.slane %v1142_v48, 4  ;;  %v9110_v43 = vld [vmem:[%s10461_s21 + $0xb0] ss:$8 sps:$4 sm:$0xff]   ;;  %v9118_v46 = vld [vmem:[%s10461_s21 + $0xd4] ss:$8 sps:$4 sm:$0xff]  }
 0x61d   :  { %v9119_v49 = vld [vmem:[%s10461_s21 + $0xe0] ss:$8 sps:$4 sm:$0xff]  }
 0x61e   :  { %v1136_v52 = vrot.slane %v1135_v50, 2  ;;  %v1144_v53 = vadd.f32 %v1143_v51, %v1142_v48  ;;  %v9121_v48 = vld [vmem:[%s10461_s21 + $0xe4] ss:$8 sps:$4 sm:$0xff]   ;;  %v9122_v51 = vld [vmem:[%s10461_s21 + $0xf0] ss:$8 sps:$4 sm:$0xff]  }
 0x620   :  { %v1137_v54 = vadd.f32 %v1136_v52, %v1135_v50  ;;  %v1145_v55 = vrot.slane %v1144_v53, 2  ;;  %v9124_v50 = vld [vmem:[%s10461_s21 + $0xf4] ss:$8 sps:$4 sm:$0xff]  }
 0x622   :  { %v1138_v56 = vrot.slane %v1137_v54, 1  ;;  %v1146_v59 = vadd.f32 %v1145_v55, %v1144_v53 }
 0x624   :  { %v1139_v60 = vadd.f32 %v1138_v56, %v1137_v54  ;;  %v1147_v62 = vrot.slane %v1146_v59, 1 }
 0x626   :  { %v1140_v27 = vmul.f32 0.5, %v1139_v60  ;;  %v1148_v57 = vadd.f32 %v1147_v62, %v1146_v59 }
 0x628   :  { %v1149_v61 = vmul.f32 0.5, %v1148_v57  ;;  %v1150_v63 = vmul.f32 %v1140_v27, %v1140_v27 }
 0x62a   :  { %v1151_v0 = vsub.f32 %v1149_v61, %v1150_v63 }
 0x62c   :  { %v1152_v1 = vmax.f32 %v1151_v0, 0.0 }
 0x62e   :  { %v1153_v2 = vadd.f32 1e-05, %v1152_v1 }
 0x630   :  { %10143 = vrsqrt.f32 %v1153_v2 }
 0x63a   :  { %v10144_v3 = vpop.eup %10143 }
 0x63b   :  { %v1155_v4 = vmul.f32 %v10144_v3, %v10435_v6 }
 0x63d   :  { %v1156_v5 = vmul.f32 %v1155_v4, %v1140_v27  ;;  %v1162_v8 = vrot.slane %v1155_v4, %v10305_v58 }
 0x63f   :  { %v1157_v9 = vsub.f32 %v10440_v14, %v1156_v5  ;;  %v1164_v10 = vmul.f32 %v1162_v8, %v1127_v42  ;;  %v9079_v14 = vld [vmem:[%s10461_s21 + $0x4] ss:$8 sps:$4 sm:$0xff]   ;;  %v9112_v42 = vld [vmem:[%s10461_s21 + $0xb4] ss:$8 sps:$4 sm:$0xff]  }
 0x640   :  { %1716 = vmatprep.subr.bf16.mxu0 %v9079_v14 }
 0x641   :  { %v1169_v11 = vrot.slane %v1157_v9, %v10305_v58 }
 0x643   :  { %v1171_v13 = vadd.f32 %v1169_v11, %v1164_v10 }
 0x645   :  { %v1172_v16 = vmax.f32 %v1171_v13, 0.0 }
 0x647   :  { %v1261_v18 = vadd.f32 %v10437_v7, %v1172_v16  ;;  %v9077_v7 = vld [vmem:[%s10461_s21] ss:$8 sps:$4 sm:$0xff]   ;;  %s11275_s21 = sld [smem:[%s11575_s0 + %s10234_s18]]  }
 0x648   :  { %1717 = vmatpush1.bf16.msra.mxu0 %v9077_v7 }
 0x649   :  { %v1268_v19 = vadd.f32 %v8016_v17, %v1261_v18  ;;  %1718 = vmatprep.subr.bf16.mxu0 %v9082_v21 }
 0x64b   :  { %v1269_v6 = vmax.f32 %v1268_v19, 0.0 }
 0x64c   :  { %1719 = vmatpush1.bf16.msra.mxu0 %v9080_v22 }
 0x64d   :  { %v1320_v20 = vpack.c.bf16 %v1269_v6, %v1269_v6  ;;  %1720 = vmatprep.subr.bf16.mxu0 %v9085_v23 }
 0x64f   :  { %1434 = vmatmul.mubr.bf16.vlgmr.msra.gmra.mrb[16].mxu1 %v1320_v20 }
 0x650   :  { %1721 = vmatpush1.bf16.msra.mxu0 %v9083_v24 }
 0x651   :  { %1722 = vmatprep.subr.bf16.mxu0 %v9088_v25 }
 0x654   :  { %1723 = vmatpush1.bf16.msra.mxu0 %v9086_v26 }
 0x655   :  { %1724 = vmatprep.subr.bf16.mxu0 %v9091_v28 }
 0x658   :  { %1725 = vmatpush1.bf16.msra.mxu0 %v9089_v29 }
 0x659   :  { %1726 = vmatprep.subr.bf16.mxu0 %v9094_v30 }
 0x65c   :  { %1727 = vmatpush1.bf16.msra.mxu0 %v9092_v31 }
 0x65d   :  { %1728 = vmatprep.subr.bf16.mxu0 %v9097_v32 }
 0x660   :  { %1729 = vmatpush1.bf16.msra.mxu0 %v9095_v33 }
 0x661   :  { %1730 = vmatprep.subr.bf16.mxu0 %v9100_v34 }
 0x664   :  { %1731 = vmatpush1.bf16.msra.mxu0 %v9098_v35 }
 0x665   :  { %1732 = vmatprep.subr.bf16.mxu0 %v9103_v36 }
 0x668   :  { %1733 = vmatpush1.bf16.msra.mxu0 %v9101_v37 }
 0x669   :  { %1734 = vmatprep.subr.bf16.mxu0 %v9106_v38 }
 0x66c   :  { %1735 = vmatpush1.bf16.msra.mxu0 %v9104_v39 }
 0x66d   :  { %1736 = vmatprep.subr.bf16.mxu0 %v9109_v40 }
 0x670   :  { %1737 = vmatpush1.bf16.msra.mxu0 %v9107_v41  ;;  %v10508_v41 = vld [vmem:[%s7932_s25] sm:$0x3]  ;;  %s11288_s25 = sld [smem:[%s11575_s0 + %s10235_s22]]  }
 0x671   :  { %1738 = vmatprep.subr.bf16.mxu0 %v9112_v42 }
 0x674   :  { %1739 = vmatpush1.bf16.msra.mxu0 %v9110_v43  ;;  %v10512_v43 = vsub.s32 1, %v10261_v12 }
 0x675   :  { %1740 = vmatprep.subr.bf16.mxu0 %v9115_v44 }
 0x678   :  { %1741 = vmatpush1.bf16.msra.mxu0 %v9113_v45 }
 0x679   :  { %1742 = vmatprep.subr.bf16.mxu0 %v9118_v46 }
 0x67c   :  { %1743 = vmatpush1.bf16.msra.mxu0 %v9116_v47 }
 0x67d   :  { %1744 = vmatprep.subr.bf16.mxu0 %v9121_v48 }
 0x680   :  { %1745 = vmatpush1.bf16.msra.mxu0 %v9119_v49 }
 0x681   :  { %1746 = vmatprep.subr.bf16.mxu0 %v9124_v50 }
 0x684   :  { %1747 = vmatpush1.bf16.msra.mxu0 %v9122_v51 }
 0x722   :  { %v10495_v52 = vpop.f32.mrb[16].mxu1 }
 0x723   :  { %v1442_v53 = vsel %vm694_vm3, %v10495_v52, 0.0  ;;  %v1458_v54 = vmul.f32 %v10495_v52, %v10495_v52  ;;  %v1437_v55 = vpop.f32.mrb[17].mxu1 }
 0x724   :  { %v1443_v56 = vrot.slane %v1442_v53, 4  ;;  %v1449_v59 = vsel %vm694_vm3, %v1437_v55, 0.0  ;;  %v1459_v60 = vmul.f32 %v1437_v55, %v1437_v55  ;;  %v1439_v62 = vpop.f32.mrb[18].mxu1 }
 0x725   :  { %v1460_v27 = vsel %vm694_vm3, %v1458_v54, 0.0  ;;  %v1450_v57 = vrot.slane %v1449_v59, 4  ;;  %v1440_v61 = vpop.f32.mrb[19].mxu1  ;;  %v10522_v54 = vld [vmem:[%s7933_s29] sm:$0x3]  ;;  %s11302_s29 = sld [smem:[%s11575_s0 + %s10236_s26]]  }
 0x726   :  { %v1444_v63 = vadd.f32 %v1443_v56, %v1442_v53  ;;  %v1461_v0 = vrot.slane %v1460_v27, 4  ;;  %v1467_v1 = vsel %vm694_vm3, %v1459_v60, 0.0 }
 0x727   :  { %v1451_v2 = vadd.f32 %v1450_v57, %v1449_v59  ;;  %v1468_v3 = vrot.slane %v1467_v1, 4 }
 0x728   :  { %v1445_v4 = vrot.slane %v1444_v63, 2  ;;  %v1462_v5 = vadd.f32 %v1461_v0, %v1460_v27 }
 0x729   :  { %v1452_v8 = vrot.slane %v1451_v2, 2  ;;  %v1469_v9 = vadd.f32 %v1468_v3, %v1467_v1  ;;  %v9125_v1 = vld [vmem:[%s10531_s3] ss:$8 sps:$4 sm:$0xff]   ;;  %v9128_v3 = vld [vmem:[%s10531_s3 + $0x10] ss:$8 sps:$4 sm:$0xff]  }
 0x72a   :  { %v1446_v10 = vadd.f32 %v1445_v4, %v1444_v63  ;;  %v1463_v11 = vrot.slane %v1462_v5, 2  ;;  %v9133_v4 = vld [vmem:[%s10531_s3 + $0x24] ss:$8 sps:$4 sm:$0xff]  }
 0x72b   :  { %v1453_v13 = vadd.f32 %v1452_v8, %v1451_v2  ;;  %v1470_v16 = vrot.slane %v1469_v9, 2  ;;  %v9130_v2 = vld [vmem:[%s10531_s3 + $0x14] ss:$8 sps:$4 sm:$0xff]  }
 0x72c   :  { %v1447_v17 = vrot.slane %v1446_v10, 1  ;;  %v1464_v18 = vadd.f32 %v1463_v11, %v1462_v5  ;;  %v9131_v5 = vld [vmem:[%s10531_s3 + $0x20] ss:$8 sps:$4 sm:$0xff]   ;;  %v9136_v8 = vld [vmem:[%s10531_s3 + $0x34] ss:$8 sps:$4 sm:$0xff]  }
 0x72d   :  { %v1454_v19 = vrot.slane %v1453_v13, 1  ;;  %v1471_v6 = vadd.f32 %v1470_v16, %v1469_v9  ;;  %v9134_v9 = vld [vmem:[%s10531_s3 + $0x30] ss:$8 sps:$4 sm:$0xff]   ;;  %v9137_v11 = vld [vmem:[%s10531_s3 + $0x40] ss:$8 sps:$4 sm:$0xff]  }
 0x72e   :  { %v1448_v20 = vadd.f32 %v1447_v17, %v1446_v10  ;;  %v1465_v14 = vrot.slane %v1464_v18, 1  ;;  %v9139_v10 = vld [vmem:[%s10531_s3 + $0x44] ss:$8 sps:$4 sm:$0xff]   ;;  %v9140_v16 = vld [vmem:[%s10531_s3 + $0x50] ss:$8 sps:$4 sm:$0xff]  }
 0x72f   :  { %v1455_v7 = vadd.f32 %v1454_v19, %v1453_v13  ;;  %v1472_v21 = vrot.slane %v1471_v6, 1  ;;  %v9142_v13 = vld [vmem:[%s10531_s3 + $0x54] ss:$8 sps:$4 sm:$0xff]   ;;  %v9145_v17 = vld [vmem:[%s10531_s3 + $0x64] ss:$8 sps:$4 sm:$0xff]  }
 0x730   :  { %v1456_v22 = vmul.f32 0.5, %v1448_v20  ;;  %v1466_v23 = vadd.f32 %v1465_v14, %v1464_v18  ;;  %v9143_v18 = vld [vmem:[%s10531_s3 + $0x60] ss:$8 sps:$4 sm:$0xff]   ;;  %v9148_v19 = vld [vmem:[%s10531_s3 + $0x74] ss:$8 sps:$4 sm:$0xff]  }
 0x731   :  { %v1457_v24 = vmul.f32 0.5, %v1455_v7  ;;  %v1473_v25 = vadd.f32 %v1472_v21, %v1471_v6  ;;  %v9146_v6 = vld [vmem:[%s10531_s3 + $0x70] ss:$8 sps:$4 sm:$0xff]   ;;  %v9151_v20 = vld [vmem:[%s10531_s3 + $0x84] ss:$8 sps:$4 sm:$0xff]  }
 0x732   :  { %v1474_v26 = vmul.f32 0.5, %v1466_v23  ;;  %v1476_v28 = vmul.f32 %v1456_v22, %v1456_v22  ;;  %v9149_v14 = vld [vmem:[%s10531_s3 + $0x80] ss:$8 sps:$4 sm:$0xff]   ;;  %v9154_v7 = vld [vmem:[%s10531_s3 + $0x94] ss:$8 sps:$4 sm:$0xff]  }
 0x733   :  { %v1475_v29 = vmul.f32 0.5, %v1473_v25  ;;  %v1477_v30 = vmul.f32 %v1457_v24, %v1457_v24  ;;  %v9152_v21 = vld [vmem:[%s10531_s3 + $0x90] ss:$8 sps:$4 sm:$0xff]   ;;  %v9155_v23 = vld [vmem:[%s10531_s3 + $0xa0] ss:$8 sps:$4 sm:$0xff]  }
 0x734   :  { %v1478_v31 = vsub.f32 %v1474_v26, %v1476_v28  ;;  %v9158_v25 = vld [vmem:[%s10531_s3 + $0xb0] ss:$8 sps:$4 sm:$0xff]   ;;  %v9163_v26 = vld [vmem:[%s10531_s3 + $0xc4] ss:$8 sps:$4 sm:$0xff]   ;;  %v9161_v28 = vld [vmem:[%s10531_s3 + $0xc0] ss:$8 sps:$4 sm:$0xff]  }
 0x735   :  { %v1479_v32 = vsub.f32 %v1475_v29, %v1477_v30  ;;  %v9164_v29 = vld [vmem:[%s10531_s3 + $0xd0] ss:$8 sps:$4 sm:$0xff]   ;;  %v9166_v30 = vld [vmem:[%s10531_s3 + $0xd4] ss:$8 sps:$4 sm:$0xff]  }
 0x736   :  { %v1480_v33 = vmax.f32 %v1478_v31, 0.0  ;;  %v9169_v31 = vld [vmem:[%s10531_s3 + $0xe4] ss:$8 sps:$4 sm:$0xff]  }
 0x737   :  { %v1481_v34 = vmax.f32 %v1479_v32, 0.0  ;;  %v9167_v32 = vld [vmem:[%s10531_s3 + $0xe0] ss:$8 sps:$4 sm:$0xff]  }
 0x738   :  { %v1482_v35 = vadd.f32 1e-05, %v1480_v33  ;;  %v9172_v33 = vld [vmem:[%s10531_s3 + $0xf4] ss:$8 sps:$4 sm:$0xff]  }
 0x739   :  { %v1483_v36 = vadd.f32 1e-05, %v1481_v34  ;;  %v9170_v34 = vld [vmem:[%s10531_s3 + $0xf0] ss:$8 sps:$4 sm:$0xff]  }
 0x73a   :  { %10145 = vrsqrt.f32 %v1482_v35  ;;  %v9175_v35 = vld [vmem:[%s10567_s7 + $0x4] ss:$8 sps:$4 sm:$0xff]  }
 0x73b   :  { %10147 = vrsqrt.f32 %v1483_v36 }
 0x744   :  { %v10146_v37 = vpop.eup %10145 }
 0x745   :  { %v10148_v38 = vpop.eup %10147 }
 0x746   :  { %v1488_v39 = vcombine.low %v10146_v37, %v10148_v38 }
 0x748   :  { %v1495_v40 = vrot.slane %v1488_v39, %v10266_v15 }
 0x74a   :  { %v1502_v42 = vrot.slane %v1495_v40, %v10266_v15 }
 0x74c   :  { %v1504_v44 = vmul.f32 %v1502_v42, %v10508_v41 }
 0x74e   :  { %v1509_v45 = vrot.slane %v1504_v44, %v10305_v58  ;;  %v1513_v46 = vrot.slane %v1504_v44, %v10512_v43 }
 0x750   :  { %v1516_v47 = vmul.f32 %v1509_v45, %v1456_v22  ;;  %v1517_v48 = vmul.f32 %v1513_v46, %v1457_v24  ;;  %v1538_v49 = vmul.f32 %v1513_v46, %v1437_v55  ;;  %v1537_v50 = vmul.f32 %v1509_v45, %v10495_v52  ;;  %v9127_v52 = vld [vmem:[%s10531_s3 + $0x4] ss:$8 sps:$4 sm:$0xff]   ;;  %v9160_v24 = vld [vmem:[%s10531_s3 + $0xb4] ss:$8 sps:$4 sm:$0xff]  }
 0x751   :  { %2130 = vmatprep.subr.bf16.mxu1 %v9127_v52  ;;  %v9157_v22 = vld [vmem:[%s10531_s3 + $0xa4] ss:$8 sps:$4 sm:$0xff]   ;;  %s7947_s3 = sld [smem:[%s11575_s0 + %s10237_s30]]  }
 0x752   :  { %v1520_v51 = vcombine.low %v1516_v47, %v1517_v48  ;;  %2131 = vmatpush1.bf16.msra.mxu1 %v9125_v1 }
 0x753   :  { %2132 = vmatprep.subr.bf16.mxu1 %v9130_v2 }
 0x754   :  { %v1527_v53 = vrot.slane %v1520_v51, %v10266_v15 }
 0x756   :  { %v1534_v56 = vrot.slane %v1527_v53, %v10266_v15  ;;  %2133 = vmatpush1.bf16.msra.mxu1 %v9128_v3 }
 0x757   :  { %2134 = vmatprep.subr.bf16.mxu1 %v9133_v4 }
 0x758   :  { %v1536_v59 = vsub.f32 %v10522_v54, %v1534_v56 }
 0x75a   :  { %v1547_v60 = vrot.slane %v1536_v59, %v10512_v43  ;;  %v1543_v62 = vrot.slane %v1536_v59, %v10305_v58  ;;  %2135 = vmatpush1.bf16.msra.mxu1 %v9131_v5 }
 0x75b   :  { %2136 = vmatprep.subr.bf16.mxu1 %v9136_v8 }
 0x75c   :  { %v1551_v27 = vadd.f32 %v1547_v60, %v1538_v49  ;;  %v1550_v57 = vadd.f32 %v1543_v62, %v1537_v50 }
 0x75e   :  { %v1553_v61 = vmax.f32 %v1551_v27, 0.0  ;;  %v1552_v63 = vmax.f32 %v1550_v57, 0.0  ;;  %2137 = vmatpush1.bf16.msra.mxu1 %v9134_v9 }
 0x75f   :  { %2138 = vmatprep.subr.bf16.mxu1 %v9139_v10 }
 0x760   :  { %v1555_v55 = vpack.c.bf16 %v1553_v61, %v1553_v61  ;;  %v1554_v0 = vpack.c.bf16 %v1552_v63, %v1552_v63 }
 0x762   :  { %1748 = vmatprep.mubr.bf16.mxu0 %v1555_v55  ;;  %2139 = vmatpush1.bf16.msra.mxu1 %v9137_v11 }
 0x763   :  { %1749 = vmatmul.mubr.bf16.vlgmr.msra.gmra.mrb[16].mxu0 %v1554_v0  ;;  %2140 = vmatprep.subr.bf16.mxu1 %v9142_v13 }
 0x766   :  { %2141 = vmatpush1.bf16.msra.mxu1 %v9140_v16 }
 0x767   :  { %2142 = vmatprep.subr.bf16.mxu1 %v9145_v17 }
 0x76a   :  { %2143 = vmatpush1.bf16.msra.mxu1 %v9143_v18 }
 0x76b   :  { %2144 = vmatprep.subr.bf16.mxu1 %v9148_v19 }
 0x76e   :  { %2145 = vmatpush1.bf16.msra.mxu1 %v9146_v6 }
 0x76f   :  { %2146 = vmatprep.subr.bf16.mxu1 %v9151_v20 }
 0x772   :  { %2147 = vmatpush1.bf16.msra.mxu1 %v9149_v14 }
 0x773   :  { %2148 = vmatprep.subr.bf16.mxu1 %v9154_v7 }
 0x776   :  { %2149 = vmatpush1.bf16.msra.mxu1 %v9152_v21 }
 0x777   :  { %2150 = vmatprep.subr.bf16.mxu1 %v9157_v22 }
 0x77a   :  { %2151 = vmatpush1.bf16.msra.mxu1 %v9155_v23 }
 0x77b   :  { %2152 = vmatprep.subr.bf16.mxu1 %v9160_v24 }
 0x77e   :  { %2153 = vmatpush1.bf16.msra.mxu1 %v9158_v25 }
 0x77f   :  { %2154 = vmatprep.subr.bf16.mxu1 %v9163_v26 }
 0x782   :  { %2155 = vmatpush1.bf16.msra.mxu1 %v9161_v28 }
 0x783   :  { %2156 = vmatprep.subr.bf16.mxu1 %v9166_v30 }
 0x786   :  { %2157 = vmatpush1.bf16.msra.mxu1 %v9164_v29 }
 0x787   :  { %2158 = vmatprep.subr.bf16.mxu1 %v9169_v31 }
 0x78a   :  { %2159 = vmatpush1.bf16.msra.mxu1 %v9167_v32 }
 0x78b   :  { %2160 = vmatprep.subr.bf16.mxu1 %v9172_v33 }
 0x78e   :  { %2161 = vmatpush1.bf16.msra.mxu1 %v9170_v34 }
 0x78f   :  { %2758 = vmatprep.subr.bf16.mxu1 %v9175_v35 }
 0x836   :  { %v1750_v36 = vpop.f32.mrb[16].mxu0 }
 0x837   :  { %v1757_v37 = vsel %vm694_vm3, %v1750_v36, 0.0  ;;  %v1773_v38 = vmul.f32 %v1750_v36, %v1750_v36  ;;  %v1752_v39 = vpop.f32.mrb[17].mxu0 }
 0x838   :  { %v1758_v40 = vrot.slane %v1757_v37, 4  ;;  %v1764_v42 = vsel %vm694_vm3, %v1752_v39, 0.0  ;;  %v1774_v44 = vmul.f32 %v1752_v39, %v1752_v39  ;;  %v1754_v45 = vpop.f32.mrb[18].mxu0 }
 0x839   :  { %v1775_v46 = vsel %vm694_vm3, %v1773_v38, 0.0  ;;  %v1765_v47 = vrot.slane %v1764_v42, 4  ;;  %v1755_v48 = vpop.f32.mrb[19].mxu0 }
 0x83a   :  { %v1759_v49 = vadd.f32 %v1758_v40, %v1757_v37  ;;  %v1776_v50 = vrot.slane %v1775_v46, 4  ;;  %v1782_v51 = vsel %vm694_vm3, %v1774_v44, 0.0  ;;  %v9173_v48 = vld [vmem:[%s10567_s7] ss:$8 sps:$4 sm:$0xff]  }
 0x83b   :  { %v1766_v53 = vadd.f32 %v1765_v47, %v1764_v42  ;;  %v1783_v56 = vrot.slane %v1782_v51, 4 }
 0x83c   :  { %v1760_v59 = vrot.slane %v1759_v49, 2  ;;  %v1777_v60 = vadd.f32 %v1776_v50, %v1775_v46  ;;  %v9178_v50 = vld [vmem:[%s10567_s7 + $0x14] ss:$8 sps:$4 sm:$0xff]  }
 0x83d   :  { %v1767_v62 = vrot.slane %v1766_v53, 2  ;;  %v1784_v27 = vadd.f32 %v1783_v56, %v1782_v51  ;;  %v9181_v51 = vld [vmem:[%s10567_s7 + $0x24] ss:$8 sps:$4 sm:$0xff]   ;;  %v9184_v56 = vld [vmem:[%s10567_s7 + $0x34] ss:$8 sps:$4 sm:$0xff]  }
 0x83e   :  { %v1761_v57 = vadd.f32 %v1760_v59, %v1759_v49  ;;  %v1778_v61 = vrot.slane %v1777_v60, 2  ;;  %v9182_v59 = vld [vmem:[%s10567_s7 + $0x30] ss:$8 sps:$4 sm:$0xff]  }
 0x83f   :  { %v1768_v63 = vadd.f32 %v1767_v62, %v1766_v53  ;;  %v1785_v55 = vrot.slane %v1784_v27, 2  ;;  %v9179_v53 = vld [vmem:[%s10567_s7 + $0x20] ss:$8 sps:$4 sm:$0xff]  }
 0x840   :  { %v1762_v0 = vrot.slane %v1761_v57, 1  ;;  %v1779_v52 = vadd.f32 %v1778_v61, %v1777_v60  ;;  %v9187_v60 = vld [vmem:[%s10567_s7 + $0x44] ss:$8 sps:$4 sm:$0xff]   ;;  %v9185_v62 = vld [vmem:[%s10567_s7 + $0x40] ss:$8 sps:$4 sm:$0xff]  }
 0x841   :  { %v1769_v1 = vrot.slane %v1768_v63, 1  ;;  %v1786_v2 = vadd.f32 %v1785_v55, %v1784_v27  ;;  %v9190_v27 = vld [vmem:[%s10567_s7 + $0x54] ss:$8 sps:$4 sm:$0xff]   ;;  %v9193_v61 = vld [vmem:[%s10567_s7 + $0x64] ss:$8 sps:$4 sm:$0xff]  }
 0x842   :  { %v1763_v3 = vadd.f32 %v1762_v0, %v1761_v57  ;;  %v1780_v4 = vrot.slane %v1779_v52, 1  ;;  %v9188_v57 = vld [vmem:[%s10567_s7 + $0x50] ss:$8 sps:$4 sm:$0xff]   ;;  %v9196_v55 = vld [vmem:[%s10567_s7 + $0x74] ss:$8 sps:$4 sm:$0xff]  }
 0x843   :  { %v1770_v5 = vadd.f32 %v1769_v1, %v1768_v63  ;;  %v1787_v8 = vrot.slane %v1786_v2, 1  ;;  %v9191_v63 = vld [vmem:[%s10567_s7 + $0x60] ss:$8 sps:$4 sm:$0xff]   ;;  %v9194_v0 = vld [vmem:[%s10567_s7 + $0x70] ss:$8 sps:$4 sm:$0xff]  }
 0x844   :  { %v1771_v9 = vmul.f32 0.5, %v1763_v3  ;;  %v1781_v10 = vadd.f32 %v1780_v4, %v1779_v52  ;;  %v9199_v52 = vld [vmem:[%s10567_s7 + $0x84] ss:$8 sps:$4 sm:$0xff]   ;;  %v9197_v1 = vld [vmem:[%s10567_s7 + $0x80] ss:$8 sps:$4 sm:$0xff]  }
 0x845   :  { %v1772_v11 = vmul.f32 0.5, %v1770_v5  ;;  %v1788_v13 = vadd.f32 %v1787_v8, %v1786_v2  ;;  %v9202_v2 = vld [vmem:[%s10567_s7 + $0x94] ss:$8 sps:$4 sm:$0xff]   ;;  %v9200_v3 = vld [vmem:[%s10567_s7 + $0x90] ss:$8 sps:$4 sm:$0xff]  }
 0x846   :  { %v1789_v16 = vmul.f32 0.5, %v1781_v10  ;;  %v1791_v17 = vmul.f32 %v1771_v9, %v1771_v9  ;;  %v9205_v4 = vld [vmem:[%s10567_s7 + $0xa4] ss:$8 sps:$4 sm:$0xff]   ;;  %v9203_v5 = vld [vmem:[%s10567_s7 + $0xa0] ss:$8 sps:$4 sm:$0xff]  }
 0x847   :  { %v1790_v18 = vmul.f32 0.5, %v1788_v13  ;;  %v1792_v19 = vmul.f32 %v1772_v11, %v1772_v11  ;;  %v9208_v8 = vld [vmem:[%s10567_s7 + $0xb4] ss:$8 sps:$4 sm:$0xff]   ;;  %v9211_v10 = vld [vmem:[%s10567_s7 + $0xc4] ss:$8 sps:$4 sm:$0xff]  }
 0x848   :  { %v1793_v6 = vsub.f32 %v1789_v16, %v1791_v17  ;;  %v9214_v13 = vld [vmem:[%s10567_s7 + $0xd4] ss:$8 sps:$4 sm:$0xff]   ;;  %v9212_v16 = vld [vmem:[%s10567_s7 + $0xd0] ss:$8 sps:$4 sm:$0xff]   ;;  %v9217_v17 = vld [vmem:[%s10567_s7 + $0xe4] ss:$8 sps:$4 sm:$0xff]  }
 0x849   :  { %v1794_v20 = vsub.f32 %v1790_v18, %v1792_v19  ;;  %v9215_v18 = vld [vmem:[%s10567_s7 + $0xe0] ss:$8 sps:$4 sm:$0xff]   ;;  %v9220_v19 = vld [vmem:[%s10567_s7 + $0xf4] ss:$8 sps:$4 sm:$0xff]  }
 0x84a   :  { %v1795_v14 = vmax.f32 %v1793_v6, 0.0  ;;  %v9218_v6 = vld [vmem:[%s10567_s7 + $0xf0] ss:$8 sps:$4 sm:$0xff]  }
 0x84b   :  { %v1796_v7 = vmax.f32 %v1794_v20, 0.0  ;;  %v9223_v20 = vld [vmem:[%s10623_s11 + $0x4] ss:$8 sps:$4 sm:$0xff]  }
 0x84c   :  { %v1797_v21 = vadd.f32 1e-05, %v1795_v14  ;;  %v9221_v14 = vld [vmem:[%s10623_s11] ss:$8 sps:$4 sm:$0xff]   ;;  %2445 = vmatprep.subr.bf16.mxu0 %v9223_v20 }
 0x84d   :  { %v1798_v22 = vadd.f32 1e-05, %v1796_v7  ;;  %2446 = vmatpush1.bf16.msra.mxu0 %v9221_v14  ;;  %v9226_v7 = vld [vmem:[%s10623_s11 + $0x14] ss:$8 sps:$4 sm:$0xff]  }
 0x84e   :  { %10149 = vrsqrt.f32 %v1797_v21  ;;  %v9224_v21 = vld [vmem:[%s10623_s11 + $0x10] ss:$8 sps:$4 sm:$0xff]   ;;  %2447 = vmatprep.subr.bf16.mxu0 %v9226_v7 }
 0x84f   :  { %10151 = vrsqrt.f32 %v1798_v22  ;;  %v9229_v22 = vld [vmem:[%s10623_s11 + $0x24] ss:$8 sps:$4 sm:$0xff]  }
 0x851   :  { %2448 = vmatpush1.bf16.msra.mxu0 %v9224_v21 }
 0x852   :  { %2449 = vmatprep.subr.bf16.mxu0 %v9229_v22 }
 0x858   :  { %v10150_v23 = vpop.eup %10149 }
 0x859   :  { %v10152_v24 = vpop.eup %10151 }
 0x85a   :  { %v1803_v25 = vcombine.low %v10150_v23, %v10152_v24  ;;  %v9227_v23 = vld [vmem:[%s10623_s11 + $0x20] ss:$8 sps:$4 sm:$0xff]   ;;  %v9232_v24 = vld [vmem:[%s10623_s11 + $0x34] ss:$8 sps:$4 sm:$0xff]  }
 0x85b   :  { %2450 = vmatpush1.bf16.msra.mxu0 %v9227_v23 }
 0x85c   :  { %v1810_v26 = vrot.slane %v1803_v25, %v10266_v15  ;;  %v9230_v25 = vld [vmem:[%s10623_s11 + $0x30] ss:$8 sps:$4 sm:$0xff]   ;;  %2451 = vmatprep.subr.bf16.mxu0 %v9232_v24 }
 0x85e   :  { %v1817_v28 = vrot.slane %v1810_v26, %v10266_v15  ;;  %v9235_v26 = vld [vmem:[%s10623_s11 + $0x44] ss:$8 sps:$4 sm:$0xff]  }
 0x85f   :  { %2452 = vmatpush1.bf16.msra.mxu0 %v9230_v25 }
 0x860   :  { %v1819_v29 = vmul.f32 %v1817_v28, %v10508_v41  ;;  %v9233_v28 = vld [vmem:[%s10623_s11 + $0x40] ss:$8 sps:$4 sm:$0xff]   ;;  %2453 = vmatprep.subr.bf16.mxu0 %v9235_v26 }
 0x862   :  { %v1824_v30 = vrot.slane %v1819_v29, %v10305_v58  ;;  %v1828_v31 = vrot.slane %v1819_v29, %v10512_v43  ;;  %v9238_v29 = vld [vmem:[%s10623_s11 + $0x54] ss:$8 sps:$4 sm:$0xff]  }
 0x863   :  { %2454 = vmatpush1.bf16.msra.mxu0 %v9233_v28 }
 0x864   :  { %v1831_v32 = vmul.f32 %v1824_v30, %v1771_v9  ;;  %v1832_v33 = vmul.f32 %v1828_v31, %v1772_v11  ;;  %v1853_v34 = vmul.f32 %v1828_v31, %v1752_v39  ;;  %v1852_v35 = vmul.f32 %v1824_v30, %v1750_v36  ;;  %v9206_v9 = vld [vmem:[%s10567_s7 + $0xb0] ss:$8 sps:$4 sm:$0xff]   ;;  %v9209_v11 = vld [vmem:[%s10567_s7 + $0xc0] ss:$8 sps:$4 sm:$0xff]   ;;  %2455 = vmatprep.subr.bf16.mxu0 %v9238_v29  ;;  %v9241_v31 = vld [vmem:[%s10623_s11 + $0x64] ss:$8 sps:$4 sm:$0xff]  }
 0x865   :  { %v9236_v30 = vld [vmem:[%s10623_s11 + $0x50] ss:$8 sps:$4 sm:$0xff]  }
 0x866   :  { %v1835_v37 = vcombine.low %v1831_v32, %v1832_v33  ;;  %v9239_v32 = vld [vmem:[%s10623_s11 + $0x60] ss:$8 sps:$4 sm:$0xff]   ;;  %v9244_v33 = vld [vmem:[%s10623_s11 + $0x74] ss:$8 sps:$4 sm:$0xff]  }
 0x867   :  { %2456 = vmatpush1.bf16.msra.mxu0 %v9236_v30 }
 0x868   :  { %v1842_v38 = vrot.slane %v1835_v37, %v10266_v15  ;;  %2457 = vmatprep.subr.bf16.mxu0 %v9241_v31  ;;  %v9245_v37 = vld [vmem:[%s10623_s11 + $0x80] ss:$8 sps:$4 sm:$0xff]  }
 0x86a   :  { %v1849_v40 = vrot.slane %v1842_v38, %v10266_v15  ;;  %v9250_v38 = vld [vmem:[%s10623_s11 + $0x94] ss:$8 sps:$4 sm:$0xff]  }
 0x86b   :  { %2458 = vmatpush1.bf16.msra.mxu0 %v9239_v32 }
 0x86c   :  { %v1851_v42 = vsub.f32 %v10522_v54, %v1849_v40  ;;  %v9176_v54 = vld [vmem:[%s10567_s7 + $0x10] ss:$8 sps:$4 sm:$0xff]   ;;  %2459 = vmatprep.subr.bf16.mxu0 %v9244_v33  ;;  %s7950_s7 = sld [smem:[%s11575_s0 + %s10239_s4]]  }
 0x86d   :  { %v9248_v40 = vld [vmem:[%s10623_s11 + $0x90] ss:$8 sps:$4 sm:$0xff]  }
 0x86e   :  { %v1862_v41 = vrot.slane %v1851_v42, %v10512_v43  ;;  %v1858_v44 = vrot.slane %v1851_v42, %v10305_v58  ;;  %v9253_v42 = vld [vmem:[%s10623_s11 + $0xa4] ss:$8 sps:$4 sm:$0xff]  }
 0x870   :  { %v1866_v45 = vadd.f32 %v1862_v41, %v1853_v34  ;;  %v1865_v46 = vadd.f32 %v1858_v44, %v1852_v35  ;;  %v9242_v34 = vld [vmem:[%s10623_s11 + $0x70] ss:$8 sps:$4 sm:$0xff]   ;;  %v9247_v35 = vld [vmem:[%s10623_s11 + $0x84] ss:$8 sps:$4 sm:$0xff]   ;;  %v9251_v41 = vld [vmem:[%s10623_s11 + $0xa0] ss:$8 sps:$4 sm:$0xff]  }
 0x871   :  { %2460 = vmatpush1.bf16.msra.mxu0 %v9242_v34  ;;  %v9256_v44 = vld [vmem:[%s10623_s11 + $0xb4] ss:$8 sps:$4 sm:$0xff]  }
 0x872   :  { %v1868_v47 = vmax.f32 %v1866_v45, 0.0  ;;  %v1867_v39 = vmax.f32 %v1865_v46, 0.0  ;;  %2461 = vmatprep.subr.bf16.mxu0 %v9247_v35  ;;  %v9254_v45 = vld [vmem:[%s10623_s11 + $0xb0] ss:$8 sps:$4 sm:$0xff]   ;;  %v9259_v46 = vld [vmem:[%s10623_s11 + $0xc4] ss:$8 sps:$4 sm:$0xff]  }
 0x874   :  { %v1969_v36 = vpack.c.bf16 %v1868_v47, %v1868_v47  ;;  %v10586_v49 = vpack.c.bf16 %v1867_v39, %v1867_v39  ;;  %v9257_v47 = vld [vmem:[%s10623_s11 + $0xc0] ss:$8 sps:$4 sm:$0xff]   ;;  %v9262_v39 = vld [vmem:[%s10623_s11 + $0xd4] ss:$8 sps:$4 sm:$0xff]  }
 0x875   :  { %2462 = vmatpush1.bf16.msra.mxu0 %v9245_v37 }
 0x876   :  { %2162 = vmatprep.mubr.bf16.mxu1 %v1969_v36  ;;  %2463 = vmatprep.subr.bf16.mxu0 %v9250_v38 }
 0x877   :  { %2163 = vmatmul.mubr.bf16.vlgmr.msra.gmra.mrb[20].mxu1 %v10586_v49 }
 0x878   :  { %2759 = vmatpush1.bf16.msra.mxu1 %v9173_v48  ;;  %2790 = vmatprep.mubr.bf16.mxu1 %v1969_v36  ;;  %v9260_v36 = vld [vmem:[%s10623_s11 + $0xd0] ss:$8 sps:$4 sm:$0xff]   ;;  %v9265_v48 = vld [vmem:[%s10623_s11 + $0xe4] ss:$8 sps:$4 sm:$0xff]  }
 0x879   :  { %2760 = vmatprep.subr.bf16.mxu1 %v9178_v50  ;;  %2464 = vmatpush1.bf16.msra.mxu0 %v9248_v40  ;;  %v9268_v50 = vld [vmem:[%s10623_s11 + $0xf4] ss:$8 sps:$4 sm:$0xff]  }
 0x87a   :  { %2465 = vmatprep.subr.bf16.mxu0 %v9253_v42 }
 0x87c   :  { %2761 = vmatpush1.bf16.msra.mxu1 %v9176_v54  ;;  %v9266_v54 = vld [vmem:[%s10623_s11 + $0xf0] ss:$8 sps:$4 sm:$0xff]  }
 0x87d   :  { %2762 = vmatprep.subr.bf16.mxu1 %v9181_v51  ;;  %2466 = vmatpush1.bf16.msra.mxu0 %v9251_v41 }
 0x87e   :  { %2467 = vmatprep.subr.bf16.mxu0 %v9256_v44  ;;  %v10670_v44 = vld [vmem:[%s7938_s15] sm:$0x3] }
 0x880   :  { %2763 = vmatpush1.bf16.msra.mxu1 %v9179_v53 }
 0x881   :  { %2764 = vmatprep.subr.bf16.mxu1 %v9184_v56  ;;  %2468 = vmatpush1.bf16.msra.mxu0 %v9254_v45 }
 0x882   :  { %2469 = vmatprep.subr.bf16.mxu0 %v9259_v46 }
 0x884   :  { %2765 = vmatpush1.bf16.msra.mxu1 %v9182_v59 }
 0x885   :  { %2766 = vmatprep.subr.bf16.mxu1 %v9187_v60  ;;  %2470 = vmatpush1.bf16.msra.mxu0 %v9257_v47 }
 0x886   :  { %2471 = vmatprep.subr.bf16.mxu0 %v9262_v39 }
 0x888   :  { %2767 = vmatpush1.bf16.msra.mxu1 %v9185_v62 }
 0x889   :  { %2768 = vmatprep.subr.bf16.mxu1 %v9190_v27  ;;  %2472 = vmatpush1.bf16.msra.mxu0 %v9260_v36 }
 0x88a   :  { %2473 = vmatprep.subr.bf16.mxu0 %v9265_v48 }
 0x88c   :  { %2769 = vmatpush1.bf16.msra.mxu1 %v9188_v57 }
 0x88d   :  { %2770 = vmatprep.subr.bf16.mxu1 %v9193_v61 }
 0x890   :  { %2771 = vmatpush1.bf16.msra.mxu1 %v9191_v63 }
 0x891   :  { %2772 = vmatprep.subr.bf16.mxu1 %v9196_v55 }
 0x894   :  { %2773 = vmatpush1.bf16.msra.mxu1 %v9194_v0 }
 0x895   :  { %2774 = vmatprep.subr.bf16.mxu1 %v9199_v52 }
 0x898   :  { %2775 = vmatpush1.bf16.msra.mxu1 %v9197_v1 }
 0x899   :  { %2776 = vmatprep.subr.bf16.mxu1 %v9202_v2 }
 0x89c   :  { %2777 = vmatpush1.bf16.msra.mxu1 %v9200_v3 }
 0x89d   :  { %2778 = vmatprep.subr.bf16.mxu1 %v9205_v4 }
 0x8a0   :  { %2779 = vmatpush1.bf16.msra.mxu1 %v9203_v5 }
 0x8a1   :  { %2780 = vmatprep.subr.bf16.mxu1 %v9208_v8 }
 0x8a4   :  { %2781 = vmatpush1.bf16.msra.mxu1 %v9206_v9 }
 0x8a5   :  { %2782 = vmatprep.subr.bf16.mxu1 %v9211_v10 }
 0x8a8   :  { %2783 = vmatpush1.bf16.msra.mxu1 %v9209_v11 }
 0x8a9   :  { %2784 = vmatprep.subr.bf16.mxu1 %v9214_v13 }
 0x8ac   :  { %2785 = vmatpush1.bf16.msra.mxu1 %v9212_v16 }
 0x8ad   :  { %2786 = vmatprep.subr.bf16.mxu1 %v9217_v17 }
 0x8b0   :  { %2787 = vmatpush1.bf16.msra.mxu1 %v9215_v18 }
 0x8b1   :  { %2788 = vmatprep.subr.bf16.mxu1 %v9220_v19 }
 0x8b4   :  { %2789 = vmatpush1.bf16.msra.mxu1 %v9218_v6 }
 0x8b7   :  { %2791 = vmatmul.mubr.bf16.vlgmr.msra.gmra.mrb[24].mxu1 %v10586_v49  ;;  %v9263_v49 = vld [vmem:[%s10623_s11 + $0xe0] ss:$8 sps:$4 sm:$0xff]  }
 0x8b8   :  { %2474 = vmatpush1.bf16.msra.mxu0 %v9263_v49 }
 0x8b9   :  { %2475 = vmatprep.subr.bf16.mxu0 %v9268_v50 }
 0x8bc   :  { %2476 = vmatpush1.bf16.msra.mxu0 %v9266_v54 }
 0x94a   :  { %v10657_v51 = vpop.f32.mrb[20].mxu1 }
 0x94b   :  { %v2171_v53 = vsel %vm694_vm3, %v10657_v51, 0.0  ;;  %v2187_v56 = vmul.f32 %v10657_v51, %v10657_v51  ;;  %v2166_v59 = vpop.f32.mrb[21].mxu1 }
 0x94c   :  { %v2172_v60 = vrot.slane %v2171_v53, 4  ;;  %v2178_v62 = vsel %vm694_vm3, %v2166_v59, 0.0  ;;  %v2188_v27 = vmul.f32 %v2166_v59, %v2166_v59  ;;  %v2168_v57 = vpop.f32.mrb[22].mxu1 }
 0x94d   :  { %v2189_v61 = vsel %vm694_vm3, %v2187_v56, 0.0  ;;  %v2179_v63 = vrot.slane %v2178_v62, 4  ;;  %v2169_v55 = vpop.f32.mrb[23].mxu1  ;;  %v10681_v56 = vld [vmem:[%s7939_s19] sm:$0x3] }
 0x94e   :  { %v2173_v0 = vadd.f32 %v2172_v60, %v2171_v53  ;;  %v2190_v52 = vrot.slane %v2189_v61, 4  ;;  %v2196_v1 = vsel %vm694_vm3, %v2188_v27, 0.0 }
 0x94f   :  { %v2180_v2 = vadd.f32 %v2179_v63, %v2178_v62  ;;  %v2197_v3 = vrot.slane %v2196_v1, 4 }
 0x950   :  { %v2174_v4 = vrot.slane %v2173_v0, 2  ;;  %v2191_v5 = vadd.f32 %v2190_v52, %v2189_v61 }
 0x951   :  { %v2181_v8 = vrot.slane %v2180_v2, 2  ;;  %v2198_v9 = vadd.f32 %v2197_v3, %v2196_v1 }
 0x952   :  { %v2175_v10 = vadd.f32 %v2174_v4, %v2173_v0  ;;  %v2192_v11 = vrot.slane %v2191_v5, 2  ;;  %v9271_v4 = vld [vmem:[%s10694_s23 + $0x4] ss:$16 sps:$4 sm:$0xff]  }
 0x953   :  { %v2182_v13 = vadd.f32 %v2181_v8, %v2180_v2  ;;  %v2199_v16 = vrot.slane %v2198_v9, 2  ;;  %3332 = vmatprep.subr.bf16.mxu0 %v9271_v4  ;;  %v9272_v8 = vld [vmem:[%s10694_s23 + $0x8] ss:$16 sps:$4 sm:$0xff]   ;;  %v9355_v4 = vld [vmem:[%s10694_s23 + $0x1c4] ss:$16 sps:$4 sm:$0xff]  }
 0x954   :  { %v2176_v17 = vrot.slane %v2175_v10, 1  ;;  %v2193_v18 = vadd.f32 %v2192_v11, %v2191_v5  ;;  %v9269_v5 = vld [vmem:[%s10694_s23] ss:$16 sps:$4 sm:$0xff]   ;;  %v9280_v11 = vld [vmem:[%s10694_s23 + $0x2c] ss:$16 sps:$4 sm:$0xff]  }
 0x955   :  { %v2183_v19 = vrot.slane %v2182_v13, 1  ;;  %v2200_v6 = vadd.f32 %v2199_v16, %v2198_v9  ;;  %v9274_v9 = vld [vmem:[%s10694_s23 + $0xc] ss:$16 sps:$4 sm:$0xff]   ;;  %v9278_v16 = vld [vmem:[%s10694_s23 + $0x28] ss:$16 sps:$4 sm:$0xff]  }
 0x956   :  { %v2177_v20 = vadd.f32 %v2176_v17, %v2175_v10  ;;  %v2194_v14 = vrot.slane %v2193_v18, 1  ;;  %3373 = vmatprep.subr.bf16.mxu1 %v9274_v9  ;;  %v9277_v10 = vld [vmem:[%s10694_s23 + $0x24] ss:$16 sps:$4 sm:$0xff]  }
 0x957   :  { %v2184_v7 = vadd.f32 %v2183_v19, %v2182_v13  ;;  %v2201_v21 = vrot.slane %v2200_v6, 1  ;;  %3374 = vmatpush1.bf16.msra.mxu1 %v9272_v8  ;;  %v9275_v13 = vld [vmem:[%s10694_s23 + $0x20] ss:$16 sps:$4 sm:$0xff]   ;;  %v9283_v17 = vld [vmem:[%s10694_s23 + $0x44] ss:$16 sps:$4 sm:$0xff]  }
 0x958   :  { %v2185_v22 = vmul.f32 0.5, %v2177_v20  ;;  %v2195_v23 = vadd.f32 %v2194_v14, %v2193_v18  ;;  %3375 = vmatprep.subr.bf16.mxu1 %v9280_v11  ;;  %v9286_v18 = vld [vmem:[%s10694_s23 + $0x4c] ss:$16 sps:$4 sm:$0xff]   ;;  %v9281_v19 = vld [vmem:[%s10694_s23 + $0x40] ss:$16 sps:$4 sm:$0xff]  }
 0x959   :  { %v2186_v24 = vmul.f32 0.5, %v2184_v7  ;;  %v2202_v25 = vadd.f32 %v2201_v21, %v2200_v6  ;;  %v9284_v6 = vld [vmem:[%s10694_s23 + $0x48] ss:$16 sps:$4 sm:$0xff]   ;;  %v9289_v20 = vld [vmem:[%s10694_s23 + $0x64] ss:$16 sps:$4 sm:$0xff]  }
 0x95a   :  { %v2203_v26 = vmul.f32 0.5, %v2195_v23  ;;  %v2205_v28 = vmul.f32 %v2185_v22, %v2185_v22  ;;  %v9292_v14 = vld [vmem:[%s10694_s23 + $0x6c] ss:$16 sps:$4 sm:$0xff]   ;;  %v9287_v7 = vld [vmem:[%s10694_s23 + $0x60] ss:$16 sps:$4 sm:$0xff]  }
 0x95b   :  { %v2204_v29 = vmul.f32 0.5, %v2202_v25  ;;  %v2206_v30 = vmul.f32 %v2186_v24, %v2186_v24  ;;  %3376 = vmatpush1.bf16.msra.mxu1 %v9278_v16  ;;  %v9290_v21 = vld [vmem:[%s10694_s23 + $0x68] ss:$16 sps:$4 sm:$0xff]   ;;  %v9298_v23 = vld [vmem:[%s10694_s23 + $0x8c] ss:$16 sps:$4 sm:$0xff]  }
 0x95c   :  { %v2207_v31 = vsub.f32 %v2203_v26, %v2205_v28  ;;  %3377 = vmatprep.subr.bf16.mxu1 %v9286_v18  ;;  %v9296_v25 = vld [vmem:[%s10694_s23 + $0x88] ss:$16 sps:$4 sm:$0xff]   ;;  %v9301_v26 = vld [vmem:[%s10694_s23 + $0xa4] ss:$16 sps:$4 sm:$0xff]   ;;  %v9304_v28 = vld [vmem:[%s10694_s23 + $0xac] ss:$16 sps:$4 sm:$0xff]  }
 0x95d   :  { %v2208_v32 = vsub.f32 %v2204_v29, %v2206_v30  ;;  %v9299_v29 = vld [vmem:[%s10694_s23 + $0xa0] ss:$16 sps:$4 sm:$0xff]   ;;  %v9302_v30 = vld [vmem:[%s10694_s23 + $0xa8] ss:$16 sps:$4 sm:$0xff]   ;;  %v9358_v8 = vld [vmem:[%s10694_s23 + $0x1cc] ss:$16 sps:$4 sm:$0xff]  }
 0x95e   :  { %v2209_v33 = vmax.f32 %v2207_v31, 0.0  ;;  %v9307_v31 = vld [vmem:[%s10694_s23 + $0xc4] ss:$16 sps:$4 sm:$0xff]   ;;  %v9364_v11 = vld [vmem:[%s10694_s23 + $0x1ec] ss:$16 sps:$4 sm:$0xff]  }
 0x95f   :  { %v2210_v34 = vmax.f32 %v2208_v32, 0.0  ;;  %3378 = vmatpush1.bf16.msra.mxu1 %v9284_v6  ;;  %v9310_v32 = vld [vmem:[%s10694_s23 + $0xcc] ss:$16 sps:$4 sm:$0xff]   ;;  %v9361_v9 = vld [vmem:[%s10694_s23 + $0x1e4] ss:$16 sps:$4 sm:$0xff]  }
 0x960   :  { %v2211_v35 = vadd.f32 1e-05, %v2209_v33  ;;  %3379 = vmatprep.subr.bf16.mxu1 %v9292_v14  ;;  %v9305_v33 = vld [vmem:[%s10694_s23 + $0xc0] ss:$16 sps:$4 sm:$0xff]   ;;  %v9362_v16 = vld [vmem:[%s10694_s23 + $0x1e8] ss:$16 sps:$4 sm:$0xff]  }
 0x961   :  { %v2212_v37 = vadd.f32 1e-05, %v2210_v34  ;;  %v9308_v34 = vld [vmem:[%s10694_s23 + $0xc8] ss:$16 sps:$4 sm:$0xff]  }
 0x962   :  { %10153 = vrsqrt.f32 %v2211_v35  ;;  %v9313_v35 = vld [vmem:[%s10694_s23 + $0xe4] ss:$16 sps:$4 sm:$0xff]  }
 0x963   :  { %10155 = vrsqrt.f32 %v2212_v37  ;;  %3380 = vmatpush1.bf16.msra.mxu1 %v9290_v21  ;;  %v9316_v37 = vld [vmem:[%s10694_s23 + $0xec] ss:$16 sps:$4 sm:$0xff]  }
 0x964   :  { %3381 = vmatprep.subr.bf16.mxu1 %v9298_v23 }
 0x967   :  { %3382 = vmatpush1.bf16.msra.mxu1 %v9296_v25 }
 0x968   :  { %3383 = vmatprep.subr.bf16.mxu1 %v9304_v28 }
 0x96b   :  { %3384 = vmatpush1.bf16.msra.mxu1 %v9302_v30 }
 0x96c   :  { %v10154_v38 = vpop.eup %10153  ;;  %3385 = vmatprep.subr.bf16.mxu1 %v9310_v32 }
 0x96d   :  { %v10156_v40 = vpop.eup %10155 }
 0x96e   :  { %v2217_v42 = vcombine.low %v10154_v38, %v10156_v40  ;;  %v9311_v38 = vld [vmem:[%s10694_s23 + $0xe0] ss:$16 sps:$4 sm:$0xff]   ;;  %v9314_v40 = vld [vmem:[%s10694_s23 + $0xe8] ss:$16 sps:$4 sm:$0xff]  }
 0x96f   :  { %3386 = vmatpush1.bf16.msra.mxu1 %v9308_v34 }
 0x970   :  { %v2224_v41 = vrot.slane %v2217_v42, %v10266_v15  ;;  %3387 = vmatprep.subr.bf16.mxu1 %v9316_v37  ;;  %v9319_v42 = vld [vmem:[%s10694_s23 + $0x104] ss:$16 sps:$4 sm:$0xff]  }
 0x972   :  { %v2231_v45 = vrot.slane %v2224_v41, %v10266_v15  ;;  %v9322_v41 = vld [vmem:[%s10694_s23 + $0x10c] ss:$16 sps:$4 sm:$0xff]  }
 0x973   :  { %3388 = vmatpush1.bf16.msra.mxu1 %v9314_v40 }
 0x974   :  { %v2233_v46 = vmul.f32 %v2231_v45, %v10670_v44  ;;  %v9317_v45 = vld [vmem:[%s10694_s23 + $0x100] ss:$16 sps:$4 sm:$0xff]   ;;  %3389 = vmatprep.subr.bf16.mxu1 %v9322_v41 }
 0x976   :  { %v2238_v47 = vrot.slane %v2233_v46, %v10305_v58  ;;  %v2242_v39 = vrot.slane %v2233_v46, %v10512_v43  ;;  %v9320_v46 = vld [vmem:[%s10694_s23 + $0x108] ss:$16 sps:$4 sm:$0xff]  }
 0x977   :  { %3390 = vmatpush1.bf16.msra.mxu1 %v9320_v46 }
 0x978   :  { %v2245_v36 = vmul.f32 %v2238_v47, %v2185_v22  ;;  %v2246_v48 = vmul.f32 %v2242_v39, %v2186_v24  ;;  %v2267_v49 = vmul.f32 %v2242_v39, %v2166_v59  ;;  %v2266_v50 = vmul.f32 %v2238_v47, %v10657_v51  ;;  %v9295_v22 = vld [vmem:[%s10694_s23 + $0x84] ss:$16 sps:$4 sm:$0xff]   ;;  %v9293_v24 = vld [vmem:[%s10694_s23 + $0x80] ss:$16 sps:$4 sm:$0xff]   ;;  %v9328_v39 = vld [vmem:[%s10694_s23 + $0x12c] ss:$16 sps:$4 sm:$0xff]  }
 0x979   :  { %v9325_v47 = vld [vmem:[%s10694_s23 + $0x124] ss:$16 sps:$4 sm:$0xff]   ;;  %3391 = vmatprep.subr.bf16.mxu1 %v9328_v39 }
 0x97a   :  { %v2249_v54 = vcombine.low %v2245_v36, %v2246_v48  ;;  %v9323_v36 = vld [vmem:[%s10694_s23 + $0x120] ss:$16 sps:$4 sm:$0xff]   ;;  %v9326_v48 = vld [vmem:[%s10694_s23 + $0x128] ss:$16 sps:$4 sm:$0xff]  }
 0x97b   :  { %3392 = vmatpush1.bf16.msra.mxu1 %v9326_v48 }
 0x97c   :  { %v2256_v53 = vrot.slane %v2249_v54, %v10266_v15  ;;  %v9329_v54 = vld [vmem:[%s10694_s23 + $0x140] ss:$16 sps:$4 sm:$0xff]  }
 0x97e   :  { %v2263_v60 = vrot.slane %v2256_v53, %v10266_v15  ;;  %v9332_v53 = vld [vmem:[%s10694_s23 + $0x148] ss:$16 sps:$4 sm:$0xff]  }
 0x980   :  { %v2265_v62 = vsub.f32 %v10681_v56, %v2263_v60  ;;  %v9337_v60 = vld [vmem:[%s10694_s23 + $0x164] ss:$16 sps:$4 sm:$0xff]  }
 0x982   :  { %v2276_v27 = vrot.slane %v2265_v62, %v10512_v43  ;;  %v2272_v57 = vrot.slane %v2265_v62, %v10305_v58  ;;  %v9340_v62 = vld [vmem:[%s10694_s23 + $0x16c] ss:$16 sps:$4 sm:$0xff]  }
 0x984   :  { %v2280_v61 = vadd.f32 %v2276_v27, %v2267_v49  ;;  %v2279_v63 = vadd.f32 %v2272_v57, %v2266_v50  ;;  %v9331_v49 = vld [vmem:[%s10694_s23 + $0x144] ss:$16 sps:$4 sm:$0xff]   ;;  %v9334_v50 = vld [vmem:[%s10694_s23 + $0x14c] ss:$16 sps:$4 sm:$0xff]   ;;  %v9335_v27 = vld [vmem:[%s10694_s23 + $0x160] ss:$16 sps:$4 sm:$0xff]  }
 0x985   :  { %3393 = vmatprep.subr.bf16.mxu1 %v9334_v50  ;;  %v9338_v57 = vld [vmem:[%s10694_s23 + $0x168] ss:$16 sps:$4 sm:$0xff]  }
 0x986   :  { %v2282_v55 = vmax.f32 %v2280_v61, 0.0  ;;  %v2281_v0 = vmax.f32 %v2279_v63, 0.0  ;;  %3394 = vmatpush1.bf16.msra.mxu1 %v9332_v53  ;;  %v9343_v61 = vld [vmem:[%s10694_s23 + $0x184] ss:$16 sps:$4 sm:$0xff]   ;;  %v9346_v63 = vld [vmem:[%s10694_s23 + $0x18c] ss:$16 sps:$4 sm:$0xff]  }
 0x987   :  { %3395 = vmatprep.subr.bf16.mxu1 %v9340_v62 }
 0x988   :  { %v2284_v59 = vpack.c.bf16 %v2282_v55, %v2282_v55  ;;  %v2283_v52 = vpack.c.bf16 %v2281_v0, %v2281_v0  ;;  %v9341_v55 = vld [vmem:[%s10694_s23 + $0x180] ss:$16 sps:$4 sm:$0xff]   ;;  %v9344_v0 = vld [vmem:[%s10694_s23 + $0x188] ss:$16 sps:$4 sm:$0xff]  }
 0x98a   :  { %v10687_v51 = vpop.f32.mrb[24].mxu1  ;;  %2477 = vmatprep.mubr.bf16.mxu0 %v2284_v59  ;;  %3396 = vmatpush1.bf16.msra.mxu1 %v9338_v57  ;;  %v9349_v59 = vld [vmem:[%s10694_s23 + $0x1a4] ss:$16 sps:$4 sm:$0xff]  }
 0x98b   :  { %v10689_v1 = vpop.f32.mrb[25].mxu1  ;;  %2478 = vmatmul.mubr.bf16.vlgmr.msra.gmra.mrb[20].mxu0 %v2283_v52  ;;  %3397 = vmatprep.subr.bf16.mxu1 %v9346_v63  ;;  %v9352_v52 = vld [vmem:[%s10694_s23 + $0x1ac] ss:$16 sps:$4 sm:$0xff]  }
 0x98c   :  { %v2796_v2 = vpop.f32.mrb[26].mxu1  ;;  %3333 = vmatpush1.bf16.msra.mxu0 %v9269_v5  ;;  %v9353_v5 = vld [vmem:[%s10694_s23 + $0x1c0] ss:$16 sps:$4 sm:$0xff]  }
 0x98d   :  { %v2797_v3 = vpop.f32.mrb[27].mxu1  ;;  %3334 = vmatprep.subr.bf16.mxu0 %v9277_v10  ;;  %v9347_v2 = vld [vmem:[%s10694_s23 + $0x1a0] ss:$16 sps:$4 sm:$0xff]   ;;  %v9356_v10 = vld [vmem:[%s10694_s23 + $0x1c8] ss:$16 sps:$4 sm:$0xff]  }
 0x98e   :  { %3398 = vmatpush1.bf16.msra.mxu1 %v9344_v0  ;;  %v9350_v3 = vld [vmem:[%s10694_s23 + $0x1a8] ss:$16 sps:$4 sm:$0xff]  }
 0x98f   :  { %3399 = vmatprep.subr.bf16.mxu1 %v9352_v52 }
 0x990   :  { %3335 = vmatpush1.bf16.msra.mxu0 %v9275_v13  ;;  %v9359_v13 = vld [vmem:[%s10694_s23 + $0x1e0] ss:$16 sps:$4 sm:$0xff]  }
 0x991   :  { %3336 = vmatprep.subr.bf16.mxu0 %v9283_v17 }
 0x992   :  { %3400 = vmatpush1.bf16.msra.mxu1 %v9350_v3 }
 0x993   :  { %3401 = vmatprep.subr.bf16.mxu1 %v9358_v8 }
 0x994   :  { %3337 = vmatpush1.bf16.msra.mxu0 %v9281_v19 }
 0x995   :  { %3338 = vmatprep.subr.bf16.mxu0 %v9289_v20 }
 0x996   :  { %3402 = vmatpush1.bf16.msra.mxu1 %v9356_v10 }
 0x997   :  { %3403 = vmatprep.subr.bf16.mxu1 %v9364_v11 }
 0x998   :  { %3339 = vmatpush1.bf16.msra.mxu0 %v9287_v7 }
 0x999   :  { %3340 = vmatprep.subr.bf16.mxu0 %v9295_v22 }
 0x99a   :  { %3404 = vmatpush1.bf16.msra.mxu1 %v9362_v16 }
 0x99c   :  { %3341 = vmatpush1.bf16.msra.mxu0 %v9293_v24 }
 0x99d   :  { %3342 = vmatprep.subr.bf16.mxu0 %v9301_v26 }
 0x9a0   :  { %3343 = vmatpush1.bf16.msra.mxu0 %v9299_v29 }
 0x9a1   :  { %3344 = vmatprep.subr.bf16.mxu0 %v9307_v31 }
 0x9a4   :  { %3345 = vmatpush1.bf16.msra.mxu0 %v9305_v33 }
 0x9a5   :  { %3346 = vmatprep.subr.bf16.mxu0 %v9313_v35 }
 0x9a8   :  { %3347 = vmatpush1.bf16.msra.mxu0 %v9311_v38 }
 0x9a9   :  { %3348 = vmatprep.subr.bf16.mxu0 %v9319_v42 }
 0x9ac   :  { %3349 = vmatpush1.bf16.msra.mxu0 %v9317_v45 }
 0x9ad   :  { %3350 = vmatprep.subr.bf16.mxu0 %v9325_v47 }
 0x9b0   :  { %3351 = vmatpush1.bf16.msra.mxu0 %v9323_v36 }
 0x9b1   :  { %3352 = vmatprep.subr.bf16.mxu0 %v9331_v49 }
 0x9b4   :  { %3353 = vmatpush1.bf16.msra.mxu0 %v9329_v54 }
 0x9b5   :  { %3354 = vmatprep.subr.bf16.mxu0 %v9337_v60 }
 0x9b8   :  { %3355 = vmatpush1.bf16.msra.mxu0 %v9335_v27 }
 0x9b9   :  { %3356 = vmatprep.subr.bf16.mxu0 %v9343_v61 }
 0x9bc   :  { %3357 = vmatpush1.bf16.msra.mxu0 %v9341_v55 }
 0x9bd   :  { %3358 = vmatprep.subr.bf16.mxu0 %v9349_v59 }
 0x9c0   :  { %3359 = vmatpush1.bf16.msra.mxu0 %v9347_v2 }
 0x9c1   :  { %3360 = vmatprep.subr.bf16.mxu0 %v9355_v4 }
 0x9c4   :  { %3361 = vmatpush1.bf16.msra.mxu0 %v9353_v5 }
 0x9c5   :  { %3362 = vmatprep.subr.bf16.mxu0 %v9361_v9 }
 0x9c8   :  { %3363 = vmatpush1.bf16.msra.mxu0 %v9359_v13 }
 0xa5e   :  { %v2479_v17 = vpop.f32.mrb[20].mxu0 }
 0xa5f   :  { %v2486_v18 = vsel %vm694_vm3, %v2479_v17, 0.0  ;;  %v2502_v19 = vmul.f32 %v2479_v17, %v2479_v17  ;;  %v2481_v6 = vpop.f32.mrb[21].mxu0 }
 0xa60   :  { %v2487_v20 = vrot.slane %v2486_v18, 4  ;;  %v2493_v14 = vsel %vm694_vm3, %v2481_v6, 0.0  ;;  %v2503_v7 = vmul.f32 %v2481_v6, %v2481_v6  ;;  %v2483_v21 = vpop.f32.mrb[22].mxu0 }
 0xa61   :  { %v2504_v22 = vsel %vm694_vm3, %v2502_v19, 0.0  ;;  %v2494_v23 = vrot.slane %v2493_v14, 4  ;;  %v2484_v24 = vpop.f32.mrb[23].mxu0 }
 0xa62   :  { %v2488_v25 = vadd.f32 %v2487_v20, %v2486_v18  ;;  %v2505_v26 = vrot.slane %v2504_v22, 4  ;;  %v2511_v28 = vsel %vm694_vm3, %v2503_v7, 0.0 }
 0xa63   :  { %v2495_v29 = vadd.f32 %v2494_v23, %v2493_v14  ;;  %v2512_v30 = vrot.slane %v2511_v28, 4  ;;  %v1965_v23 = vld [vmem:[%s7937_s27] sm:$0x3] }
 0xa64   :  { %v2489_v31 = vrot.slane %v2488_v25, 2  ;;  %v2506_v32 = vadd.f32 %v2505_v26, %v2504_v22  ;;  %v2809_v26 = vrot.slane %v1965_v23, %v10512_v43 }
 0xa65   :  { %v2496_v33 = vrot.slane %v2495_v29, 2  ;;  %v2513_v34 = vadd.f32 %v2512_v30, %v2511_v28 }
 0xa66   :  { %v2490_v35 = vadd.f32 %v2489_v31, %v2488_v25  ;;  %v2507_v37 = vrot.slane %v2506_v32, 2  ;;  %v2805_v25 = vrot.slane %v1965_v23, %v10305_v58  ;;  %v9436_v23 = vld [vmem:[%s10784_s1 + $0x16c] ss:$16 sps:$4 sm:$0xff]  }
 0xa67   :  { %v2497_v38 = vadd.f32 %v2496_v33, %v2495_v29  ;;  %v2514_v40 = vrot.slane %v2513_v34, 2 }
 0xa68   :  { %v2491_v42 = vrot.slane %v2490_v35, 1  ;;  %v2508_v41 = vadd.f32 %v2507_v37, %v2506_v32  ;;  %v9368_v37 = vld [vmem:[%s10784_s1 + $0x8] ss:$16 sps:$4 sm:$0xff]  }
 0xa69   :  { %v2498_v45 = vrot.slane %v2497_v38, 1  ;;  %v2515_v46 = vadd.f32 %v2514_v40, %v2513_v34  ;;  %v9373_v40 = vld [vmem:[%s10784_s1 + $0x24] ss:$16 sps:$4 sm:$0xff]  }
 0xa6a   :  { %v2492_v47 = vadd.f32 %v2491_v42, %v2490_v35  ;;  %v2509_v39 = vrot.slane %v2508_v41, 1  ;;  %v9376_v42 = vld [vmem:[%s10784_s1 + $0x2c] ss:$16 sps:$4 sm:$0xff]  }
 0xa6b   :  { %v2499_v36 = vadd.f32 %v2498_v45, %v2497_v38  ;;  %v2516_v48 = vrot.slane %v2515_v46, 1  ;;  %v9370_v38 = vld [vmem:[%s10784_s1 + $0xc] ss:$16 sps:$4 sm:$0xff]   ;;  %v9374_v45 = vld [vmem:[%s10784_s1 + $0x28] ss:$16 sps:$4 sm:$0xff]  }
 0xa6c   :  { %v2500_v49 = vmul.f32 0.5, %v2492_v47  ;;  %v2510_v50 = vadd.f32 %v2509_v39, %v2508_v41  ;;  %4346 = vmatprep.subr.bf16.mxu1 %v9370_v38  ;;  %v9371_v41 = vld [vmem:[%s10784_s1 + $0x20] ss:$16 sps:$4 sm:$0xff]   ;;  %v9382_v47 = vld [vmem:[%s10784_s1 + $0x4c] ss:$16 sps:$4 sm:$0xff]  }
 0xa6d   :  { %v2501_v54 = vmul.f32 0.5, %v2499_v36  ;;  %v2517_v53 = vadd.f32 %v2516_v48, %v2515_v46  ;;  %v9379_v46 = vld [vmem:[%s10784_s1 + $0x44] ss:$16 sps:$4 sm:$0xff]   ;;  %v9377_v39 = vld [vmem:[%s10784_s1 + $0x40] ss:$16 sps:$4 sm:$0xff]  }
 0xa6e   :  { %v2518_v60 = vmul.f32 0.5, %v2510_v50  ;;  %v2520_v62 = vmul.f32 %v2500_v49, %v2500_v49  ;;  %v9380_v36 = vld [vmem:[%s10784_s1 + $0x48] ss:$16 sps:$4 sm:$0xff]   ;;  %v9385_v48 = vld [vmem:[%s10784_s1 + $0x64] ss:$16 sps:$4 sm:$0xff]  }
 0xa6f   :  { %v2519_v27 = vmul.f32 0.5, %v2517_v53  ;;  %v2521_v57 = vmul.f32 %v2501_v54, %v2501_v54  ;;  %v9383_v50 = vld [vmem:[%s10784_s1 + $0x60] ss:$16 sps:$4 sm:$0xff]   ;;  %v9391_v53 = vld [vmem:[%s10784_s1 + $0x84] ss:$16 sps:$4 sm:$0xff]  }
 0xa70   :  { %v2522_v61 = vsub.f32 %v2518_v60, %v2520_v62  ;;  %v9394_v60 = vld [vmem:[%s10784_s1 + $0x8c] ss:$16 sps:$4 sm:$0xff]   ;;  %v9389_v62 = vld [vmem:[%s10784_s1 + $0x80] ss:$16 sps:$4 sm:$0xff]   ;;  %v9458_v38 = vld [vmem:[%s10784_s1 + $0x1e8] ss:$16 sps:$4 sm:$0xff]  }
 0xa71   :  { %v2523_v63 = vsub.f32 %v2519_v27, %v2521_v57  ;;  %v9392_v27 = vld [vmem:[%s10784_s1 + $0x88] ss:$16 sps:$4 sm:$0xff]   ;;  %v9397_v57 = vld [vmem:[%s10784_s1 + $0xa4] ss:$16 sps:$4 sm:$0xff]  }
 0xa72   :  { %v2524_v55 = vmax.f32 %v2522_v61, 0.0  ;;  %v9400_v61 = vld [vmem:[%s10784_s1 + $0xac] ss:$16 sps:$4 sm:$0xff]  }
 0xa73   :  { %v2525_v0 = vmax.f32 %v2523_v63, 0.0  ;;  %v9395_v63 = vld [vmem:[%s10784_s1 + $0xa0] ss:$16 sps:$4 sm:$0xff]  }
 0xa74   :  { %v2526_v59 = vadd.f32 1e-05, %v2524_v55  ;;  %v9398_v55 = vld [vmem:[%s10784_s1 + $0xa8] ss:$16 sps:$4 sm:$0xff]  }
 0xa75   :  { %v2527_v52 = vadd.f32 1e-05, %v2525_v0  ;;  %v9403_v0 = vld [vmem:[%s10784_s1 + $0xc4] ss:$16 sps:$4 sm:$0xff]  }
 0xa76   :  { %10157 = vrsqrt.f32 %v2526_v59  ;;  %v9406_v59 = vld [vmem:[%s10784_s1 + $0xcc] ss:$16 sps:$4 sm:$0xff]  }
 0xa77   :  { %10159 = vrsqrt.f32 %v2527_v52  ;;  %v9401_v52 = vld [vmem:[%s10784_s1 + $0xc0] ss:$16 sps:$4 sm:$0xff]  }
 0xa80   :  { %v10158_v2 = vpop.eup %10157 }
 0xa81   :  { %v10160_v3 = vpop.eup %10159 }
 0xa82   :  { %v2532_v4 = vcombine.low %v10158_v2, %v10160_v3  ;;  %v9404_v2 = vld [vmem:[%s10784_s1 + $0xc8] ss:$16 sps:$4 sm:$0xff]   ;;  %v9409_v3 = vld [vmem:[%s10784_s1 + $0xe4] ss:$16 sps:$4 sm:$0xff]  }
 0xa84   :  { %v2539_v5 = vrot.slane %v2532_v4, %v10266_v15  ;;  %v9412_v4 = vld [vmem:[%s10784_s1 + $0xec] ss:$16 sps:$4 sm:$0xff]  }
 0xa86   :  { %v2546_v8 = vrot.slane %v2539_v5, %v10266_v15  ;;  %v9407_v5 = vld [vmem:[%s10784_s1 + $0xe0] ss:$16 sps:$4 sm:$0xff]  }
 0xa88   :  { %v2548_v9 = vmul.f32 %v2546_v8, %v10670_v44  ;;  %v9410_v8 = vld [vmem:[%s10784_s1 + $0xe8] ss:$16 sps:$4 sm:$0xff]  }
 0xa8a   :  { %v2553_v10 = vrot.slane %v2548_v9, %v10305_v58  ;;  %v2557_v11 = vrot.slane %v2548_v9, %v10512_v43  ;;  %v9415_v9 = vld [vmem:[%s10784_s1 + $0x104] ss:$16 sps:$4 sm:$0xff]  }
 0xa8c   :  { %v2560_v13 = vmul.f32 %v2553_v10, %v2500_v49  ;;  %v2561_v16 = vmul.f32 %v2557_v11, %v2501_v54  ;;  %v2581_v18 = vmul.f32 %v2553_v10, %v2479_v17  ;;  %v2582_v19 = vmul.f32 %v2557_v11, %v2481_v6  ;;  %v9388_v49 = vld [vmem:[%s10784_s1 + $0x6c] ss:$16 sps:$4 sm:$0xff]   ;;  %v9386_v54 = vld [vmem:[%s10784_s1 + $0x68] ss:$16 sps:$4 sm:$0xff]   ;;  %v9413_v11 = vld [vmem:[%s10784_s1 + $0x100] ss:$16 sps:$4 sm:$0xff]  }
 0xa8d   :  { %v9418_v10 = vld [vmem:[%s10784_s1 + $0x10c] ss:$16 sps:$4 sm:$0xff]  }
 0xa8e   :  { %v2564_v20 = vcombine.low %v2560_v13, %v2561_v16  ;;  %v9416_v13 = vld [vmem:[%s10784_s1 + $0x108] ss:$16 sps:$4 sm:$0xff]   ;;  %v9421_v16 = vld [vmem:[%s10784_s1 + $0x124] ss:$16 sps:$4 sm:$0xff]  }
 0xa90   :  { %v2571_v14 = vrot.slane %v2564_v20, %v10266_v15  ;;  %v9422_v20 = vld [vmem:[%s10784_s1 + $0x128] ss:$16 sps:$4 sm:$0xff]  }
 0xa92   :  { %v2578_v7 = vrot.slane %v2571_v14, %v10266_v15  ;;  %v9427_v14 = vld [vmem:[%s10784_s1 + $0x144] ss:$16 sps:$4 sm:$0xff]  }
 0xa94   :  { %v2580_v44 = vsub.f32 %v10681_v56, %v2578_v7  ;;  %v9430_v7 = vld [vmem:[%s10784_s1 + $0x14c] ss:$16 sps:$4 sm:$0xff]  }
 0xa96   :  { %v2587_v21 = vrot.slane %v2580_v44, %v10305_v58  ;;  %v2591_v22 = vrot.slane %v2580_v44, %v10512_v43  ;;  %v9425_v44 = vld [vmem:[%s10784_s1 + $0x140] ss:$16 sps:$4 sm:$0xff]  }
 0xa98   :  { %v2595_v24 = vadd.f32 %v2591_v22, %v2582_v19  ;;  %v2594_v17 = vadd.f32 %v2587_v21, %v2581_v18  ;;  %v9424_v18 = vld [vmem:[%s10784_s1 + $0x12c] ss:$16 sps:$4 sm:$0xff]   ;;  %v9419_v19 = vld [vmem:[%s10784_s1 + $0x120] ss:$16 sps:$4 sm:$0xff]   ;;  %v9428_v21 = vld [vmem:[%s10784_s1 + $0x148] ss:$16 sps:$4 sm:$0xff]  }
 0xa99   :  { %v9433_v22 = vld [vmem:[%s10784_s1 + $0x164] ss:$16 sps:$4 sm:$0xff]  }
 0xa9a   :  { %v2597_v6 = vmax.f32 %v2595_v24, 0.0  ;;  %v2596_v28 = vmax.f32 %v2594_v17, 0.0  ;;  %v9431_v24 = vld [vmem:[%s10784_s1 + $0x160] ss:$16 sps:$4 sm:$0xff]   ;;  %v9434_v17 = vld [vmem:[%s10784_s1 + $0x168] ss:$16 sps:$4 sm:$0xff]  }
 0xa9c   :  { %v2800_v29 = vadd.f32 %v10689_v1, %v2597_v6  ;;  %v2799_v30 = vadd.f32 %v10687_v51, %v2596_v28  ;;  %v9367_v51 = vld [vmem:[%s10784_s1 + $0x4] ss:$16 sps:$4 sm:$0xff]   ;;  %v9365_v1 = vld [vmem:[%s10784_s1] ss:$16 sps:$4 sm:$0xff]   ;;  %v9440_v28 = vld [vmem:[%s10784_s1 + $0x188] ss:$16 sps:$4 sm:$0xff]  }
 0xa9d   :  { %4264 = vmatprep.subr.bf16.mxu0 %v9367_v51  ;;  %v9439_v6 = vld [vmem:[%s10784_s1 + $0x184] ss:$16 sps:$4 sm:$0xff]  }
 0xa9e   :  { %v2813_v31 = vadd.f32 %v2809_v26, %v2800_v29  ;;  %v2812_v32 = vadd.f32 %v2805_v25, %v2799_v30  ;;  %v9442_v25 = vld [vmem:[%s10784_s1 + $0x18c] ss:$16 sps:$4 sm:$0xff]   ;;  %v9437_v26 = vld [vmem:[%s10784_s1 + $0x180] ss:$16 sps:$4 sm:$0xff]   ;;  %v9445_v29 = vld [vmem:[%s10784_s1 + $0x1a4] ss:$16 sps:$4 sm:$0xff]  }
 0xa9f   :  { %v9443_v30 = vld [vmem:[%s10784_s1 + $0x1a0] ss:$16 sps:$4 sm:$0xff]   ;;  %v9457_v51 = vld [vmem:[%s10784_s1 + $0x1e4] ss:$16 sps:$4 sm:$0xff]  }
 0xaa0   :  { %v2815_v56 = vmax.f32 %v2813_v31, 0.0  ;;  %v2814_v33 = vmax.f32 %v2812_v32, 0.0  ;;  %v9448_v31 = vld [vmem:[%s10784_s1 + $0x1ac] ss:$16 sps:$4 sm:$0xff]   ;;  %v9451_v32 = vld [vmem:[%s10784_s1 + $0x1c4] ss:$16 sps:$4 sm:$0xff]  }
 0xaa2   :  { %v3011_v34 = vpack.c.bf16 %v2815_v56, %v2815_v56  ;;  %v3010_v35 = vpack.c.bf16 %v2814_v33, %v2814_v33  ;;  %v9446_v56 = vld [vmem:[%s10784_s1 + $0x1a8] ss:$16 sps:$4 sm:$0xff]   ;;  %v9449_v33 = vld [vmem:[%s10784_s1 + $0x1c0] ss:$16 sps:$4 sm:$0xff]  }
 0xaa4   :  { %3364 = vmatprep.mubr.bf16.mxu0 %v3011_v34  ;;  %3405 = vmatprep.mubr.bf16.mxu1 %v3011_v34  ;;  %v9454_v34 = vld [vmem:[%s10784_s1 + $0x1cc] ss:$16 sps:$4 sm:$0xff]  }
 0xaa5   :  { %3365 = vmatmul.mubr.bf16.vlgmr.msra.gmra.mrb[24].mxu0 %v3010_v35  ;;  %3406 = vmatmul.mubr.bf16.vlgmr.msra.gmra.mrb[28].mxu1 %v3010_v35  ;;  %v9452_v35 = vld [vmem:[%s10784_s1 + $0x1c8] ss:$16 sps:$4 sm:$0xff]  }
 0xaa6   :  { %4265 = vmatpush1.bf16.msra.mxu0 %v9365_v1  ;;  %4347 = vmatpush1.bf16.msra.mxu1 %v9368_v37  ;;  %v9460_v1 = vld [vmem:[%s10784_s1 + $0x1ec] ss:$16 sps:$4 sm:$0xff]   ;;  %v9455_v37 = vld [vmem:[%s10784_s1 + $0x1e0] ss:$16 sps:$4 sm:$0xff]  }
 0xaa7   :  { %4266 = vmatprep.subr.bf16.mxu0 %v9373_v40  ;;  %4348 = vmatprep.subr.bf16.mxu1 %v9376_v42  ;;  %v9463_v40 = vld [vmem:[%s10784_s1 + $0x204] ss:$16 sps:$4 sm:$0xff]   ;;  %v9466_v42 = vld [vmem:[%s10784_s1 + $0x20c] ss:$16 sps:$4 sm:$0xff]  }
 0xaaa   :  { %4267 = vmatpush1.bf16.msra.mxu0 %v9371_v41  ;;  %4349 = vmatpush1.bf16.msra.mxu1 %v9374_v45 }
 0xaab   :  { %4268 = vmatprep.subr.bf16.mxu0 %v9379_v46  ;;  %4350 = vmatprep.subr.bf16.mxu1 %v9382_v47 }
 0xaae   :  { %4269 = vmatpush1.bf16.msra.mxu0 %v9377_v39  ;;  %4351 = vmatpush1.bf16.msra.mxu1 %v9380_v36 }
 0xaaf   :  { %4270 = vmatprep.subr.bf16.mxu0 %v9385_v48  ;;  %4352 = vmatprep.subr.bf16.mxu1 %v9388_v49 }
 0xab2   :  { %4271 = vmatpush1.bf16.msra.mxu0 %v9383_v50  ;;  %4353 = vmatpush1.bf16.msra.mxu1 %v9386_v54 }
 0xab3   :  { %4272 = vmatprep.subr.bf16.mxu0 %v9391_v53  ;;  %4354 = vmatprep.subr.bf16.mxu1 %v9394_v60 }
 0xab6   :  { %4273 = vmatpush1.bf16.msra.mxu0 %v9389_v62  ;;  %4355 = vmatpush1.bf16.msra.mxu1 %v9392_v27 }
 0xab7   :  { %4274 = vmatprep.subr.bf16.mxu0 %v9397_v57  ;;  %4356 = vmatprep.subr.bf16.mxu1 %v9400_v61 }
 0xaba   :  { %4275 = vmatpush1.bf16.msra.mxu0 %v9395_v63  ;;  %4357 = vmatpush1.bf16.msra.mxu1 %v9398_v55 }
 0xabb   :  { %4276 = vmatprep.subr.bf16.mxu0 %v9403_v0  ;;  %4358 = vmatprep.subr.bf16.mxu1 %v9406_v59 }
 0xabe   :  { %4277 = vmatpush1.bf16.msra.mxu0 %v9401_v52  ;;  %4359 = vmatpush1.bf16.msra.mxu1 %v9404_v2 }
 0xabf   :  { %4278 = vmatprep.subr.bf16.mxu0 %v9409_v3  ;;  %4360 = vmatprep.subr.bf16.mxu1 %v9412_v4 }
 0xac2   :  { %4279 = vmatpush1.bf16.msra.mxu0 %v9407_v5  ;;  %4361 = vmatpush1.bf16.msra.mxu1 %v9410_v8 }
 0xac3   :  { %4280 = vmatprep.subr.bf16.mxu0 %v9415_v9  ;;  %4362 = vmatprep.subr.bf16.mxu1 %v9418_v10 }
 0xac6   :  { %4281 = vmatpush1.bf16.msra.mxu0 %v9413_v11  ;;  %4363 = vmatpush1.bf16.msra.mxu1 %v9416_v13 }
 0xac7   :  { %4282 = vmatprep.subr.bf16.mxu0 %v9421_v16  ;;  %4364 = vmatprep.subr.bf16.mxu1 %v9424_v18 }
 0xaca   :  { %4283 = vmatpush1.bf16.msra.mxu0 %v9419_v19  ;;  %4365 = vmatpush1.bf16.msra.mxu1 %v9422_v20 }
 0xacb   :  { %4284 = vmatprep.subr.bf16.mxu0 %v9427_v14  ;;  %4366 = vmatprep.subr.bf16.mxu1 %v9430_v7 }
 0xace   :  { %4285 = vmatpush1.bf16.msra.mxu0 %v9425_v44  ;;  %4367 = vmatpush1.bf16.msra.mxu1 %v9428_v21 }
 0xacf   :  { %4286 = vmatprep.subr.bf16.mxu0 %v9433_v22  ;;  %4368 = vmatprep.subr.bf16.mxu1 %v9436_v23 }
 0xad2   :  { %4287 = vmatpush1.bf16.msra.mxu0 %v9431_v24  ;;  %4369 = vmatpush1.bf16.msra.mxu1 %v9434_v17 }
 0xad3   :  { %4288 = vmatprep.subr.bf16.mxu0 %v9439_v6  ;;  %4370 = vmatprep.subr.bf16.mxu1 %v9442_v25 }
 0xad6   :  { %4289 = vmatpush1.bf16.msra.mxu0 %v9437_v26  ;;  %4371 = vmatpush1.bf16.msra.mxu1 %v9440_v28 }
 0xad7   :  { %4290 = vmatprep.subr.bf16.mxu0 %v9445_v29  ;;  %4372 = vmatprep.subr.bf16.mxu1 %v9448_v31 }
 0xada   :  { %4291 = vmatpush1.bf16.msra.mxu0 %v9443_v30  ;;  %4373 = vmatpush1.bf16.msra.mxu1 %v9446_v56 }
 0xadb   :  { %4292 = vmatprep.subr.bf16.mxu0 %v9451_v32  ;;  %4374 = vmatprep.subr.bf16.mxu1 %v9454_v34 }
 0xade   :  { %4293 = vmatpush1.bf16.msra.mxu0 %v9449_v33  ;;  %4375 = vmatpush1.bf16.msra.mxu1 %v9452_v35 }
 0xadf   :  { %4294 = vmatprep.subr.bf16.mxu0 %v9457_v51  ;;  %4376 = vmatprep.subr.bf16.mxu1 %v9460_v1 }
 0xae2   :  { %4295 = vmatpush1.bf16.msra.mxu0 %v9455_v37  ;;  %4377 = vmatpush1.bf16.msra.mxu1 %v9458_v38 }
 0xae3   :  { %4305 = vmatprep.subr.bf16.mxu0 %v9463_v40  ;;  %4387 = vmatprep.subr.bf16.mxu1 %v9466_v42 }
 0xb78   :  { %v10852_v41 = vpop.f32.mrb[24].mxu0  ;;  %v10854_v45 = vpop.f32.mrb[28].mxu1 }
 0xb79   :  { %v3414_v46 = vsel %vm694_vm3, %v10852_v41, 0.0  ;;  %v3446_v47 = vmul.f32 %v10852_v41, %v10852_v41  ;;  %v3428_v39 = vsel %vm694_vm3, %v10854_v45, 0.0  ;;  %v3448_v36 = vmul.f32 %v10854_v45, %v10854_v45  ;;  %v10864_v48 = vpop.f32.mrb[25].mxu0  ;;  %v10866_v49 = vpop.f32.mrb[29].mxu1 }
 0xb7a   :  { %v3415_v50 = vrot.slane %v3414_v46, 4  ;;  %v3429_v54 = vrot.slane %v3428_v39, 4  ;;  %v3421_v53 = vsel %vm694_vm3, %v10864_v48, 0.0  ;;  %v3447_v60 = vmul.f32 %v10864_v48, %v10864_v48  ;;  %v3370_v62 = vpop.f32.mrb[26].mxu0  ;;  %v3411_v27 = vpop.f32.mrb[30].mxu1 }
 0xb7b   :  { %v3450_v57 = vsel %vm694_vm3, %v3446_v47, 0.0  ;;  %v3464_v61 = vsel %vm694_vm3, %v3448_v36, 0.0  ;;  %v3422_v63 = vrot.slane %v3421_v53, 4  ;;  %v3435_v55 = vsel %vm694_vm3, %v10866_v49, 0.0  ;;  %v3371_v0 = vpop.f32.mrb[27].mxu0  ;;  %v3412_v59 = vpop.f32.mrb[31].mxu1 }
 0xb7c   :  { %v3416_v52 = vadd.f32 %v3415_v50, %v3414_v46  ;;  %v3451_v2 = vrot.slane %v3450_v57, 4  ;;  %v3430_v3 = vadd.f32 %v3429_v54, %v3428_v39  ;;  %v3465_v4 = vrot.slane %v3464_v61, 4 }
 0xb7d   :  { %v3423_v5 = vadd.f32 %v3422_v63, %v3421_v53  ;;  %v3457_v8 = vsel %vm694_vm3, %v3447_v60, 0.0  ;;  %v3436_v9 = vrot.slane %v3435_v55, 4  ;;  %v3449_v10 = vmul.f32 %v10866_v49, %v10866_v49 }
 0xb7e   :  { %v3417_v11 = vrot.slane %v3416_v52, 2  ;;  %v3452_v13 = vadd.f32 %v3451_v2, %v3450_v57  ;;  %v3431_v16 = vrot.slane %v3430_v3, 2  ;;  %v3466_v18 = vadd.f32 %v3465_v4, %v3464_v61 }
 0xb7f   :  { %v3424_v19 = vrot.slane %v3423_v5, 2  ;;  %v3458_v20 = vrot.slane %v3457_v8, 4  ;;  %v3437_v14 = vadd.f32 %v3436_v9, %v3435_v55  ;;  %v3471_v7 = vsel %vm694_vm3, %v3449_v10, 0.0 }
 0xb80   :  { %v3418_v44 = vadd.f32 %v3417_v11, %v3416_v52  ;;  %v3453_v21 = vrot.slane %v3452_v13, 2  ;;  %v3432_v22 = vadd.f32 %v3431_v16, %v3430_v3  ;;  %v3467_v23 = vrot.slane %v3466_v18, 2 }
 0xb81   :  { %v3425_v24 = vadd.f32 %v3424_v19, %v3423_v5  ;;  %v3459_v17 = vadd.f32 %v3458_v20, %v3457_v8  ;;  %v3438_v6 = vrot.slane %v3437_v14, 2  ;;  %v3472_v25 = vrot.slane %v3471_v7, 4 }
 0xb82   :  { %v3419_v26 = vrot.slane %v3418_v44, 1  ;;  %v3454_v28 = vadd.f32 %v3453_v21, %v3452_v13  ;;  %v3433_v29 = vrot.slane %v3432_v22, 1  ;;  %v3468_v30 = vadd.f32 %v3467_v23, %v3466_v18 }
 0xb83   :  { %v3426_v31 = vrot.slane %v3425_v24, 1  ;;  %v3460_v32 = vrot.slane %v3459_v17, 2  ;;  %v3439_v56 = vadd.f32 %v3438_v6, %v3437_v14  ;;  %v3473_v33 = vadd.f32 %v3472_v25, %v3471_v7 }
 0xb84   :  { %v3420_v34 = vadd.f32 %v3419_v26, %v3418_v44  ;;  %v3455_v35 = vrot.slane %v3454_v28, 1  ;;  %v3434_v51 = vadd.f32 %v3433_v29, %v3432_v22  ;;  %v3469_v1 = vrot.slane %v3468_v30, 1 }
 0xb85   :  { %v3427_v37 = vadd.f32 %v3426_v31, %v3425_v24  ;;  %v3461_v38 = vadd.f32 %v3460_v32, %v3459_v17  ;;  %v3440_v40 = vrot.slane %v3439_v56, 1  ;;  %v3474_v42 = vrot.slane %v3473_v33, 2 }
 0xb86   :  { %v3442_v46 = vmul.f32 0.5, %v3420_v34  ;;  %v3456_v47 = vadd.f32 %v3455_v35, %v3454_v28  ;;  %v3444_v39 = vmul.f32 0.5, %v3434_v51  ;;  %v3470_v36 = vadd.f32 %v3469_v1, %v3468_v30  ;;  %v3008_v28 = vld [vmem:[%s10883_s5] sm:$0xf] }
 0xb87   :  { %v3443_v50 = vmul.f32 0.5, %v3427_v37  ;;  %v3462_v54 = vrot.slane %v3461_v38, 1  ;;  %v3441_v53 = vadd.f32 %v3440_v40, %v3439_v56  ;;  %v3475_v60 = vadd.f32 %v3474_v42, %v3473_v33 }
 0xb88   :  { %v3478_v62 = vmul.f32 0.5, %v3456_v47  ;;  %v3482_v27 = vmul.f32 %v3442_v46, %v3442_v46  ;;  %v3480_v57 = vmul.f32 0.5, %v3470_v36  ;;  %v3484_v61 = vmul.f32 %v3444_v39, %v3444_v39 }
 0xb89   :  { %v3463_v63 = vadd.f32 %v3462_v54, %v3461_v38  ;;  %v3483_v55 = vmul.f32 %v3443_v50, %v3443_v50  ;;  %v3445_v0 = vmul.f32 0.5, %v3441_v53  ;;  %v3476_v59 = vrot.slane %v3475_v60, 1 }
 0xb8a   :  { %v3486_v52 = vsub.f32 %v3478_v62, %v3482_v27  ;;  %v3488_v2 = vsub.f32 %v3480_v57, %v3484_v61  ;;  %v10890_v30 = vsub.s32 2, %v10261_v12  ;;  %v10893_v31 = vsub.s32 3, %v10261_v12  ;;  %v3009_v62 = vld [vmem:[%s10903_s9] sm:$0xf] }
 0xb8b   :  { %v3479_v3 = vmul.f32 0.5, %v3463_v63  ;;  %v3477_v4 = vadd.f32 %v3476_v59, %v3475_v60  ;;  %v3485_v5 = vmul.f32 %v3445_v0, %v3445_v0 }
 0xb8c   :  { %v3490_v8 = vmax.f32 %v3486_v52, 0.0  ;;  %v3492_v9 = vmax.f32 %v3488_v2, 0.0 }
 0xb8d   :  { %v3487_v10 = vsub.f32 %v3479_v3, %v3483_v55  ;;  %v3481_v11 = vmul.f32 0.5, %v3477_v4  ;;  %v9461_v3 = vld [vmem:[%s10784_s1 + $0x200] ss:$16 sps:$4 sm:$0xff]   ;;  %v9464_v4 = vld [vmem:[%s10784_s1 + $0x208] ss:$16 sps:$4 sm:$0xff]  }
 0xb8e   :  { %v3494_v13 = vadd.f32 1e-05, %v3490_v8  ;;  %v3496_v16 = vadd.f32 1e-05, %v3492_v9  ;;  %v9469_v8 = vld [vmem:[%s10784_s1 + $0x224] ss:$16 sps:$4 sm:$0xff]  }
 0xb8f   :  { %v3491_v18 = vmax.f32 %v3487_v10, 0.0  ;;  %v3489_v19 = vsub.f32 %v3481_v11, %v3485_v5  ;;  %v9472_v9 = vld [vmem:[%s10784_s1 + $0x22c] ss:$16 sps:$4 sm:$0xff]   ;;  %v9467_v11 = vld [vmem:[%s10784_s1 + $0x220] ss:$16 sps:$4 sm:$0xff]  }
 0xb90   :  { %10161 = vrsqrt.f32 %v3494_v13  ;;  %v9470_v13 = vld [vmem:[%s10784_s1 + $0x228] ss:$16 sps:$4 sm:$0xff]  }
 0xb91   :  { %v3495_v20 = vadd.f32 1e-05, %v3491_v18  ;;  %v3493_v14 = vmax.f32 %v3489_v19, 0.0  ;;  %10163 = vrsqrt.f32 %v3496_v16  ;;  %v9475_v16 = vld [vmem:[%s10784_s1 + $0x244] ss:$16 sps:$4 sm:$0xff]  }
 0xb92   :  { %v9478_v18 = vld [vmem:[%s10784_s1 + $0x24c] ss:$16 sps:$4 sm:$0xff]   ;;  %v9473_v19 = vld [vmem:[%s10784_s1 + $0x240] ss:$16 sps:$4 sm:$0xff]  }
 0xb93   :  { %10165 = vrsqrt.f32 %v3495_v20  ;;  %v3497_v7 = vadd.f32 1e-05, %v3493_v14  ;;  %v9476_v20 = vld [vmem:[%s10784_s1 + $0x248] ss:$16 sps:$4 sm:$0xff]   ;;  %v9481_v14 = vld [vmem:[%s10784_s1 + $0x264] ss:$16 sps:$4 sm:$0xff]  }
 0xb95   :  { %10167 = vrsqrt.f32 %v3497_v7  ;;  %v9484_v7 = vld [vmem:[%s10784_s1 + $0x26c] ss:$16 sps:$4 sm:$0xff]  }
 0xb9a   :  { %v10162_v44 = vpop.eup %10161 }
 0xb9b   :  { %v10164_v21 = vpop.eup %10163 }
 0xb9d   :  { %v10166_v22 = vpop.eup %10165 }
 0xb9e   :  { %v3506_v23 = vcombine.low %v10162_v44, %v10166_v22  ;;  %v9479_v44 = vld [vmem:[%s10784_s1 + $0x260] ss:$16 sps:$4 sm:$0xff]   ;;  %v9487_v22 = vld [vmem:[%s10784_s1 + $0x284] ss:$16 sps:$4 sm:$0xff]  }
 0xb9f   :  { %v10168_v24 = vpop.eup %10167 }
 0xba0   :  { %v3507_v17 = vcombine.low %v10164_v21, %v10168_v24  ;;  %v3514_v6 = vrot.slane %v3506_v23, %v10266_v15  ;;  %v9482_v21 = vld [vmem:[%s10784_s1 + $0x268] ss:$16 sps:$4 sm:$0xff]   ;;  %v9490_v23 = vld [vmem:[%s10784_s1 + $0x28c] ss:$16 sps:$4 sm:$0xff]   ;;  %v9485_v24 = vld [vmem:[%s10784_s1 + $0x280] ss:$16 sps:$4 sm:$0xff]  }
 0xba2   :  { %v3521_v25 = vrot.slane %v3507_v17, %v10266_v15  ;;  %v9488_v17 = vld [vmem:[%s10784_s1 + $0x288] ss:$16 sps:$4 sm:$0xff]  }
 0xba4   :  { %v3522_v26 = vcombine.low %v3514_v6, %v3521_v25  ;;  %v9493_v6 = vld [vmem:[%s10784_s1 + $0x2a4] ss:$16 sps:$4 sm:$0xff]   ;;  %v9496_v25 = vld [vmem:[%s10784_s1 + $0x2ac] ss:$16 sps:$4 sm:$0xff]  }
 0xba6   :  { %v3529_v29 = vrot.slane %v3522_v26, %v10266_v15  ;;  %v9491_v26 = vld [vmem:[%s10784_s1 + $0x2a0] ss:$16 sps:$4 sm:$0xff]  }
 0xba8   :  { %v3531_v32 = vmul.f32 %v3529_v29, %v3008_v28  ;;  %v9494_v28 = vld [vmem:[%s10784_s1 + $0x2a8] ss:$16 sps:$4 sm:$0xff]   ;;  %v9499_v29 = vld [vmem:[%s10784_s1 + $0x2c4] ss:$16 sps:$4 sm:$0xff]  }
 0xbaa   :  { %v3544_v56 = vrot.slane %v3531_v32, %v10890_v30  ;;  %v3548_v33 = vrot.slane %v3531_v32, %v10893_v31  ;;  %v3536_v34 = vrot.slane %v3531_v32, %v10305_v58  ;;  %v3540_v35 = vrot.slane %v3531_v32, %v10512_v43  ;;  %v9502_v32 = vld [vmem:[%s10784_s1 + $0x2cc] ss:$16 sps:$4 sm:$0xff]  }
 0xbac   :  { %v3555_v51 = vmul.f32 %v3544_v56, %v3444_v39  ;;  %v3556_v1 = vmul.f32 %v3548_v33, %v3445_v0  ;;  %v3590_v37 = vmul.f32 %v3548_v33, %v10866_v49  ;;  %v3553_v38 = vmul.f32 %v3536_v34, %v3442_v46  ;;  %v9500_v33 = vld [vmem:[%s10784_s1 + $0x2c8] ss:$16 sps:$4 sm:$0xff]  }
 0xbad   :  { %v3554_v40 = vmul.f32 %v3540_v35, %v3443_v50  ;;  %v3588_v42 = vmul.f32 %v3540_v35, %v10864_v48  ;;  %v3587_v47 = vmul.f32 %v3536_v34, %v10852_v41  ;;  %v3589_v36 = vmul.f32 %v3544_v56, %v10854_v45  ;;  %v9497_v56 = vld [vmem:[%s10784_s1 + $0x2c0] ss:$16 sps:$4 sm:$0xff]   ;;  %v9505_v34 = vld [vmem:[%s10784_s1 + $0x2e4] ss:$16 sps:$4 sm:$0xff]   ;;  %v9508_v35 = vld [vmem:[%s10784_s1 + $0x2ec] ss:$16 sps:$4 sm:$0xff]  }
 0xbae   :  { %v3562_v54 = vcombine.low %v3555_v51, %v3556_v1  ;;  %v9503_v51 = vld [vmem:[%s10784_s1 + $0x2e0] ss:$16 sps:$4 sm:$0xff]   ;;  %v9506_v1 = vld [vmem:[%s10784_s1 + $0x2e8] ss:$16 sps:$4 sm:$0xff]  }
 0xbaf   :  { %v3561_v39 = vcombine.low %v3553_v38, %v3554_v40  ;;  %v9514_v38 = vld [vmem:[%s10784_s1 + $0x30c] ss:$16 sps:$4 sm:$0xff]   ;;  %v9509_v40 = vld [vmem:[%s10784_s1 + $0x300] ss:$16 sps:$4 sm:$0xff]  }
 0xbb0   :  { %v3576_v53 = vrot.slane %v3562_v54, %v10266_v15  ;;  %v9515_v54 = vld [vmem:[%s10784_s1 + $0x320] ss:$16 sps:$4 sm:$0xff]  }
 0xbb1   :  { %v3569_v49 = vrot.slane %v3561_v39, %v10266_v15  ;;  %v9518_v39 = vld [vmem:[%s10784_s1 + $0x328] ss:$16 sps:$4 sm:$0xff]  }
 0xbb3   :  { %v3577_v60 = vcombine.low %v3569_v49, %v3576_v53  ;;  %v9523_v53 = vld [vmem:[%s10784_s1 + $0x344] ss:$16 sps:$4 sm:$0xff]   ;;  %v9526_v49 = vld [vmem:[%s10784_s1 + $0x34c] ss:$16 sps:$4 sm:$0xff]  }
 0xbb5   :  { %v3584_v27 = vrot.slane %v3577_v60, %v10266_v15  ;;  %v9521_v60 = vld [vmem:[%s10784_s1 + $0x340] ss:$16 sps:$4 sm:$0xff]  }
 0xbb7   :  { %v3586_v46 = vsub.f32 %v3009_v62, %v3584_v27  ;;  %v9524_v62 = vld [vmem:[%s10784_s1 + $0x348] ss:$16 sps:$4 sm:$0xff]   ;;  %v9529_v27 = vld [vmem:[%s10784_s1 + $0x364] ss:$16 sps:$4 sm:$0xff]  }
 0xbb9   :  { %v3599_v50 = vrot.slane %v3586_v46, %v10512_v43  ;;  %v3595_v48 = vrot.slane %v3586_v46, %v10305_v58  ;;  %v3607_v41 = vrot.slane %v3586_v46, %v10893_v31  ;;  %v3603_v45 = vrot.slane %v3586_v46, %v10890_v30  ;;  %v9532_v46 = vld [vmem:[%s10784_s1 + $0x36c] ss:$16 sps:$4 sm:$0xff]  }
 0xbbb   :  { %v3613_v57 = vadd.f32 %v3599_v50, %v3588_v42  ;;  %v3612_v61 = vadd.f32 %v3595_v48, %v3587_v47  ;;  %v3615_v63 = vadd.f32 %v3607_v41, %v3590_v37  ;;  %v10916_v55 = vadd.f32 %v3603_v45, %v3589_v36  ;;  %v9511_v37 = vld [vmem:[%s10784_s1 + $0x304] ss:$16 sps:$4 sm:$0xff]   ;;  %v9512_v42 = vld [vmem:[%s10784_s1 + $0x308] ss:$16 sps:$4 sm:$0xff]   ;;  %v9520_v36 = vld [vmem:[%s10784_s1 + $0x32c] ss:$16 sps:$4 sm:$0xff]  }
 0xbbc   :  { %v9517_v47 = vld [vmem:[%s10784_s1 + $0x324] ss:$16 sps:$4 sm:$0xff]   ;;  %v9527_v50 = vld [vmem:[%s10784_s1 + $0x360] ss:$16 sps:$4 sm:$0xff]   ;;  %v9530_v48 = vld [vmem:[%s10784_s1 + $0x368] ss:$16 sps:$4 sm:$0xff]  }
 0xbbd   :  { %v3617_v0 = vmax.f32 %v3613_v57, 0.0  ;;  %v3616_v59 = vmax.f32 %v3612_v61, 0.0  ;;  %v3619_v52 = vmax.f32 %v3615_v63, 0.0  ;;  %v9535_v41 = vld [vmem:[%s10784_s1 + $0x384] ss:$16 sps:$4 sm:$0xff]  }
 0xbbe   :  { %v9538_v45 = vld [vmem:[%s10784_s1 + $0x38c] ss:$16 sps:$4 sm:$0xff]   ;;  %v9533_v57 = vld [vmem:[%s10784_s1 + $0x380] ss:$16 sps:$4 sm:$0xff]   ;;  %v9536_v61 = vld [vmem:[%s10784_s1 + $0x388] ss:$16 sps:$4 sm:$0xff]  }
 0xbbf   :  { %v3621_v2 = vpack.c.bf16 %v3617_v0, %v3617_v0  ;;  %v3620_v5 = vpack.c.bf16 %v3616_v59, %v3616_v59  ;;  %v3623_v10 = vpack.c.bf16 %v3619_v52, %v3619_v52  ;;  %v9541_v63 = vld [vmem:[%s10784_s1 + $0x3a4] ss:$16 sps:$4 sm:$0xff]   ;;  %v9544_v0 = vld [vmem:[%s10784_s1 + $0x3ac] ss:$16 sps:$4 sm:$0xff]   ;;  %v9539_v59 = vld [vmem:[%s10784_s1 + $0x3a0] ss:$16 sps:$4 sm:$0xff]  }
 0xbc0   :  { %v9542_v52 = vld [vmem:[%s10784_s1 + $0x3a8] ss:$16 sps:$4 sm:$0xff]  }
 0xbc1   :  { %4296 = vmatprep.mubr.bf16.mxu0 %v3621_v2  ;;  %4378 = vmatprep.mubr.bf16.mxu1 %v3621_v2  ;;  %v9547_v2 = vld [vmem:[%s10784_s1 + $0x3c4] ss:$16 sps:$4 sm:$0xff]  }
 0xbc2   :  { %4297 = vmatmul.mubr.bf16.vlgmr.msra.gmra.mrb[28].mxu0 %v3620_v5  ;;  %4379 = vmatmul.mubr.bf16.vlgmr.msra.gmra.mrb[32].mxu1 %v3620_v5  ;;  %v9548_v5 = vld [vmem:[%s10784_s1 + $0x3c8] ss:$16 sps:$4 sm:$0xff]  }
 0xbc3   :  { %4306 = vmatpush1.bf16.msra.mxu0 %v9461_v3  ;;  %4388 = vmatpush1.bf16.msra.mxu1 %v9464_v4  ;;  %v9550_v3 = vld [vmem:[%s10784_s1 + $0x3cc] ss:$16 sps:$4 sm:$0xff]   ;;  %v9545_v4 = vld [vmem:[%s10784_s1 + $0x3c0] ss:$16 sps:$4 sm:$0xff]  }
 0xbc4   :  { %4337 = vmatprep.mubr.bf16.mxu0 %v3623_v10  ;;  %4419 = vmatprep.mubr.bf16.mxu1 %v3623_v10  ;;  %v9551_v10 = vld [vmem:[%s10784_s1 + $0x3e0] ss:$16 sps:$4 sm:$0xff]  }
 0xbc5   :  { %4307 = vmatprep.subr.bf16.mxu0 %v9469_v8  ;;  %4389 = vmatprep.subr.bf16.mxu1 %v9472_v9  ;;  %v9553_v8 = vld [vmem:[%s10784_s1 + $0x3e4] ss:$16 sps:$4 sm:$0xff]   ;;  %v9556_v9 = vld [vmem:[%s10784_s1 + $0x3ec] ss:$16 sps:$4 sm:$0xff]  }
 0xbc7   :  { %4308 = vmatpush1.bf16.msra.mxu0 %v9467_v11  ;;  %4390 = vmatpush1.bf16.msra.mxu1 %v9470_v13  ;;  %v9554_v11 = vld [vmem:[%s10784_s1 + $0x3e8] ss:$16 sps:$4 sm:$0xff]   ;;  %v3618_v13 = vmax.f32 %v10916_v55, 0.0  ;;  %v9559_v55 = vld [vmem:[%s10984_s13 + $0x4] ss:$16 sps:$4 sm:$0xff]  }
 0xbc8   :  { %4309 = vmatprep.subr.bf16.mxu0 %v9475_v16  ;;  %4391 = vmatprep.subr.bf16.mxu1 %v9478_v18  ;;  %v9557_v18 = vld [vmem:[%s10984_s13] ss:$16 sps:$4 sm:$0xff]  }
 0xbc9   :  { %v3622_v16 = vpack.c.bf16 %v3618_v13, %v3618_v13  ;;  %v9643_v13 = vld [vmem:[%s10984_s13 + $0x1c4] ss:$16 sps:$4 sm:$0xff]  }
 0xbcb   :  { %4310 = vmatpush1.bf16.msra.mxu0 %v9473_v19  ;;  %4392 = vmatpush1.bf16.msra.mxu1 %v9476_v20  ;;  %v9560_v19 = vld [vmem:[%s10984_s13 + $0x8] ss:$16 sps:$4 sm:$0xff]   ;;  %v9562_v20 = vld [vmem:[%s10984_s13 + $0xc] ss:$16 sps:$4 sm:$0xff]  }
 0xbcc   :  { %4311 = vmatprep.subr.bf16.mxu0 %v9481_v14  ;;  %4393 = vmatprep.subr.bf16.mxu1 %v9484_v7  ;;  %v9565_v14 = vld [vmem:[%s10984_s13 + $0x24] ss:$16 sps:$4 sm:$0xff]   ;;  %v9568_v7 = vld [vmem:[%s10984_s13 + $0x2c] ss:$16 sps:$4 sm:$0xff]  }
 0xbcf   :  { %4312 = vmatpush1.bf16.msra.mxu0 %v9479_v44  ;;  %4394 = vmatpush1.bf16.msra.mxu1 %v9482_v21  ;;  %v9563_v44 = vld [vmem:[%s10984_s13 + $0x20] ss:$16 sps:$4 sm:$0xff]   ;;  %v9566_v21 = vld [vmem:[%s10984_s13 + $0x28] ss:$16 sps:$4 sm:$0xff]  }
 0xbd0   :  { %4313 = vmatprep.subr.bf16.mxu0 %v9487_v22  ;;  %4395 = vmatprep.subr.bf16.mxu1 %v9490_v23  ;;  %v9571_v22 = vld [vmem:[%s10984_s13 + $0x44] ss:$16 sps:$4 sm:$0xff]   ;;  %v9574_v23 = vld [vmem:[%s10984_s13 + $0x4c] ss:$16 sps:$4 sm:$0xff]  }
 0xbd3   :  { %4314 = vmatpush1.bf16.msra.mxu0 %v9485_v24  ;;  %4396 = vmatpush1.bf16.msra.mxu1 %v9488_v17  ;;  %v9569_v24 = vld [vmem:[%s10984_s13 + $0x40] ss:$16 sps:$4 sm:$0xff]   ;;  %v9572_v17 = vld [vmem:[%s10984_s13 + $0x48] ss:$16 sps:$4 sm:$0xff]  }
 0xbd4   :  { %4315 = vmatprep.subr.bf16.mxu0 %v9493_v6  ;;  %4397 = vmatprep.subr.bf16.mxu1 %v9496_v25  ;;  %v9577_v6 = vld [vmem:[%s10984_s13 + $0x64] ss:$16 sps:$4 sm:$0xff]   ;;  %v9580_v25 = vld [vmem:[%s10984_s13 + $0x6c] ss:$16 sps:$4 sm:$0xff]  }
 0xbd7   :  { %4316 = vmatpush1.bf16.msra.mxu0 %v9491_v26  ;;  %4398 = vmatpush1.bf16.msra.mxu1 %v9494_v28  ;;  %v9575_v26 = vld [vmem:[%s10984_s13 + $0x60] ss:$16 sps:$4 sm:$0xff]   ;;  %v9578_v28 = vld [vmem:[%s10984_s13 + $0x68] ss:$16 sps:$4 sm:$0xff]  }
 0xbd8   :  { %4317 = vmatprep.subr.bf16.mxu0 %v9499_v29  ;;  %4399 = vmatprep.subr.bf16.mxu1 %v9502_v32  ;;  %v9583_v29 = vld [vmem:[%s10984_s13 + $0x84] ss:$16 sps:$4 sm:$0xff]   ;;  %v9586_v32 = vld [vmem:[%s10984_s13 + $0x8c] ss:$16 sps:$4 sm:$0xff]  }
 0xbdb   :  { %4318 = vmatpush1.bf16.msra.mxu0 %v9497_v56  ;;  %4400 = vmatpush1.bf16.msra.mxu1 %v9500_v33  ;;  %v9581_v56 = vld [vmem:[%s10984_s13 + $0x80] ss:$16 sps:$4 sm:$0xff]   ;;  %v9584_v33 = vld [vmem:[%s10984_s13 + $0x88] ss:$16 sps:$4 sm:$0xff]  }
 0xbdc   :  { %4319 = vmatprep.subr.bf16.mxu0 %v9505_v34  ;;  %4401 = vmatprep.subr.bf16.mxu1 %v9508_v35  ;;  %v9589_v34 = vld [vmem:[%s10984_s13 + $0xa4] ss:$16 sps:$4 sm:$0xff]   ;;  %v9592_v35 = vld [vmem:[%s10984_s13 + $0xac] ss:$16 sps:$4 sm:$0xff]  }
 0xbdf   :  { %4320 = vmatpush1.bf16.msra.mxu0 %v9503_v51  ;;  %4402 = vmatpush1.bf16.msra.mxu1 %v9506_v1  ;;  %v9587_v51 = vld [vmem:[%s10984_s13 + $0xa0] ss:$16 sps:$4 sm:$0xff]   ;;  %v9590_v1 = vld [vmem:[%s10984_s13 + $0xa8] ss:$16 sps:$4 sm:$0xff]  }
 0xbe0   :  { %4321 = vmatprep.subr.bf16.mxu0 %v9511_v37  ;;  %4403 = vmatprep.subr.bf16.mxu1 %v9514_v38  ;;  %v9595_v37 = vld [vmem:[%s10984_s13 + $0xc4] ss:$16 sps:$4 sm:$0xff]   ;;  %v9598_v38 = vld [vmem:[%s10984_s13 + $0xcc] ss:$16 sps:$4 sm:$0xff]  }
 0xbe3   :  { %4322 = vmatpush1.bf16.msra.mxu0 %v9509_v40  ;;  %4404 = vmatpush1.bf16.msra.mxu1 %v9512_v42  ;;  %v9593_v40 = vld [vmem:[%s10984_s13 + $0xc0] ss:$16 sps:$4 sm:$0xff]   ;;  %v9596_v42 = vld [vmem:[%s10984_s13 + $0xc8] ss:$16 sps:$4 sm:$0xff]  }
 0xbe4   :  { %4323 = vmatprep.subr.bf16.mxu0 %v9517_v47  ;;  %4405 = vmatprep.subr.bf16.mxu1 %v9520_v36  ;;  %v9601_v47 = vld [vmem:[%s10984_s13 + $0xe4] ss:$16 sps:$4 sm:$0xff]   ;;  %v9604_v36 = vld [vmem:[%s10984_s13 + $0xec] ss:$16 sps:$4 sm:$0xff]  }
 0xbe7   :  { %4324 = vmatpush1.bf16.msra.mxu0 %v9515_v54  ;;  %4406 = vmatpush1.bf16.msra.mxu1 %v9518_v39  ;;  %v9599_v54 = vld [vmem:[%s10984_s13 + $0xe0] ss:$16 sps:$4 sm:$0xff]   ;;  %v9602_v39 = vld [vmem:[%s10984_s13 + $0xe8] ss:$16 sps:$4 sm:$0xff]  }
 0xbe8   :  { %4325 = vmatprep.subr.bf16.mxu0 %v9523_v53  ;;  %4407 = vmatprep.subr.bf16.mxu1 %v9526_v49  ;;  %v9607_v53 = vld [vmem:[%s10984_s13 + $0x104] ss:$16 sps:$4 sm:$0xff]   ;;  %v9610_v49 = vld [vmem:[%s10984_s13 + $0x10c] ss:$16 sps:$4 sm:$0xff]  }
 0xbeb   :  { %4326 = vmatpush1.bf16.msra.mxu0 %v9521_v60  ;;  %4408 = vmatpush1.bf16.msra.mxu1 %v9524_v62  ;;  %v9605_v60 = vld [vmem:[%s10984_s13 + $0x100] ss:$16 sps:$4 sm:$0xff]   ;;  %v9608_v62 = vld [vmem:[%s10984_s13 + $0x108] ss:$16 sps:$4 sm:$0xff]  }
 0xbec   :  { %4327 = vmatprep.subr.bf16.mxu0 %v9529_v27  ;;  %4409 = vmatprep.subr.bf16.mxu1 %v9532_v46  ;;  %v9613_v27 = vld [vmem:[%s10984_s13 + $0x124] ss:$16 sps:$4 sm:$0xff]   ;;  %v9616_v46 = vld [vmem:[%s10984_s13 + $0x12c] ss:$16 sps:$4 sm:$0xff]  }
 0xbef   :  { %4328 = vmatpush1.bf16.msra.mxu0 %v9527_v50  ;;  %4410 = vmatpush1.bf16.msra.mxu1 %v9530_v48  ;;  %v9611_v50 = vld [vmem:[%s10984_s13 + $0x120] ss:$16 sps:$4 sm:$0xff]   ;;  %v9614_v48 = vld [vmem:[%s10984_s13 + $0x128] ss:$16 sps:$4 sm:$0xff]  }
 0xbf0   :  { %4329 = vmatprep.subr.bf16.mxu0 %v9535_v41  ;;  %4411 = vmatprep.subr.bf16.mxu1 %v9538_v45  ;;  %v9619_v41 = vld [vmem:[%s10984_s13 + $0x144] ss:$16 sps:$4 sm:$0xff]   ;;  %v9622_v45 = vld [vmem:[%s10984_s13 + $0x14c] ss:$16 sps:$4 sm:$0xff]  }
 0xbf3   :  { %4330 = vmatpush1.bf16.msra.mxu0 %v9533_v57  ;;  %4412 = vmatpush1.bf16.msra.mxu1 %v9536_v61  ;;  %v9617_v57 = vld [vmem:[%s10984_s13 + $0x140] ss:$16 sps:$4 sm:$0xff]   ;;  %v9620_v61 = vld [vmem:[%s10984_s13 + $0x148] ss:$16 sps:$4 sm:$0xff]  }
 0xbf4   :  { %4331 = vmatprep.subr.bf16.mxu0 %v9541_v63  ;;  %4413 = vmatprep.subr.bf16.mxu1 %v9544_v0  ;;  %v9625_v63 = vld [vmem:[%s10984_s13 + $0x164] ss:$16 sps:$4 sm:$0xff]   ;;  %v9628_v0 = vld [vmem:[%s10984_s13 + $0x16c] ss:$16 sps:$4 sm:$0xff]  }
 0xbf7   :  { %4332 = vmatpush1.bf16.msra.mxu0 %v9539_v59  ;;  %4414 = vmatpush1.bf16.msra.mxu1 %v9542_v52  ;;  %v9623_v59 = vld [vmem:[%s10984_s13 + $0x160] ss:$16 sps:$4 sm:$0xff]   ;;  %v9626_v52 = vld [vmem:[%s10984_s13 + $0x168] ss:$16 sps:$4 sm:$0xff]  }
 0xbf8   :  { %4333 = vmatprep.subr.bf16.mxu0 %v9547_v2  ;;  %4415 = vmatprep.subr.bf16.mxu1 %v9550_v3  ;;  %v9631_v2 = vld [vmem:[%s10984_s13 + $0x184] ss:$16 sps:$4 sm:$0xff]   ;;  %v9634_v3 = vld [vmem:[%s10984_s13 + $0x18c] ss:$16 sps:$4 sm:$0xff]  }
 0xbfb   :  { %4334 = vmatpush1.bf16.msra.mxu0 %v9545_v4  ;;  %4416 = vmatpush1.bf16.msra.mxu1 %v9548_v5  ;;  %v9629_v4 = vld [vmem:[%s10984_s13 + $0x180] ss:$16 sps:$4 sm:$0xff]   ;;  %v9632_v5 = vld [vmem:[%s10984_s13 + $0x188] ss:$16 sps:$4 sm:$0xff]  }
 0xbfc   :  { %4335 = vmatprep.subr.bf16.mxu0 %v9553_v8  ;;  %4417 = vmatprep.subr.bf16.mxu1 %v9556_v9  ;;  %v9637_v8 = vld [vmem:[%s10984_s13 + $0x1a4] ss:$16 sps:$4 sm:$0xff]   ;;  %v9640_v9 = vld [vmem:[%s10984_s13 + $0x1ac] ss:$16 sps:$4 sm:$0xff]  }
 0xbff   :  { %4336 = vmatpush1.bf16.msra.mxu0 %v9551_v10  ;;  %4418 = vmatpush1.bf16.msra.mxu1 %v9554_v11  ;;  %v9635_v10 = vld [vmem:[%s10984_s13 + $0x1a0] ss:$16 sps:$4 sm:$0xff]   ;;  %v9638_v11 = vld [vmem:[%s10984_s13 + $0x1a8] ss:$16 sps:$4 sm:$0xff]  }
 0xc00   :  { %5665 = vmatprep.subr.bf16.mxu0 %v9559_v55  ;;  %5747 = vmatprep.subr.bf16.mxu1 %v9562_v20  ;;  %v9641_v55 = vld [vmem:[%s10984_s13 + $0x1c0] ss:$16 sps:$4 sm:$0xff]   ;;  %v9652_v20 = vld [vmem:[%s10984_s13 + $0x1ec] ss:$16 sps:$4 sm:$0xff]  }
 0xc02   :  { %4338 = vmatmul.mubr.bf16.vlgmr.msra.gmra.mrb[28].mxu0 %v3622_v16  ;;  %4420 = vmatmul.mubr.bf16.vlgmr.msra.gmra.mrb[32].mxu1 %v3622_v16  ;;  %v9646_v16 = vld [vmem:[%s10984_s13 + $0x1cc] ss:$16 sps:$4 sm:$0xff]  }
 0xc03   :  { %5666 = vmatpush1.bf16.msra.mxu0 %v9557_v18  ;;  %5748 = vmatpush1.bf16.msra.mxu1 %v9560_v19  ;;  %v9644_v18 = vld [vmem:[%s10984_s13 + $0x1c8] ss:$16 sps:$4 sm:$0xff]   ;;  %v9649_v19 = vld [vmem:[%s10984_s13 + $0x1e4] ss:$16 sps:$4 sm:$0xff]  }
 0xc04   :  { %5667 = vmatprep.subr.bf16.mxu0 %v9565_v14  ;;  %5749 = vmatprep.subr.bf16.mxu1 %v9568_v7  ;;  %v9647_v14 = vld [vmem:[%s10984_s13 + $0x1e0] ss:$16 sps:$4 sm:$0xff]   ;;  %v9650_v7 = vld [vmem:[%s10984_s13 + $0x1e8] ss:$16 sps:$4 sm:$0xff]  }
 0xc07   :  { %5668 = vmatpush1.bf16.msra.mxu0 %v9563_v44  ;;  %5750 = vmatpush1.bf16.msra.mxu1 %v9566_v21  ;;  %v9655_v44 = vld [vmem:[%s10984_s13 + $0x204] ss:$16 sps:$4 sm:$0xff]   ;;  %v9658_v21 = vld [vmem:[%s10984_s13 + $0x20c] ss:$16 sps:$4 sm:$0xff]  }
 0xc08   :  { %5669 = vmatprep.subr.bf16.mxu0 %v9571_v22  ;;  %5751 = vmatprep.subr.bf16.mxu1 %v9574_v23 }
 0xc0b   :  { %5670 = vmatpush1.bf16.msra.mxu0 %v9569_v24  ;;  %5752 = vmatpush1.bf16.msra.mxu1 %v9572_v17 }
 0xc0c   :  { %5671 = vmatprep.subr.bf16.mxu0 %v9577_v6  ;;  %5753 = vmatprep.subr.bf16.mxu1 %v9580_v25 }
 0xc0f   :  { %5672 = vmatpush1.bf16.msra.mxu0 %v9575_v26  ;;  %5754 = vmatpush1.bf16.msra.mxu1 %v9578_v28 }
 0xc10   :  { %5673 = vmatprep.subr.bf16.mxu0 %v9583_v29  ;;  %5755 = vmatprep.subr.bf16.mxu1 %v9586_v32 }
 0xc13   :  { %5674 = vmatpush1.bf16.msra.mxu0 %v9581_v56  ;;  %5756 = vmatpush1.bf16.msra.mxu1 %v9584_v33 }
 0xc14   :  { %5675 = vmatprep.subr.bf16.mxu0 %v9589_v34  ;;  %5757 = vmatprep.subr.bf16.mxu1 %v9592_v35 }
 0xc17   :  { %5676 = vmatpush1.bf16.msra.mxu0 %v9587_v51  ;;  %5758 = vmatpush1.bf16.msra.mxu1 %v9590_v1 }
 0xc18   :  { %5677 = vmatprep.subr.bf16.mxu0 %v9595_v37  ;;  %5759 = vmatprep.subr.bf16.mxu1 %v9598_v38 }
 0xc1b   :  { %5678 = vmatpush1.bf16.msra.mxu0 %v9593_v40  ;;  %5760 = vmatpush1.bf16.msra.mxu1 %v9596_v42 }
 0xc1c   :  { %5679 = vmatprep.subr.bf16.mxu0 %v9601_v47  ;;  %5761 = vmatprep.subr.bf16.mxu1 %v9604_v36 }
 0xc1f   :  { %5680 = vmatpush1.bf16.msra.mxu0 %v9599_v54  ;;  %5762 = vmatpush1.bf16.msra.mxu1 %v9602_v39 }
 0xc20   :  { %5681 = vmatprep.subr.bf16.mxu0 %v9607_v53  ;;  %5763 = vmatprep.subr.bf16.mxu1 %v9610_v49 }
 0xc23   :  { %5682 = vmatpush1.bf16.msra.mxu0 %v9605_v60  ;;  %5764 = vmatpush1.bf16.msra.mxu1 %v9608_v62 }
 0xc24   :  { %5683 = vmatprep.subr.bf16.mxu0 %v9613_v27  ;;  %5765 = vmatprep.subr.bf16.mxu1 %v9616_v46 }
 0xc27   :  { %5684 = vmatpush1.bf16.msra.mxu0 %v9611_v50  ;;  %5766 = vmatpush1.bf16.msra.mxu1 %v9614_v48 }
 0xc28   :  { %5685 = vmatprep.subr.bf16.mxu0 %v9619_v41  ;;  %5767 = vmatprep.subr.bf16.mxu1 %v9622_v45 }
 0xc2b   :  { %5686 = vmatpush1.bf16.msra.mxu0 %v9617_v57  ;;  %5768 = vmatpush1.bf16.msra.mxu1 %v9620_v61 }
 0xc2c   :  { %5687 = vmatprep.subr.bf16.mxu0 %v9625_v63  ;;  %5769 = vmatprep.subr.bf16.mxu1 %v9628_v0 }
 0xc2f   :  { %5688 = vmatpush1.bf16.msra.mxu0 %v9623_v59  ;;  %5770 = vmatpush1.bf16.msra.mxu1 %v9626_v52 }
 0xc30   :  { %5689 = vmatprep.subr.bf16.mxu0 %v9631_v2  ;;  %5771 = vmatprep.subr.bf16.mxu1 %v9634_v3 }
 0xc33   :  { %5690 = vmatpush1.bf16.msra.mxu0 %v9629_v4  ;;  %5772 = vmatpush1.bf16.msra.mxu1 %v9632_v5 }
 0xc34   :  { %5691 = vmatprep.subr.bf16.mxu0 %v9637_v8  ;;  %5773 = vmatprep.subr.bf16.mxu1 %v9640_v9 }
 0xc37   :  { %5692 = vmatpush1.bf16.msra.mxu0 %v9635_v10  ;;  %5774 = vmatpush1.bf16.msra.mxu1 %v9638_v11 }
 0xc38   :  { %5693 = vmatprep.subr.bf16.mxu0 %v9643_v13  ;;  %5775 = vmatprep.subr.bf16.mxu1 %v9646_v16 }
 0xc3b   :  { %5694 = vmatpush1.bf16.msra.mxu0 %v9641_v55  ;;  %5776 = vmatpush1.bf16.msra.mxu1 %v9644_v18 }
 0xc3c   :  { %5695 = vmatprep.subr.bf16.mxu0 %v9649_v19  ;;  %5777 = vmatprep.subr.bf16.mxu1 %v9652_v20 }
 0xc3f   :  { %5696 = vmatpush1.bf16.msra.mxu0 %v9647_v14  ;;  %5778 = vmatpush1.bf16.msra.mxu1 %v9650_v7 }
 0xc40   :  { %5706 = vmatprep.subr.bf16.mxu0 %v9655_v44  ;;  %5788 = vmatprep.subr.bf16.mxu1 %v9658_v21 }
 0xcd5   :  { %v11052_v22 = vpop.f32.mrb[28].mxu0  ;;  %v11054_v23 = vpop.f32.mrb[32].mxu1 }
 0xcd6   :  { %v4428_v24 = vsel %vm694_vm3, %v11052_v22, 0.0  ;;  %v4460_v17 = vmul.f32 %v11052_v22, %v11052_v22  ;;  %v4442_v6 = vsel %vm694_vm3, %v11054_v23, 0.0  ;;  %v4462_v25 = vmul.f32 %v11054_v23, %v11054_v23  ;;  %v11064_v26 = vpop.f32.mrb[29].mxu0  ;;  %v11066_v28 = vpop.f32.mrb[33].mxu1 }
 0xcd7   :  { %v4429_v29 = vrot.slane %v4428_v24, 4  ;;  %v4443_v32 = vrot.slane %v4442_v6, 4  ;;  %v4435_v56 = vsel %vm694_vm3, %v11064_v26, 0.0  ;;  %v4461_v33 = vmul.f32 %v11064_v26, %v11064_v26  ;;  %v4343_v34 = vpop.f32.mrb[30].mxu0  ;;  %v4425_v35 = vpop.f32.mrb[34].mxu1 }
 0xcd8   :  { %v4464_v51 = vsel %vm694_vm3, %v4460_v17, 0.0  ;;  %v4478_v1 = vsel %vm694_vm3, %v4462_v25, 0.0  ;;  %v4436_v37 = vrot.slane %v4435_v56, 4  ;;  %v4449_v38 = vsel %vm694_vm3, %v11066_v28, 0.0  ;;  %v4344_v40 = vpop.f32.mrb[31].mxu0  ;;  %v4426_v42 = vpop.f32.mrb[35].mxu1 }
 0xcd9   :  { %v4430_v47 = vadd.f32 %v4429_v29, %v4428_v24  ;;  %v4465_v36 = vrot.slane %v4464_v51, 4  ;;  %v4444_v54 = vadd.f32 %v4443_v32, %v4442_v6  ;;  %v4479_v39 = vrot.slane %v4478_v1, 4 }
 0xcda   :  { %v4437_v53 = vadd.f32 %v4436_v37, %v4435_v56  ;;  %v4471_v49 = vsel %vm694_vm3, %v4461_v33, 0.0  ;;  %v4450_v60 = vrot.slane %v4449_v38, 4  ;;  %v4463_v62 = vmul.f32 %v11066_v28, %v11066_v28 }
 0xcdb   :  { %v4431_v27 = vrot.slane %v4430_v47, 2  ;;  %v4466_v46 = vadd.f32 %v4465_v36, %v4464_v51  ;;  %v4445_v50 = vrot.slane %v4444_v54, 2  ;;  %v4480_v48 = vadd.f32 %v4479_v39, %v4478_v1 }
 0xcdc   :  { %v4438_v41 = vrot.slane %v4437_v53, 2  ;;  %v4472_v45 = vrot.slane %v4471_v49, 4  ;;  %v4451_v57 = vadd.f32 %v4450_v60, %v4449_v38  ;;  %v4485_v61 = vsel %vm694_vm3, %v4463_v62, 0.0 }
 0xcdd   :  { %v4432_v63 = vadd.f32 %v4431_v27, %v4430_v47  ;;  %v4467_v0 = vrot.slane %v4466_v46, 2  ;;  %v4446_v59 = vadd.f32 %v4445_v50, %v4444_v54  ;;  %v4481_v52 = vrot.slane %v4480_v48, 2 }
 0xcde   :  { %v4439_v2 = vadd.f32 %v4438_v41, %v4437_v53  ;;  %v4473_v3 = vadd.f32 %v4472_v45, %v4471_v49  ;;  %v4452_v4 = vrot.slane %v4451_v57, 2  ;;  %v4486_v5 = vrot.slane %v4485_v61, 4 }
 0xcdf   :  { %v4433_v8 = vrot.slane %v4432_v63, 1  ;;  %v4468_v9 = vadd.f32 %v4467_v0, %v4466_v46  ;;  %v4447_v10 = vrot.slane %v4446_v59, 1  ;;  %v4482_v11 = vadd.f32 %v4481_v52, %v4480_v48 }
 0xce0   :  { %v4440_v13 = vrot.slane %v4439_v2, 1  ;;  %v4474_v16 = vrot.slane %v4473_v3, 2  ;;  %v4453_v55 = vadd.f32 %v4452_v4, %v4451_v57  ;;  %v4487_v18 = vadd.f32 %v4486_v5, %v4485_v61 }
 0xce1   :  { %v4434_v19 = vadd.f32 %v4433_v8, %v4432_v63  ;;  %v4469_v20 = vrot.slane %v4468_v9, 1  ;;  %v4448_v14 = vadd.f32 %v4447_v10, %v4446_v59  ;;  %v4483_v7 = vrot.slane %v4482_v11, 1 }
 0xce2   :  { %v4441_v44 = vadd.f32 %v4440_v13, %v4439_v2  ;;  %v4475_v21 = vadd.f32 %v4474_v16, %v4473_v3  ;;  %v4454_v24 = vrot.slane %v4453_v55, 1  ;;  %v4488_v17 = vrot.slane %v4487_v18, 2  ;;  %v10193_v13 = vld [vmem:[%s10883_s5] sm:$0xf] }
 0xce3   :  { %v4456_v6 = vmul.f32 0.5, %v4434_v19  ;;  %v4470_v25 = vadd.f32 %v4469_v20, %v4468_v9  ;;  %v4458_v29 = vmul.f32 0.5, %v4448_v14  ;;  %v4484_v32 = vadd.f32 %v4483_v7, %v4482_v11 }
 0xce4   :  { %v4457_v56 = vmul.f32 0.5, %v4441_v44  ;;  %v4476_v33 = vrot.slane %v4475_v21, 1  ;;  %v4455_v34 = vadd.f32 %v4454_v24, %v4453_v55  ;;  %v4489_v35 = vadd.f32 %v4488_v17, %v4487_v18 }
 0xce5   :  { %v4492_v51 = vmul.f32 0.5, %v4470_v25  ;;  %v4496_v1 = vmul.f32 %v4456_v6, %v4456_v6  ;;  %v4494_v37 = vmul.f32 0.5, %v4484_v32  ;;  %v4498_v38 = vmul.f32 %v4458_v29, %v4458_v29 }
 0xce6   :  { %v4477_v40 = vadd.f32 %v4476_v33, %v4475_v21  ;;  %v4497_v42 = vmul.f32 %v4457_v56, %v4457_v56  ;;  %v4459_v47 = vmul.f32 0.5, %v4455_v34  ;;  %v4490_v36 = vrot.slane %v4489_v35, 1 }
 0xce7   :  { %v4500_v54 = vsub.f32 %v4492_v51, %v4496_v1  ;;  %v4502_v39 = vsub.f32 %v4494_v37, %v4498_v38 }
 0xce8   :  { %v4493_v53 = vmul.f32 0.5, %v4477_v40  ;;  %v4491_v49 = vadd.f32 %v4490_v36, %v4489_v35  ;;  %v4499_v60 = vmul.f32 %v4459_v47, %v4459_v47 }
 0xce9   :  { %v4504_v62 = vmax.f32 %v4500_v54, 0.0  ;;  %v4506_v27 = vmax.f32 %v4502_v39, 0.0 }
 0xcea   :  { %v4501_v46 = vsub.f32 %v4493_v53, %v4497_v42  ;;  %v4495_v50 = vmul.f32 0.5, %v4491_v49  ;;  %v9653_v53 = vld [vmem:[%s10984_s13 + $0x200] ss:$16 sps:$4 sm:$0xff]   ;;  %v9656_v49 = vld [vmem:[%s10984_s13 + $0x208] ss:$16 sps:$4 sm:$0xff]  }
 0xceb   :  { %v4508_v48 = vadd.f32 1e-05, %v4504_v62  ;;  %v4510_v41 = vadd.f32 1e-05, %v4506_v27  ;;  %v9661_v62 = vld [vmem:[%s10984_s13 + $0x224] ss:$16 sps:$4 sm:$0xff]  }
 0xcec   :  { %v4505_v45 = vmax.f32 %v4501_v46, 0.0  ;;  %v4503_v57 = vsub.f32 %v4495_v50, %v4499_v60  ;;  %v9664_v27 = vld [vmem:[%s10984_s13 + $0x22c] ss:$16 sps:$4 sm:$0xff]   ;;  %v9659_v50 = vld [vmem:[%s10984_s13 + $0x220] ss:$16 sps:$4 sm:$0xff]  }
 0xced   :  { %10169 = vrsqrt.f32 %v4508_v48  ;;  %v9662_v48 = vld [vmem:[%s10984_s13 + $0x228] ss:$16 sps:$4 sm:$0xff]  }
 0xcee   :  { %v4509_v61 = vadd.f32 1e-05, %v4505_v45  ;;  %v4507_v63 = vmax.f32 %v4503_v57, 0.0  ;;  %10171 = vrsqrt.f32 %v4510_v41  ;;  %v9667_v41 = vld [vmem:[%s10984_s13 + $0x244] ss:$16 sps:$4 sm:$0xff]  }
 0xcef   :  { %v9670_v45 = vld [vmem:[%s10984_s13 + $0x24c] ss:$16 sps:$4 sm:$0xff]   ;;  %v9665_v57 = vld [vmem:[%s10984_s13 + $0x240] ss:$16 sps:$4 sm:$0xff]  }
 0xcf0   :  { %10173 = vrsqrt.f32 %v4509_v61  ;;  %v4511_v0 = vadd.f32 1e-05, %v4507_v63  ;;  %v9668_v61 = vld [vmem:[%s10984_s13 + $0x248] ss:$16 sps:$4 sm:$0xff]   ;;  %v9673_v63 = vld [vmem:[%s10984_s13 + $0x264] ss:$16 sps:$4 sm:$0xff]  }
 0xcf2   :  { %10175 = vrsqrt.f32 %v4511_v0  ;;  %v9676_v0 = vld [vmem:[%s10984_s13 + $0x26c] ss:$16 sps:$4 sm:$0xff]  }
 0xcf7   :  { %v10170_v59 = vpop.eup %10169 }
 0xcf8   :  { %v10172_v52 = vpop.eup %10171 }
 0xcfa   :  { %v10174_v2 = vpop.eup %10173 }
 0xcfb   :  { %v4520_v3 = vcombine.low %v10170_v59, %v10174_v2  ;;  %v9671_v59 = vld [vmem:[%s10984_s13 + $0x260] ss:$16 sps:$4 sm:$0xff]   ;;  %v9679_v2 = vld [vmem:[%s10984_s13 + $0x284] ss:$16 sps:$4 sm:$0xff]  }
 0xcfc   :  { %v10176_v4 = vpop.eup %10175 }
 0xcfd   :  { %v4521_v5 = vcombine.low %v10172_v52, %v10176_v4  ;;  %v4528_v8 = vrot.slane %v4520_v3, %v10266_v15  ;;  %v9674_v52 = vld [vmem:[%s10984_s13 + $0x268] ss:$16 sps:$4 sm:$0xff]   ;;  %v9682_v3 = vld [vmem:[%s10984_s13 + $0x28c] ss:$16 sps:$4 sm:$0xff]   ;;  %v9677_v4 = vld [vmem:[%s10984_s13 + $0x280] ss:$16 sps:$4 sm:$0xff]  }
 0xcff   :  { %v4535_v9 = vrot.slane %v4521_v5, %v10266_v15  ;;  %v9680_v5 = vld [vmem:[%s10984_s13 + $0x288] ss:$16 sps:$4 sm:$0xff]  }
 0xd01   :  { %v4536_v10 = vcombine.low %v4528_v8, %v4535_v9  ;;  %v9685_v8 = vld [vmem:[%s10984_s13 + $0x2a4] ss:$16 sps:$4 sm:$0xff]   ;;  %v9688_v9 = vld [vmem:[%s10984_s13 + $0x2ac] ss:$16 sps:$4 sm:$0xff]  }
 0xd03   :  { %v4543_v11 = vrot.slane %v4536_v10, %v10266_v15  ;;  %v9683_v10 = vld [vmem:[%s10984_s13 + $0x2a0] ss:$16 sps:$4 sm:$0xff]  }
 0xd05   :  { %v4545_v16 = vmul.f32 %v10193_v13, %v4543_v11  ;;  %v9686_v11 = vld [vmem:[%s10984_s13 + $0x2a8] ss:$16 sps:$4 sm:$0xff]   ;;  %v9691_v13 = vld [vmem:[%s10984_s13 + $0x2c4] ss:$16 sps:$4 sm:$0xff]  }
 0xd07   :  { %v4550_v55 = vrot.slane %v4545_v16, %v10305_v58  ;;  %v4554_v18 = vrot.slane %v4545_v16, %v10512_v43  ;;  %v4558_v19 = vrot.slane %v4545_v16, %v10890_v30  ;;  %v4562_v20 = vrot.slane %v4545_v16, %v10893_v31  ;;  %v9694_v16 = vld [vmem:[%s10984_s13 + $0x2cc] ss:$16 sps:$4 sm:$0xff]  }
 0xd09   :  { %v4567_v14 = vmul.f32 %v4550_v55, %v4456_v6  ;;  %v4568_v7 = vmul.f32 %v4554_v18, %v4457_v56  ;;  %v4569_v44 = vmul.f32 %v4558_v19, %v4458_v29  ;;  %v4570_v21 = vmul.f32 %v4562_v20, %v4459_v47  ;;  %v10194_v29 = vld [vmem:[%s10903_s9] sm:$0xf] }
 0xd0a   :  { %v4604_v24 = vmul.f32 %v4562_v20, %v11066_v28  ;;  %v4602_v17 = vmul.f32 %v4554_v18, %v11064_v26  ;;  %v4601_v25 = vmul.f32 %v4550_v55, %v11052_v22  ;;  %v4603_v32 = vmul.f32 %v4558_v19, %v11054_v23  ;;  %v9689_v55 = vld [vmem:[%s10984_s13 + $0x2c0] ss:$16 sps:$4 sm:$0xff]   ;;  %v9692_v18 = vld [vmem:[%s10984_s13 + $0x2c8] ss:$16 sps:$4 sm:$0xff]   ;;  %v9697_v19 = vld [vmem:[%s10984_s13 + $0x2e4] ss:$16 sps:$4 sm:$0xff]  }
 0xd0b   :  { %v4575_v33 = vcombine.low %v4567_v14, %v4568_v7  ;;  %v4576_v34 = vcombine.low %v4569_v44, %v4570_v21  ;;  %v9700_v20 = vld [vmem:[%s10984_s13 + $0x2ec] ss:$16 sps:$4 sm:$0xff]   ;;  %v9695_v14 = vld [vmem:[%s10984_s13 + $0x2e0] ss:$16 sps:$4 sm:$0xff]   ;;  %v9698_v7 = vld [vmem:[%s10984_s13 + $0x2e8] ss:$16 sps:$4 sm:$0xff]  }
 0xd0c   :  { %v9703_v44 = vld [vmem:[%s10984_s13 + $0x304] ss:$16 sps:$4 sm:$0xff]   ;;  %v9706_v21 = vld [vmem:[%s10984_s13 + $0x30c] ss:$16 sps:$4 sm:$0xff]  }
 0xd0d   :  { %v4583_v35 = vrot.slane %v4575_v33, %v10266_v15  ;;  %v4590_v51 = vrot.slane %v4576_v34, %v10266_v15  ;;  %v9707_v33 = vld [vmem:[%s10984_s13 + $0x320] ss:$16 sps:$4 sm:$0xff]   ;;  %v9710_v34 = vld [vmem:[%s10984_s13 + $0x328] ss:$16 sps:$4 sm:$0xff]  }
 0xd0f   :  { %v4591_v1 = vcombine.low %v4583_v35, %v4590_v51  ;;  %v9715_v35 = vld [vmem:[%s10984_s13 + $0x344] ss:$16 sps:$4 sm:$0xff]   ;;  %v9718_v51 = vld [vmem:[%s10984_s13 + $0x34c] ss:$16 sps:$4 sm:$0xff]  }
 0xd11   :  { %v4598_v6 = vrot.slane %v4591_v1, %v10266_v15  ;;  %v9713_v1 = vld [vmem:[%s10984_s13 + $0x340] ss:$16 sps:$4 sm:$0xff]  }
 0xd13   :  { %v4600_v56 = vsub.f32 %v10194_v29, %v4598_v6  ;;  %v9716_v6 = vld [vmem:[%s10984_s13 + $0x348] ss:$16 sps:$4 sm:$0xff]   ;;  %v9721_v29 = vld [vmem:[%s10984_s13 + $0x364] ss:$16 sps:$4 sm:$0xff]  }
 0xd15   :  { %v4621_v28 = vrot.slane %v4600_v56, %v10893_v31  ;;  %v4613_v26 = vrot.slane %v4600_v56, %v10512_v43  ;;  %v4609_v22 = vrot.slane %v4600_v56, %v10305_v58  ;;  %v4617_v23 = vrot.slane %v4600_v56, %v10890_v30  ;;  %v9724_v56 = vld [vmem:[%s10984_s13 + $0x36c] ss:$16 sps:$4 sm:$0xff]  }
 0xd17   :  { %v4629_v37 = vadd.f32 %v4621_v28, %v4604_v24  ;;  %v4627_v38 = vadd.f32 %v4613_v26, %v4602_v17  ;;  %v4626_v40 = vadd.f32 %v4609_v22, %v4601_v25  ;;  %v11100_v42 = vadd.f32 %v4617_v23, %v4603_v32  ;;  %v9701_v24 = vld [vmem:[%s10984_s13 + $0x300] ss:$16 sps:$4 sm:$0xff]   ;;  %v9704_v17 = vld [vmem:[%s10984_s13 + $0x308] ss:$16 sps:$4 sm:$0xff]   ;;  %v9709_v25 = vld [vmem:[%s10984_s13 + $0x324] ss:$16 sps:$4 sm:$0xff]  }
 0xd18   :  { %v9712_v32 = vld [vmem:[%s10984_s13 + $0x32c] ss:$16 sps:$4 sm:$0xff]   ;;  %v9719_v28 = vld [vmem:[%s10984_s13 + $0x360] ss:$16 sps:$4 sm:$0xff]   ;;  %v9722_v26 = vld [vmem:[%s10984_s13 + $0x368] ss:$16 sps:$4 sm:$0xff]  }
 0xd19   :  { %v4631_v47 = vmax.f32 %v4627_v38, 0.0  ;;  %v4630_v36 = vmax.f32 %v4626_v40, 0.0  ;;  %v4633_v54 = vmax.f32 %v4629_v37, 0.0  ;;  %v9727_v22 = vld [vmem:[%s10984_s13 + $0x384] ss:$16 sps:$4 sm:$0xff]  }
 0xd1a   :  { %v9730_v23 = vld [vmem:[%s10984_s13 + $0x38c] ss:$16 sps:$4 sm:$0xff]   ;;  %v9725_v37 = vld [vmem:[%s10984_s13 + $0x380] ss:$16 sps:$4 sm:$0xff]   ;;  %v9728_v38 = vld [vmem:[%s10984_s13 + $0x388] ss:$16 sps:$4 sm:$0xff]  }
 0xd1b   :  { %v11102_v39 = vpack.c.bf16 %v4631_v47, %v4631_v47  ;;  %v11106_v60 = vpack.c.bf16 %v4630_v36, %v4630_v36  ;;  %v11112_v46 = vpack.c.bf16 %v4633_v54, %v4633_v54  ;;  %v9733_v40 = vld [vmem:[%s10984_s13 + $0x3a4] ss:$16 sps:$4 sm:$0xff]   ;;  %v9736_v47 = vld [vmem:[%s10984_s13 + $0x3ac] ss:$16 sps:$4 sm:$0xff]   ;;  %v9731_v36 = vld [vmem:[%s10984_s13 + $0x3a0] ss:$16 sps:$4 sm:$0xff]  }
 0xd1c   :  { %v9734_v54 = vld [vmem:[%s10984_s13 + $0x3a8] ss:$16 sps:$4 sm:$0xff]  }
 0xd1d   :  { %5697 = vmatprep.mubr.bf16.mxu0 %v11102_v39  ;;  %5779 = vmatprep.mubr.bf16.mxu1 %v11102_v39 }
 0xd1e   :  { %5698 = vmatmul.mubr.bf16.vlgmr.msra.gmra.mrb[32].mxu0 %v11106_v60  ;;  %5780 = vmatmul.mubr.bf16.vlgmr.msra.gmra.mrb[36].mxu1 %v11106_v60 }
 0xd1f   :  { %5707 = vmatpush1.bf16.msra.mxu0 %v9653_v53  ;;  %5789 = vmatpush1.bf16.msra.mxu1 %v9656_v49  ;;  %v9739_v53 = vld [vmem:[%s10984_s13 + $0x3c4] ss:$16 sps:$4 sm:$0xff]   ;;  %v9742_v49 = vld [vmem:[%s10984_s13 + $0x3cc] ss:$16 sps:$4 sm:$0xff]  }
 0xd20   :  { %5738 = vmatprep.mubr.bf16.mxu0 %v11112_v46  ;;  %5820 = vmatprep.mubr.bf16.mxu1 %v11112_v46 }
 0xd21   :  { %5708 = vmatprep.subr.bf16.mxu0 %v9661_v62  ;;  %5790 = vmatprep.subr.bf16.mxu1 %v9664_v27  ;;  %v9737_v62 = vld [vmem:[%s10984_s13 + $0x3c0] ss:$16 sps:$4 sm:$0xff]   ;;  %v9740_v27 = vld [vmem:[%s10984_s13 + $0x3c8] ss:$16 sps:$4 sm:$0xff]  }
 0xd23   :  { %5709 = vmatpush1.bf16.msra.mxu0 %v9659_v50  ;;  %5791 = vmatpush1.bf16.msra.mxu1 %v9662_v48  ;;  %v9745_v50 = vld [vmem:[%s10984_s13 + $0x3e4] ss:$16 sps:$4 sm:$0xff]   ;;  %v9748_v48 = vld [vmem:[%s10984_s13 + $0x3ec] ss:$16 sps:$4 sm:$0xff]  }
 0xd24   :  { %5710 = vmatprep.subr.bf16.mxu0 %v9667_v41  ;;  %5792 = vmatprep.subr.bf16.mxu1 %v9670_v45  ;;  %v9743_v41 = vld [vmem:[%s10984_s13 + $0x3e0] ss:$16 sps:$4 sm:$0xff]   ;;  %v9746_v45 = vld [vmem:[%s10984_s13 + $0x3e8] ss:$16 sps:$4 sm:$0xff]  }
 0xd27   :  { %5711 = vmatpush1.bf16.msra.mxu0 %v9665_v57  ;;  %5793 = vmatpush1.bf16.msra.mxu1 %v9668_v61  ;;  %v4632_v57 = vmax.f32 %v11100_v42, 0.0  ;;  %v9751_v42 = vld [vmem:[%s11184_s17 + $0x4] ss:$16 sps:$4 sm:$0xff]  }
 0xd28   :  { %5712 = vmatprep.subr.bf16.mxu0 %v9673_v63  ;;  %5794 = vmatprep.subr.bf16.mxu1 %v9676_v0  ;;  %v9749_v63 = vld [vmem:[%s11184_s17] ss:$16 sps:$4 sm:$0xff]   ;;  %v9752_v0 = vld [vmem:[%s11184_s17 + $0x8] ss:$16 sps:$4 sm:$0xff]  }
 0xd29   :  { %v11177_v61 = vpack.c.bf16 %v4632_v57, %v4632_v57  ;;  %v9827_v57 = vld [vmem:[%s11184_s17 + $0x1a0] ss:$16 sps:$4 sm:$0xff]  }
 0xd2b   :  { %5713 = vmatpush1.bf16.msra.mxu0 %v9671_v59  ;;  %5795 = vmatpush1.bf16.msra.mxu1 %v9674_v52  ;;  %v9754_v59 = vld [vmem:[%s11184_s17 + $0xc] ss:$16 sps:$4 sm:$0xff]   ;;  %v9757_v52 = vld [vmem:[%s11184_s17 + $0x24] ss:$16 sps:$4 sm:$0xff]  }
 0xd2c   :  { %5714 = vmatprep.subr.bf16.mxu0 %v9679_v2  ;;  %5796 = vmatprep.subr.bf16.mxu1 %v9682_v3  ;;  %v9760_v2 = vld [vmem:[%s11184_s17 + $0x2c] ss:$16 sps:$4 sm:$0xff]   ;;  %v9755_v3 = vld [vmem:[%s11184_s17 + $0x20] ss:$16 sps:$4 sm:$0xff]  }
 0xd2f   :  { %5715 = vmatpush1.bf16.msra.mxu0 %v9677_v4  ;;  %5797 = vmatpush1.bf16.msra.mxu1 %v9680_v5  ;;  %v9758_v4 = vld [vmem:[%s11184_s17 + $0x28] ss:$16 sps:$4 sm:$0xff]   ;;  %v9763_v5 = vld [vmem:[%s11184_s17 + $0x44] ss:$16 sps:$4 sm:$0xff]  }
 0xd30   :  { %5716 = vmatprep.subr.bf16.mxu0 %v9685_v8  ;;  %5798 = vmatprep.subr.bf16.mxu1 %v9688_v9  ;;  %v9766_v8 = vld [vmem:[%s11184_s17 + $0x4c] ss:$16 sps:$4 sm:$0xff]   ;;  %v9761_v9 = vld [vmem:[%s11184_s17 + $0x40] ss:$16 sps:$4 sm:$0xff]  }
 0xd33   :  { %5717 = vmatpush1.bf16.msra.mxu0 %v9683_v10  ;;  %5799 = vmatpush1.bf16.msra.mxu1 %v9686_v11  ;;  %v9764_v10 = vld [vmem:[%s11184_s17 + $0x48] ss:$16 sps:$4 sm:$0xff]   ;;  %v9769_v11 = vld [vmem:[%s11184_s17 + $0x64] ss:$16 sps:$4 sm:$0xff]  }
 0xd34   :  { %5718 = vmatprep.subr.bf16.mxu0 %v9691_v13  ;;  %5800 = vmatprep.subr.bf16.mxu1 %v9694_v16  ;;  %v9772_v13 = vld [vmem:[%s11184_s17 + $0x6c] ss:$16 sps:$4 sm:$0xff]   ;;  %v9767_v16 = vld [vmem:[%s11184_s17 + $0x60] ss:$16 sps:$4 sm:$0xff]  }
 0xd37   :  { %5719 = vmatpush1.bf16.msra.mxu0 %v9689_v55  ;;  %5801 = vmatpush1.bf16.msra.mxu1 %v9692_v18  ;;  %v9770_v55 = vld [vmem:[%s11184_s17 + $0x68] ss:$16 sps:$4 sm:$0xff]   ;;  %v9775_v18 = vld [vmem:[%s11184_s17 + $0x84] ss:$16 sps:$4 sm:$0xff]  }
 0xd38   :  { %5720 = vmatprep.subr.bf16.mxu0 %v9697_v19  ;;  %5802 = vmatprep.subr.bf16.mxu1 %v9700_v20  ;;  %v9778_v19 = vld [vmem:[%s11184_s17 + $0x8c] ss:$16 sps:$4 sm:$0xff]   ;;  %v9773_v20 = vld [vmem:[%s11184_s17 + $0x80] ss:$16 sps:$4 sm:$0xff]  }
 0xd3b   :  { %5721 = vmatpush1.bf16.msra.mxu0 %v9695_v14  ;;  %5803 = vmatpush1.bf16.msra.mxu1 %v9698_v7  ;;  %v9776_v14 = vld [vmem:[%s11184_s17 + $0x88] ss:$16 sps:$4 sm:$0xff]   ;;  %v9781_v7 = vld [vmem:[%s11184_s17 + $0xa4] ss:$16 sps:$4 sm:$0xff]  }
 0xd3c   :  { %5722 = vmatprep.subr.bf16.mxu0 %v9703_v44  ;;  %5804 = vmatprep.subr.bf16.mxu1 %v9706_v21  ;;  %v9784_v44 = vld [vmem:[%s11184_s17 + $0xac] ss:$16 sps:$4 sm:$0xff]   ;;  %v9779_v21 = vld [vmem:[%s11184_s17 + $0xa0] ss:$16 sps:$4 sm:$0xff]  }
 0xd3f   :  { %5723 = vmatpush1.bf16.msra.mxu0 %v9701_v24  ;;  %5805 = vmatpush1.bf16.msra.mxu1 %v9704_v17  ;;  %v9782_v24 = vld [vmem:[%s11184_s17 + $0xa8] ss:$16 sps:$4 sm:$0xff]   ;;  %v9787_v17 = vld [vmem:[%s11184_s17 + $0xc4] ss:$16 sps:$4 sm:$0xff]  }
 0xd40   :  { %5724 = vmatprep.subr.bf16.mxu0 %v9709_v25  ;;  %5806 = vmatprep.subr.bf16.mxu1 %v9712_v32  ;;  %v9790_v25 = vld [vmem:[%s11184_s17 + $0xcc] ss:$16 sps:$4 sm:$0xff]   ;;  %v9785_v32 = vld [vmem:[%s11184_s17 + $0xc0] ss:$16 sps:$4 sm:$0xff]  }
 0xd43   :  { %5725 = vmatpush1.bf16.msra.mxu0 %v9707_v33  ;;  %5807 = vmatpush1.bf16.msra.mxu1 %v9710_v34  ;;  %v9788_v33 = vld [vmem:[%s11184_s17 + $0xc8] ss:$16 sps:$4 sm:$0xff]   ;;  %v9793_v34 = vld [vmem:[%s11184_s17 + $0xe4] ss:$16 sps:$4 sm:$0xff]  }
 0xd44   :  { %5726 = vmatprep.subr.bf16.mxu0 %v9715_v35  ;;  %5808 = vmatprep.subr.bf16.mxu1 %v9718_v51  ;;  %v9796_v35 = vld [vmem:[%s11184_s17 + $0xec] ss:$16 sps:$4 sm:$0xff]   ;;  %v9791_v51 = vld [vmem:[%s11184_s17 + $0xe0] ss:$16 sps:$4 sm:$0xff]  }
 0xd47   :  { %5727 = vmatpush1.bf16.msra.mxu0 %v9713_v1  ;;  %5809 = vmatpush1.bf16.msra.mxu1 %v9716_v6  ;;  %v9794_v1 = vld [vmem:[%s11184_s17 + $0xe8] ss:$16 sps:$4 sm:$0xff]   ;;  %v9799_v6 = vld [vmem:[%s11184_s17 + $0x104] ss:$16 sps:$4 sm:$0xff]  }
 0xd48   :  { %5728 = vmatprep.subr.bf16.mxu0 %v9721_v29  ;;  %5810 = vmatprep.subr.bf16.mxu1 %v9724_v56  ;;  %v9802_v29 = vld [vmem:[%s11184_s17 + $0x10c] ss:$16 sps:$4 sm:$0xff]   ;;  %v9797_v56 = vld [vmem:[%s11184_s17 + $0x100] ss:$16 sps:$4 sm:$0xff]  }
 0xd4b   :  { %5729 = vmatpush1.bf16.msra.mxu0 %v9719_v28  ;;  %5811 = vmatpush1.bf16.msra.mxu1 %v9722_v26  ;;  %v9800_v28 = vld [vmem:[%s11184_s17 + $0x108] ss:$16 sps:$4 sm:$0xff]   ;;  %v9805_v26 = vld [vmem:[%s11184_s17 + $0x124] ss:$16 sps:$4 sm:$0xff]  }
 0xd4c   :  { %5730 = vmatprep.subr.bf16.mxu0 %v9727_v22  ;;  %5812 = vmatprep.subr.bf16.mxu1 %v9730_v23  ;;  %v9808_v22 = vld [vmem:[%s11184_s17 + $0x12c] ss:$16 sps:$4 sm:$0xff]   ;;  %v9803_v23 = vld [vmem:[%s11184_s17 + $0x120] ss:$16 sps:$4 sm:$0xff]  }
 0xd4f   :  { %5731 = vmatpush1.bf16.msra.mxu0 %v9725_v37  ;;  %5813 = vmatpush1.bf16.msra.mxu1 %v9728_v38  ;;  %v9806_v37 = vld [vmem:[%s11184_s17 + $0x128] ss:$16 sps:$4 sm:$0xff]   ;;  %v9811_v38 = vld [vmem:[%s11184_s17 + $0x144] ss:$16 sps:$4 sm:$0xff]  }
 0xd50   :  { %5732 = vmatprep.subr.bf16.mxu0 %v9733_v40  ;;  %5814 = vmatprep.subr.bf16.mxu1 %v9736_v47  ;;  %v9814_v40 = vld [vmem:[%s11184_s17 + $0x14c] ss:$16 sps:$4 sm:$0xff]   ;;  %v9809_v47 = vld [vmem:[%s11184_s17 + $0x140] ss:$16 sps:$4 sm:$0xff]  }
 0xd53   :  { %5733 = vmatpush1.bf16.msra.mxu0 %v9731_v36  ;;  %5815 = vmatpush1.bf16.msra.mxu1 %v9734_v54  ;;  %v9812_v36 = vld [vmem:[%s11184_s17 + $0x148] ss:$16 sps:$4 sm:$0xff]   ;;  %v9817_v54 = vld [vmem:[%s11184_s17 + $0x164] ss:$16 sps:$4 sm:$0xff]  }
 0xd54   :  { %5734 = vmatprep.subr.bf16.mxu0 %v9739_v53  ;;  %5816 = vmatprep.subr.bf16.mxu1 %v9742_v49  ;;  %v9820_v53 = vld [vmem:[%s11184_s17 + $0x16c] ss:$16 sps:$4 sm:$0xff]   ;;  %v9815_v49 = vld [vmem:[%s11184_s17 + $0x160] ss:$16 sps:$4 sm:$0xff]  }
 0xd57   :  { %5735 = vmatpush1.bf16.msra.mxu0 %v9737_v62  ;;  %5817 = vmatpush1.bf16.msra.mxu1 %v9740_v27  ;;  %v9818_v62 = vld [vmem:[%s11184_s17 + $0x168] ss:$16 sps:$4 sm:$0xff]   ;;  %v9823_v27 = vld [vmem:[%s11184_s17 + $0x184] ss:$16 sps:$4 sm:$0xff]  }
 0xd58   :  { %5736 = vmatprep.subr.bf16.mxu0 %v9745_v50  ;;  %5818 = vmatprep.subr.bf16.mxu1 %v9748_v48  ;;  %v9826_v50 = vld [vmem:[%s11184_s17 + $0x18c] ss:$16 sps:$4 sm:$0xff]   ;;  %v9821_v48 = vld [vmem:[%s11184_s17 + $0x180] ss:$16 sps:$4 sm:$0xff]  }
 0xd5b   :  { %5737 = vmatpush1.bf16.msra.mxu0 %v9743_v41  ;;  %5819 = vmatpush1.bf16.msra.mxu1 %v9746_v45  ;;  %v9824_v41 = vld [vmem:[%s11184_s17 + $0x188] ss:$16 sps:$4 sm:$0xff]   ;;  %v9829_v45 = vld [vmem:[%s11184_s17 + $0x1a4] ss:$16 sps:$4 sm:$0xff]  }
 0xd5c   :  { %6679 = vmatprep.subr.bf16.mxu0 %v9751_v42  ;;  %6761 = vmatprep.subr.bf16.mxu1 %v9754_v59  ;;  %v9832_v42 = vld [vmem:[%s11184_s17 + $0x1ac] ss:$16 sps:$4 sm:$0xff]   ;;  %v9833_v59 = vld [vmem:[%s11184_s17 + $0x1c0] ss:$16 sps:$4 sm:$0xff]  }
 0xd5e   :  { %5739 = vmatmul.mubr.bf16.vlgmr.msra.gmra.mrb[32].mxu0 %v11177_v61  ;;  %5821 = vmatmul.mubr.bf16.vlgmr.msra.gmra.mrb[36].mxu1 %v11177_v61 }
 0xd5f   :  { %6680 = vmatpush1.bf16.msra.mxu0 %v9749_v63  ;;  %6762 = vmatpush1.bf16.msra.mxu1 %v9752_v0  ;;  %v9835_v63 = vld [vmem:[%s11184_s17 + $0x1c4] ss:$16 sps:$4 sm:$0xff]   ;;  %v9830_v0 = vld [vmem:[%s11184_s17 + $0x1a8] ss:$16 sps:$4 sm:$0xff]  }
 0xd60   :  { %6681 = vmatprep.subr.bf16.mxu0 %v9757_v52  ;;  %6763 = vmatprep.subr.bf16.mxu1 %v9760_v2  ;;  %v9838_v52 = vld [vmem:[%s11184_s17 + $0x1cc] ss:$16 sps:$4 sm:$0xff]   ;;  %v9836_v2 = vld [vmem:[%s11184_s17 + $0x1c8] ss:$16 sps:$4 sm:$0xff]  }
 0xd63   :  { %6682 = vmatpush1.bf16.msra.mxu0 %v9755_v3  ;;  %6764 = vmatpush1.bf16.msra.mxu1 %v9758_v4  ;;  %v9841_v3 = vld [vmem:[%s11184_s17 + $0x1e4] ss:$16 sps:$4 sm:$0xff]   ;;  %v9844_v4 = vld [vmem:[%s11184_s17 + $0x1ec] ss:$16 sps:$4 sm:$0xff]  }
 0xd64   :  { %6683 = vmatprep.subr.bf16.mxu0 %v9763_v5  ;;  %6765 = vmatprep.subr.bf16.mxu1 %v9766_v8  ;;  %v9839_v5 = vld [vmem:[%s11184_s17 + $0x1e0] ss:$16 sps:$4 sm:$0xff]   ;;  %v9842_v8 = vld [vmem:[%s11184_s17 + $0x1e8] ss:$16 sps:$4 sm:$0xff]  }
 0xd67   :  { %6684 = vmatpush1.bf16.msra.mxu0 %v9761_v9  ;;  %6766 = vmatpush1.bf16.msra.mxu1 %v9764_v10  ;;  %v9847_v9 = vld [vmem:[%s11184_s17 + $0x204] ss:$16 sps:$4 sm:$0xff]   ;;  %v9850_v10 = vld [vmem:[%s11184_s17 + $0x20c] ss:$16 sps:$4 sm:$0xff]  }
 0xd68   :  { %6685 = vmatprep.subr.bf16.mxu0 %v9769_v11  ;;  %6767 = vmatprep.subr.bf16.mxu1 %v9772_v13 }
 0xd6b   :  { %6686 = vmatpush1.bf16.msra.mxu0 %v9767_v16  ;;  %6768 = vmatpush1.bf16.msra.mxu1 %v9770_v55 }
 0xd6c   :  { %6687 = vmatprep.subr.bf16.mxu0 %v9775_v18  ;;  %6769 = vmatprep.subr.bf16.mxu1 %v9778_v19 }
 0xd6f   :  { %6688 = vmatpush1.bf16.msra.mxu0 %v9773_v20  ;;  %6770 = vmatpush1.bf16.msra.mxu1 %v9776_v14 }
 0xd70   :  { %6689 = vmatprep.subr.bf16.mxu0 %v9781_v7  ;;  %6771 = vmatprep.subr.bf16.mxu1 %v9784_v44 }
 0xd73   :  { %6690 = vmatpush1.bf16.msra.mxu0 %v9779_v21  ;;  %6772 = vmatpush1.bf16.msra.mxu1 %v9782_v24 }
 0xd74   :  { %6691 = vmatprep.subr.bf16.mxu0 %v9787_v17  ;;  %6773 = vmatprep.subr.bf16.mxu1 %v9790_v25 }
 0xd77   :  { %6692 = vmatpush1.bf16.msra.mxu0 %v9785_v32  ;;  %6774 = vmatpush1.bf16.msra.mxu1 %v9788_v33 }
 0xd78   :  { %6693 = vmatprep.subr.bf16.mxu0 %v9793_v34  ;;  %6775 = vmatprep.subr.bf16.mxu1 %v9796_v35 }
 0xd7b   :  { %6694 = vmatpush1.bf16.msra.mxu0 %v9791_v51  ;;  %6776 = vmatpush1.bf16.msra.mxu1 %v9794_v1 }
 0xd7c   :  { %6695 = vmatprep.subr.bf16.mxu0 %v9799_v6  ;;  %6777 = vmatprep.subr.bf16.mxu1 %v9802_v29 }
 0xd7f   :  { %6696 = vmatpush1.bf16.msra.mxu0 %v9797_v56  ;;  %6778 = vmatpush1.bf16.msra.mxu1 %v9800_v28 }
 0xd80   :  { %6697 = vmatprep.subr.bf16.mxu0 %v9805_v26  ;;  %6779 = vmatprep.subr.bf16.mxu1 %v9808_v22 }
 0xd83   :  { %6698 = vmatpush1.bf16.msra.mxu0 %v9803_v23  ;;  %6780 = vmatpush1.bf16.msra.mxu1 %v9806_v37 }
 0xd84   :  { %6699 = vmatprep.subr.bf16.mxu0 %v9811_v38  ;;  %6781 = vmatprep.subr.bf16.mxu1 %v9814_v40 }
 0xd87   :  { %6700 = vmatpush1.bf16.msra.mxu0 %v9809_v47  ;;  %6782 = vmatpush1.bf16.msra.mxu1 %v9812_v36 }
 0xd88   :  { %6701 = vmatprep.subr.bf16.mxu0 %v9817_v54  ;;  %6783 = vmatprep.subr.bf16.mxu1 %v9820_v53 }
 0xd8b   :  { %6702 = vmatpush1.bf16.msra.mxu0 %v9815_v49  ;;  %6784 = vmatpush1.bf16.msra.mxu1 %v9818_v62 }
 0xd8c   :  { %6703 = vmatprep.subr.bf16.mxu0 %v9823_v27  ;;  %6785 = vmatprep.subr.bf16.mxu1 %v9826_v50 }
 0xd8f   :  { %6704 = vmatpush1.bf16.msra.mxu0 %v9821_v48  ;;  %6786 = vmatpush1.bf16.msra.mxu1 %v9824_v41 }
 0xd90   :  { %6705 = vmatprep.subr.bf16.mxu0 %v9829_v45  ;;  %6787 = vmatprep.subr.bf16.mxu1 %v9832_v42 }
 0xd93   :  { %6706 = vmatpush1.bf16.msra.mxu0 %v9827_v57  ;;  %6788 = vmatpush1.bf16.msra.mxu1 %v9830_v0 }
 0xd94   :  { %6707 = vmatprep.subr.bf16.mxu0 %v9835_v63  ;;  %6789 = vmatprep.subr.bf16.mxu1 %v9838_v52 }
 0xd97   :  { %6708 = vmatpush1.bf16.msra.mxu0 %v9833_v59  ;;  %6790 = vmatpush1.bf16.msra.mxu1 %v9836_v2 }
 0xd98   :  { %6709 = vmatprep.subr.bf16.mxu0 %v9841_v3  ;;  %6791 = vmatprep.subr.bf16.mxu1 %v9844_v4 }
 0xd9b   :  { %6710 = vmatpush1.bf16.msra.mxu0 %v9839_v5  ;;  %6792 = vmatpush1.bf16.msra.mxu1 %v9842_v8 }
 0xd9c   :  { %6720 = vmatprep.subr.bf16.mxu0 %v9847_v9  ;;  %6802 = vmatprep.subr.bf16.mxu1 %v9850_v10 }
 0xe31   :  { %v11252_v11 = vpop.f32.mrb[32].mxu0  ;;  %v11254_v13 = vpop.f32.mrb[36].mxu1 }
 0xe32   :  { %v5829_v16 = vsel %vm694_vm3, %v11252_v11, 0.0  ;;  %v5861_v55 = vmul.f32 %v11252_v11, %v11252_v11  ;;  %v5843_v18 = vsel %vm694_vm3, %v11254_v13, 0.0  ;;  %v5863_v19 = vmul.f32 %v11254_v13, %v11254_v13  ;;  %v11264_v20 = vpop.f32.mrb[33].mxu0  ;;  %v11266_v14 = vpop.f32.mrb[37].mxu1 }
 0xe33   :  { %v5830_v7 = vrot.slane %v5829_v16, 4  ;;  %v5844_v44 = vrot.slane %v5843_v18, 4  ;;  %v5836_v21 = vsel %vm694_vm3, %v11264_v20, 0.0  ;;  %v5862_v24 = vmul.f32 %v11264_v20, %v11264_v20  ;;  %v5744_v17 = vpop.f32.mrb[34].mxu0  ;;  %v5826_v25 = vpop.f32.mrb[38].mxu1 }
 0xe34   :  { %v5865_v32 = vsel %vm694_vm3, %v5861_v55, 0.0  ;;  %v5879_v33 = vsel %vm694_vm3, %v5863_v19, 0.0  ;;  %v5837_v34 = vrot.slane %v5836_v21, 4  ;;  %v5850_v35 = vsel %vm694_vm3, %v11266_v14, 0.0  ;;  %v5745_v51 = vpop.f32.mrb[35].mxu0  ;;  %v5827_v1 = vpop.f32.mrb[39].mxu1 }
 0xe35   :  { %v5831_v6 = vadd.f32 %v5830_v7, %v5829_v16  ;;  %v5866_v29 = vrot.slane %v5865_v32, 4  ;;  %v5845_v56 = vadd.f32 %v5844_v44, %v5843_v18  ;;  %v5880_v28 = vrot.slane %v5879_v33, 4 }
 0xe36   :  { %v5838_v26 = vadd.f32 %v5837_v34, %v5836_v21  ;;  %v5872_v22 = vsel %vm694_vm3, %v5862_v24, 0.0  ;;  %v5851_v23 = vrot.slane %v5850_v35, 4  ;;  %v5864_v37 = vmul.f32 %v11266_v14, %v11266_v14 }
 0xe37   :  { %v5832_v38 = vrot.slane %v5831_v6, 2  ;;  %v5867_v40 = vadd.f32 %v5866_v29, %v5865_v32  ;;  %v5846_v47 = vrot.slane %v5845_v56, 2  ;;  %v5881_v36 = vadd.f32 %v5880_v28, %v5879_v33 }
 0xe38   :  { %v5839_v54 = vrot.slane %v5838_v26, 2  ;;  %v5873_v53 = vrot.slane %v5872_v22, 4  ;;  %v5852_v49 = vadd.f32 %v5851_v23, %v5850_v35  ;;  %v5886_v62 = vsel %vm694_vm3, %v5864_v37, 0.0 }
 0xe39   :  { %v5833_v27 = vadd.f32 %v5832_v38, %v5831_v6  ;;  %v5868_v50 = vrot.slane %v5867_v40, 2  ;;  %v5847_v48 = vadd.f32 %v5846_v47, %v5845_v56  ;;  %v5882_v41 = vrot.slane %v5881_v36, 2 }
 0xe3a   :  { %v5840_v45 = vadd.f32 %v5839_v54, %v5838_v26  ;;  %v5874_v57 = vadd.f32 %v5873_v53, %v5872_v22  ;;  %v5853_v42 = vrot.slane %v5852_v49, 2  ;;  %v5887_v63 = vrot.slane %v5886_v62, 4 }
 0xe3b   :  { %v5834_v0 = vrot.slane %v5833_v27, 1  ;;  %v5869_v59 = vadd.f32 %v5868_v50, %v5867_v40  ;;  %v5848_v52 = vrot.slane %v5847_v48, 1  ;;  %v5883_v2 = vadd.f32 %v5882_v41, %v5881_v36 }
 0xe3c   :  { %v5841_v3 = vrot.slane %v5840_v45, 1  ;;  %v5875_v4 = vrot.slane %v5874_v57, 2  ;;  %v5854_v5 = vadd.f32 %v5853_v42, %v5852_v49  ;;  %v5888_v8 = vadd.f32 %v5887_v63, %v5886_v62 }
 0xe3d   :  { %v5835_v9 = vadd.f32 %v5834_v0, %v5833_v27  ;;  %v5870_v10 = vrot.slane %v5869_v59, 1  ;;  %v5849_v16 = vadd.f32 %v5848_v52, %v5847_v48  ;;  %v5884_v55 = vrot.slane %v5883_v2, 1 }
 0xe3e   :  { %v5842_v18 = vadd.f32 %v5841_v3, %v5840_v45  ;;  %v5876_v19 = vadd.f32 %v5875_v4, %v5874_v57  ;;  %v5855_v7 = vrot.slane %v5854_v5, 1  ;;  %v5889_v44 = vrot.slane %v5888_v8, 2 }
 0xe3f   :  { %v5857_v21 = vmul.f32 0.5, %v5835_v9  ;;  %v5871_v24 = vadd.f32 %v5870_v10, %v5869_v59  ;;  %v5859_v17 = vmul.f32 0.5, %v5849_v16  ;;  %v5885_v25 = vadd.f32 %v5884_v55, %v5883_v2 }
 0xe40   :  { %v5858_v32 = vmul.f32 0.5, %v5842_v18  ;;  %v5877_v33 = vrot.slane %v5876_v19, 1  ;;  %v5856_v34 = vadd.f32 %v5855_v7, %v5854_v5  ;;  %v5890_v35 = vadd.f32 %v5889_v44, %v5888_v8  ;;  %v5019_v8 = vld [vmem:[%s11288_s25] sm:$0xf] }
 0xe41   :  { %v5893_v51 = vmul.f32 0.5, %v5871_v24  ;;  %v5897_v1 = vmul.f32 %v5857_v21, %v5857_v21  ;;  %v5895_v6 = vmul.f32 0.5, %v5885_v25  ;;  %v5899_v29 = vmul.f32 %v5859_v17, %v5859_v17 }
 0xe42   :  { %v5878_v56 = vadd.f32 %v5877_v33, %v5876_v19  ;;  %v5898_v28 = vmul.f32 %v5858_v32, %v5858_v32  ;;  %v5860_v26 = vmul.f32 0.5, %v5856_v34  ;;  %v5891_v22 = vrot.slane %v5890_v35, 1 }
 0xe43   :  { %v5901_v23 = vsub.f32 %v5893_v51, %v5897_v1  ;;  %v5903_v37 = vsub.f32 %v5895_v6, %v5899_v29 }
 0xe44   :  { %v5894_v38 = vmul.f32 0.5, %v5878_v56  ;;  %v5892_v40 = vadd.f32 %v5891_v22, %v5890_v35  ;;  %v5900_v47 = vmul.f32 %v5860_v26, %v5860_v26  ;;  %v5020_v56 = vld [vmem:[%s11302_s29] sm:$0xf] }
 0xe45   :  { %v5905_v36 = vmax.f32 %v5901_v23, 0.0  ;;  %v5907_v54 = vmax.f32 %v5903_v37, 0.0 }
 0xe46   :  { %v5902_v53 = vsub.f32 %v5894_v38, %v5898_v28  ;;  %v5896_v49 = vmul.f32 0.5, %v5892_v40  ;;  %v9845_v40 = vld [vmem:[%s11184_s17 + $0x200] ss:$16 sps:$4 sm:$0xff]  }
 0xe47   :  { %v5909_v62 = vadd.f32 1e-05, %v5905_v36  ;;  %v5911_v27 = vadd.f32 1e-05, %v5907_v54 }
 0xe48   :  { %v5906_v50 = vmax.f32 %v5902_v53, 0.0  ;;  %v5904_v48 = vsub.f32 %v5896_v49, %v5900_v47  ;;  %v9848_v47 = vld [vmem:[%s11184_s17 + $0x208] ss:$16 sps:$4 sm:$0xff]  }
 0xe49   :  { %10177 = vrsqrt.f32 %v5909_v62  ;;  %v9853_v62 = vld [vmem:[%s11184_s17 + $0x224] ss:$16 sps:$4 sm:$0xff]  }
 0xe4a   :  { %v5910_v41 = vadd.f32 1e-05, %v5906_v50  ;;  %v5908_v45 = vmax.f32 %v5904_v48, 0.0  ;;  %10179 = vrsqrt.f32 %v5911_v27  ;;  %v9856_v27 = vld [vmem:[%s11184_s17 + $0x22c] ss:$16 sps:$4 sm:$0xff]  }
 0xe4b   :  { %v9851_v48 = vld [vmem:[%s11184_s17 + $0x220] ss:$16 sps:$4 sm:$0xff]  }
 0xe4c   :  { %10181 = vrsqrt.f32 %v5910_v41  ;;  %v5912_v57 = vadd.f32 1e-05, %v5908_v45  ;;  %v9854_v41 = vld [vmem:[%s11184_s17 + $0x228] ss:$16 sps:$4 sm:$0xff]   ;;  %v9859_v45 = vld [vmem:[%s11184_s17 + $0x244] ss:$16 sps:$4 sm:$0xff]  }
 0xe4e   :  { %10183 = vrsqrt.f32 %v5912_v57  ;;  %v9862_v57 = vld [vmem:[%s11184_s17 + $0x24c] ss:$16 sps:$4 sm:$0xff]  }
 0xe53   :  { %v10178_v42 = vpop.eup %10177 }
 0xe54   :  { %v10180_v63 = vpop.eup %10179 }
 0xe56   :  { %v10182_v0 = vpop.eup %10181 }
 0xe57   :  { %v5921_v59 = vcombine.low %v10178_v42, %v10182_v0  ;;  %v9857_v42 = vld [vmem:[%s11184_s17 + $0x240] ss:$16 sps:$4 sm:$0xff]   ;;  %v9865_v0 = vld [vmem:[%s11184_s17 + $0x264] ss:$16 sps:$4 sm:$0xff]  }
 0xe58   :  { %v10184_v52 = vpop.eup %10183 }
 0xe59   :  { %v5922_v2 = vcombine.low %v10180_v63, %v10184_v52  ;;  %v5929_v3 = vrot.slane %v5921_v59, %v10266_v15  ;;  %v9860_v63 = vld [vmem:[%s11184_s17 + $0x248] ss:$16 sps:$4 sm:$0xff]   ;;  %v9868_v59 = vld [vmem:[%s11184_s17 + $0x26c] ss:$16 sps:$4 sm:$0xff]   ;;  %v9863_v52 = vld [vmem:[%s11184_s17 + $0x260] ss:$16 sps:$4 sm:$0xff]  }
 0xe5b   :  { %v5936_v4 = vrot.slane %v5922_v2, %v10266_v15  ;;  %v9866_v2 = vld [vmem:[%s11184_s17 + $0x268] ss:$16 sps:$4 sm:$0xff]  }
 0xe5d   :  { %v5937_v5 = vcombine.low %v5929_v3, %v5936_v4  ;;  %v9871_v3 = vld [vmem:[%s11184_s17 + $0x284] ss:$16 sps:$4 sm:$0xff]   ;;  %v9874_v4 = vld [vmem:[%s11184_s17 + $0x28c] ss:$16 sps:$4 sm:$0xff]  }
 0xe5f   :  { %v5944_v9 = vrot.slane %v5937_v5, %v10266_v15  ;;  %v9869_v5 = vld [vmem:[%s11184_s17 + $0x280] ss:$16 sps:$4 sm:$0xff]  }
 0xe61   :  { %v5946_v10 = vmul.f32 %v5944_v9, %v5019_v8  ;;  %v9872_v8 = vld [vmem:[%s11184_s17 + $0x288] ss:$16 sps:$4 sm:$0xff]   ;;  %v9877_v9 = vld [vmem:[%s11184_s17 + $0x2a4] ss:$16 sps:$4 sm:$0xff]  }
 0xe63   :  { %v5959_v16 = vrot.slane %v5946_v10, %v10890_v30  ;;  %v5963_v55 = vrot.slane %v5946_v10, %v10893_v31  ;;  %v5951_v18 = vrot.slane %v5946_v10, %v10305_v58  ;;  %v5955_v19 = vrot.slane %v5946_v10, %v10512_v43  ;;  %v9880_v10 = vld [vmem:[%s11184_s17 + $0x2ac] ss:$16 sps:$4 sm:$0xff]  }
 0xe65   :  { %v5970_v7 = vmul.f32 %v5959_v16, %v5859_v17  ;;  %v5971_v44 = vmul.f32 %v5963_v55, %v5860_v26  ;;  %v6005_v24 = vmul.f32 %v5963_v55, %v11266_v14  ;;  %v5968_v25 = vmul.f32 %v5951_v18, %v5857_v21  ;;  %v9878_v55 = vld [vmem:[%s11184_s17 + $0x2a8] ss:$16 sps:$4 sm:$0xff]  }
 0xe66   :  { %v5969_v33 = vmul.f32 %v5955_v19, %v5858_v32  ;;  %v6003_v34 = vmul.f32 %v5955_v19, %v11264_v20  ;;  %v6002_v35 = vmul.f32 %v5951_v18, %v11252_v11  ;;  %v6004_v51 = vmul.f32 %v5959_v16, %v11254_v13  ;;  %v9875_v16 = vld [vmem:[%s11184_s17 + $0x2a0] ss:$16 sps:$4 sm:$0xff]   ;;  %v9883_v18 = vld [vmem:[%s11184_s17 + $0x2c4] ss:$16 sps:$4 sm:$0xff]   ;;  %v9886_v19 = vld [vmem:[%s11184_s17 + $0x2cc] ss:$16 sps:$4 sm:$0xff]  }
 0xe67   :  { %v5977_v1 = vcombine.low %v5970_v7, %v5971_v44  ;;  %v9881_v7 = vld [vmem:[%s11184_s17 + $0x2c0] ss:$16 sps:$4 sm:$0xff]   ;;  %v9884_v44 = vld [vmem:[%s11184_s17 + $0x2c8] ss:$16 sps:$4 sm:$0xff]  }
 0xe68   :  { %v5976_v17 = vcombine.low %v5968_v25, %v5969_v33  ;;  %v9892_v25 = vld [vmem:[%s11184_s17 + $0x2ec] ss:$16 sps:$4 sm:$0xff]   ;;  %v9887_v33 = vld [vmem:[%s11184_s17 + $0x2e0] ss:$16 sps:$4 sm:$0xff]  }
 0xe69   :  { %v5991_v14 = vrot.slane %v5977_v1, %v10266_v15  ;;  %v9893_v1 = vld [vmem:[%s11184_s17 + $0x300] ss:$16 sps:$4 sm:$0xff]  }
 0xe6a   :  { %v5984_v6 = vrot.slane %v5976_v17, %v10266_v15  ;;  %v9896_v17 = vld [vmem:[%s11184_s17 + $0x308] ss:$16 sps:$4 sm:$0xff]  }
 0xe6c   :  { %v5992_v29 = vcombine.low %v5984_v6, %v5991_v14  ;;  %v9901_v14 = vld [vmem:[%s11184_s17 + $0x324] ss:$16 sps:$4 sm:$0xff]   ;;  %v9904_v6 = vld [vmem:[%s11184_s17 + $0x32c] ss:$16 sps:$4 sm:$0xff]  }
 0xe6e   :  { %v5999_v28 = vrot.slane %v5992_v29, %v10266_v15  ;;  %v9899_v29 = vld [vmem:[%s11184_s17 + $0x320] ss:$16 sps:$4 sm:$0xff]  }
 0xe70   :  { %v6001_v21 = vsub.f32 %v5020_v56, %v5999_v28  ;;  %v9902_v56 = vld [vmem:[%s11184_s17 + $0x328] ss:$16 sps:$4 sm:$0xff]   ;;  %v9907_v28 = vld [vmem:[%s11184_s17 + $0x344] ss:$16 sps:$4 sm:$0xff]  }
 0xe72   :  { %v6014_v32 = vrot.slane %v6001_v21, %v10512_v43  ;;  %v6010_v20 = vrot.slane %v6001_v21, %v10305_v58  ;;  %v6022_v11 = vrot.slane %v6001_v21, %v10893_v31  ;;  %v6018_v13 = vrot.slane %v6001_v21, %v10890_v30  ;;  %v9910_v21 = vld [vmem:[%s11184_s17 + $0x34c] ss:$16 sps:$4 sm:$0xff]  }
 0xe74   :  { %v6028_v26 = vadd.f32 %v6014_v32, %v6003_v34  ;;  %v6027_v22 = vadd.f32 %v6010_v20, %v6002_v35  ;;  %v6030_v23 = vadd.f32 %v6022_v11, %v6005_v24  ;;  %v11315_v37 = vadd.f32 %v6018_v13, %v6004_v51  ;;  %v9889_v24 = vld [vmem:[%s11184_s17 + $0x2e4] ss:$16 sps:$4 sm:$0xff]   ;;  %v9890_v34 = vld [vmem:[%s11184_s17 + $0x2e8] ss:$16 sps:$4 sm:$0xff]   ;;  %v9898_v51 = vld [vmem:[%s11184_s17 + $0x30c] ss:$16 sps:$4 sm:$0xff]  }
 0xe75   :  { %v9895_v35 = vld [vmem:[%s11184_s17 + $0x304] ss:$16 sps:$4 sm:$0xff]   ;;  %v9905_v32 = vld [vmem:[%s11184_s17 + $0x340] ss:$16 sps:$4 sm:$0xff]   ;;  %v9908_v20 = vld [vmem:[%s11184_s17 + $0x348] ss:$16 sps:$4 sm:$0xff]  }
 0xe76   :  { %v6032_v38 = vmax.f32 %v6028_v26, 0.0  ;;  %v6031_v36 = vmax.f32 %v6027_v22, 0.0  ;;  %v6034_v54 = vmax.f32 %v6030_v23, 0.0  ;;  %v9913_v11 = vld [vmem:[%s11184_s17 + $0x364] ss:$16 sps:$4 sm:$0xff]  }
 0xe77   :  { %v9916_v13 = vld [vmem:[%s11184_s17 + $0x36c] ss:$16 sps:$4 sm:$0xff]   ;;  %v9911_v26 = vld [vmem:[%s11184_s17 + $0x360] ss:$16 sps:$4 sm:$0xff]   ;;  %v9914_v22 = vld [vmem:[%s11184_s17 + $0x368] ss:$16 sps:$4 sm:$0xff]  }
 0xe78   :  { %v6036_v53 = vpack.c.bf16 %v6032_v38, %v6032_v38  ;;  %v6035_v49 = vpack.c.bf16 %v6031_v36, %v6031_v36  ;;  %v6038_v50 = vpack.c.bf16 %v6034_v54, %v6034_v54  ;;  %v9919_v23 = vld [vmem:[%s11184_s17 + $0x384] ss:$16 sps:$4 sm:$0xff]   ;;  %v9922_v38 = vld [vmem:[%s11184_s17 + $0x38c] ss:$16 sps:$4 sm:$0xff]  }
 0xe79   :  { %v9925_v36 = vld [vmem:[%s11184_s17 + $0x3a4] ss:$16 sps:$4 sm:$0xff]   ;;  %v9928_v54 = vld [vmem:[%s11184_s17 + $0x3ac] ss:$16 sps:$4 sm:$0xff]  }
 0xe7a   :  { %6711 = vmatprep.mubr.bf16.mxu0 %v6036_v53  ;;  %6793 = vmatprep.mubr.bf16.mxu1 %v6036_v53  ;;  %v9923_v53 = vld [vmem:[%s11184_s17 + $0x3a0] ss:$16 sps:$4 sm:$0xff]  }
 0xe7b   :  { %6712 = vmatmul.mubr.bf16.vlgmr.msra.gmra.mrb[36].mxu0 %v6035_v49  ;;  %6794 = vmatmul.mubr.bf16.vlgmr.msra.gmra.mrb[40].mxu1 %v6035_v49  ;;  %v9926_v49 = vld [vmem:[%s11184_s17 + $0x3a8] ss:$16 sps:$4 sm:$0xff]  }
 0xe7c   :  { %6721 = vmatpush1.bf16.msra.mxu0 %v9845_v40  ;;  %6803 = vmatpush1.bf16.msra.mxu1 %v9848_v47  ;;  %v9917_v40 = vld [vmem:[%s11184_s17 + $0x380] ss:$16 sps:$4 sm:$0xff]   ;;  %v9920_v47 = vld [vmem:[%s11184_s17 + $0x388] ss:$16 sps:$4 sm:$0xff]  }
 0xe7d   :  { %6752 = vmatprep.mubr.bf16.mxu0 %v6038_v50  ;;  %6834 = vmatprep.mubr.bf16.mxu1 %v6038_v50  ;;  %v9929_v50 = vld [vmem:[%s11184_s17 + $0x3c0] ss:$16 sps:$4 sm:$0xff]  }
 0xe7e   :  { %6722 = vmatprep.subr.bf16.mxu0 %v9853_v62  ;;  %6804 = vmatprep.subr.bf16.mxu1 %v9856_v27  ;;  %v9931_v62 = vld [vmem:[%s11184_s17 + $0x3c4] ss:$16 sps:$4 sm:$0xff]   ;;  %v9934_v27 = vld [vmem:[%s11184_s17 + $0x3cc] ss:$16 sps:$4 sm:$0xff]  }
 0xe80   :  { %6723 = vmatpush1.bf16.msra.mxu0 %v9851_v48  ;;  %6805 = vmatpush1.bf16.msra.mxu1 %v9854_v41  ;;  %v9932_v48 = vld [vmem:[%s11184_s17 + $0x3c8] ss:$16 sps:$4 sm:$0xff]   ;;  %v9937_v41 = vld [vmem:[%s11184_s17 + $0x3e4] ss:$16 sps:$4 sm:$0xff]  }
 0xe81   :  { %6724 = vmatprep.subr.bf16.mxu0 %v9859_v45  ;;  %6806 = vmatprep.subr.bf16.mxu1 %v9862_v57  ;;  %v9940_v45 = vld [vmem:[%s11184_s17 + $0x3ec] ss:$16 sps:$4 sm:$0xff]   ;;  %v9935_v57 = vld [vmem:[%s11184_s17 + $0x3e0] ss:$16 sps:$4 sm:$0xff]  }
 0xe84   :  { %6725 = vmatpush1.bf16.msra.mxu0 %v9857_v42  ;;  %6807 = vmatpush1.bf16.msra.mxu1 %v9860_v63  ;;  %v9938_v42 = vld [vmem:[%s11184_s17 + $0x3e8] ss:$16 sps:$4 sm:$0xff]   ;;  %v6033_v63 = vmax.f32 %v11315_v37, 0.0  ;;  %v9947_v37 = vld [vmem:[%s11275_s21 + $0x20] ss:$16 sps:$4 sm:$0xff]  }
 0xe85   :  { %6726 = vmatprep.subr.bf16.mxu0 %v9865_v0  ;;  %6808 = vmatprep.subr.bf16.mxu1 %v9868_v59  ;;  %v9943_v0 = vld [vmem:[%s11275_s21 + $0x4] ss:$16 sps:$4 sm:$0xff]  }
 0xe86   :  { %v9946_v59 = vld [vmem:[%s11275_s21 + $0x204] ss:$16 sps:$4 sm:$0xff]  }
 0xe88   :  { %6727 = vmatpush1.bf16.msra.mxu0 %v9863_v52  ;;  %6809 = vmatpush1.bf16.msra.mxu1 %v9866_v2  ;;  %v9941_v52 = vld [vmem:[%s11275_s21] ss:$16 sps:$4 sm:$0xff]   ;;  %v6037_v2 = vpack.c.bf16 %v6033_v63, %v6033_v63  ;;  %v10021_v63 = vld [vmem:[%s11275_s21 + $0x1a4] ss:$16 sps:$4 sm:$0xff]  }
 0xe89   :  { %6728 = vmatprep.subr.bf16.mxu0 %v9871_v3  ;;  %6810 = vmatprep.subr.bf16.mxu1 %v9874_v4  ;;  %v9944_v3 = vld [vmem:[%s11275_s21 + $0x200] ss:$16 sps:$4 sm:$0xff]   ;;  %v9949_v4 = vld [vmem:[%s11275_s21 + $0x24] ss:$16 sps:$4 sm:$0xff]  }
 0xe8c   :  { %6729 = vmatpush1.bf16.msra.mxu0 %v9869_v5  ;;  %6811 = vmatpush1.bf16.msra.mxu1 %v9872_v8  ;;  %v9952_v5 = vld [vmem:[%s11275_s21 + $0x224] ss:$16 sps:$4 sm:$0xff]   ;;  %v9950_v8 = vld [vmem:[%s11275_s21 + $0x220] ss:$16 sps:$4 sm:$0xff]  }
 0xe8d   :  { %6730 = vmatprep.subr.bf16.mxu0 %v9877_v9  ;;  %6812 = vmatprep.subr.bf16.mxu1 %v9880_v10  ;;  %v9955_v9 = vld [vmem:[%s11275_s21 + $0x44] ss:$16 sps:$4 sm:$0xff]  }
 0xe8e   :  { %v9958_v10 = vld [vmem:[%s11275_s21 + $0x244] ss:$16 sps:$4 sm:$0xff]  }
 0xe90   :  { %6731 = vmatpush1.bf16.msra.mxu0 %v9875_v16  ;;  %6813 = vmatpush1.bf16.msra.mxu1 %v9878_v55  ;;  %v9953_v16 = vld [vmem:[%s11275_s21 + $0x40] ss:$16 sps:$4 sm:$0xff]  }
 0xe91   :  { %6732 = vmatprep.subr.bf16.mxu0 %v9883_v18  ;;  %6814 = vmatprep.subr.bf16.mxu1 %v9886_v19  ;;  %v9956_v55 = vld [vmem:[%s11275_s21 + $0x240] ss:$16 sps:$4 sm:$0xff]   ;;  %v9961_v18 = vld [vmem:[%s11275_s21 + $0x64] ss:$16 sps:$4 sm:$0xff]  }
 0xe92   :  { %v9964_v19 = vld [vmem:[%s11275_s21 + $0x264] ss:$16 sps:$4 sm:$0xff]  }
 0xe94   :  { %6733 = vmatpush1.bf16.msra.mxu0 %v9881_v7  ;;  %6815 = vmatpush1.bf16.msra.mxu1 %v9884_v44  ;;  %v9959_v7 = vld [vmem:[%s11275_s21 + $0x60] ss:$16 sps:$4 sm:$0xff]  }
 0xe95   :  { %6734 = vmatprep.subr.bf16.mxu0 %v9889_v24  ;;  %6816 = vmatprep.subr.bf16.mxu1 %v9892_v25  ;;  %v9962_v44 = vld [vmem:[%s11275_s21 + $0x260] ss:$16 sps:$4 sm:$0xff]   ;;  %v9967_v24 = vld [vmem:[%s11275_s21 + $0x84] ss:$16 sps:$4 sm:$0xff]  }
 0xe96   :  { %v9970_v25 = vld [vmem:[%s11275_s21 + $0x284] ss:$16 sps:$4 sm:$0xff]  }
 0xe98   :  { %6735 = vmatpush1.bf16.msra.mxu0 %v9887_v33  ;;  %6817 = vmatpush1.bf16.msra.mxu1 %v9890_v34  ;;  %v9965_v33 = vld [vmem:[%s11275_s21 + $0x80] ss:$16 sps:$4 sm:$0xff]  }
 0xe99   :  { %6736 = vmatprep.subr.bf16.mxu0 %v9895_v35  ;;  %6818 = vmatprep.subr.bf16.mxu1 %v9898_v51  ;;  %v9968_v34 = vld [vmem:[%s11275_s21 + $0x280] ss:$16 sps:$4 sm:$0xff]   ;;  %v9973_v35 = vld [vmem:[%s11275_s21 + $0xa4] ss:$16 sps:$4 sm:$0xff]  }
 0xe9a   :  { %v9976_v51 = vld [vmem:[%s11275_s21 + $0x2a4] ss:$16 sps:$4 sm:$0xff]  }
 0xe9c   :  { %6737 = vmatpush1.bf16.msra.mxu0 %v9893_v1  ;;  %6819 = vmatpush1.bf16.msra.mxu1 %v9896_v17  ;;  %v9971_v1 = vld [vmem:[%s11275_s21 + $0xa0] ss:$16 sps:$4 sm:$0xff]  }
 0xe9d   :  { %6738 = vmatprep.subr.bf16.mxu0 %v9901_v14  ;;  %6820 = vmatprep.subr.bf16.mxu1 %v9904_v6  ;;  %v9974_v17 = vld [vmem:[%s11275_s21 + $0x2a0] ss:$16 sps:$4 sm:$0xff]   ;;  %v9979_v14 = vld [vmem:[%s11275_s21 + $0xc4] ss:$16 sps:$4 sm:$0xff]  }
 0xe9e   :  { %v9982_v6 = vld [vmem:[%s11275_s21 + $0x2c4] ss:$16 sps:$4 sm:$0xff]  }
 0xea0   :  { %6739 = vmatpush1.bf16.msra.mxu0 %v9899_v29  ;;  %6821 = vmatpush1.bf16.msra.mxu1 %v9902_v56  ;;  %v9977_v29 = vld [vmem:[%s11275_s21 + $0xc0] ss:$16 sps:$4 sm:$0xff]  }
 0xea1   :  { %6740 = vmatprep.subr.bf16.mxu0 %v9907_v28  ;;  %6822 = vmatprep.subr.bf16.mxu1 %v9910_v21  ;;  %v9980_v56 = vld [vmem:[%s11275_s21 + $0x2c0] ss:$16 sps:$4 sm:$0xff]   ;;  %v9985_v28 = vld [vmem:[%s11275_s21 + $0xe4] ss:$16 sps:$4 sm:$0xff]  }
 0xea2   :  { %v9988_v21 = vld [vmem:[%s11275_s21 + $0x2e4] ss:$16 sps:$4 sm:$0xff]  }
 0xea4   :  { %6741 = vmatpush1.bf16.msra.mxu0 %v9905_v32  ;;  %6823 = vmatpush1.bf16.msra.mxu1 %v9908_v20  ;;  %v9983_v32 = vld [vmem:[%s11275_s21 + $0xe0] ss:$16 sps:$4 sm:$0xff]  }
 0xea5   :  { %6742 = vmatprep.subr.bf16.mxu0 %v9913_v11  ;;  %6824 = vmatprep.subr.bf16.mxu1 %v9916_v13  ;;  %v9986_v20 = vld [vmem:[%s11275_s21 + $0x2e0] ss:$16 sps:$4 sm:$0xff]   ;;  %v9991_v11 = vld [vmem:[%s11275_s21 + $0x104] ss:$16 sps:$4 sm:$0xff]  }
 0xea6   :  { %v9994_v13 = vld [vmem:[%s11275_s21 + $0x304] ss:$16 sps:$4 sm:$0xff]  }
 0xea8   :  { %6743 = vmatpush1.bf16.msra.mxu0 %v9911_v26  ;;  %6825 = vmatpush1.bf16.msra.mxu1 %v9914_v22  ;;  %v9989_v26 = vld [vmem:[%s11275_s21 + $0x100] ss:$16 sps:$4 sm:$0xff]  }
 0xea9   :  { %6744 = vmatprep.subr.bf16.mxu0 %v9919_v23  ;;  %6826 = vmatprep.subr.bf16.mxu1 %v9922_v38  ;;  %v9992_v22 = vld [vmem:[%s11275_s21 + $0x300] ss:$16 sps:$4 sm:$0xff]   ;;  %v9997_v23 = vld [vmem:[%s11275_s21 + $0x124] ss:$16 sps:$4 sm:$0xff]  }
 0xeaa   :  { %v10000_v38 = vld [vmem:[%s11275_s21 + $0x324] ss:$16 sps:$4 sm:$0xff]  }
 0xeac   :  { %6745 = vmatpush1.bf16.msra.mxu0 %v9917_v40  ;;  %6827 = vmatpush1.bf16.msra.mxu1 %v9920_v47  ;;  %v9995_v40 = vld [vmem:[%s11275_s21 + $0x120] ss:$16 sps:$4 sm:$0xff]  }
 0xead   :  { %6746 = vmatprep.subr.bf16.mxu0 %v9925_v36  ;;  %6828 = vmatprep.subr.bf16.mxu1 %v9928_v54  ;;  %v9998_v47 = vld [vmem:[%s11275_s21 + $0x320] ss:$16 sps:$4 sm:$0xff]   ;;  %v10003_v36 = vld [vmem:[%s11275_s21 + $0x144] ss:$16 sps:$4 sm:$0xff]  }
 0xeae   :  { %v10006_v54 = vld [vmem:[%s11275_s21 + $0x344] ss:$16 sps:$4 sm:$0xff]  }
 0xeb0   :  { %6747 = vmatpush1.bf16.msra.mxu0 %v9923_v53  ;;  %6829 = vmatpush1.bf16.msra.mxu1 %v9926_v49  ;;  %v10001_v53 = vld [vmem:[%s11275_s21 + $0x140] ss:$16 sps:$4 sm:$0xff]  }
 0xeb1   :  { %6748 = vmatprep.subr.bf16.mxu0 %v9931_v62  ;;  %6830 = vmatprep.subr.bf16.mxu1 %v9934_v27  ;;  %v10004_v49 = vld [vmem:[%s11275_s21 + $0x340] ss:$16 sps:$4 sm:$0xff]   ;;  %v10009_v62 = vld [vmem:[%s11275_s21 + $0x164] ss:$16 sps:$4 sm:$0xff]  }
 0xeb2   :  { %v10012_v27 = vld [vmem:[%s11275_s21 + $0x364] ss:$16 sps:$4 sm:$0xff]  }
 0xeb4   :  { %6749 = vmatpush1.bf16.msra.mxu0 %v9929_v50  ;;  %6831 = vmatpush1.bf16.msra.mxu1 %v9932_v48  ;;  %v10007_v50 = vld [vmem:[%s11275_s21 + $0x160] ss:$16 sps:$4 sm:$0xff]  }
 0xeb5   :  { %6750 = vmatprep.subr.bf16.mxu0 %v9937_v41  ;;  %6832 = vmatprep.subr.bf16.mxu1 %v9940_v45  ;;  %v10010_v48 = vld [vmem:[%s11275_s21 + $0x360] ss:$16 sps:$4 sm:$0xff]   ;;  %v10015_v41 = vld [vmem:[%s11275_s21 + $0x184] ss:$16 sps:$4 sm:$0xff]  }
 0xeb6   :  { %v10018_v45 = vld [vmem:[%s11275_s21 + $0x384] ss:$16 sps:$4 sm:$0xff]  }
 0xeb8   :  { %6751 = vmatpush1.bf16.msra.mxu0 %v9935_v57  ;;  %6833 = vmatpush1.bf16.msra.mxu1 %v9938_v42  ;;  %v10013_v57 = vld [vmem:[%s11275_s21 + $0x180] ss:$16 sps:$4 sm:$0xff]  }
 0xeb9   :  { %7689 = vmatprep.subr.bf16.mxu0 %v9943_v0  ;;  %7730 = vmatprep.subr.bf16.mxu1 %v9946_v59  ;;  %v10016_v42 = vld [vmem:[%s11275_s21 + $0x380] ss:$16 sps:$4 sm:$0xff]   ;;  %v10024_v0 = vld [vmem:[%s11275_s21 + $0x3a4] ss:$16 sps:$4 sm:$0xff]  }
 0xeba   :  { %v10019_v59 = vld [vmem:[%s11275_s21 + $0x1a0] ss:$16 sps:$4 sm:$0xff]  }
 0xebb   :  { %6753 = vmatmul.mubr.bf16.vlgmr.msra.gmra.mrb[36].mxu0 %v6037_v2  ;;  %6835 = vmatmul.mubr.bf16.vlgmr.msra.gmra.mrb[40].mxu1 %v6037_v2  ;;  %v10027_v2 = vld [vmem:[%s11275_s21 + $0x1c4] ss:$16 sps:$4 sm:$0xff]  }
 0xebc   :  { %7690 = vmatpush1.bf16.msra.mxu0 %v9941_v52  ;;  %7721 = vmatprep.mubr.bf16.mxu0 %v11102_v39  ;;  %v10022_v52 = vld [vmem:[%s11275_s21 + $0x3a0] ss:$16 sps:$4 sm:$0xff]  }
 0xebd   :  { %7731 = vmatpush1.bf16.msra.mxu1 %v9944_v3  ;;  %7762 = vmatprep.mubr.bf16.mxu1 %v11112_v46  ;;  %v10030_v3 = vld [vmem:[%s11275_s21 + $0x3c4] ss:$16 sps:$4 sm:$0xff]  }
 0xebe   :  { %7691 = vmatprep.subr.bf16.mxu0 %v9949_v4  ;;  %7732 = vmatprep.subr.bf16.mxu1 %v9952_v5  ;;  %v10025_v4 = vld [vmem:[%s11275_s21 + $0x1c0] ss:$16 sps:$4 sm:$0xff]  }
 0xebf   :  { %v10028_v5 = vld [vmem:[%s11275_s21 + $0x3c0] ss:$16 sps:$4 sm:$0xff]  }
 0xec0   :  { %7692 = vmatpush1.bf16.msra.mxu0 %v9947_v37  ;;  %v10033_v37 = vld [vmem:[%s11275_s21 + $0x1e4] ss:$16 sps:$4 sm:$0xff]  }
 0xec1   :  { %7733 = vmatpush1.bf16.msra.mxu1 %v9950_v8  ;;  %7693 = vmatprep.subr.bf16.mxu0 %v9955_v9  ;;  %v10036_v8 = vld [vmem:[%s11275_s21 + $0x3e4] ss:$16 sps:$4 sm:$0xff]   ;;  %v10031_v9 = vld [vmem:[%s11275_s21 + $0x1e0] ss:$16 sps:$4 sm:$0xff]  }
 0xec2   :  { %7734 = vmatprep.subr.bf16.mxu1 %v9958_v10  ;;  %v10034_v10 = vld [vmem:[%s11275_s21 + $0x3e0] ss:$16 sps:$4 sm:$0xff]  }
 0xec4   :  { %7694 = vmatpush1.bf16.msra.mxu0 %v9953_v16  ;;  %v10039_v16 = vld [vmem:[%s11275_s21 + $0xc] ss:$16 sps:$4 sm:$0xff]  }
 0xec5   :  { %7735 = vmatpush1.bf16.msra.mxu1 %v9956_v55  ;;  %7695 = vmatprep.subr.bf16.mxu0 %v9961_v18  ;;  %v10042_v55 = vld [vmem:[%s11275_s21 + $0x20c] ss:$16 sps:$4 sm:$0xff]   ;;  %v10037_v18 = vld [vmem:[%s11275_s21 + $0x8] ss:$16 sps:$4 sm:$0xff]  }
 0xec6   :  { %7736 = vmatprep.subr.bf16.mxu1 %v9964_v19  ;;  %v10040_v19 = vld [vmem:[%s11275_s21 + $0x208] ss:$16 sps:$4 sm:$0xff]  }
 0xec8   :  { %7696 = vmatpush1.bf16.msra.mxu0 %v9959_v7  ;;  %v10045_v7 = vld [vmem:[%s11275_s21 + $0x2c] ss:$16 sps:$4 sm:$0xff]  }
 0xec9   :  { %7737 = vmatpush1.bf16.msra.mxu1 %v9962_v44  ;;  %7697 = vmatprep.subr.bf16.mxu0 %v9967_v24  ;;  %v10048_v44 = vld [vmem:[%s11275_s21 + $0x22c] ss:$16 sps:$4 sm:$0xff]   ;;  %v10043_v24 = vld [vmem:[%s11275_s21 + $0x28] ss:$16 sps:$4 sm:$0xff]  }
 0xeca   :  { %7738 = vmatprep.subr.bf16.mxu1 %v9970_v25  ;;  %v10046_v25 = vld [vmem:[%s11275_s21 + $0x228] ss:$16 sps:$4 sm:$0xff]  }
 0xecc   :  { %7698 = vmatpush1.bf16.msra.mxu0 %v9965_v33  ;;  %v10051_v33 = vld [vmem:[%s11275_s21 + $0x4c] ss:$16 sps:$4 sm:$0xff]  }
 0xecd   :  { %7739 = vmatpush1.bf16.msra.mxu1 %v9968_v34  ;;  %7699 = vmatprep.subr.bf16.mxu0 %v9973_v35  ;;  %v10054_v34 = vld [vmem:[%s11275_s21 + $0x24c] ss:$16 sps:$4 sm:$0xff]   ;;  %v10049_v35 = vld [vmem:[%s11275_s21 + $0x48] ss:$16 sps:$4 sm:$0xff]  }
 0xece   :  { %7740 = vmatprep.subr.bf16.mxu1 %v9976_v51  ;;  %v10052_v51 = vld [vmem:[%s11275_s21 + $0x248] ss:$16 sps:$4 sm:$0xff]  }
 0xed0   :  { %7700 = vmatpush1.bf16.msra.mxu0 %v9971_v1  ;;  %v10060_v1 = vld [vmem:[%s11275_s21 + $0x26c] ss:$16 sps:$4 sm:$0xff]  }
 0xed1   :  { %7741 = vmatpush1.bf16.msra.mxu1 %v9974_v17  ;;  %7701 = vmatprep.subr.bf16.mxu0 %v9979_v14  ;;  %v10058_v17 = vld [vmem:[%s11275_s21 + $0x268] ss:$16 sps:$4 sm:$0xff]   ;;  %v10063_v14 = vld [vmem:[%s11275_s21 + $0x8c] ss:$16 sps:$4 sm:$0xff]  }
 0xed2   :  { %7742 = vmatprep.subr.bf16.mxu1 %v9982_v6  ;;  %v10066_v6 = vld [vmem:[%s11275_s21 + $0x28c] ss:$16 sps:$4 sm:$0xff]  }
 0xed4   :  { %7702 = vmatpush1.bf16.msra.mxu0 %v9977_v29  ;;  %v10061_v29 = vld [vmem:[%s11275_s21 + $0x88] ss:$16 sps:$4 sm:$0xff]  }
 0xed5   :  { %7743 = vmatpush1.bf16.msra.mxu1 %v9980_v56  ;;  %7703 = vmatprep.subr.bf16.mxu0 %v9985_v28  ;;  %v10064_v56 = vld [vmem:[%s11275_s21 + $0x288] ss:$16 sps:$4 sm:$0xff]   ;;  %v10069_v28 = vld [vmem:[%s11275_s21 + $0xac] ss:$16 sps:$4 sm:$0xff]  }
 0xed6   :  { %7744 = vmatprep.subr.bf16.mxu1 %v9988_v21  ;;  %v10072_v21 = vld [vmem:[%s11275_s21 + $0x2ac] ss:$16 sps:$4 sm:$0xff]  }
 0xed8   :  { %7704 = vmatpush1.bf16.msra.mxu0 %v9983_v32  ;;  %v10067_v32 = vld [vmem:[%s11275_s21 + $0xa8] ss:$16 sps:$4 sm:$0xff]  }
 0xed9   :  { %7745 = vmatpush1.bf16.msra.mxu1 %v9986_v20  ;;  %7705 = vmatprep.subr.bf16.mxu0 %v9991_v11  ;;  %v10070_v20 = vld [vmem:[%s11275_s21 + $0x2a8] ss:$16 sps:$4 sm:$0xff]   ;;  %v10075_v11 = vld [vmem:[%s11275_s21 + $0xcc] ss:$16 sps:$4 sm:$0xff]  }
 0xeda   :  { %7746 = vmatprep.subr.bf16.mxu1 %v9994_v13  ;;  %v10078_v13 = vld [vmem:[%s11275_s21 + $0x2cc] ss:$16 sps:$4 sm:$0xff]  }
 0xedc   :  { %7706 = vmatpush1.bf16.msra.mxu0 %v9989_v26  ;;  %v10073_v26 = vld [vmem:[%s11275_s21 + $0xc8] ss:$16 sps:$4 sm:$0xff]  }
 0xedd   :  { %7747 = vmatpush1.bf16.msra.mxu1 %v9992_v22  ;;  %7707 = vmatprep.subr.bf16.mxu0 %v9997_v23  ;;  %v10076_v22 = vld [vmem:[%s11275_s21 + $0x2c8] ss:$16 sps:$4 sm:$0xff]   ;;  %v10081_v23 = vld [vmem:[%s11275_s21 + $0xec] ss:$16 sps:$4 sm:$0xff]  }
 0xede   :  { %7748 = vmatprep.subr.bf16.mxu1 %v10000_v38  ;;  %v10084_v38 = vld [vmem:[%s11275_s21 + $0x2ec] ss:$16 sps:$4 sm:$0xff]  }
 0xee0   :  { %7708 = vmatpush1.bf16.msra.mxu0 %v9995_v40  ;;  %v10079_v40 = vld [vmem:[%s11275_s21 + $0xe8] ss:$16 sps:$4 sm:$0xff]  }
 0xee1   :  { %7749 = vmatpush1.bf16.msra.mxu1 %v9998_v47  ;;  %7709 = vmatprep.subr.bf16.mxu0 %v10003_v36  ;;  %v10082_v47 = vld [vmem:[%s11275_s21 + $0x2e8] ss:$16 sps:$4 sm:$0xff]   ;;  %v10087_v36 = vld [vmem:[%s11275_s21 + $0x10c] ss:$16 sps:$4 sm:$0xff]  }
 0xee2   :  { %7750 = vmatprep.subr.bf16.mxu1 %v10006_v54  ;;  %v10090_v54 = vld [vmem:[%s11275_s21 + $0x30c] ss:$16 sps:$4 sm:$0xff]  }
 0xee4   :  { %7710 = vmatpush1.bf16.msra.mxu0 %v10001_v53  ;;  %v10085_v53 = vld [vmem:[%s11275_s21 + $0x108] ss:$16 sps:$4 sm:$0xff]  }
 0xee5   :  { %7751 = vmatpush1.bf16.msra.mxu1 %v10004_v49  ;;  %7711 = vmatprep.subr.bf16.mxu0 %v10009_v62  ;;  %v10088_v49 = vld [vmem:[%s11275_s21 + $0x308] ss:$16 sps:$4 sm:$0xff]   ;;  %v10093_v62 = vld [vmem:[%s11275_s21 + $0x12c] ss:$16 sps:$4 sm:$0xff]  }
 0xee6   :  { %7752 = vmatprep.subr.bf16.mxu1 %v10012_v27  ;;  %v10096_v27 = vld [vmem:[%s11275_s21 + $0x32c] ss:$16 sps:$4 sm:$0xff]  }
 0xee8   :  { %7712 = vmatpush1.bf16.msra.mxu0 %v10007_v50  ;;  %v10091_v50 = vld [vmem:[%s11275_s21 + $0x128] ss:$16 sps:$4 sm:$0xff]  }
 0xee9   :  { %7753 = vmatpush1.bf16.msra.mxu1 %v10010_v48  ;;  %7713 = vmatprep.subr.bf16.mxu0 %v10015_v41  ;;  %v10094_v48 = vld [vmem:[%s11275_s21 + $0x328] ss:$16 sps:$4 sm:$0xff]   ;;  %v10099_v41 = vld [vmem:[%s11275_s21 + $0x14c] ss:$16 sps:$4 sm:$0xff]  }
 0xeea   :  { %7754 = vmatprep.subr.bf16.mxu1 %v10018_v45  ;;  %v10102_v45 = vld [vmem:[%s11275_s21 + $0x34c] ss:$16 sps:$4 sm:$0xff]  }
 0xeec   :  { %7714 = vmatpush1.bf16.msra.mxu0 %v10013_v57  ;;  %v10097_v57 = vld [vmem:[%s11275_s21 + $0x148] ss:$16 sps:$4 sm:$0xff]  }
 0xeed   :  { %7755 = vmatpush1.bf16.msra.mxu1 %v10016_v42  ;;  %7715 = vmatprep.subr.bf16.mxu0 %v10021_v63  ;;  %v10100_v42 = vld [vmem:[%s11275_s21 + $0x348] ss:$16 sps:$4 sm:$0xff]   ;;  %v10105_v63 = vld [vmem:[%s11275_s21 + $0x16c] ss:$16 sps:$4 sm:$0xff]  }
 0xeee   :  { %7756 = vmatprep.subr.bf16.mxu1 %v10024_v0  ;;  %v10108_v0 = vld [vmem:[%s11275_s21 + $0x36c] ss:$16 sps:$4 sm:$0xff]  }
 0xef0   :  { %7716 = vmatpush1.bf16.msra.mxu0 %v10019_v59  ;;  %v10103_v59 = vld [vmem:[%s11275_s21 + $0x168] ss:$16 sps:$4 sm:$0xff]  }
 0xef1   :  { %7757 = vmatpush1.bf16.msra.mxu1 %v10022_v52  ;;  %7717 = vmatprep.subr.bf16.mxu0 %v10027_v2  ;;  %v10106_v52 = vld [vmem:[%s11275_s21 + $0x368] ss:$16 sps:$4 sm:$0xff]   ;;  %v10111_v2 = vld [vmem:[%s11275_s21 + $0x18c] ss:$16 sps:$4 sm:$0xff]  }
 0xef2   :  { %7758 = vmatprep.subr.bf16.mxu1 %v10030_v3  ;;  %v10114_v3 = vld [vmem:[%s11275_s21 + $0x38c] ss:$16 sps:$4 sm:$0xff]  }
 0xef4   :  { %7718 = vmatpush1.bf16.msra.mxu0 %v10025_v4  ;;  %v10109_v4 = vld [vmem:[%s11275_s21 + $0x188] ss:$16 sps:$4 sm:$0xff]  }
 0xef5   :  { %7759 = vmatpush1.bf16.msra.mxu1 %v10028_v5  ;;  %7719 = vmatprep.subr.bf16.mxu0 %v10033_v37  ;;  %v10112_v5 = vld [vmem:[%s11275_s21 + $0x388] ss:$16 sps:$4 sm:$0xff]   ;;  %v10117_v37 = vld [vmem:[%s11275_s21 + $0x1ac] ss:$16 sps:$4 sm:$0xff]  }
 0xef6   :  { %7760 = vmatprep.subr.bf16.mxu1 %v10036_v8  ;;  %v10120_v8 = vld [vmem:[%s11275_s21 + $0x3ac] ss:$16 sps:$4 sm:$0xff]  }
 0xef8   :  { %7720 = vmatpush1.bf16.msra.mxu0 %v10031_v9  ;;  %v10115_v9 = vld [vmem:[%s11275_s21 + $0x1a8] ss:$16 sps:$4 sm:$0xff]  }
 0xef9   :  { %7761 = vmatpush1.bf16.msra.mxu1 %v10034_v10  ;;  %7771 = vmatprep.subr.bf16.mxu0 %v10039_v16  ;;  %v10118_v10 = vld [vmem:[%s11275_s21 + $0x3a8] ss:$16 sps:$4 sm:$0xff]   ;;  %v10123_v16 = vld [vmem:[%s11275_s21 + $0x1cc] ss:$16 sps:$4 sm:$0xff]  }
 0xefa   :  { %7812 = vmatprep.subr.bf16.mxu1 %v10042_v55  ;;  %v10126_v55 = vld [vmem:[%s11275_s21 + $0x3cc] ss:$16 sps:$4 sm:$0xff]  }
 0xefb   :  { %7722 = vmatmul.mubr.bf16.vlgmr.msra.gmra.mrb[40].mxu0 %v11106_v60 }
 0xefc   :  { %7763 = vmatmul.mubr.bf16.vlgmr.msra.gmra.mrb[44].mxu1 %v11177_v61  ;;  %7772 = vmatpush1.bf16.msra.mxu0 %v10037_v18  ;;  %v10121_v18 = vld [vmem:[%s11275_s21 + $0x1c8] ss:$16 sps:$4 sm:$0xff]  }
 0xefd   :  { %7803 = vmatprep.mubr.bf16.mxu0 %v11102_v39  ;;  %7813 = vmatpush1.bf16.msra.mxu1 %v10040_v19  ;;  %v10057_v39 = vld [vmem:[%s11275_s21 + $0x6c] ss:$16 sps:$4 sm:$0xff]   ;;  %v10124_v19 = vld [vmem:[%s11275_s21 + $0x3c8] ss:$16 sps:$4 sm:$0xff]  }
 0xefe   :  { %7844 = vmatprep.mubr.bf16.mxu1 %v11112_v46  ;;  %7773 = vmatprep.subr.bf16.mxu0 %v10045_v7  ;;  %v10055_v46 = vld [vmem:[%s11275_s21 + $0x68] ss:$16 sps:$4 sm:$0xff]   ;;  %v10129_v7 = vld [vmem:[%s11275_s21 + $0x1ec] ss:$16 sps:$4 sm:$0xff]  }
 0xeff   :  { %7814 = vmatprep.subr.bf16.mxu1 %v10048_v44  ;;  %v10132_v44 = vld [vmem:[%s11275_s21 + $0x3ec] ss:$16 sps:$4 sm:$0xff]  }
 0xf00   :  { %7774 = vmatpush1.bf16.msra.mxu0 %v10043_v24  ;;  %v10127_v24 = vld [vmem:[%s11275_s21 + $0x1e8] ss:$16 sps:$4 sm:$0xff]  }
 0xf01   :  { %7815 = vmatpush1.bf16.msra.mxu1 %v10046_v25  ;;  %7775 = vmatprep.subr.bf16.mxu0 %v10051_v33  ;;  %v10130_v25 = vld [vmem:[%s11275_s21 + $0x3e8] ss:$16 sps:$4 sm:$0xff]  }
 0xf02   :  { %7816 = vmatprep.subr.bf16.mxu1 %v10054_v34 }
 0xf04   :  { %7776 = vmatpush1.bf16.msra.mxu0 %v10049_v35 }
 0xf05   :  { %7817 = vmatpush1.bf16.msra.mxu1 %v10052_v51  ;;  %7777 = vmatprep.subr.bf16.mxu0 %v10057_v39 }
 0xf06   :  { %7818 = vmatprep.subr.bf16.mxu1 %v10060_v1 }
 0xf08   :  { %7778 = vmatpush1.bf16.msra.mxu0 %v10055_v46 }
 0xf09   :  { %7819 = vmatpush1.bf16.msra.mxu1 %v10058_v17  ;;  %7779 = vmatprep.subr.bf16.mxu0 %v10063_v14 }
 0xf0a   :  { %7820 = vmatprep.subr.bf16.mxu1 %v10066_v6 }
 0xf0c   :  { %7780 = vmatpush1.bf16.msra.mxu0 %v10061_v29 }
 0xf0d   :  { %7821 = vmatpush1.bf16.msra.mxu1 %v10064_v56  ;;  %7781 = vmatprep.subr.bf16.mxu0 %v10069_v28 }
 0xf0e   :  { %7822 = vmatprep.subr.bf16.mxu1 %v10072_v21 }
 0xf10   :  { %7782 = vmatpush1.bf16.msra.mxu0 %v10067_v32 }
 0xf11   :  { %7823 = vmatpush1.bf16.msra.mxu1 %v10070_v20  ;;  %7783 = vmatprep.subr.bf16.mxu0 %v10075_v11 }
 0xf12   :  { %7824 = vmatprep.subr.bf16.mxu1 %v10078_v13 }
 0xf14   :  { %7784 = vmatpush1.bf16.msra.mxu0 %v10073_v26 }
 0xf15   :  { %7825 = vmatpush1.bf16.msra.mxu1 %v10076_v22  ;;  %7785 = vmatprep.subr.bf16.mxu0 %v10081_v23 }
 0xf16   :  { %7826 = vmatprep.subr.bf16.mxu1 %v10084_v38 }
 0xf18   :  { %7786 = vmatpush1.bf16.msra.mxu0 %v10079_v40 }
 0xf19   :  { %7827 = vmatpush1.bf16.msra.mxu1 %v10082_v47  ;;  %7787 = vmatprep.subr.bf16.mxu0 %v10087_v36 }
 0xf1a   :  { %7828 = vmatprep.subr.bf16.mxu1 %v10090_v54 }
 0xf1c   :  { %7788 = vmatpush1.bf16.msra.mxu0 %v10085_v53 }
 0xf1d   :  { %7829 = vmatpush1.bf16.msra.mxu1 %v10088_v49  ;;  %7789 = vmatprep.subr.bf16.mxu0 %v10093_v62 }
 0xf1e   :  { %7830 = vmatprep.subr.bf16.mxu1 %v10096_v27 }
 0xf20   :  { %7790 = vmatpush1.bf16.msra.mxu0 %v10091_v50 }
 0xf21   :  { %7831 = vmatpush1.bf16.msra.mxu1 %v10094_v48  ;;  %7791 = vmatprep.subr.bf16.mxu0 %v10099_v41 }
 0xf22   :  { %7832 = vmatprep.subr.bf16.mxu1 %v10102_v45 }
 0xf24   :  { %7792 = vmatpush1.bf16.msra.mxu0 %v10097_v57 }
 0xf25   :  { %7833 = vmatpush1.bf16.msra.mxu1 %v10100_v42  ;;  %7793 = vmatprep.subr.bf16.mxu0 %v10105_v63 }
 0xf26   :  { %7834 = vmatprep.subr.bf16.mxu1 %v10108_v0 }
 0xf28   :  { %7794 = vmatpush1.bf16.msra.mxu0 %v10103_v59 }
 0xf29   :  { %7835 = vmatpush1.bf16.msra.mxu1 %v10106_v52  ;;  %7795 = vmatprep.subr.bf16.mxu0 %v10111_v2 }
 0xf2a   :  { %7836 = vmatprep.subr.bf16.mxu1 %v10114_v3 }
 0xf2c   :  { %7796 = vmatpush1.bf16.msra.mxu0 %v10109_v4 }
 0xf2d   :  { %7837 = vmatpush1.bf16.msra.mxu1 %v10112_v5  ;;  %7797 = vmatprep.subr.bf16.mxu0 %v10117_v37 }
 0xf2e   :  { %7838 = vmatprep.subr.bf16.mxu1 %v10120_v8 }
 0xf30   :  { %7798 = vmatpush1.bf16.msra.mxu0 %v10115_v9 }
 0xf31   :  { %7839 = vmatpush1.bf16.msra.mxu1 %v10118_v10  ;;  %7799 = vmatprep.subr.bf16.mxu0 %v10123_v16 }
 0xf32   :  { %7840 = vmatprep.subr.bf16.mxu1 %v10126_v55 }
 0xf34   :  { %7800 = vmatpush1.bf16.msra.mxu0 %v10121_v18 }
 0xf35   :  { %7841 = vmatpush1.bf16.msra.mxu1 %v10124_v19  ;;  %7801 = vmatprep.subr.bf16.mxu0 %v10129_v7 }
 0xf36   :  { %7842 = vmatprep.subr.bf16.mxu1 %v10132_v44 }
 0xf38   :  { %7802 = vmatpush1.bf16.msra.mxu0 %v10127_v24 }
 0xf39   :  { %7843 = vmatpush1.bf16.msra.mxu1 %v10130_v25 }
 0xf3b   :  { %7804 = vmatmul.mubr.bf16.vlgmr.msra.gmra.mrb[44].mxu0 %v11106_v60 }
 0xf3c   :  { %7845 = vmatmul.mubr.bf16.vlgmr.msra.gmra.mrb[48].mxu1 %v11177_v61 }
 0xf8e   :  { %v11516_v33 = vpop.f32.mrb[36].mxu0  ;;  %v11518_v34 = vpop.f32.mrb[40].mxu1 }
 0xf8f   :  { %v6843_v35 = vsel %vm694_vm3, %v11516_v33, 0.0  ;;  %v6875_v51 = vmul.f32 %v11516_v33, %v11516_v33  ;;  %v6857_v39 = vsel %vm694_vm3, %v11518_v34, 0.0  ;;  %v6877_v1 = vmul.f32 %v11518_v34, %v11518_v34  ;;  %v11528_v46 = vpop.f32.mrb[37].mxu0  ;;  %v11530_v60 = vpop.f32.mrb[41].mxu1 }
 0xf90   :  { %v6844_v61 = vrot.slane %v6843_v35, 4  ;;  %v6858_v17 = vrot.slane %v6857_v39, 4  ;;  %v6850_v14 = vsel %vm694_vm3, %v11528_v46, 0.0  ;;  %v6876_v6 = vmul.f32 %v11528_v46, %v11528_v46  ;;  %v6758_v29 = vpop.f32.mrb[38].mxu0  ;;  %v6840_v56 = vpop.f32.mrb[42].mxu1 }
 0xf91   :  { %v6879_v28 = vsel %vm694_vm3, %v6875_v51, 0.0  ;;  %v6893_v21 = vsel %vm694_vm3, %v6877_v1, 0.0  ;;  %v6851_v32 = vrot.slane %v6850_v14, 4  ;;  %v6864_v20 = vsel %vm694_vm3, %v11530_v60, 0.0  ;;  %v6759_v11 = vpop.f32.mrb[39].mxu0  ;;  %v6841_v13 = vpop.f32.mrb[43].mxu1 }
 0xf92   :  { %v6845_v26 = vadd.f32 %v6844_v61, %v6843_v35  ;;  %v6880_v22 = vrot.slane %v6879_v28, 4  ;;  %v6859_v23 = vadd.f32 %v6858_v17, %v6857_v39  ;;  %v6894_v38 = vrot.slane %v6893_v21, 4 }
 0xf93   :  { %v6852_v40 = vadd.f32 %v6851_v32, %v6850_v14  ;;  %v6886_v47 = vsel %vm694_vm3, %v6876_v6, 0.0  ;;  %v6865_v36 = vrot.slane %v6864_v20, 4  ;;  %v6878_v54 = vmul.f32 %v11530_v60, %v11530_v60 }
 0xf94   :  { %v6846_v53 = vrot.slane %v6845_v26, 2  ;;  %v6881_v49 = vadd.f32 %v6880_v22, %v6879_v28  ;;  %v6860_v62 = vrot.slane %v6859_v23, 2  ;;  %v6895_v27 = vadd.f32 %v6894_v38, %v6893_v21 }
 0xf95   :  { %v6853_v50 = vrot.slane %v6852_v40, 2  ;;  %v6887_v48 = vrot.slane %v6886_v47, 4  ;;  %v6866_v41 = vadd.f32 %v6865_v36, %v6864_v20  ;;  %v6900_v45 = vsel %vm694_vm3, %v6878_v54, 0.0 }
 0xf96   :  { %v6847_v57 = vadd.f32 %v6846_v53, %v6845_v26  ;;  %v6882_v42 = vrot.slane %v6881_v49, 2  ;;  %v6861_v63 = vadd.f32 %v6860_v62, %v6859_v23  ;;  %v6896_v0 = vrot.slane %v6895_v27, 2 }
 0xf97   :  { %v6854_v59 = vadd.f32 %v6853_v50, %v6852_v40  ;;  %v6888_v52 = vadd.f32 %v6887_v48, %v6886_v47  ;;  %v6867_v2 = vrot.slane %v6866_v41, 2  ;;  %v6901_v3 = vrot.slane %v6900_v45, 4 }
 0xf98   :  { %v6848_v4 = vrot.slane %v6847_v57, 1  ;;  %v6883_v5 = vadd.f32 %v6882_v42, %v6881_v49  ;;  %v6862_v37 = vrot.slane %v6861_v63, 1  ;;  %v6897_v8 = vadd.f32 %v6896_v0, %v6895_v27 }
 0xf99   :  { %v6855_v9 = vrot.slane %v6854_v59, 1  ;;  %v6889_v10 = vrot.slane %v6888_v52, 2  ;;  %v6868_v16 = vadd.f32 %v6867_v2, %v6866_v41  ;;  %v6902_v55 = vadd.f32 %v6901_v3, %v6900_v45 }
 0xf9a   :  { %v6849_v18 = vadd.f32 %v6848_v4, %v6847_v57  ;;  %v6884_v19 = vrot.slane %v6883_v5, 1  ;;  %v6863_v7 = vadd.f32 %v6862_v37, %v6861_v63  ;;  %v6898_v44 = vrot.slane %v6897_v8, 1 }
 0xf9b   :  { %v6856_v24 = vadd.f32 %v6855_v9, %v6854_v59  ;;  %v6890_v25 = vadd.f32 %v6889_v10, %v6888_v52  ;;  %v6869_v35 = vrot.slane %v6868_v16, 1  ;;  %v6903_v51 = vrot.slane %v6902_v55, 2  ;;  %v10195_v9 = vld [vmem:[%s11288_s25] sm:$0xf] }
 0xf9c   :  { %v6871_v39 = vmul.f32 0.5, %v6849_v18  ;;  %v6885_v1 = vadd.f32 %v6884_v19, %v6883_v5  ;;  %v6873_v61 = vmul.f32 0.5, %v6863_v7  ;;  %v6899_v17 = vadd.f32 %v6898_v44, %v6897_v8 }
 0xf9d   :  { %v6872_v14 = vmul.f32 0.5, %v6856_v24  ;;  %v6891_v6 = vrot.slane %v6890_v25, 1  ;;  %v6870_v29 = vadd.f32 %v6869_v35, %v6868_v16  ;;  %v6904_v56 = vadd.f32 %v6903_v51, %v6902_v55 }
 0xf9e   :  { %v6907_v28 = vmul.f32 0.5, %v6885_v1  ;;  %v6911_v21 = vmul.f32 %v6871_v39, %v6871_v39  ;;  %v6909_v32 = vmul.f32 0.5, %v6899_v17  ;;  %v6913_v20 = vmul.f32 %v6873_v61, %v6873_v61 }
 0xf9f   :  { %v6892_v11 = vadd.f32 %v6891_v6, %v6890_v25  ;;  %v6912_v13 = vmul.f32 %v6872_v14, %v6872_v14  ;;  %v6874_v26 = vmul.f32 0.5, %v6870_v29  ;;  %v6905_v22 = vrot.slane %v6904_v56, 1 }
 0xfa0   :  { %v6915_v23 = vsub.f32 %v6907_v28, %v6911_v21  ;;  %v6917_v38 = vsub.f32 %v6909_v32, %v6913_v20 }
 0xfa1   :  { %v6908_v40 = vmul.f32 0.5, %v6892_v11  ;;  %v6906_v47 = vadd.f32 %v6905_v22, %v6904_v56  ;;  %v6914_v36 = vmul.f32 %v6874_v26, %v6874_v26 }
 0xfa2   :  { %v6919_v54 = vmax.f32 %v6915_v23, 0.0  ;;  %v6921_v53 = vmax.f32 %v6917_v38, 0.0 }
 0xfa3   :  { %v6916_v49 = vsub.f32 %v6908_v40, %v6912_v13  ;;  %v6910_v62 = vmul.f32 0.5, %v6906_v47  ;;  %v5018_v13 = vld [vmem:[%s7947_s3] sm:$0xf] }
 0xfa4   :  { %v6923_v27 = vadd.f32 1e-05, %v6919_v54  ;;  %v6925_v50 = vadd.f32 1e-05, %v6921_v53 }
 0xfa5   :  { %v6920_v48 = vmax.f32 %v6916_v49, 0.0  ;;  %v6918_v41 = vsub.f32 %v6910_v62, %v6914_v36 }
 0xfa6   :  { %10185 = vrsqrt.f32 %v6923_v27  ;;  %v7861_v27 = vrot.slane %v5018_v13, %v10305_v58 }
 0xfa7   :  { %v6924_v45 = vadd.f32 1e-05, %v6920_v48  ;;  %v6922_v57 = vmax.f32 %v6918_v41, 0.0  ;;  %10187 = vrsqrt.f32 %v6925_v50  ;;  %v7865_v48 = vrot.slane %v5018_v13, %v10512_v43 }
 0xfa9   :  { %10189 = vrsqrt.f32 %v6924_v45  ;;  %v6926_v42 = vadd.f32 1e-05, %v6922_v57 }
 0xfab   :  { %10191 = vrsqrt.f32 %v6926_v42 }
 0xfb0   :  { %v10186_v63 = vpop.eup %10185 }
 0xfb1   :  { %v10188_v0 = vpop.eup %10187 }
 0xfb3   :  { %v10190_v59 = vpop.eup %10189 }
 0xfb4   :  { %v6935_v52 = vcombine.low %v10186_v63, %v10190_v59 }
 0xfb5   :  { %v10192_v2 = vpop.eup %10191 }
 0xfb6   :  { %v6936_v3 = vcombine.low %v10188_v0, %v10192_v2  ;;  %v6943_v4 = vrot.slane %v6935_v52, %v10266_v15  ;;  %v10238_v2 = vmov 1983009808  }
 0xfb8   :  { %v6950_v5 = vrot.slane %v6936_v3, %v10266_v15  ;;  %v7893_v3 = vunpack.c.l.s4 %v10238_v2 }
 0xfba   :  { %v6951_v37 = vcombine.low %v6943_v4, %v6950_v5 }
 0xfbc   :  { %v6958_v8 = vrot.slane %v6951_v37, %v10266_v15 }
 0xfbe   :  { %v6960_v10 = vmul.f32 %v10195_v9, %v6958_v8  ;;  %v7869_v9 = vrot.slane %v5018_v13, %v10890_v30 }
 0xfc0   :  { %v6977_v16 = vrot.slane %v6960_v10, %v10893_v31  ;;  %v6965_v55 = vrot.slane %v6960_v10, %v10305_v58  ;;  %v6969_v18 = vrot.slane %v6960_v10, %v10512_v43  ;;  %v6973_v19 = vrot.slane %v6960_v10, %v10890_v30 }
 0xfc2   :  { %v6985_v7 = vmul.f32 %v6977_v16, %v6874_v26  ;;  %v7019_v44 = vmul.f32 %v6977_v16, %v11530_v60  ;;  %v6982_v24 = vmul.f32 %v6965_v55, %v6871_v39  ;;  %v6983_v25 = vmul.f32 %v6969_v18, %v6872_v14 }
 0xfc3   :  { %v6984_v35 = vmul.f32 %v6973_v19, %v6873_v61  ;;  %v7016_v51 = vmul.f32 %v6965_v55, %v11516_v33  ;;  %v7017_v1 = vmul.f32 %v6969_v18, %v11528_v46  ;;  %v7018_v17 = vmul.f32 %v6973_v19, %v11518_v34  ;;  %v10196_v61 = vld [vmem:[%s11302_s29] sm:$0xf] }
 0xfc4   :  { %v6990_v6 = vcombine.low %v6982_v24, %v6983_v25  ;;  %v7873_v55 = vrot.slane %v5018_v13, %v10893_v31  ;;  %v7894_v24 = vunpack.c.0.s8 %v7893_v3 }
 0xfc5   :  { %v6991_v29 = vcombine.low %v6984_v35, %v6985_v7 }
 0xfc6   :  { %v6998_v56 = vrot.slane %v6990_v6, %v10266_v15 }
 0xfc7   :  { %v7005_v28 = vrot.slane %v6991_v29, %v10266_v15 }
 0xfc9   :  { %v7006_v60 = vcombine.low %v6998_v56, %v7005_v28 }
 0xfcb   :  { %v7013_v39 = vrot.slane %v7006_v60, %v10266_v15 }
 0xfcd   :  { %v7015_v33 = vsub.f32 %v10196_v61, %v7013_v39 }
 0xfce   :  { %v7723_v14 = vpop.f32.mrb[40].mxu0 }
 0xfcf   :  { %v7024_v46 = vrot.slane %v7015_v33, %v10305_v58  ;;  %v7764_v34 = vpop.f32.mrb[44].mxu1  ;;  %v7725_v21 = vpop.f32.mrb[41].mxu0  ;;  %v7028_v32 = vrot.slane %v7015_v33, %v10512_v43  ;;  %v7032_v20 = vrot.slane %v7015_v33, %v10890_v30  ;;  %v7036_v11 = vrot.slane %v7015_v33, %v10893_v31 }
 0xfd0   :  { %v7765_v26 = vadd.f32 %v7764_v34, %v7723_v14  ;;  %v7766_v22 = vpop.f32.mrb[45].mxu1  ;;  %v7727_v23 = vpop.f32.mrb[42].mxu0 }
 0xfd1   :  { %v7041_v38 = vadd.f32 %v7024_v46, %v7016_v51  ;;  %v7042_v40 = vadd.f32 %v7028_v32, %v7017_v1  ;;  %v7767_v15 = vadd.f32 %v7766_v22, %v7725_v21  ;;  %v7768_v47 = vpop.f32.mrb[46].mxu1  ;;  %v7728_v36 = vpop.f32.mrb[43].mxu0  ;;  %v7043_v54 = vadd.f32 %v7032_v20, %v7018_v17 }
 0xfd2   :  { %v7769_v53 = vpop.f32.mrb[47].mxu1  ;;  %v7044_v49 = vadd.f32 %v7036_v11, %v7019_v44  ;;  %v7897_v17 = vsub.s32 %v7894_v24, %v10261_v12 }
 0xfd3   :  { %v7045_v62 = vmax.f32 %v7041_v38, 0.0  ;;  %v7046_v50 = vmax.f32 %v7042_v40, 0.0  ;;  %v7047_v37 = vmax.f32 %v7043_v54, 0.0 }
 0xfd4   :  { %v7048_v16 = vmax.f32 %v7044_v49, 0.0 }
 0xfd5   :  { %v7853_v41 = vadd.f32 %v7765_v26, %v7045_v62  ;;  %v7854_v45 = vadd.f32 %v7767_v15, %v7046_v50 }
 0xfd7   :  { %v7878_v57 = vadd.f32 %v7861_v27, %v7853_v41  ;;  %v7879_v42 = vadd.f32 %v7865_v48, %v7854_v45 }
 0xfd9   :  { %v7882_v63 = vmax.f32 %v7878_v57, 0.0  ;;  %v7883_v0 = vmax.f32 %v7879_v42, 0.0 }
 0xfdb   :  { %v7890_v59 = vcombine.low %v7882_v63, %v7883_v0 }
 0xfdd   :  { %v7898_v29 = vrot.slane %v7890_v59, %v7897_v17 }
0x100e   :  { %v7805_v52 = vpop.f32.mrb[44].mxu0 }
0x100f   :  { %v7846_v4 = vpop.f32.mrb[48].mxu1  ;;  %v7807_v5 = vpop.f32.mrb[45].mxu0 }
0x1010   :  { %v7847_v8 = vadd.f32 %v7846_v4, %v7805_v52  ;;  %v7848_v58 = vpop.f32.mrb[49].mxu1  ;;  %v7809_v10 = vpop.f32.mrb[46].mxu0 }
0x1011   :  { %v7849_v43 = vadd.f32 %v7848_v58, %v7807_v5  ;;  %v7850_v18 = vpop.f32.mrb[50].mxu1  ;;  %v7810_v19 = vpop.f32.mrb[47].mxu0 }
0x1012   :  { %v7855_v7 = vadd.f32 %v7847_v8, %v7047_v37  ;;  %v7851_v44 = vpop.f32.mrb[51].mxu1 }
0x1013   :  { %v7856_v25 = vadd.f32 %v7849_v43, %v7048_v16 }
0x1014   :  { %v7880_v35 = vadd.f32 %v7869_v9, %v7855_v7 }
0x1015   :  { %v7881_v51 = vadd.f32 %v7873_v55, %v7856_v25 }
0x1016   :  { %v7884_v1 = vmax.f32 %v7880_v35, 0.0 }
0x1017   :  { %v7885_v30 = vmax.f32 %v7881_v51, 0.0 }
0x1019   :  { %v7891_v6 = vcombine.low %v7884_v1, %v7885_v30 }
0x101b   :  { %v7905_v31 = vrot.slane %v7891_v6, %v7897_v17 }
0x101d   :  { %v7906_v56 = vcombine.low %v7898_v29, %v7905_v31 }
0x101f   :  { %7908 = vst [vmem:[%s7950_s7] sm:$0xff] %v7906_v56 }

</bundles_post_ra>
